<compile_context>
chip_gen: v5e
topology: v5e:2x2
jax: 0.10.0
libtpu: 0.0.40
codegen_flags: <defaults>
</compile_context>

<pallas_src>
import math

import jax
import jax.numpy as jnp
from jax.experimental import pallas as pl
from jax.experimental.pallas import tpu as pltpu

# --- model hyper-parameters (match VisionTransformer defaults) ---
EMB = 64
FF_HIDDEN = EMB * 4
NUM_CLASSES = 2
HEAD_HIDDEN = 16
NUM_HEADS = 1            # head_dim == EMB
LN_EPS = 1e-5

# --- input geometry: num_node * (feature_dim // 3) must equal 304, the
#     hard-coded num_patches of the reference module ---
BATCH = 2
NUM_NODE = 19
FEATURE_DIM = 48         # L_out = 48 // 3 = 16  ->  19 * 16 = 304 patches
NUM_PATCHES = NUM_NODE * (FEATURE_DIM // 3)

NUM_S_BLOCKS = 2         # grid over the patch axis (v7x: one block per core)

# rows of the packed (8, EMB) small-parameter input
_R_BO, _R_G1, _R_BE1, _R_BFF2 = 0, 1, 2, 3


# ------------------------------------------------------------------- kernel --

def fused_vit_kernel(patches_ref, pos_ref, vece_ref, bwide_ref,
                     wpe_ref, wqkv_ref, wo_ref, wff1_ref, wff2_ref, out_ref):
    SB, E = pos_ref.shape                   # patches in this S-block, emb dim
    BSB = patches_ref.shape[0]              # B * SB
    B = BSB // SB
    FF = wff1_ref.shape[1]

    f32, bf16 = jnp.float32, jnp.bfloat16

    vec = vece_ref[...]                     # (8, E)   packed small params
    bwide = bwide_ref[...]                  # (2, 256) packed wide biases

    def row(r):
        return vec[r:r + 1, :]              # (1, E)

    def layernorm(v, g, b):
        mu = jnp.mean(v, axis=-1, keepdims=True)
        var = jnp.mean((v - mu) ** 2, axis=-1, keepdims=True)
        return (v - mu) * jax.lax.rsqrt(var + LN_EPS) * g + b

    def mm_bf16(a, w_ref, bias):            # bf16 MXU, f32 accumulation
        return jnp.dot(a.astype(bf16), w_ref[...], preferred_element_type=f32) + bias

    # ---- patch embedding: Conv1d(k=3, s=3) as ONE (BSB, 8) @ (8, E) MXU matmul.
    #      Lane 3 of each patch row is 1.0 and weight row 3 holds conv bias, so
    #      the bias is folded into the matmul.  Kept f32 (tiny K=8 matmul). ----
    emb = jnp.dot(patches_ref[...], wpe_ref[...], preferred_element_type=f32)
    emb = jnp.maximum(emb, 0.0)             # ReLU *before* pos (matches ref)

    # ---- positional encoding: per-batch add on aligned row slices (no
    #      duplicated (B*SB, E) pos copy is materialized) ----
    pos = pos_ref[...]
    tok = jnp.concatenate(
        [emb[b * SB:(b + 1) * SB, :] + pos for b in range(B)], axis=0)   # (BSB, E)

    # ---- fused, pre-folded QKV projection (192 output lanes, no zero pad).
    #      Kept f32: the weights are trace-time compositions (Wq@Wiq etc.) and
    #      the matmul is small, so f32 MXU cost is negligible. ----
    qkv = jnp.dot(tok, wqkv_ref[...], preferred_element_type=f32) + bwide[0:1, 0:3 * E]
    q = qkv[:, 0:E]                          # already 1/sqrt(E)-scaled
    k = qkv[:, E:2 * E]
    v = qkv[:, 2 * E:3 * E]

    # ---- attention over the *batch* axis (nn.MultiheadAttention defaults to
    #      batch_first=False, so it sees (L=B, N=S, E)): per position s the
    #      softmax runs over the B "time steps"; independent per position, so
    #      the S-grid split is exact.  B is tiny -> VPU work. ----
    qs = [q[b * SB:(b + 1) * SB, :] for b in range(B)]
    ks = [k[b * SB:(b + 1) * SB, :] for b in range(B)]
    vs = [v[b * SB:(b + 1) * SB, :] for b in range(B)]
    attn_rows = []
    for i in range(B):
        sc = [jnp.sum(qs[i] * ks[j], axis=-1, keepdims=True) for j in range(B)]
        m = sc[0]
        for j in range(1, B):
            m = jnp.maximum(m, sc[j])
        es = [jnp.exp(s - m) for s in sc]
        den = es[0]
        for j in range(1, B):
            den = den + es[j]
        inv = 1.0 / den
        acc = (es[0] * inv) * vs[0]
        for j in range(1, B):
            acc = acc + (es[j] * inv) * vs[j]
        attn_rows.append(acc)                # (SB, E)
    attn = jnp.concatenate(attn_rows, axis=0)  # (BSB, E)

    # ---- out-proj + residual + LN1, feed-forward + residual + LN2 ----
    o = mm_bf16(attn, wo_ref, row(_R_BO))
    n1 = layernorm(o + tok, row(_R_G1), row(_R_BE1))
    h = jnp.maximum(mm_bf16(n1, wff1_ref, bwide[1:2, 0:FF]), 0.0)   # (BSB, FF)
    f = mm_bf16(h, wff2_ref, row(_R_BFF2))

    # LN2 *without* affine: g2/be2 are folded into the head weights outside.
    y = f + n1
    mu = jnp.mean(y, axis=-1, keepdims=True)
    var = jnp.mean((y - mu) ** 2, axis=-1, keepdims=True)
    n2 = (y - mu) * jax.lax.rsqrt(var + LN_EPS)

    # ---- per-block pooled partial sums; mean + MLP head finish in the wrapper ----
    out_ref[...] = jnp.concatenate(
        [jnp.sum(n2[b * SB:(b + 1) * SB, :], axis=0, keepdims=True) for b in range(B)],
        axis=0)                              # (B, E)


# ------------------------------------------------------------------ wrapper --

def _pack_params(params):
    """Trace-time weight folding & packing (plain jnp, runs outside the kernel)."""
    E = EMB
    f32, bf16 = jnp.float32, jnp.bfloat16
    blk, head = params["block"], params["head"]
    scale = 1.0 / math.sqrt(E)                         # num_heads=1 -> head_dim=E

    wiq, wik, wiv = (blk["in_proj_w"][0:E], blk["in_proj_w"][E:2 * E],
                     blk["in_proj_w"][2 * E:3 * E])
    biq, bik, biv = (blk["in_proj_b"][0:E], blk["in_proj_b"][E:2 * E],
                     blk["in_proj_b"][2 * E:3 * E])

    # Fold query/keys Linear layers with the attention in-projection and the
    # 1/sqrt(E) scale (mathematically identical to the chained layers).
    wq_eff = scale * (blk["wq"].T @ wiq.T)
    bq_eff = scale * (blk["bq"] @ wiq.T + biq)
    wk_eff = blk["wk"].T @ wik.T
    bk_eff = blk["bk"] @ wik.T + bik
    wv_eff = wiv.T
    bv_eff = biv

    # Compact fused QKV weight: Q at 0:E, K at E:2E, V at 2E:3E (192 lanes).
    wqkv = jnp.concatenate([wq_eff, wk_eff, wv_eff], axis=1).astype(f32)   # (E, 3E)
    bqkv = jnp.concatenate([bq_eff, bk_eff, bv_eff]).astype(f32)           # (3E,)

    # Patch-embedding weight as an (8, E) matmul operand: rows 0:3 = conv taps,
    # row 3 = conv bias (matched by the constant 1.0 lane in the patch buffer).
    wpe = jnp.zeros((8, E), f32)
    wpe = wpe.at[0:3].set(params["conv_w"][:, 0, :].T)
    wpe = wpe.at[3].set(params["conv_b"])

    # Pack remaining (E,)-sized vectors into one (8, E) array.
    vece = jnp.zeros((8, E), f32)
    vece = vece.at[_R_BO].set(blk["bo"])
    vece = vece.at[_R_G1].set(blk["g1"])
    vece = vece.at[_R_BE1].set(blk["be1"])
    vece = vece.at[_R_BFF2].set(blk["b2"])

    # Wide biases: row 0 = fused QKV bias (192 lanes), row 1 = FF1 bias (256).
    bwide = jnp.zeros((2, 256), f32)
    bwide = bwide.at[0, 0:3 * E].set(bqkv)
    bwide = bwide.at[1, 0:FF_HIDDEN].set(blk["b1"])

    # Head with the LN2 affine folded in (runs in f32 in the wrapper epilogue):
    #   mean(n2_norm*g2 + be2) @ W1^T + b1 == mean(n2_norm) @ (diag(g2)W1^T) + (W1 be2 + b1)
    wh1_eff = blk["g2"][:, None] * head["w1"].T        # (E, 16)
    bh1_eff = head["b1"] + head["w1"] @ blk["be2"]     # (16,)
    wh2 = head["w2"].T                                 # (16, NUM_CLASSES)
    bh2 = head["b2"]

    kernel_args = (vece, bwide, wpe, wqkv,
                   blk["wo"].T.astype(bf16),
                   blk["w1"].T.astype(bf16), blk["w2"].T.astype(bf16))
    head_args = (wh1_eff, bh1_eff, wh2, bh2)
    return kernel_args, head_args


def vision_transformer_forward(x, params):
    B, num_node, feat = x.shape
    l_out = (feat - 3) // 3 + 1
    S = num_node * l_out
    assert S % NUM_S_BLOCKS == 0
    SB = S // NUM_S_BLOCKS
    assert SB % 8 == 0

    # Conv1d(kernel=3, stride=3) == non-overlapping length-3 windows; pad to 8
    # lanes with a constant 1.0 lane so the conv bias folds into the matmul.
    windows = x[..., : l_out * 3].reshape(B, S, 3)
    pat = jnp.zeros((B, S, 8), jnp.float32)
    pat = pat.at[..., 0:3].set(windows)
    pat = pat.at[..., 3].set(1.0)
    # Re-group rows so each grid step gets one contiguous S-block for all batches:
    # pat_blocked[i, b*SB + s] = pat[b, i*SB + s]
    pat_blocked = (pat.reshape(B, NUM_S_BLOCKS, SB, 8)
                   .transpose(1, 0, 2, 3)
                   .reshape(NUM_S_BLOCKS, B * SB, 8))

    kernel_args, (wh1, bh1, wh2, bh2) = _pack_params(params)

    grid_spec = pltpu.PrefetchScalarGridSpec(
        num_scalar_prefetch=0,
        grid=(NUM_S_BLOCKS,),
        in_specs=[
            pl.BlockSpec((None, B * SB, 8), lambda i: (i, 0, 0)),   # patches
            pl.BlockSpec((SB, EMB), lambda i: (i, 0)),              # pos enc
            pl.BlockSpec((8, EMB), lambda i: (0, 0)),               # vece
            pl.BlockSpec((2, 256), lambda i: (0, 0)),               # wide biases
            pl.BlockSpec((8, EMB), lambda i: (0, 0)),               # patch-embed W
            pl.BlockSpec((EMB, 3 * EMB), lambda i: (0, 0)),         # fused QKV W
            pl.BlockSpec((EMB, EMB), lambda i: (0, 0)),             # out-proj W
            pl.BlockSpec((EMB, FF_HIDDEN), lambda i: (0, 0)),       # FF1 W
            pl.BlockSpec((FF_HIDDEN, EMB), lambda i: (0, 0)),       # FF2 W
        ],
        out_specs=pl.BlockSpec((None, B, EMB), lambda i: (i, 0, 0)),
    )

    partials = pl.pallas_call(
        fused_vit_kernel,
        out_shape=jax.ShapeDtypeStruct((NUM_S_BLOCKS, B, EMB), jnp.float32),
        grid_spec=grid_spec,
        compiler_params=pltpu.CompilerParams(
            dimension_semantics=("parallel",)),
    )(pat_blocked, params["pos"], *kernel_args)

    # Tiny f32 epilogue: mean over all S patches + LN2-affine-folded MLP head.
    pooled = jnp.sum(partials, axis=0) * (1.0 / S)     # (B, E)
    hh = jax.nn.relu(pooled @ wh1 + bh1)
    return hh @ wh2 + bh2


# ---------------------------------------------------- pure-JAX reference -----

def ref_forward(x, params):
    B, num_node, feat = x.shape
    E = EMB
    l_out = (feat - 3) // 3 + 1
    blk, head = params["block"], params["head"]

    w = params["conv_w"][:, 0, :]                                    # (E, 3)
    patches = x[..., : l_out * 3].reshape(B, num_node * l_out, 3)
    tok = jax.nn.relu(jnp.einsum("bpt,et->bpe", patches, w) + params["conv_b"])
    tok = tok + params["pos"][None]

    q = tok @ blk["wq"].T + blk["bq"]
    k = tok @ blk["wk"].T + blk["bk"]
    wiq, wik, wiv = (blk["in_proj_w"][0:E], blk["in_proj_w"][E:2 * E],
                     blk["in_proj_w"][2 * E:3 * E])
    biq, bik, biv = (blk["in_proj_b"][0:E], blk["in_proj_b"][E:2 * E],
                     blk["in_proj_b"][2 * E:3 * E])
    qp = (q @ wiq.T + biq) / math.sqrt(E)
    kp = k @ wik.T + bik
    vp = tok @ wiv.T + biv
    scores = jnp.einsum("bse,cse->sbc", qp, kp)       # attention over batch axis
    att = jax.nn.softmax(scores, axis=-1)
    ao = jnp.einsum("sbc,cse->bse", att, vp)
    o = ao @ blk["wo"].T + blk["bo"]

    def ln(v, g, b):
        mu = jnp.mean(v, axis=-1, keepdims=True)
        var = jnp.mean((v - mu) ** 2, axis=-1, keepdims=True)
        return (v - mu) * jax.lax.rsqrt(var + LN_EPS) * g + b

    n1 = ln(o + tok, blk["g1"], blk["be1"])
    hft = jax.nn.relu(n1 @ blk["w1"].T + blk["b1"])
    n2 = ln(hft @ blk["w2"].T + blk["b2"] + n1, blk["g2"], blk["be2"])
    pooled = jnp.mean(n2, axis=1)
    hh = jax.nn.relu(pooled @ head["w1"].T + head["b1"])
    return hh @ head["w2"].T + head["b2"]


# ------------------------------------------------------------------- params --

def create_positional_encoding(num_positions, emb_size):
    position = jnp.arange(num_positions, dtype=jnp.float32)[:, None]
    div_term = jnp.exp(jnp.arange(0, emb_size, 2, dtype=jnp.float32)
                       * (-(math.log(10000.0) / emb_size)))
    pe = jnp.zeros((num_positions, emb_size), jnp.float32)
    pe = pe.at[:, 0::2].set(jnp.sin(position * div_term))
    pe = pe.at[:, 1::2].set(jnp.cos(position * div_term))
    return pe


def init_params(key):
    keys = jax.random.split(key, 12)

    def lin(k, out_dim, in_dim):
        kw, kb = jax.random.split(k)
        return (jax.random.normal(kw, (out_dim, in_dim), jnp.float32) * 0.05,
                jax.random.normal(kb, (out_dim,), jnp.float32) * 0.05)

    conv_w = jax.random.normal(keys[0], (EMB, 1, 3), jnp.float32) * 0.05
    conv_b = jax.random.normal(keys[1], (EMB,), jnp.float32) * 0.05

    wq, bq = lin(keys[2], EMB, EMB)
    wk, bk = lin(keys[3], EMB, EMB)
    in_proj_w = jax.random.normal(keys[4], (3 * EMB, EMB), jnp.float32) * 0.05
    in_proj_b = jax.random.normal(keys[5], (3 * EMB,), jnp.float32) * 0.05
    wo, bo = lin(keys[6], EMB, EMB)
    w1, b1 = lin(keys[7], FF_HIDDEN, EMB)
    w2, b2 = lin(keys[8], EMB, FF_HIDDEN)

    hw1, hb1 = lin(keys[9], HEAD_HIDDEN, EMB)
    hw2, hb2 = lin(keys[10], NUM_CLASSES, HEAD_HIDDEN)

    # cls_token exists in the reference __init__ but is unused in forward.
    return {
        "conv_w": conv_w, "conv_b": conv_b,
        "pos": create_positional_encoding(NUM_PATCHES, EMB),
        "block": {
            "wq": wq, "bq": bq, "wk": wk, "bk": bk,
            "in_proj_w": in_proj_w, "in_proj_b": in_proj_b,
            "wo": wo, "bo": bo,
            "g1": jnp.ones((EMB,), jnp.float32), "be1": jnp.zeros((EMB,), jnp.float32),
            "w1": w1, "b1": b1, "w2": w2, "b2": b2,
            "g2": jnp.ones((EMB,), jnp.float32), "be2": jnp.zeros((EMB,), jnp.float32),
        },
        "head": {"w1": hw1, "b1": hb1, "w2": hw2, "b2": hb2},
    }


# --------------------------------------------------------------------- main --

if __name__ == "__main__":
    root = jax.random.PRNGKey(0)
    kx, kp = jax.random.split(root)
    x = jax.random.normal(kx, (BATCH, NUM_NODE, FEATURE_DIM), jnp.float32)
    params = init_params(kp)

    logits = jax.block_until_ready(jax.jit(vision_transformer_forward)(x, params))
    ref = jax.block_until_ready(jax.jit(ref_forward)(x, params))

    assert logits.shape == (BATCH, NUM_CLASSES)
    assert bool(jnp.all(jnp.isfinite(logits)))
    # bf16 MXU operands on the large matmuls + trace-time weight folding.
    assert bool(jnp.allclose(logits, ref, rtol=3e-2, atol=3e-2))
    print("KERNEL_OK")
</pallas_src>

<mosaic_0001>
module attributes {stable_mosaic.version = 11 : i64} {
  func.func @fused_vit_kernel(%arg0: i32, %arg1: memref<1x304x8xf32, #tpu.memory_space<vmem>>, %arg2: memref<152x64xf32, #tpu.memory_space<vmem>>, %arg3: memref<8x64xf32, #tpu.memory_space<vmem>>, %arg4: memref<2x256xf32, #tpu.memory_space<vmem>>, %arg5: memref<8x64xf32, #tpu.memory_space<vmem>>, %arg6: memref<64x192xf32, #tpu.memory_space<vmem>>, %arg7: memref<64x64xbf16, #tpu.memory_space<vmem>>, %arg8: memref<64x256xbf16, #tpu.memory_space<vmem>>, %arg9: memref<256x64xbf16, #tpu.memory_space<vmem>>, %arg10: memref<1x2x64xf32, #tpu.memory_space<vmem>>) attributes {dimension_semantics = [#tpu.dimension_semantics<parallel>], iteration_bounds = array<i64: 2>, scalar_prefetch = 0 : i64, scratch_operands = 0 : i64, tpu.core_type = #tpu.core_type<tc>, window_params = [{transform_indices = @transform_0, window_bounds = array<i64: 1, 304, 8>}, {transform_indices = @transform_1, window_bounds = array<i64: 152, 64>}, {pipeline_mode = #tpu.pipeline_mode<synchronous>, transform_indices = @transform_2, window_bounds = array<i64: 8, 64>}, {pipeline_mode = #tpu.pipeline_mode<synchronous>, transform_indices = @transform_3, window_bounds = array<i64: 2, 256>}, {pipeline_mode = #tpu.pipeline_mode<synchronous>, transform_indices = @transform_4, window_bounds = array<i64: 8, 64>}, {pipeline_mode = #tpu.pipeline_mode<synchronous>, transform_indices = @transform_5, window_bounds = array<i64: 64, 192>}, {pipeline_mode = #tpu.pipeline_mode<synchronous>, transform_indices = @transform_6, window_bounds = array<i64: 64, 64>}, {pipeline_mode = #tpu.pipeline_mode<synchronous>, transform_indices = @transform_7, window_bounds = array<i64: 64, 256>}, {pipeline_mode = #tpu.pipeline_mode<synchronous>, transform_indices = @transform_8, window_bounds = array<i64: 256, 64>}, {transform_indices = @transform_9, window_bounds = array<i64: 1, 2, 64>}]} {
    %c0 = arith.constant 0 : index
    %c0_0 = arith.constant 0 : index
    %0 = vector.load %arg3[%c0, %c0_0] : memref<8x64xf32, #tpu.memory_space<vmem>>, vector<8x64xf32>
    %c0_1 = arith.constant 0 : index
    %c0_2 = arith.constant 0 : index
    %1 = vector.load %arg4[%c0_1, %c0_2] : memref<2x256xf32, #tpu.memory_space<vmem>>, vector<2x256xf32>
    %c0_3 = arith.constant 0 : index
    %c0_4 = arith.constant 0 : index
    %c0_5 = arith.constant 0 : index
    %2 = vector.load %arg1[%c0_3, %c0_4, %c0_5] : memref<1x304x8xf32, #tpu.memory_space<vmem>>, vector<1x304x8xf32>
    %3 = vector.shape_cast %2 : vector<1x304x8xf32> to vector<304x8xf32>
    %c0_6 = arith.constant 0 : index
    %c0_7 = arith.constant 0 : index
    %4 = vector.load %arg5[%c0_6, %c0_7] : memref<8x64xf32, #tpu.memory_space<vmem>>, vector<8x64xf32>
    %cst = arith.constant dense<0.000000e+00> : vector<304x64xf32>
    %5 = tpu.matmul %3, %4, %cst {dimension_numbers = #tpu.dot_dimension_numbers<[1], [0], [0], [1], [0, 0, 1, 1], [], []>} : vector<304x8xf32>, vector<8x64xf32>, vector<304x64xf32> -> vector<304x64xf32>
    %cst_8 = arith.constant 0.000000e+00 : f32
    %6 = vector.broadcast %cst_8 : f32 to vector<304x64xf32>
    %7 = arith.maximumf %5, %6 : vector<304x64xf32>
    %c0_9 = arith.constant 0 : index
    %c0_10 = arith.constant 0 : index
    %8 = vector.load %arg2[%c0_9, %c0_10] : memref<152x64xf32, #tpu.memory_space<vmem>>, vector<152x64xf32>
    %9 = vector.extract_strided_slice %7 {offsets = [0, 0], sizes = [152, 64], strides = [1, 1]} : vector<304x64xf32> to vector<152x64xf32>
    %10 = arith.addf %9, %8 : vector<152x64xf32>
    %11 = vector.extract_strided_slice %7 {offsets = [152, 0], sizes = [152, 64], strides = [1, 1]} : vector<304x64xf32> to vector<152x64xf32>
    %12 = arith.addf %11, %8 : vector<152x64xf32>
    %13 = tpu.concatenate %10, %12 in 0 : vector<152x64xf32>, vector<152x64xf32> -> vector<304x64xf32>
    %c0_11 = arith.constant 0 : index
    %c0_12 = arith.constant 0 : index
    %14 = vector.load %arg6[%c0_11, %c0_12] : memref<64x192xf32, #tpu.memory_space<vmem>>, vector<64x192xf32>
    %cst_13 = arith.constant dense<0.000000e+00> : vector<304x192xf32>
    %15 = tpu.matmul %13, %14, %cst_13 {dimension_numbers = #tpu.dot_dimension_numbers<[1], [0], [0], [1], [0, 0, 1, 1], [], []>} : vector<304x64xf32>, vector<64x192xf32>, vector<304x192xf32> -> vector<304x192xf32>
    %16 = vector.extract_strided_slice %1 {offsets = [0, 0], sizes = [1, 192], strides = [1, 1]} : vector<2x256xf32> to vector<1x192xf32>
    %17 = vector.broadcast %16 : vector<1x192xf32> to vector<304x192xf32>
    %18 = arith.addf %15, %17 : vector<304x192xf32>
    %19 = vector.extract_strided_slice %18 {offsets = [0, 0], sizes = [304, 64], strides = [1, 1]} : vector<304x192xf32> to vector<304x64xf32>
    %20 = vector.extract_strided_slice %18 {offsets = [0, 64], sizes = [304, 64], strides = [1, 1]} : vector<304x192xf32> to vector<304x64xf32>
    %21 = vector.extract_strided_slice %18 {offsets = [0, 128], sizes = [304, 64], strides = [1, 1]} : vector<304x192xf32> to vector<304x64xf32>
    %22 = vector.extract_strided_slice %19 {offsets = [0, 0], sizes = [152, 64], strides = [1, 1]} : vector<304x64xf32> to vector<152x64xf32>
    %23 = vector.extract_strided_slice %19 {offsets = [152, 0], sizes = [152, 64], strides = [1, 1]} : vector<304x64xf32> to vector<152x64xf32>
    %24 = vector.extract_strided_slice %20 {offsets = [0, 0], sizes = [152, 64], strides = [1, 1]} : vector<304x64xf32> to vector<152x64xf32>
    %25 = vector.extract_strided_slice %20 {offsets = [152, 0], sizes = [152, 64], strides = [1, 1]} : vector<304x64xf32> to vector<152x64xf32>
    %26 = vector.extract_strided_slice %21 {offsets = [0, 0], sizes = [152, 64], strides = [1, 1]} : vector<304x64xf32> to vector<152x64xf32>
    %27 = vector.extract_strided_slice %21 {offsets = [152, 0], sizes = [152, 64], strides = [1, 1]} : vector<304x64xf32> to vector<152x64xf32>
    %28 = arith.mulf %22, %24 : vector<152x64xf32>
    %cst_14 = arith.constant dense<0.000000e+00> : vector<152xf32>
    %29 = vector.multi_reduction <add>, %28, %cst_14 [1] : vector<152x64xf32> to vector<152xf32>
    %30 = vector.shape_cast %29 : vector<152xf32> to vector<152x1xf32>
    %31 = arith.mulf %22, %25 : vector<152x64xf32>
    %cst_15 = arith.constant dense<0.000000e+00> : vector<152xf32>
    %32 = vector.multi_reduction <add>, %31, %cst_15 [1] : vector<152x64xf32> to vector<152xf32>
    %33 = vector.shape_cast %32 : vector<152xf32> to vector<152x1xf32>
    %34 = arith.maximumf %30, %33 : vector<152x1xf32>
    %35 = arith.subf %30, %34 : vector<152x1xf32>
    %36 = math.exp %35 : vector<152x1xf32>
    %37 = arith.subf %33, %34 : vector<152x1xf32>
    %38 = math.exp %37 : vector<152x1xf32>
    %39 = arith.addf %36, %38 : vector<152x1xf32>
    %cst_16 = arith.constant 1.000000e+00 : f32
    %40 = vector.broadcast %cst_16 : f32 to vector<152x1xf32>
    %41 = arith.divf %40, %39 : vector<152x1xf32>
    %42 = arith.mulf %36, %41 : vector<152x1xf32>
    %43 = vector.broadcast %42 : vector<152x1xf32> to vector<152x64xf32>
    %44 = arith.mulf %43, %26 : vector<152x64xf32>
    %45 = arith.mulf %38, %41 : vector<152x1xf32>
    %46 = vector.broadcast %45 : vector<152x1xf32> to vector<152x64xf32>
    %47 = arith.mulf %46, %27 : vector<152x64xf32>
    %48 = arith.addf %44, %47 : vector<152x64xf32>
    %49 = arith.mulf %23, %24 : vector<152x64xf32>
    %cst_17 = arith.constant dense<0.000000e+00> : vector<152xf32>
    %50 = vector.multi_reduction <add>, %49, %cst_17 [1] : vector<152x64xf32> to vector<152xf32>
    %51 = vector.shape_cast %50 : vector<152xf32> to vector<152x1xf32>
    %52 = arith.mulf %23, %25 : vector<152x64xf32>
    %cst_18 = arith.constant dense<0.000000e+00> : vector<152xf32>
    %53 = vector.multi_reduction <add>, %52, %cst_18 [1] : vector<152x64xf32> to vector<152xf32>
    %54 = vector.shape_cast %53 : vector<152xf32> to vector<152x1xf32>
    %55 = arith.maximumf %51, %54 : vector<152x1xf32>
    %56 = arith.subf %51, %55 : vector<152x1xf32>
    %57 = math.exp %56 : vector<152x1xf32>
    %58 = arith.subf %54, %55 : vector<152x1xf32>
    %59 = math.exp %58 : vector<152x1xf32>
    %60 = arith.addf %57, %59 : vector<152x1xf32>
    %cst_19 = arith.constant 1.000000e+00 : f32
    %61 = vector.broadcast %cst_19 : f32 to vector<152x1xf32>
    %62 = arith.divf %61, %60 : vector<152x1xf32>
    %63 = arith.mulf %57, %62 : vector<152x1xf32>
    %64 = vector.broadcast %63 : vector<152x1xf32> to vector<152x64xf32>
    %65 = arith.mulf %64, %26 : vector<152x64xf32>
    %66 = arith.mulf %59, %62 : vector<152x1xf32>
    %67 = vector.broadcast %66 : vector<152x1xf32> to vector<152x64xf32>
    %68 = arith.mulf %67, %27 : vector<152x64xf32>
    %69 = arith.addf %65, %68 : vector<152x64xf32>
    %70 = tpu.concatenate %48, %69 in 0 : vector<152x64xf32>, vector<152x64xf32> -> vector<304x64xf32>
    %71 = vector.extract_strided_slice %0 {offsets = [0, 0], sizes = [1, 64], strides = [1, 1]} : vector<8x64xf32> to vector<1x64xf32>
    %72 = arith.truncf %70 : vector<304x64xf32> to vector<304x64xbf16>
    %c0_20 = arith.constant 0 : index
    %c0_21 = arith.constant 0 : index
    %73 = vector.load %arg7[%c0_20, %c0_21] : memref<64x64xbf16, #tpu.memory_space<vmem>>, vector<64x64xbf16>
    %cst_22 = arith.constant dense<0.000000e+00> : vector<304x64xf32>
    %74 = tpu.matmul %72, %73, %cst_22 {dimension_numbers = #tpu.dot_dimension_numbers<[1], [0], [0], [1], [0, 0, 1, 1], [], []>} : vector<304x64xbf16>, vector<64x64xbf16>, vector<304x64xf32> -> vector<304x64xf32>
    %75 = vector.broadcast %71 : vector<1x64xf32> to vector<304x64xf32>
    %76 = arith.addf %74, %75 : vector<304x64xf32>
    %77 = arith.addf %76, %13 : vector<304x64xf32>
    %78 = vector.extract_strided_slice %0 {offsets = [1, 0], sizes = [1, 64], strides = [1, 1]} : vector<8x64xf32> to vector<1x64xf32>
    %79 = vector.extract_strided_slice %0 {offsets = [2, 0], sizes = [1, 64], strides = [1, 1]} : vector<8x64xf32> to vector<1x64xf32>
    %cst_23 = arith.constant dense<0.000000e+00> : vector<304xf32>
    %80 = vector.multi_reduction <add>, %77, %cst_23 [1] : vector<304x64xf32> to vector<304xf32>
    %81 = vector.shape_cast %80 : vector<304xf32> to vector<304x1xf32>
    %cst_24 = arith.constant 6.400000e+01 : f32
    %82 = vector.broadcast %cst_24 : f32 to vector<304x1xf32>
    %83 = arith.divf %81, %82 : vector<304x1xf32>
    %84 = vector.broadcast %83 : vector<304x1xf32> to vector<304x64xf32>
    %85 = arith.subf %77, %84 : vector<304x64xf32>
    %86 = arith.mulf %85, %85 : vector<304x64xf32>
    %cst_25 = arith.constant dense<0.000000e+00> : vector<304xf32>
    %87 = vector.multi_reduction <add>, %86, %cst_25 [1] : vector<304x64xf32> to vector<304xf32>
    %88 = vector.shape_cast %87 : vector<304xf32> to vector<304x1xf32>
    %cst_26 = arith.constant 6.400000e+01 : f32
    %89 = vector.broadcast %cst_26 : f32 to vector<304x1xf32>
    %90 = arith.divf %88, %89 : vector<304x1xf32>
    %91 = vector.broadcast %83 : vector<304x1xf32> to vector<304x64xf32>
    %92 = arith.subf %77, %91 : vector<304x64xf32>
    %cst_27 = arith.constant 9.99999974E-6 : f32
    %93 = vector.broadcast %cst_27 : f32 to vector<304x1xf32>
    %94 = arith.addf %90, %93 : vector<304x1xf32>
    %95 = math.rsqrt %94 : vector<304x1xf32>
    %96 = vector.broadcast %95 : vector<304x1xf32> to vector<304x64xf32>
    %97 = arith.mulf %92, %96 : vector<304x64xf32>
    %98 = vector.broadcast %78 : vector<1x64xf32> to vector<304x64xf32>
    %99 = arith.mulf %97, %98 : vector<304x64xf32>
    %100 = vector.broadcast %79 : vector<1x64xf32> to vector<304x64xf32>
    %101 = arith.addf %99, %100 : vector<304x64xf32>
    %102 = vector.extract_strided_slice %1 {offsets = [1, 0], sizes = [1, 256], strides = [1, 1]} : vector<2x256xf32> to vector<1x256xf32>
    %103 = arith.truncf %101 : vector<304x64xf32> to vector<304x64xbf16>
    %c0_28 = arith.constant 0 : index
    %c0_29 = arith.constant 0 : index
    %104 = vector.load %arg8[%c0_28, %c0_29] : memref<64x256xbf16, #tpu.memory_space<vmem>>, vector<64x256xbf16>
    %cst_30 = arith.constant dense<0.000000e+00> : vector<304x256xf32>
    %105 = tpu.matmul %103, %104, %cst_30 {dimension_numbers = #tpu.dot_dimension_numbers<[1], [0], [0], [1], [0, 0, 1, 1], [], []>} : vector<304x64xbf16>, vector<64x256xbf16>, vector<304x256xf32> -> vector<304x256xf32>
    %106 = vector.broadcast %102 : vector<1x256xf32> to vector<304x256xf32>
    %107 = arith.addf %105, %106 : vector<304x256xf32>
    %cst_31 = arith.constant 0.000000e+00 : f32
    %108 = vector.broadcast %cst_31 : f32 to vector<304x256xf32>
    %109 = arith.maximumf %107, %108 : vector<304x256xf32>
    %110 = vector.extract_strided_slice %0 {offsets = [3, 0], sizes = [1, 64], strides = [1, 1]} : vector<8x64xf32> to vector<1x64xf32>
    %111 = arith.truncf %109 : vector<304x256xf32> to vector<304x256xbf16>
    %c0_32 = arith.constant 0 : index
    %c0_33 = arith.constant 0 : index
    %112 = vector.load %arg9[%c0_32, %c0_33] : memref<256x64xbf16, #tpu.memory_space<vmem>>, vector<256x64xbf16>
    %cst_34 = arith.constant dense<0.000000e+00> : vector<304x64xf32>
    %113 = tpu.matmul %111, %112, %cst_34 {dimension_numbers = #tpu.dot_dimension_numbers<[1], [0], [0], [1], [0, 0, 1, 1], [], []>} : vector<304x256xbf16>, vector<256x64xbf16>, vector<304x64xf32> -> vector<304x64xf32>
    %114 = vector.broadcast %110 : vector<1x64xf32> to vector<304x64xf32>
    %115 = arith.addf %113, %114 : vector<304x64xf32>
    %116 = arith.addf %115, %101 : vector<304x64xf32>
    %cst_35 = arith.constant dense<0.000000e+00> : vector<304xf32>
    %117 = vector.multi_reduction <add>, %116, %cst_35 [1] : vector<304x64xf32> to vector<304xf32>
    %118 = vector.shape_cast %117 : vector<304xf32> to vector<304x1xf32>
    %cst_36 = arith.constant 6.400000e+01 : f32
    %119 = vector.broadcast %cst_36 : f32 to vector<304x1xf32>
    %120 = arith.divf %118, %119 : vector<304x1xf32>
    %121 = vector.broadcast %120 : vector<304x1xf32> to vector<304x64xf32>
    %122 = arith.subf %116, %121 : vector<304x64xf32>
    %123 = arith.mulf %122, %122 : vector<304x64xf32>
    %cst_37 = arith.constant dense<0.000000e+00> : vector<304xf32>
    %124 = vector.multi_reduction <add>, %123, %cst_37 [1] : vector<304x64xf32> to vector<304xf32>
    %125 = vector.shape_cast %124 : vector<304xf32> to vector<304x1xf32>
    %cst_38 = arith.constant 6.400000e+01 : f32
    %126 = vector.broadcast %cst_38 : f32 to vector<304x1xf32>
    %127 = arith.divf %125, %126 : vector<304x1xf32>
    %128 = vector.broadcast %120 : vector<304x1xf32> to vector<304x64xf32>
    %129 = arith.subf %116, %128 : vector<304x64xf32>
    %cst_39 = arith.constant 9.99999974E-6 : f32
    %130 = vector.broadcast %cst_39 : f32 to vector<304x1xf32>
    %131 = arith.addf %127, %130 : vector<304x1xf32>
    %132 = math.rsqrt %131 : vector<304x1xf32>
    %133 = vector.broadcast %132 : vector<304x1xf32> to vector<304x64xf32>
    %134 = arith.mulf %129, %133 : vector<304x64xf32>
    %135 = vector.extract_strided_slice %134 {offsets = [0, 0], sizes = [152, 64], strides = [1, 1]} : vector<304x64xf32> to vector<152x64xf32>
    %cst_40 = arith.constant dense<0.000000e+00> : vector<64xf32>
    %136 = vector.multi_reduction <add>, %135, %cst_40 [0] : vector<152x64xf32> to vector<64xf32>
    %137 = vector.shape_cast %136 : vector<64xf32> to vector<1x64xf32>
    %138 = vector.extract_strided_slice %134 {offsets = [152, 0], sizes = [152, 64], strides = [1, 1]} : vector<304x64xf32> to vector<152x64xf32>
    %cst_41 = arith.constant dense<0.000000e+00> : vector<64xf32>
    %139 = vector.multi_reduction <add>, %138, %cst_41 [0] : vector<152x64xf32> to vector<64xf32>
    %140 = vector.shape_cast %139 : vector<64xf32> to vector<1x64xf32>
    %141 = tpu.concatenate %137, %140 in 0 : vector<1x64xf32>, vector<1x64xf32> -> vector<2x64xf32>
    %c0_42 = arith.constant 0 : index
    %c0_43 = arith.constant 0 : index
    %c0_44 = arith.constant 0 : index
    %142 = vector.load %arg10[%c0_42, %c0_43, %c0_44] : memref<1x2x64xf32, #tpu.memory_space<vmem>>, vector<1x2x64xf32>
    %143 = vector.shape_cast %142 : vector<1x2x64xf32> to vector<2x64xf32>
    %144 = vector.shape_cast %141 : vector<2x64xf32> to vector<1x2x64xf32>
    tpu.vector_store %arg10[%c0_42, %c0_43, %c0_44], %144 {strides = array<i32>} : memref<1x2x64xf32, #tpu.memory_space<vmem>>, vector<1x2x64xf32>,
    return
  }
  func.func @transform_0(%arg0: i32) -> (i32, i32, i32) {
    %c0_i32 = arith.constant 0 : i32
    %c0_i32_0 = arith.constant 0 : i32
    %c0_i32_1 = arith.constant 0 : i32
    return %arg0, %c0_i32, %c0_i32_0 : i32, i32, i32
  }
  func.func @transform_1(%arg0: i32) -> (i32, i32) {
    %c0_i32 = arith.constant 0 : i32
    %c0_i32_0 = arith.constant 0 : i32
    return %arg0, %c0_i32 : i32, i32
  }
  func.func @transform_2(%arg0: i32) -> (i32, i32) {
    %c0_i32 = arith.constant 0 : i32
    %c0_i32_0 = arith.constant 0 : i32
    %c0_i32_1 = arith.constant 0 : i32
    return %c0_i32, %c0_i32_0 : i32, i32
  }
  func.func @transform_3(%arg0: i32) -> (i32, i32) {
    %c0_i32 = arith.constant 0 : i32
    %c0_i32_0 = arith.constant 0 : i32
    %c0_i32_1 = arith.constant 0 : i32
    return %c0_i32, %c0_i32_0 : i32, i32
  }
  func.func @transform_4(%arg0: i32) -> (i32, i32) {
    %c0_i32 = arith.constant 0 : i32
    %c0_i32_0 = arith.constant 0 : i32
    %c0_i32_1 = arith.constant 0 : i32
    return %c0_i32, %c0_i32_0 : i32, i32
  }
  func.func @transform_5(%arg0: i32) -> (i32, i32) {
    %c0_i32 = arith.constant 0 : i32
    %c0_i32_0 = arith.constant 0 : i32
    %c0_i32_1 = arith.constant 0 : i32
    return %c0_i32, %c0_i32_0 : i32, i32
  }
  func.func @transform_6(%arg0: i32) -> (i32, i32) {
    %c0_i32 = arith.constant 0 : i32
    %c0_i32_0 = arith.constant 0 : i32
    %c0_i32_1 = arith.constant 0 : i32
    return %c0_i32, %c0_i32_0 : i32, i32
  }
  func.func @transform_7(%arg0: i32) -> (i32, i32) {
    %c0_i32 = arith.constant 0 : i32
    %c0_i32_0 = arith.constant 0 : i32
    %c0_i32_1 = arith.constant 0 : i32
    return %c0_i32, %c0_i32_0 : i32, i32
  }
  func.func @transform_8(%arg0: i32) -> (i32, i32) {
    %c0_i32 = arith.constant 0 : i32
    %c0_i32_0 = arith.constant 0 : i32
    %c0_i32_1 = arith.constant 0 : i32
    return %c0_i32, %c0_i32_0 : i32, i32
  }
  func.func @transform_9(%arg0: i32) -> (i32, i32, i32) {
    %c0_i32 = arith.constant 0 : i32
    %c0_i32_0 = arith.constant 0 : i32
    %c0_i32_1 = arith.constant 0 : i32
    return %arg0, %c0_i32, %c0_i32_0 : i32, i32, i32
  }
}

</mosaic_0001>

<bundles_post_ra>
// kernel: vision_transformer_forward.1
= control target key start
LH: loop header
LB: loop body
LE: loop exit
PB: predicated region body
PF: predicated region fallthrough
CT: control target
= control target key end

     0   :  { %s6423_s30 = smov 0   ;;  %s11277_s0 = inlined_call_operand.vmem [shape: f32[2,304,8], index: 0, kind: input, shape index: {}]   ;;  %s11278_s1 = inlined_call_operand.vmem [shape: f32[304,64], index: 1, kind: input, shape index: {}]   ;;  %s11279_s2 = inlined_call_operand.vmem [shape: f32[8,64], index: 2, kind: input, shape index: {}]   ;;  %s11280_s3 = inlined_call_operand.vmem [shape: f32[2,256], index: 3, kind: input, shape index: {}]   ;;  %s11281_s4 = inlined_call_operand.vmem [shape: f32[8,64], index: 4, kind: input, shape index: {}]   ;;  %s11282_s5 = inlined_call_operand.vmem [shape: f32[64,192], index: 5, kind: input, shape index: {}]   ;;  %s11283_s6 = inlined_call_operand.vmem [shape: bf16[64,64], index: 6, kind: input, shape index: {}]   ;;  %s11284_s7 = inlined_call_operand.vmem [shape: bf16[64,256], index: 7, kind: input, shape index: {}]   ;;  %s11285_s8 = inlined_call_operand.vmem [shape: bf16[256,64], index: 8, kind: input, shape index: {}]   ;;  %s11286_s9 = inlined_call_operand.vmem [shape: f32[2,2,64], index: 9, kind: output, shape index: {}]  }
   0x1 LB: > { %s6429_s10 = sadd.s32 4294967295, %s6369_s30   ;;  %p5650_p0 = scmp.ge.s32.totalorder %s6369_s30, 1  ;;  %s6369_s30 = sphi %s6423_s30, %s19_s30  }
   0x2   : > { %p298_p1 = scmp.lt.s32.totalorder %s6369_s30, 3 }
   0x4   : > { %p299_p2 = pnand %p5650_p0, %p298_p1 }
   0x6   : > { %302 = sbr.rel (%p299_p2) target bundleno = 2400 (0x960), region = 56 }
   0xb   : > { %v394_v0 = vld [vmem:[%s11281_s4] sm:$0xff]  ;;  %p338_p3 = scmp.lt.s32.totalorder %s6429_s10, 1  ;;  %vm395_vm0 = vcmask 64512   ;;  %v750_v12 = vld [vmem:[%s11282_s5 + $0x70] sm:$0xff]  ;;  %v751_v13 = vld [vmem:[%s11282_s5 + $0x78] sm:$0xff]  ;;  %s343_s15 = smul.u32 19, %s6429_s10 }
   0xc   : > { %525 = vmatpush.msra.mxu0 %v394_v0  ;;  %v748_v14 = vld [vmem:[%s11282_s5 + $0x60] sm:$0xff]  ;;  %882 = vmatpush.msra.mxu1 %v750_v12  ;;  %v749_v15 = vld [vmem:[%s11282_s5 + $0x68] sm:$0xff]  ;;  %v746_v16 = vld [vmem:[%s11282_s5 + $0x50] sm:$0xff]  ;;  %vm759_vm1 = vcmask 523264   ;;  %s6371_s22 = smov 64  }
   0xd   : > { %s6438_s13 = scalar_select %p338_p3, %s6429_s10, 1  ;;  %1013 = vmatpush.msra.mxu2 %v751_v13  ;;  %v747_v17 = vld [vmem:[%s11282_s5 + $0x58] sm:$0xff]  ;;  %v744_v19 = vld [vmem:[%s11282_s5 + $0x40] sm:$0xff]  ;;  %v745_v20 = vld [vmem:[%s11282_s5 + $0x48] sm:$0xff] }
   0xe   : > { %883 = vmatpush.msra.mxu1 %v748_v14  ;;  %v742_v21 = vld [vmem:[%s11282_s5 + $0x30] sm:$0xff]  ;;  %v743_v22 = vld [vmem:[%s11282_s5 + $0x38] sm:$0xff]  ;;  %v740_v23 = vld [vmem:[%s11282_s5 + $0x20] sm:$0xff]  ;;  %p344_p4 = scmp.lt.s32.totalorder %s343_s15, 37 }
   0xf   : > { %s5967_s14 = smul.u32 304, %s6438_s13  ;;  %1014 = vmatpush.msra.mxu2 %v749_v15  ;;  %v741_v24 = vld [vmem:[%s11282_s5 + $0x28] sm:$0xff]  ;;  %v738_v26 = vld [vmem:[%s11282_s5 + $0x10] sm:$0xff]  ;;  %v739_v27 = vld [vmem:[%s11282_s5 + $0x18] sm:$0xff]  ;;  %s5653_s26 = sshll.u32 %s6438_s13, 1 }
  0x10   : > { %884 = vmatpush.msra.mxu1 %v746_v16  ;;  %v736_v28 = vld [vmem:[%s11282_s5] sm:$0xff]  ;;  %v737_v29 = vld [vmem:[%s11282_s5 + $0x8] sm:$0xff]  ;;  %s11843_s15 = smov (!%p344_p4, %s343_s15), 37  ;;  %s352_s29 = scalar_lea.vmem %s11286_s9, %s5653_s26 }
  0x11   : > { %s6444_s17 = scalar_lea.vmem %s11277_s0, %s5967_s14  ;;  %1015 = vmatpush.msra.mxu2 %v747_v17  ;;  %s5652_s16 = sshll.u32 %s11843_s15, 3 }
  0x12   : > { %v356_v1 = vld [vmem:[%s6444_s17] sm:$0xff]  ;;  %v357_v2 = vld [vmem:[%s6444_s17 + $0x8] sm:$0xff]  ;;  %v358_v3 = vld [vmem:[%s6444_s17 + $0x10] sm:$0xff]  ;;  %885 = vmatpush.msra.mxu1 %v744_v19  ;;  %s6530_s20 = scalar_lea.vmem %s11278_s1, %s5652_s16 }
  0x13   : > { %5654 = vmatmul.msk.f32.vlgmr.msra.gmra.mxu0 %vm395_vm0, %v356_v1  ;;  %v359_v4 = vld [vmem:[%s6444_s17 + $0x18] sm:$0xff]  ;;  %v360_v5 = vld [vmem:[%s6444_s17 + $0x20] sm:$0xff]  ;;  %v361_v6 = vld [vmem:[%s6444_s17 + $0x28] sm:$0xff]  ;;  %1016 = vmatpush.msra.mxu2 %v745_v20 }
  0x14   : > { %v362_v7 = vld [vmem:[%s6444_s17 + $0x30] sm:$0xff]  ;;  %v363_v8 = vld [vmem:[%s6444_s17 + $0x38] sm:$0xff]  ;;  %v364_v9 = vld [vmem:[%s6444_s17 + $0x40] sm:$0xff]  ;;  %886 = vmatpush.msra.mxu1 %v742_v21 }
  0x15   : > { %v365_v10 = vld [vmem:[%s6444_s17 + $0x48] sm:$0xff]  ;;  %v366_v11 = vld [vmem:[%s6444_s17 + $0x50] sm:$0xff]  ;;  %v367_v18 = vld [vmem:[%s6444_s17 + $0x58] sm:$0xff]  ;;  %1017 = vmatpush.msra.mxu2 %v743_v22 }
  0x16   : > { %v368_v25 = vld [vmem:[%s6444_s17 + $0x60] sm:$0xff]  ;;  %887 = vmatpush.msra.mxu1 %v740_v23  ;;  %v369_v30 = vld [vmem:[%s6444_s17 + $0x68] sm:$0xff]  ;;  %v370_v31 = vld [vmem:[%s6444_s17 + $0x70] sm:$0xff] }
  0x17   : > { %1018 = vmatpush.msra.mxu2 %v741_v24  ;;  %v371_v32 = vld [vmem:[%s6444_s17 + $0x78] sm:$0xff]  ;;  %v6533_v34 = vld [vmem:[%s6530_s20] sm:$0xff]  ;;  %v6545_v39 = vld [vmem:[%s6530_s20 + $0x8] sm:$0xff] }
  0x18   : > { %888 = vmatpush.msra.mxu1 %v738_v26  ;;  %v372_v35 = vld [vmem:[%s6444_s17 + $0x80] sm:$0xff]  ;;  %v373_v40 = vld [vmem:[%s6444_s17 + $0x88] sm:$0xff]  ;;  %v6557_v44 = vld [vmem:[%s6530_s20 + $0x10] sm:$0xff] }
  0x19   : > { %1019 = vmatpush.msra.mxu2 %v739_v27  ;;  %v374_v45 = vld [vmem:[%s6444_s17 + $0x90] sm:$0xff]  ;;  %v6569_v49 = vld [vmem:[%s6530_s20 + $0x18] sm:$0xff]  ;;  %v6581_v54 = vld [vmem:[%s6530_s20 + $0x20] sm:$0xff] }
  0x1a   : > { %889 = vmatpush.msra.mxu1 %v736_v28  ;;  %v375_v50 = vld [vmem:[%s6444_s17 + $0x98] sm:$0xff]  ;;  %v376_v55 = vld [vmem:[%s6444_s17 + $0xa0] sm:$0xff]  ;;  %v6593_v59 = vld [vmem:[%s6530_s20 + $0x28] sm:$0xff] }
  0x1b   : > { %5655 = vmatmul.msk.f32.gmra.mxu0 %vm395_vm0, %v357_v2  ;;  %1020 = vmatpush.msra.mxu2 %v737_v29  ;;  %v377_v60 = vld [vmem:[%s6444_s17 + $0xa8] sm:$0xff]  ;;  %v6605_v0 = vld [vmem:[%s6530_s20 + $0x30] sm:$0xff]  ;;  %v383_v26 = vld [vmem:[%s6444_s17 + $0xd8] sm:$0xff] }
  0x1c   : > { %v378_v1 = vld [vmem:[%s6444_s17 + $0xb0] sm:$0xff]  ;;  %v6641_v15 = vld [vmem:[%s6530_s20 + $0x48] sm:$0xff] }
  0x1d   : > { %v381_v16 = vld [vmem:[%s6444_s17 + $0xc8] sm:$0xff]  ;;  %v6653_v20 = vld [vmem:[%s6530_s20 + $0x50] sm:$0xff] }
  0x1e   : > { %v382_v21 = vld [vmem:[%s6444_s17 + $0xd0] sm:$0xff] }
  0x23   : > { %5656 = vmatmul.msk.f32.gmra.mxu0 %vm395_vm0, %v358_v3 }
  0x2b   : > { %5657 = vmatmul.msk.f32.gmra.mxu0 %vm395_vm0, %v359_v4 }
  0x33   : > { %5658 = vmatmul.msk.f32.gmra.mxu0 %vm395_vm0, %v360_v5  ;;  %v6617_v5 = vld [vmem:[%s6530_s20 + $0x38] sm:$0xff] }
  0x3b   : > { %5659 = vmatmul.msk.f32.gmra.mxu0 %vm395_vm0, %v361_v6  ;;  %v379_v6 = vld [vmem:[%s6444_s17 + $0xb8] sm:$0xff] }
  0x43   : > { %5660 = vmatmul.msk.f32.gmra.mxu0 %vm395_vm0, %v362_v7 }
  0x4b   : > { %5661 = vmatmul.msk.f32.gmra.mxu0 %vm395_vm0, %v363_v8 }
  0x53   : > { %5662 = vmatmul.msk.f32.gmra.mxu0 %vm395_vm0, %v364_v9 }
  0x5b   : > { %5663 = vmatmul.msk.f32.gmra.mxu0 %vm395_vm0, %v365_v10  ;;  %v6629_v10 = vld [vmem:[%s6530_s20 + $0x40] sm:$0xff] }
  0x63   : > { %5664 = vmatmul.msk.f32.gmra.mxu0 %vm395_vm0, %v366_v11  ;;  %v380_v11 = vld [vmem:[%s6444_s17 + $0xc0] sm:$0xff] }
  0x6b   : > { %5665 = vmatmul.msk.f32.gmra.mxu0 %vm395_vm0, %v367_v18 }
  0x73   : > { %5666 = vmatmul.msk.f32.gmra.mxu0 %vm395_vm0, %v368_v25  ;;  %v6665_v25 = vld [vmem:[%s6530_s20 + $0x58] sm:$0xff] }
  0x7b   : > { %5667 = vmatmul.msk.f32.gmra.mxu0 %vm395_vm0, %v369_v30  ;;  %v6677_v30 = vld [vmem:[%s6530_s20 + $0x60] sm:$0xff] }
  0x83   : > { %5668 = vmatmul.msk.f32.gmra.mxu0 %vm395_vm0, %v370_v31  ;;  %v384_v31 = vld [vmem:[%s6444_s17 + $0xe0] sm:$0xff] }
  0x8b   : > { %5669 = vmatmul.msk.f32.gmra.mxu0 %vm395_vm0, %v371_v32 }
  0x90   : > { %v527_v33 = vpop.f32.mrf.mxu0 }
  0x91   : > { %v641_v36 = vmax.f32 %v527_v33, 0.0 }
  0x93   : > { %v6537_v37 = vadd.f32 %v6533_v34, %v641_v36  ;;  %5670 = vmatmul.msk.f32.gmra.mxu0 %vm395_vm0, %v372_v35  ;;  %v6689_v36 = vld [vmem:[%s6530_s20 + $0x68] sm:$0xff] }
  0x95   : > { %11437 = vst [vmem:[#allocation2_spill] sm:$0xff] %v6537_v37  ;;  %5692 = vmatmul.msk.f32.vlgmr.msra.gmra.mxu1 %vm759_vm1, %v6537_v37  ;;  %5730 = vmatmul.msk.f32.vlgmr.msra.gmra.mxu2 %vm759_vm1, %v6537_v37 }
  0x98   : > { %v530_v38 = vpop.f32.mrf.mxu0 }
  0x99   : > { %v642_v41 = vmax.f32 %v530_v38, 0.0  ;;  %v385_v38 = vld [vmem:[%s6444_s17 + $0xe8] sm:$0xff] }
  0x9b   : > { %v6549_v42 = vadd.f32 %v6545_v39, %v642_v41  ;;  %5671 = vmatmul.msk.f32.gmra.mxu0 %vm395_vm0, %v373_v40 }
  0x9d   : > { %11438 = vst [vmem:[#allocation3_spill] sm:$0xff] %v6549_v42  ;;  %5693 = vmatmul.msk.f32.gmra.mxu1 %vm759_vm1, %v6549_v42  ;;  %5731 = vmatmul.msk.f32.gmra.mxu2 %vm759_vm1, %v6549_v42 }
  0xa0   : > { %v533_v43 = vpop.f32.mrf.mxu0 }
  0xa1   : > { %v643_v46 = vmax.f32 %v533_v43, 0.0 }
  0xa3   : > { %v6561_v47 = vadd.f32 %v6557_v44, %v643_v46  ;;  %5672 = vmatmul.msk.f32.gmra.mxu0 %vm395_vm0, %v374_v45  ;;  %v6701_v45 = vld [vmem:[%s6530_s20 + $0x70] sm:$0xff] }
  0xa4   : > { %v386_v46 = vld [vmem:[%s6444_s17 + $0xf0] sm:$0xff] }
  0xa5   : > { %11439 = vst [vmem:[#allocation4_spill] sm:$0xff] %v6561_v47  ;;  %5694 = vmatmul.msk.f32.gmra.mxu1 %vm759_vm1, %v6561_v47  ;;  %5732 = vmatmul.msk.f32.gmra.mxu2 %vm759_vm1, %v6561_v47 }
  0xa8   : > { %v536_v48 = vpop.f32.mrf.mxu0 }
  0xa9   : > { %v644_v51 = vmax.f32 %v536_v48, 0.0 }
  0xab   : > { %v6573_v52 = vadd.f32 %v6569_v49, %v644_v51  ;;  %5673 = vmatmul.msk.f32.gmra.mxu0 %vm395_vm0, %v375_v50 }
  0xad   : > { %11440 = vst [vmem:[#allocation5_spill] sm:$0xff] %v6573_v52  ;;  %5695 = vmatmul.msk.f32.gmra.mxu1 %vm759_vm1, %v6573_v52  ;;  %5733 = vmatmul.msk.f32.gmra.mxu2 %vm759_vm1, %v6573_v52 }
  0xb0   : > { %v539_v53 = vpop.f32.mrf.mxu0 }
  0xb1   : > { %v645_v56 = vmax.f32 %v539_v53, 0.0  ;;  %v6713_v53 = vld [vmem:[%s6530_s20 + $0x78] sm:$0xff] }
  0xb3   : > { %v6585_v57 = vadd.f32 %v6581_v54, %v645_v56  ;;  %5674 = vmatmul.msk.f32.gmra.mxu0 %vm395_vm0, %v376_v55  ;;  %v387_v55 = vld [vmem:[%s6444_s17 + $0xf8] sm:$0xff]  ;;  %v6719_v56 = vld [vmem:[%s11280_s3] sm:$0xf] }
  0xb5   : > { %11441 = vst [vmem:[#allocation6_spill] sm:$0xff] %v6585_v57  ;;  %5696 = vmatmul.msk.f32.gmra.mxu1 %vm759_vm1, %v6585_v57  ;;  %5734 = vmatmul.msk.f32.gmra.mxu2 %vm759_vm1, %v6585_v57 }
  0xb8   : > { %v542_v58 = vpop.f32.mrf.mxu0 }
  0xb9   : > { %v646_v61 = vmax.f32 %v542_v58, 0.0 }
  0xbb   : > { %v6597_v62 = vadd.f32 %v6593_v59, %v646_v61  ;;  %5675 = vmatmul.msk.f32.gmra.mxu0 %vm395_vm0, %v377_v60  ;;  %v753_v61 = vperm.slane %v6719_v56, 0 }
  0xbd   : > { %11442 = vst [vmem:[#allocation7_spill] sm:$0xff] %v6597_v62  ;;  %5697 = vmatmul.msk.f32.gmra.mxu1 %vm759_vm1, %v6597_v62  ;;  %5735 = vmatmul.msk.f32.gmra.mxu2 %vm759_vm1, %v6597_v62 }
  0xc0   : > { %v545_v63 = vpop.f32.mrf.mxu0 }
  0xc1   : > { %v647_v2 = vmax.f32 %v545_v63, 0.0  ;;  %v6730_v63 = vperm.slane %v753_v61, 0 }
  0xc3   : > { %v6609_v3 = vadd.f32 %v6605_v0, %v647_v2  ;;  %5676 = vmatmul.msk.f32.gmra.mxu0 %vm395_vm0, %v378_v1  ;;  %v6733_v2 = vld [vmem:[%s6530_s20 + $0x80] sm:$0xff] }
  0xc5   : > { %11443 = vst [vmem:[#allocation8_spill] sm:$0xff] %v6609_v3  ;;  %5698 = vmatmul.msk.f32.gmra.mxu1 %vm759_vm1, %v6609_v3  ;;  %5736 = vmatmul.msk.f32.gmra.mxu2 %vm759_vm1, %v6609_v3 }
  0xc8   : > { %v548_v4 = vpop.f32.mrf.mxu0 }
  0xc9   : > { %v648_v7 = vmax.f32 %v548_v4, 0.0  ;;  %v388_v4 = vld [vmem:[%s6444_s17 + $0x100] sm:$0xff] }
  0xcb   : > { %v6621_v8 = vadd.f32 %v6617_v5, %v648_v7  ;;  %5677 = vmatmul.msk.f32.gmra.mxu0 %vm395_vm0, %v379_v6 }
  0xcd   : > { %11444 = vst [vmem:[#allocation9_spill] sm:$0xff] %v6621_v8  ;;  %5699 = vmatmul.msk.f32.gmra.mxu1 %vm759_vm1, %v6621_v8  ;;  %5737 = vmatmul.msk.f32.gmra.mxu2 %vm759_vm1, %v6621_v8 }
  0xd0   : > { %v551_v9 = vpop.f32.mrf.mxu0 }
  0xd1   : > { %v649_v12 = vmax.f32 %v551_v9, 0.0 }
  0xd3   : > { %v6633_v13 = vadd.f32 %v6629_v10, %v649_v12  ;;  %5678 = vmatmul.msk.f32.gmra.mxu0 %vm395_vm0, %v380_v11 }
  0xd5   : > { %11445 = vst [vmem:[#allocation10_spill] sm:$0xff] %v6633_v13  ;;  %5700 = vmatmul.msk.f32.gmra.mxu1 %vm759_vm1, %v6633_v13  ;;  %5738 = vmatmul.msk.f32.gmra.mxu2 %vm759_vm1, %v6633_v13 }
  0xd8   : > { %v554_v14 = vpop.f32.mrf.mxu0 }
  0xd9   : > { %v650_v17 = vmax.f32 %v554_v14, 0.0  ;;  %v6750_v14 = vld [vmem:[%s6530_s20 + $0x88] sm:$0xff] }
  0xdb   : > { %v6645_v18 = vadd.f32 %v6641_v15, %v650_v17  ;;  %5679 = vmatmul.msk.f32.gmra.mxu0 %vm395_vm0, %v381_v16  ;;  %v389_v16 = vld [vmem:[%s6444_s17 + $0x108] sm:$0xff] }
  0xdd   : > { %11446 = vst [vmem:[#allocation11_spill] sm:$0xff] %v6645_v18  ;;  %5701 = vmatmul.msk.f32.gmra.mxu1 %vm759_vm1, %v6645_v18  ;;  %5739 = vmatmul.msk.f32.gmra.mxu2 %vm759_vm1, %v6645_v18  ;;  %v393_v18 = vld [vmem:[%s6444_s17 + $0x128] sm:$0xff] }
  0xe0   : > { %v557_v19 = vpop.f32.mrf.mxu0 }
  0xe1   : > { %v651_v22 = vmax.f32 %v557_v19, 0.0 }
  0xe3   : > { %v6657_v23 = vadd.f32 %v6653_v20, %v651_v22  ;;  %5680 = vmatmul.msk.f32.gmra.mxu0 %vm395_vm0, %v382_v21 }
  0xe5   : > { %11447 = vst [vmem:[#allocation12_spill] sm:$0xff] %v6657_v23  ;;  %5702 = vmatmul.msk.f32.gmra.mxu1 %vm759_vm1, %v6657_v23  ;;  %5740 = vmatmul.msk.f32.gmra.mxu2 %vm759_vm1, %v6657_v23 }
  0xe8   : > { %v560_v24 = vpop.f32.mrf.mxu0 }
  0xe9   : > { %v652_v27 = vmax.f32 %v560_v24, 0.0 }
  0xeb   : > { %v6669_v28 = vadd.f32 %v6665_v25, %v652_v27  ;;  %5681 = vmatmul.msk.f32.gmra.mxu0 %vm395_vm0, %v383_v26  ;;  %v6767_v26 = vld [vmem:[%s6530_s20 + $0x90] sm:$0xff] }
  0xec   : > { %v390_v27 = vld [vmem:[%s6444_s17 + $0x110] sm:$0xff] }
  0xed   : > { %11448 = vst [vmem:[#allocation13_spill] sm:$0xff] %v6669_v28  ;;  %5703 = vmatmul.msk.f32.gmra.mxu1 %vm759_vm1, %v6669_v28  ;;  %5741 = vmatmul.msk.f32.gmra.mxu2 %vm759_vm1, %v6669_v28 }
  0xf0   : > { %v563_v29 = vpop.f32.mrf.mxu0 }
  0xf1   : > { %v653_v32 = vmax.f32 %v563_v29, 0.0 }
  0xf3   : > { %v6681_v33 = vadd.f32 %v6677_v30, %v653_v32  ;;  %5682 = vmatmul.msk.f32.gmra.mxu0 %vm395_vm0, %v384_v31 }
  0xf5   : > { %11449 = vst [vmem:[#allocation14_spill] sm:$0xff] %v6681_v33  ;;  %5704 = vmatmul.msk.f32.gmra.mxu1 %vm759_vm1, %v6681_v33  ;;  %5742 = vmatmul.msk.f32.gmra.mxu2 %vm759_vm1, %v6681_v33 }
  0xf8   : > { %v566_v35 = vpop.f32.mrf.mxu0 }
  0xf9   : > { %v654_v40 = vmax.f32 %v566_v35, 0.0 }
  0xfb   : > { %v6693_v41 = vadd.f32 %v6689_v36, %v654_v40  ;;  %5683 = vmatmul.msk.f32.gmra.mxu0 %vm395_vm0, %v385_v38  ;;  %v391_v40 = vld [vmem:[%s6444_s17 + $0x118] sm:$0xff] }
  0xfd   : > { %11450 = vst [vmem:[#allocation15_spill] sm:$0xff] %v6693_v41  ;;  %5705 = vmatmul.msk.f32.gmra.mxu1 %vm759_vm1, %v6693_v41  ;;  %5743 = vmatmul.msk.f32.gmra.mxu2 %vm759_vm1, %v6693_v41 }
 0x100   : > { %v569_v43 = vpop.f32.mrf.mxu0 }
 0x101   : > { %v655_v48 = vmax.f32 %v569_v43, 0.0 }
 0x103   : > { %v6705_v50 = vadd.f32 %v6701_v45, %v655_v48  ;;  %5684 = vmatmul.msk.f32.gmra.mxu0 %vm395_vm0, %v386_v46 }
 0x105   : > { %11451 = vst [vmem:[#allocation16_spill] sm:$0xff] %v6705_v50  ;;  %5706 = vmatmul.msk.f32.gmra.mxu1 %vm759_vm1, %v6705_v50  ;;  %5744 = vmatmul.msk.f32.gmra.mxu2 %vm759_vm1, %v6705_v50 }
 0x108   : > { %v572_v51 = vpop.f32.mrf.mxu0 }
 0x109   : > { %v656_v58 = vmax.f32 %v572_v51, 0.0 }
 0x10b   : > { %v6722_v60 = vadd.f32 %v6713_v53, %v656_v58  ;;  %5685 = vmatmul.msk.f32.gmra.mxu0 %vm395_vm0, %v387_v55 }
 0x10d   : > { %11452 = vst [vmem:[#allocation17_spill] sm:$0xff] %v6722_v60  ;;  %5707 = vmatmul.msk.f32.gmra.mxu1 %vm759_vm1, %v6722_v60  ;;  %5745 = vmatmul.msk.f32.gmra.mxu2 %vm759_vm1, %v6722_v60 }
 0x110   : > { %v575_v1 = vpop.f32.mrf.mxu0 }
 0x111   : > { %v657_v6 = vmax.f32 %v575_v1, 0.0 }
 0x112   : > { %v891_v7 = vpop.f32.mrf.mxu1 }
 0x113   : > { %v6737_v9 = vadd.f32 %v6733_v2, %v657_v6  ;;  %v6740_v11 = vadd.f32 %v891_v7, %v6730_v63  ;;  %5686 = vmatmul.msk.f32.gmra.mxu0 %vm395_vm0, %v388_v4 }
 0x115   : > { %11453 = vst [vmem:[#allocation18_spill] sm:$0xff] %v6737_v9  ;;  %1155 = vrot.lane.b32.xlu0 %v6740_v11, %s6371_s22  ;;  %5708 = vmatmul.msk.f32.gmra.mxu1 %vm759_vm1, %v6737_v9 }
 0x116   : > { %5746 = vmatmul.msk.f32.gmra.mxu2 %vm759_vm1, %v6737_v9 }
 0x118   : > { %v578_v12 = vpop.f32.mrf.mxu0 }
 0x119   : > { %v658_v17 = vmax.f32 %v578_v12, 0.0 }
 0x11a   : > { %v894_v19 = vpop.f32.mrf.mxu1 }
 0x11b   : > { %v6754_v21 = vadd.f32 %v6750_v14, %v658_v17  ;;  %v6757_v22 = vadd.f32 %v894_v19, %v6730_v63  ;;  %5687 = vmatmul.msk.f32.gmra.mxu0 %vm395_vm0, %v389_v16  ;;  %v6821_v16 = vpop.f32.mrf.mxu2 }
 0x11d   : > { %11454 = vst [vmem:[#allocation19_spill] sm:$0xff] %v6754_v21  ;;  %1157 = vrot.lane.b32.xlu0 %v6757_v22, %s6371_s22  ;;  %5709 = vmatmul.msk.f32.gmra.mxu1 %vm759_vm1, %v6754_v21 }
 0x11e   : > { %5747 = vmatmul.msk.f32.gmra.mxu2 %vm759_vm1, %v6754_v21 }
 0x120   : > { %v581_v24 = vpop.f32.mrf.mxu0 }
 0x121   : > { %v659_v29 = vmax.f32 %v581_v24, 0.0 }
 0x122   : > { %v897_v31 = vpop.f32.mrf.mxu1 }
 0x123   : > { %v6771_v32 = vadd.f32 %v6767_v26, %v659_v29  ;;  %v6774_v35 = vadd.f32 %v897_v31, %v6730_v63  ;;  %5688 = vmatmul.msk.f32.gmra.mxu0 %vm395_vm0, %v390_v27 }
 0x125   : > { %11455 = vst [vmem:[#allocation20_spill] sm:$0xff] %v6771_v32  ;;  %1159 = vrot.lane.b32.xlu2 %v6774_v35, %s6371_s22  ;;  %5710 = vmatmul.msk.f32.gmra.mxu1 %vm759_vm1, %v6771_v32 }
 0x126   : > { %5748 = vmatmul.msk.f32.gmra.mxu2 %vm759_vm1, %v6771_v32 }
 0x128   : > { %v584_v38 = vpop.f32.mrf.mxu0 }
 0x129   : > { %v660_v43 = vmax.f32 %v584_v38, 0.0  ;;  %v6835_v38 = vpop.f32.mrf.mxu2 }
 0x12a   : > { %v900_v46 = vpop.f32.mrf.mxu1 }
 0x12b   : > { %v6785_v48 = vadd.f32 %v6533_v34, %v660_v43  ;;  %v6788_v51 = vadd.f32 %v900_v46, %v6730_v63  ;;  %5689 = vmatmul.msk.f32.gmra.mxu0 %vm395_vm0, %v391_v40 }
 0x12d   : > { %11456 = vst [vmem:[#allocation21_spill] sm:$0xff] %v6785_v48  ;;  %1161 = vrot.lane.b32.xlu2 %v6788_v51, %s6371_s22  ;;  %5711 = vmatmul.msk.f32.gmra.mxu1 %vm759_vm1, %v6785_v48 }
 0x12e   : > { %5749 = vmatmul.msk.f32.gmra.mxu2 %vm759_vm1, %v6785_v48 }
 0x130   : > { %v587_v55 = vpop.f32.mrf.mxu0 }
 0x131   : > { %v661_v58 = vmax.f32 %v587_v55, 0.0 }
 0x132   : > { %v903_v61 = vpop.f32.mrf.mxu1 }
 0x133   : > { %v6798_v34 = vadd.f32 %v6545_v39, %v661_v58  ;;  %v6801_v1 = vadd.f32 %v903_v61, %v6730_v63 }
 0x135   : > { %11457 = vst [vmem:[#allocation22_spill] sm:$0xff] %v6798_v34  ;;  %1163 = vrot.lane.b32.xlu2 %v6801_v1, %s6371_s22  ;;  %5712 = vmatmul.msk.f32.gmra.mxu1 %vm759_vm1, %v6798_v34 }
 0x136   : > { %5750 = vmatmul.msk.f32.gmra.mxu2 %vm759_vm1, %v6798_v34 }
 0x138   : > { %v590_v4 = vpop.f32.mrf.mxu0 }
 0x139   : > { %v662_v6 = vmax.f32 %v590_v4, 0.0  ;;  %v6855_v4 = vpop.f32.mrf.mxu2 }
 0x13a   : > { %v906_v7 = vpop.f32.mrf.mxu1 }
 0x13b   : > { %v6810_v12 = vadd.f32 %v6557_v44, %v662_v6  ;;  %v6813_v39 = vadd.f32 %v906_v7, %v6730_v63 }
 0x13d   : > { %11458 = vst [vmem:[#allocation23_spill] sm:$0xff] %v6810_v12  ;;  %1165 = vrot.lane.b32.xlu0 %v6813_v39, %s6371_s22  ;;  %5713 = vmatmul.msk.f32.gmra.mxu1 %vm759_vm1, %v6810_v12 }
 0x13e   : > { %5751 = vmatmul.msk.f32.gmra.mxu2 %vm759_vm1, %v6810_v12 }
 0x140   : > { %v593_v17 = vpop.f32.mrf.mxu0 }
 0x141   : > { %v663_v19 = vmax.f32 %v593_v17, 0.0 }
 0x142   : > { %v909_v24 = vpop.f32.mrf.mxu1 }
 0x143   : > { %v6824_v44 = vadd.f32 %v6569_v49, %v663_v19  ;;  %v6827_v27 = vadd.f32 %v909_v24, %v6730_v63  ;;  %v392_v24 = vld [vmem:[%s6444_s17 + $0x120] sm:$0xff] }
 0x144   : > { %5690 = vmatmul.msk.f32.gmra.mxu0 %vm395_vm0, %v392_v24 }
 0x145   : > { %11459 = vst [vmem:[#allocation24_spill] sm:$0xff] %v6824_v44  ;;  %1167 = vrot.lane.b32.xlu0 %v6827_v27, %s6371_s22  ;;  %5714 = vmatmul.msk.f32.gmra.mxu1 %vm759_vm1, %v6824_v44 }
 0x146   : > { %5752 = vmatmul.msk.f32.gmra.mxu2 %vm759_vm1, %v6824_v44 }
 0x148   : > { %v596_v29 = vpop.f32.mrf.mxu0 }
 0x149   : > { %v664_v31 = vmax.f32 %v596_v29, 0.0  ;;  %v6875_v29 = vpop.f32.mrf.mxu2 }
 0x14a   : > { %v912_v40 = vpop.f32.mrf.mxu1 }
 0x14b   : > { %v6838_v49 = vadd.f32 %v6581_v54, %v664_v31  ;;  %v6841_v43 = vadd.f32 %v912_v40, %v6730_v63 }
 0x14c   : > { %5691 = vmatmul.msk.f32.gmra.mxu0 %vm395_vm0, %v393_v18 }
 0x14d   : > { %11460 = vst [vmem:[#allocation25_spill] sm:$0xff] %v6838_v49  ;;  %1169 = vrot.lane.b32.xlu1 %v6841_v43, %s6371_s22  ;;  %5715 = vmatmul.msk.f32.gmra.mxu1 %vm759_vm1, %v6838_v49 }
 0x14e   : > { %5753 = vmatmul.msk.f32.gmra.mxu2 %vm759_vm1, %v6838_v49 }
 0x150   : > { %v599_v46 = vpop.f32.mrf.mxu0 }
 0x151   : > { %v665_v55 = vmax.f32 %v599_v46, 0.0 }
 0x152   : > { %v915_v58 = vpop.f32.mrf.mxu1 }
 0x153   : > { %v6850_v61 = vadd.f32 %v6593_v59, %v665_v55  ;;  %v6853_v54 = vadd.f32 %v915_v58, %v6730_v63  ;;  %v6891_v58 = vpop.f32.mrf.mxu2 }
 0x155   : > { %11461 = vst [vmem:[#allocation26_spill] sm:$0xff] %v6850_v61  ;;  %1171 = vrot.lane.b32.xlu0 %v6853_v54, %s6371_s22  ;;  %5716 = vmatmul.msk.f32.gmra.mxu1 %vm759_vm1, %v6850_v61 }
 0x156   : > { %5754 = vmatmul.msk.f32.gmra.mxu2 %vm759_vm1, %v6850_v61 }
 0x158   : > { %v602_v6 = vpop.f32.mrf.mxu0 }
 0x159   : > { %v666_v7 = vmax.f32 %v602_v6, 0.0 }
 0x15a   : > { %v918_v17 = vpop.f32.mrf.mxu1 }
 0x15b   : > { %v6864_v59 = vadd.f32 %v6605_v0, %v666_v7  ;;  %v6867_v19 = vadd.f32 %v918_v17, %v6730_v63 }
 0x15d   : > { %11462 = vst [vmem:[#allocation27_spill] sm:$0xff] %v6864_v59  ;;  %1173 = vrot.lane.b32.xlu2 %v6867_v19, %s6371_s22  ;;  %5717 = vmatmul.msk.f32.gmra.mxu1 %vm759_vm1, %v6864_v59 }
 0x15e   : > { %5755 = vmatmul.msk.f32.gmra.mxu2 %vm759_vm1, %v6864_v59 }
 0x160   : > { %v605_v31 = vpop.f32.mrf.mxu0 }
 0x161   : > { %v667_v0 = vmax.f32 %v605_v31, 0.0 }
 0x162   : > { %v921_v40 = vpop.f32.mrf.mxu1 }
 0x163   : > { %v6880_v46 = vadd.f32 %v6617_v5, %v667_v0  ;;  %v6883_v55 = vadd.f32 %v921_v40, %v6730_v63  ;;  %v6905_v40 = vpop.f32.mrf.mxu2 }
 0x165   : > { %11463 = vst [vmem:[#allocation28_spill] sm:$0xff] %v6880_v46  ;;  %1175 = vrot.lane.b32.xlu0 %v6883_v55, %s6371_s22  ;;  %5718 = vmatmul.msk.f32.gmra.mxu1 %vm759_vm1, %v6880_v46 }
 0x166   : > { %5756 = vmatmul.msk.f32.gmra.mxu2 %vm759_vm1, %v6880_v46 }
 0x168   : > { %v608_v6 = vpop.f32.mrf.mxu0 }
 0x169   : > { %v668_v7 = vmax.f32 %v608_v6, 0.0 }
 0x16a   : > { %v924_v17 = vpop.f32.mrf.mxu1 }
 0x16b   : > { %v6894_v5 = vadd.f32 %v6629_v10, %v668_v7  ;;  %v6897_v24 = vadd.f32 %v924_v17, %v6730_v63 }
 0x16d   : > { %11464 = vst [vmem:[#allocation29_spill] sm:$0xff] %v6894_v5  ;;  %1177 = vrot.lane.b32.xlu1 %v6897_v24, %s6371_s22  ;;  %5719 = vmatmul.msk.f32.gmra.mxu1 %vm759_vm1, %v6894_v5 }
 0x16e   : > { %5757 = vmatmul.msk.f32.gmra.mxu2 %vm759_vm1, %v6894_v5 }
 0x170   : > { %v611_v31 = vpop.f32.mrf.mxu0 }
 0x171   : > { %v669_v0 = vmax.f32 %v611_v31, 0.0 }
 0x172   : > { %v927_v6 = vpop.f32.mrf.mxu1 }
 0x173   : > { %v6908_v10 = vadd.f32 %v6641_v15, %v669_v0  ;;  %v6911_v7 = vadd.f32 %v927_v6, %v6730_v63  ;;  %v6925_v0 = vpop.f32.mrf.mxu2 }
 0x175   : > { %11465 = vst [vmem:[#allocation30_spill] sm:$0xff] %v6908_v10  ;;  %1179 = vrot.lane.b32.xlu0 %v6911_v7, %s6371_s22  ;;  %5720 = vmatmul.msk.f32.gmra.mxu1 %vm759_vm1, %v6908_v10 }
 0x176   : > { %5758 = vmatmul.msk.f32.gmra.mxu2 %vm759_vm1, %v6908_v10 }
 0x178   : > { %v614_v17 = vpop.f32.mrf.mxu0 }
 0x179   : > { %v670_v31 = vmax.f32 %v614_v17, 0.0 }
 0x17a   : > { %v930_v5 = vpop.f32.mrf.mxu1 }
 0x17b   : > { %v6920_v61 = vadd.f32 %v6653_v20, %v670_v31  ;;  %v6923_v15 = vadd.f32 %v930_v5, %v6730_v63  ;;  %v6943_v31 = vpop.f32.mrf.mxu2 }
 0x17c   : > { %11468 = vst [vmem:[#allocation33_spill] sm:$0xff] %v6943_v31 }
 0x17d   : > { %11466 = vst [vmem:[#allocation31_spill] sm:$0xff] %v6920_v61  ;;  %1181 = vrot.lane.b32.xlu2 %v6923_v15, %s6371_s22  ;;  %5721 = vmatmul.msk.f32.gmra.mxu1 %vm759_vm1, %v6920_v61 }
 0x17e   : > { %5759 = vmatmul.msk.f32.gmra.mxu2 %vm759_vm1, %v6920_v61 }
 0x180   : > { %v617_v6 = vpop.f32.mrf.mxu0 }
 0x181   : > { %v671_v17 = vmax.f32 %v617_v6, 0.0 }
 0x182   : > { %v933_v10 = vpop.f32.mrf.mxu1 }
 0x183   : > { %v6934_v20 = vadd.f32 %v6665_v25, %v671_v17  ;;  %v6937_v5 = vadd.f32 %v933_v10, %v6730_v63  ;;  %v6963_v46 = vpop.f32.mrf.mxu2 }
 0x184   : > { %11470 = vst [vmem:[#allocation35_spill] sm:$0xff] %v6963_v46 }
 0x185   : > { %11467 = vst [vmem:[#allocation32_spill] sm:$0xff] %v6934_v20  ;;  %1183 = vrot.lane.b32.xlu0 %v6937_v5, %s6371_s22  ;;  %5722 = vmatmul.msk.f32.gmra.mxu1 %vm759_vm1, %v6934_v20 }
 0x186   : > { %5760 = vmatmul.msk.f32.gmra.mxu2 %vm759_vm1, %v6934_v20 }
 0x187   : > { %v6947_v61 = vpop.permute.xlu0 %1155 }
 0x188   : > { %v620_v6 = vpop.f32.mrf.mxu0 }
 0x189   : > { %v672_v49 = vmax.f32 %v620_v6, 0.0 }
 0x18a   : > { %v936_v25 = vpop.f32.mrf.mxu1 }
 0x18b   : > { %v6950_v17 = vadd.f32 %v6677_v30, %v672_v49  ;;  %v6953_v10 = vadd.f32 %v936_v25, %v6730_v63  ;;  %v6977_v34 = vpop.f32.mrf.mxu2 }
 0x18c   : > { %11472 = vst [vmem:[#allocation37_spill] sm:$0xff] %v6977_v34 }
 0x18d   : > { %11469 = vst [vmem:[#allocation34_spill] sm:$0xff] %v6950_v17  ;;  %1185 = vrot.lane.b32.xlu2 %v6953_v10, %s6371_s22  ;;  %5723 = vmatmul.msk.f32.gmra.mxu1 %vm759_vm1, %v6950_v17 }
 0x18e   : > { %5761 = vmatmul.msk.f32.gmra.mxu2 %vm759_vm1, %v6950_v17  ;;  %v6975_v17 = vpop.permute.xlu2 %1159 }
 0x18f   : > { %v6961_v20 = vpop.permute.xlu0 %1157 }
 0x190   : > { %v623_v6 = vpop.f32.mrf.mxu0  ;;  %v1213_v49 = vmul.f32 %v6961_v20, %v6757_v22 }
 0x191   : > { %v673_v59 = vmax.f32 %v623_v6, 0.0 }
 0x192   : > { %v939_v30 = vpop.f32.mrf.mxu1  ;;  %v1234_v44 = vsel %vm759_vm1, %v1213_v49, 0.0 }
 0x193   : > { %v6968_v25 = vadd.f32 %v6689_v36, %v673_v59  ;;  %v1214_v36 = vmul.f32 %v6975_v17, %v6774_v35  ;;  %v6996_v60 = vpop.f32.mrf.mxu2  ;;  %v7036_v50 = vadd.f32 %v939_v30, %v6730_v63 }
 0x194   : > { %11475 = vst [vmem:[#allocation40_spill] sm:$0xff] %v6996_v60 }
 0x195   : > { %11471 = vst [vmem:[#allocation36_spill] sm:$0xff] %v6968_v25  ;;  %5724 = vmatmul.msk.f32.gmra.mxu1 %vm759_vm1, %v6968_v25  ;;  %v1237_v49 = vsel %vm759_vm1, %v1214_v36, 0.0 }
 0x196   : > { %5762 = vmatmul.msk.f32.gmra.mxu2 %vm759_vm1, %v6968_v25 }
 0x197   : > { %1235 = vadd.xlane.f32.xlu1 %v1234_v44 }
 0x198   : > { %v626_v12 = vpop.f32.mrf.mxu0 }
 0x199   : > { %v674_v6 = vmax.f32 %v626_v12, 0.0 }
 0x19a   : > { %v6979_v48 = vpop.f32.mrf.mxu1 }
 0x19b   : > { %v6984_v59 = vadd.f32 %v6701_v45, %v674_v6  ;;  %v6998_v45 = vpop.permute.xlu2 %1161 }
 0x19d   : > { %11473 = vst [vmem:[#allocation38_spill] sm:$0xff] %v6984_v59  ;;  %5725 = vmatmul.msk.f32.gmra.mxu1 %vm759_vm1, %v6984_v59 }
 0x19e   : > { %5763 = vmatmul.msk.f32.gmra.mxu2 %vm759_vm1, %v6984_v59 }
 0x19f   : > { %1238 = vadd.xlane.f32.xlu1 %v1237_v49 }
 0x1a0   : > { %v629_v12 = vpop.f32.mrf.mxu0 }
 0x1a1   : > { %v675_v44 = vmax.f32 %v629_v12, 0.0  ;;  %v1212_v12 = vmul.f32 %v6947_v61, %v6740_v11 }
 0x1a2   : > { %v6991_v25 = vpop.f32.mrf.mxu1 }
 0x1a3   : > { %v6994_v9 = vadd.f32 %v6713_v53, %v675_v44  ;;  %v7011_v53 = vpop.f32.mrf.mxu2  ;;  %v7013_v44 = vpop.permute.xlu2 %1163  ;;  %v1231_v32 = vsel %vm759_vm1, %v1212_v12, 0.0 }
 0x1a4   : > { %11477 = vst [vmem:[#allocation42_spill] sm:$0xff] %v7011_v53 }
 0x1a5   : > { %11474 = vst [vmem:[#allocation39_spill] sm:$0xff] %v6994_v9  ;;  %5726 = vmatmul.msk.f32.gmra.mxu1 %vm759_vm1, %v6994_v9 }
 0x1a6   : > { %5764 = vmatmul.msk.f32.gmra.mxu2 %vm759_vm1, %v6994_v9 }
 0x1a8   : > { %v632_v6 = vpop.f32.mrf.mxu0 }
 0x1a9   : > { %v676_v36 = vmax.f32 %v632_v6, 0.0  ;;  %v1216_v6 = vmul.f32 %v7013_v44, %v6801_v1 }
 0x1aa   : > { %v948_v49 = vpop.f32.mrf.mxu1 }
 0x1ab   : > { %v7007_v59 = vadd.f32 %v6733_v2, %v676_v36  ;;  %v1243_v2 = vsel %vm759_vm1, %v1216_v6, 0.0  ;;  %v7024_v36 = vadd.f32 %v948_v49, %v6730_v63  ;;  %v7050_v8 = vpop.f32.mrf.mxu2 }
 0x1ac   : > { %11480 = vst [vmem:[#allocation45_spill] sm:$0xff] %v7050_v8 }
 0x1ad   : > { %11476 = vst [vmem:[#allocation41_spill] sm:$0xff] %v7007_v59  ;;  %5727 = vmatmul.msk.f32.gmra.mxu1 %vm759_vm1, %v7007_v59 }
 0x1ae   : > { %5765 = vmatmul.msk.f32.gmra.mxu2 %vm759_vm1, %v7007_v59 }
 0x1af   : > { %1232 = vadd.xlane.f32.xlu0 %v1231_v32  ;;  %v7020_v21 = vpop.permute.xlu0 %1165 }
 0x1b2   : > { %v951_v9 = vpop.f32.mrf.mxu1 }
 0x1b3   : > { %v7029_v59 = vadd.f32 %v951_v9, %v6730_v63 }
 0x1b6   : > { %1244 = vadd.xlane.f32.xlu2 %v1243_v2 }
 0x1b7   : > { %v7031_v32 = vpop.permute.xlu0 %1167  ;;  %v7122_v53 = vpop.permute.xlu2 %1173 }
 0x1b8   : > { %1307 = vrot.lane.b32.xlu1 %v7024_v36, %s6371_s22  ;;  %11478 = vst [vmem:[#allocation43_spill] sm:$0xff] %v7031_v32  ;;  %v1218_v18 = vmul.f32 %v7031_v32, %v6827_v27 }
 0x1b9   : > { %11488 = vst [vmem:[#allocation53_spill] sm:$0xff] %v7122_v53 }
 0x1ba   : > { %v954_v12 = vpop.f32.mrf.mxu1 }
 0x1c0   : > { %1309 = vrot.lane.b32.xlu1 %v7029_v59, %s6371_s22 }
 0x1c1   : > { %v635_v28 = vpop.f32.mrf.mxu0 }
 0x1c2   : > { %v957_v6 = vpop.f32.mrf.mxu1  ;;  %v677_v23 = vmax.f32 %v635_v28, 0.0  ;;  %v1249_v28 = vsel %vm759_vm1, %v1218_v18, 0.0 }
 0x1c3   : > { %1187 = vrot.lane.b32.xlu0 %v7036_v50, %s6371_s22  ;;  %v7071_v52 = vadd.f32 %v957_v6, %v6730_v63 }
 0x1c4   : > { %v7048_v30 = vadd.f32 %v6750_v14, %v677_v23  ;;  %v1215_v23 = vmul.f32 %v6998_v45, %v6788_v51 }
 0x1c6   : > { %11479 = vst [vmem:[#allocation44_spill] sm:$0xff] %v7048_v30  ;;  %5728 = vmatmul.msk.f32.gmra.mxu1 %vm759_vm1, %v7048_v30  ;;  %5766 = vmatmul.msk.f32.gmra.mxu2 %vm759_vm1, %v7048_v30  ;;  %v1240_v3 = vsel %vm759_vm1, %v1215_v23, 0.0  ;;  %v7078_v23 = vadd.f32 %v954_v12, %v6730_v63 }
 0x1c7   : > { %v7040_v49 = vpop.permute.xlu0 %1171 }
 0x1c8   : > { %v1220_v2 = vmul.f32 %v7040_v49, %v6853_v54 }
 0x1ca   : > { %v960_v41 = vpop.f32.mrf.mxu1  ;;  %v1255_v9 = vsel %vm759_vm1, %v1220_v2, 0.0 }
 0x1cb   : > { %1256 = vadd.xlane.f32.xlu2 %v1255_v9 }
 0x1d2   : > { %v963_v33 = vpop.f32.mrf.mxu1 }
 0x1d3   : > { %v7057_v2 = vadd.f32 %v963_v33, %v6730_v63  ;;  %v1217_v33 = vmul.f32 %v7020_v21, %v6813_v39 }
 0x1d5   : > { %v1246_v62 = vsel %vm759_vm1, %v1217_v33, 0.0 }
 0x1d7   : > { %v7075_v18 = vpop.permute.xlu0 %1175 }
 0x1d8   : > { %11481 = vst [vmem:[#allocation46_spill] sm:$0xff] %v7075_v18 }
 0x1da   : > { %v966_v13 = vpop.f32.mrf.mxu1 }
 0x1e2   : > { %v969_v9 = vpop.f32.mrf.mxu1 }
 0x1e3   : > { %1317 = vrot.lane.b32.xlu2 %v7057_v2, %s6371_s22 }
 0x1ea   : > { %1250 = vadd.xlane.f32.xlu1 %v1249_v28  ;;  %v972_v14 = vpop.f32.mrf.mxu1  ;;  %v7083_v28 = vadd.f32 %v960_v41, %v6730_v63 }
 0x1eb   : > { %v7091_v33 = vadd.f32 %v972_v14, %v6730_v63  ;;  %v7110_v14 = vpop.permute.xlu1 %1169 }
 0x1ec   : > { %11485 = vst [vmem:[#allocation50_spill] sm:$0xff] %v7110_v14 }
 0x1ed   : > { %1241 = vadd.xlane.f32.xlu0 %v1240_v3  ;;  %v1222_v3 = vmul.f32 %v7075_v18, %v6883_v55 }
 0x1ef   : > { %v1261_v6 = vsel %vm759_vm1, %v1222_v3, 0.0  ;;  %v7104_v3 = vadd.f32 %v966_v13, %v6730_v63 }
 0x1f1   : > { %11484 = vst [vmem:[#allocation49_spill] sm:$0xff] %v7104_v3 }
 0x1f2   : > { %v975_v30 = vpop.f32.mrf.mxu1 }
 0x1f5   : > { %1247 = vadd.xlane.f32.xlu0 %v1246_v62 }
 0x1fa   : > { %v978_v57 = vpop.f32.mrf.mxu1 }
 0x202   : > { %v981_v42 = vpop.f32.mrf.mxu1 }
 0x203   : > { %1313 = vrot.lane.b32.xlu1 %v7071_v52, %s6371_s22 }
 0x209   : > { %1311 = vrot.lane.b32.xlu0 %v7078_v23, %s6371_s22 }
 0x20a   : > { %v984_v62 = vpop.f32.mrf.mxu1 }
 0x20b   : > { %1315 = vrot.lane.b32.xlu1 %v7083_v28, %s6371_s22  ;;  %v7096_v41 = vadd.f32 %v984_v62, %v6730_v63  ;;  %v7113_v62 = vadd.f32 %v978_v57, %v6730_v63 }
 0x20c   : > { %1262 = vadd.xlane.f32.xlu2 %v1261_v6  ;;  %v7119_v6 = vpop.permute.xlu1 %1177 }
 0x20d   : > { %11482 = vst [vmem:[#allocation47_spill] sm:$0xff] %v7096_v41  ;;  %v1223_v60 = vmul.f32 %v7119_v6, %v6897_v24 }
 0x20e   : > { %11486 = vst [vmem:[#allocation51_spill] sm:$0xff] %v7113_v62 }
 0x20f   : > { %11487 = vst [vmem:[#allocation52_spill] sm:$0xff] %v7119_v6 }
 0x212   : > { %v987_v12 = vpop.f32.mrf.mxu1 }
 0x213   : > { %1323 = vrot.lane.b32.xlu1 %v7091_v33, %s6371_s22 }
 0x214   : > { %v7126_v37 = vpop.xlane.xlu1 %1235 }
 0x21a   : > { %v990_v47 = vpop.f32.mrf.mxu1 }
 0x21b   : > { %1331 = vrot.lane.b32.xlu1 %v7096_v41, %s6371_s22  ;;  %v7101_v8 = vadd.f32 %v990_v47, %v6730_v63  ;;  %v1219_v47 = vmul.f32 %v7110_v14, %v6841_v43  ;;  %v1264_v14 = vsel %vm759_vm1, %v1223_v60, 0.0 }
 0x21c   : > { %v7132_v32 = vpop.xlane.xlu1 %1238 }
 0x21d   : > { %11483 = vst [vmem:[#allocation48_spill] sm:$0xff] %v7101_v8  ;;  %v1252_v13 = vsel %vm759_vm1, %v1219_v47, 0.0  ;;  %v7134_v47 = vpop.permute.xlu0 %1179 }
 0x21e   : > { %11489 = vst [vmem:[#allocation54_spill] sm:$0xff] %v7134_v47 }
 0x223   : > { %1335 = vrot.lane.b32.xlu1 %v7101_v8, %s6371_s22  ;;  %v1221_v8 = vmul.f32 %v7122_v53, %v6867_v19 }
 0x224   : > { %1319 = vrot.lane.b32.xlu2 %v7104_v3, %s6371_s22 }
 0x225   : > { %v1258_v57 = vsel %vm759_vm1, %v1221_v8, 0.0  ;;  %v7140_v3 = vpop.permute.xlu0 %1183 }
 0x22a   : > { %v7136_v41 = vpop.permute.xlu1 %1307 }
 0x22c   : > { %1327 = vrot.lane.b32.xlu2 %v7113_v62, %s6371_s22 }
 0x22d   : > { %v7152_v53 = vpop.xlane.xlu0 %1232 }
 0x232   : > { %v7146_v6 = vpop.permute.xlu1 %1309 }
 0x233   : > { %1253 = vadd.xlane.f32.xlu0 %v1252_v13  ;;  %v1364_v13 = vmul.f32 %v7136_v41, %v6740_v11  ;;  %v1365_v60 = vmul.f32 %v7146_v6, %v6757_v22 }
 0x235   : > { %v1383_v8 = vsel %vm759_vm1, %v1364_v13, 0.0  ;;  %v1386_v13 = vsel %vm759_vm1, %v1365_v60, 0.0  ;;  %v7169_v22 = vpop.permute.xlu0 %1187 }
 0x23b   : > { %1259 = vadd.xlane.f32.xlu0 %v1258_v57  ;;  %v7144_v57 = vadd.f32 %v969_v9, %v6730_v63  ;;  %v7159_v9 = vadd.f32 %v975_v30, %v6730_v63  ;;  %v993_v30 = vpop.f32.mrf.mxu1 }
 0x23d   : > { %11490 = vst [vmem:[#allocation55_spill] sm:$0xff] %v7144_v57 }
 0x23e   : > { %11492 = vst [vmem:[#allocation57_spill] sm:$0xff] %v7159_v9 }
 0x243   : > { %1265 = vadd.xlane.f32.xlu0 %v1264_v14  ;;  %v638_v14 = vpop.f32.mrf.mxu0 }
 0x244   : > { %v678_v11 = vmax.f32 %v638_v14, 0.0  ;;  %v7179_v14 = vadd.f32 %v987_v12, %v6730_v63 }
 0x246   : > { %v7155_v18 = vadd.f32 %v6767_v26, %v678_v11  ;;  %v7172_v26 = vadd.f32 %v981_v42, %v6730_v63  ;;  %11495 = vst [vmem:[#allocation60_spill] sm:$0xff] %v7179_v14  ;;  %v7188_v42 = vadd.f32 %v993_v30, %v6730_v63 }
 0x248   : > { %11491 = vst [vmem:[#allocation56_spill] sm:$0xff] %v7155_v18  ;;  %5729 = vmatmul.msk.f32.gmra.mxu1 %vm759_vm1, %v7155_v18 }
 0x249   : > { %11494 = vst [vmem:[#allocation59_spill] sm:$0xff] %v7172_v26 }
 0x24a   : > { %11496 = vst [vmem:[#allocation61_spill] sm:$0xff] %v7188_v42 }
 0x255   : > { %1384 = vadd.xlane.f32.xlu2 %v1383_v8  ;;  %v7163_v8 = vpop.f32.mrf.mxu2  ;;  %5767 = vmatmul.msk.f32.gmra.mxu2 %vm759_vm1, %v7155_v18 }
 0x256   : > { %11493 = vst [vmem:[#allocation58_spill] sm:$0xff] %v7163_v8 }
 0x257   : > { %1321 = vrot.lane.b32.xlu0 %v7144_v57, %s6371_s22 }
 0x25d   : > { %1387 = vadd.xlane.f32.xlu2 %v1386_v13  ;;  %v7181_v11 = vpop.xlane.xlu1 %1250  ;;  %v996_v13 = vpop.f32.mrf.mxu1 }
 0x25f   : > { %1325 = vrot.lane.b32.xlu0 %v7159_v9, %s6371_s22 }
 0x260   : > { %v7176_v60 = vpop.xlane.xlu0 %1241 }
 0x265   : > { %v999_v57 = vpop.f32.mrf.mxu1 }
 0x267   : > { %1329 = vrot.lane.b32.xlu0 %v7172_v26, %s6371_s22 }
 0x268   : > { %v7185_v18 = vpop.xlane.xlu0 %1247 }
 0x26f   : > { %1333 = vrot.lane.b32.xlu0 %v7179_v14, %s6371_s22  ;;  %v7200_v14 = vadd.f32 %v999_v57, %v6730_v63 }
 0x271   : > { %11499 = vst [vmem:[#allocation64_spill] sm:$0xff] %v7200_v14 }
 0x275   : > { %v7190_v8 = vpop.permute.xlu1 %1313 }
 0x276   : > { %11497 = vst [vmem:[#allocation62_spill] sm:$0xff] %v7190_v8  ;;  %v1367_v26 = vmul.f32 %v7190_v8, %v6788_v51 }
 0x277   : > { %1337 = vrot.lane.b32.xlu0 %v7188_v42, %s6371_s22 }
 0x278   : > { %v1392_v12 = vsel %vm759_vm1, %v1367_v26, 0.0 }
 0x279   : > { %1393 = vadd.xlane.f32.xlu1 %v1392_v12  ;;  %v7212_v12 = vpop.permute.xlu2 %1181 }
 0x27a   : > { %11501 = vst [vmem:[#allocation66_spill] sm:$0xff] %v7212_v12 }
 0x27b   : > { %v7197_v9 = vpop.permute.xlu0 %1311 }
 0x27c   : > { %11498 = vst [vmem:[#allocation63_spill] sm:$0xff] %v7197_v9  ;;  %v1366_v30 = vmul.f32 %v7197_v9, %v6774_v35  ;;  %v7219_v35 = vadd.f32 %v996_v13, %v6730_v63  ;;  %v7248_v9 = vadd.f32 %v6991_v25, %v6730_v63 }
 0x27d   : > { %v7204_v62 = vpop.permute.xlu1 %1315 }
 0x27e   : > { %11500 = vst [vmem:[#allocation65_spill] sm:$0xff] %v7204_v62  ;;  %v1389_v34 = vsel %vm759_vm1, %v1366_v30, 0.0  ;;  %v1368_v51 = vmul.f32 %v7204_v62, %v6801_v1 }
 0x27f   : > { %1390 = vadd.xlane.f32.xlu2 %v1389_v34  ;;  %1341 = vrot.lane.b32.xlu0 %v7200_v14, %s6371_s22  ;;  %11502 = vst [vmem:[#allocation67_spill] sm:$0xff] %v7219_v35  ;;  %v7225_v34 = vadd.f32 %v6979_v48, %v6730_v63 }
 0x280   : > { %v1395_v26 = vsel %vm759_vm1, %v1368_v51, 0.0  ;;  %v1225_v51 = vmul.f32 %v7212_v12, %v6923_v15 }
 0x281   : > { %1396 = vadd.xlane.f32.xlu1 %v1395_v26  ;;  %v7214_v57 = vpop.permute.xlu2 %1185 }
 0x282   : > { %v1270_v13 = vsel %vm759_vm1, %v1225_v51, 0.0 }
 0x289   : > { %v7216_v42 = vpop.xlane.xlu2 %1244 }
 0x291   : > { %v7227_v1 = vpop.xlane.xlu2 %1256 }
 0x292   : > { %11503 = vst [vmem:[#allocation68_spill] sm:$0xff] %v7227_v1 }
 0x297   : > { %1339 = vrot.lane.b32.xlu2 %v7219_v35, %s6371_s22  ;;  %v7240_v35 = vpop.f32.mrf.mxu2 }
 0x298   : > { %11506 = vst [vmem:[#allocation71_spill] sm:$0xff] %v7240_v35 }
 0x299   : > { %v7231_v30 = vpop.permute.xlu2 %1317 }
 0x29a   : > { %1189 = vrot.lane.b32.xlu1 %v7225_v34, %s6371_s22  ;;  %11504 = vst [vmem:[#allocation69_spill] sm:$0xff] %v7231_v30  ;;  %v1369_v12 = vmul.f32 %v7231_v30, %v6813_v39 }
 0x29c   : > { %v1398_v51 = vsel %vm759_vm1, %v1369_v12, 0.0  ;;  %v5942_v12 = vld [vmem:[%s11283_s6 + $0x18] sm:$0xff] }
 0x29d   : > { %2769 = vmatpush.bf16.msra.mxu3 %v5942_v12 }
 0x29f   : > { %v7252_v1 = vpop.f32.mrf.mxu2 }
 0x2a0   : > { %11509 = vst [vmem:[#allocation74_spill] sm:$0xff] %v7252_v1 }
 0x2a1   : > { %v7236_v26 = vpop.xlane.xlu2 %1262 }
 0x2a2   : > { %11505 = vst [vmem:[#allocation70_spill] sm:$0xff] %v7236_v26 }
 0x2a6   : > { %v7238_v14 = vpop.xlane.xlu0 %1253 }
 0x2a7   : > { %v7263_v25 = vpop.f32.mrf.mxu2 }
 0x2a8   : > { %11512 = vst [vmem:[#allocation77_spill] sm:$0xff] %v7263_v25 }
 0x2a9   : > { %1271 = vadd.xlane.f32.xlu0 %v1270_v13  ;;  %v7242_v48 = vpop.permute.xlu2 %1319 }
 0x2aa   : > { %11507 = vst [vmem:[#allocation72_spill] sm:$0xff] %v7242_v48  ;;  %v1370_v26 = vmul.f32 %v7242_v48, %v6827_v27 }
 0x2ac   : > { %v1401_v62 = vsel %vm759_vm1, %v1370_v26, 0.0 }
 0x2ae   : > { %v7244_v8 = vpop.xlane.xlu0 %1259 }
 0x2af   : > { %11508 = vst [vmem:[#allocation73_spill] sm:$0xff] %v7244_v8  ;;  %v5941_v8 = vld [vmem:[%s11283_s6 + $0x10] sm:$0xff]  ;;  %v7281_v46 = vpop.f32.mrf.mxu2 }
 0x2b0   : > { %2770 = vmatpush.bf16.msra.mxu3 %v5941_v8  ;;  %11515 = vst [vmem:[#allocation80_spill] sm:$0xff] %v7281_v46 }
 0x2b1   : > { %v7257_v13 = vpop.permute.xlu2 %1327 }
 0x2b2   : > { %11510 = vst [vmem:[#allocation75_spill] sm:$0xff] %v7257_v13 }
 0x2b6   : > { %v7259_v35 = vpop.xlane.xlu0 %1265 }
 0x2b7   : > { %11511 = vst [vmem:[#allocation76_spill] sm:$0xff] %v7259_v35  ;;  %v7274_v35 = vpop.permute.xlu1 %1323 }
 0x2b8   : > { %11514 = vst [vmem:[#allocation79_spill] sm:$0xff] %v7274_v35 }
 0x2bd   : > { %1191 = vrot.lane.b32.xlu0 %v7248_v9, %s6371_s22 }
 0x2c0   : > { %1399 = vadd.xlane.f32.xlu2 %v1398_v51 }
 0x2c8   : > { %v1385_v39 = vpop.xlane.xlu2 %1384  ;;  %1402 = vadd.xlane.f32.xlu2 %v1401_v62 }
 0x2c9   : > { %v1440_v1 = vmax.f32 %v7152_v53, %v1385_v39  ;;  %v7267_v30 = vpop.permute.xlu0 %1321 }
 0x2ca   : > { %11513 = vst [vmem:[#allocation78_spill] sm:$0xff] %v7267_v30  ;;  %v1371_v51 = vmul.f32 %v7267_v30, %v6841_v43 }
 0x2cb   : > { %v1459_v27 = vsub.f32 %v7152_v53, %v1440_v1  ;;  %v1516_v25 = vsub.f32 %v1385_v39, %v1440_v1  ;;  %v1224_v53 = vmul.f32 %v7134_v47, %v6911_v7 }
 0x2cc   : > { %v1404_v26 = vsel %vm759_vm1, %v1371_v51, 0.0 }
 0x2cd   : > { %v1478_v62 = vmul.f32 1.442695, %v1459_v27  ;;  %v1535_v48 = vmul.f32 1.442695, %v1516_v25  ;;  %1405 = vadd.xlane.f32.xlu1 %v1404_v26  ;;  %v5940_v25 = vld [vmem:[%s11283_s6 + $0x8] sm:$0xff] }
 0x2ce   : > { %2771 = vmatpush.bf16.msra.mxu3 %v5940_v25 }
 0x2cf   : > { %5978 = vpow2.f32 %v1478_v62  ;;  %v7298_v62 = vpop.permute.xlu1 %1331 }
 0x2d0   : > { %5980 = vpow2.f32 %v1535_v48  ;;  %v1388_v43 = vpop.xlane.xlu2 %1387  ;;  %v1267_v48 = vsel %vm759_vm1, %v1224_v53, 0.0  ;;  %11517 = vst [vmem:[#allocation82_spill] sm:$0xff] %v7298_v62 }
 0x2d1   : > { %v1441_v1 = vmax.f32 %v7126_v37, %v1388_v43  ;;  %v7286_v39 = vpop.permute.xlu0 %1325 }
 0x2d2   : > { %11516 = vst [vmem:[#allocation81_spill] sm:$0xff] %v7286_v39  ;;  %v1373_v12 = vmul.f32 %v7286_v39, %v6867_v19  ;;  %v5939_v19 = vld [vmem:[%s11283_s6] sm:$0xff] }
 0x2d3   : > { %v1460_v8 = vsub.f32 %v7126_v37, %v1441_v1  ;;  %v1517_v51 = vsub.f32 %v1388_v43, %v1441_v1  ;;  %2772 = vmatpush.bf16.msra.mxu3 %v5939_v19  ;;  %v1372_v43 = vmul.f32 %v7274_v35, %v6853_v54  ;;  %v7308_v1 = vpop.f32.mrf.mxu2  ;;  %v754_v35 = vperm.slane %v6719_v56, 2 }
 0x2d4   : > { %v1410_v27 = vsel %vm759_vm1, %v1373_v12, 0.0  ;;  %11519 = vst [vmem:[#allocation84_spill] sm:$0xff] %v7308_v1 }
 0x2d5   : > { %v7296_v26 = vpop.eup %5978  ;;  %v1480_v46 = vmul.f32 1.442695, %v1460_v8  ;;  %v1537_v47 = vmul.f32 1.442695, %v1517_v51  ;;  %1268 = vadd.xlane.f32.xlu1 %v1267_v48  ;;  %1411 = vadd.xlane.f32.xlu2 %v1410_v27  ;;  %v1407_v12 = vsel %vm759_vm1, %v1372_v43, 0.0  ;;  %v1374_v27 = vmul.f32 %v7257_v13, %v6883_v55 }
 0x2d6   : > { %v5981_v39 = vpop.eup %5980 }
 0x2d7   : > { %v1573_v37 = vadd.f32 %v5981_v39, %v7296_v26  ;;  %5982 = vpow2.f32 %v1480_v46  ;;  %v7318_v54 = vpop.permute.xlu1 %1335 }
 0x2d8   : > { %5984 = vpow2.f32 %v1537_v47  ;;  %11520 = vst [vmem:[#allocation85_spill] sm:$0xff] %v7318_v54  ;;  %v1378_v43 = vmul.f32 %v7318_v54, %v6937_v5 }
 0x2d9   : > { %5986 = vrcp.f32 %v1573_v37  ;;  %v7306_v53 = vpop.permute.xlu0 %1329  ;;  %v1603_v55 = vand.u32 2147483648, %v1573_v37  ;;  %vm1597_vm3 = vweird.f32 %v1573_v37  ;;  %v1601_v13 = vand.u32 2147483647, %v1573_v37 }
 0x2da   : > { %11518 = vst [vmem:[#allocation83_spill] sm:$0xff] %v7306_v53  ;;  %v1375_v25 = vmul.f32 %v7306_v53, %v6897_v24  ;;  %v1376_v24 = vmul.f32 %v7298_v62, %v6911_v7  ;;  %v1425_v7 = vsel %vm759_vm1, %v1378_v43, 0.0 }
 0x2db   : > { %v1604_v54 = vor.u32 1.1754944e-38, %v1603_v55  ;;  %vm1602_vm5 = vcmp.eq.f32.partialorder %v1601_v13, 8.507059e+37 }
 0x2dc   : > { %v1416_v8 = vsel %vm759_vm1, %v1375_v25, 0.0  ;;  %v1419_v1 = vsel %vm759_vm1, %v1376_v24, 0.0 }
 0x2dd   : > { %v7314_v51 = vpop.eup %5982  ;;  %1408 = vadd.xlane.f32.xlu1 %v1407_v12  ;;  %1417 = vadd.xlane.f32.xlu2 %v1416_v8  ;;  %v1079_v12 = vpop.f32.mrf.mxu2  ;;  %v1413_v8 = vsel %vm759_vm1, %v1374_v27, 0.0  ;;  %v1226_v27 = vmul.f32 %v7140_v3, %v6937_v5 }
 0x2de   : > { %v7316_v46 = vpop.eup %5984 }
 0x2df   : > { %v5987_v47 = vpop.eup %5986  ;;  %v1574_v48 = vadd.f32 %v7316_v46, %v7314_v51 }
 0x2e0   : > { %v1593_v19 = vmul.f32 %v5987_v47, %v1573_v37  ;;  %vm1598_vm2 = vweird.f32 %v5987_v47 }
 0x2e1   : > { %5988 = vrcp.f32 %v1574_v48  ;;  %vm1599_vm4 = vmor %vm1597_vm3, %vm1598_vm2  ;;  %v1616_v37 = vand.u32 2147483647, %v1574_v48  ;;  %vm1612_vm7 = vweird.f32 %v1574_v48 }
 0x2e2   : > { %v1594_v25 = vsub.f32 1.0, %v1593_v19 }
 0x2e3   : > { %vm1617_vm9 = vcmp.eq.f32.partialorder %v1616_v37, 8.507059e+37 }
 0x2e4   : > { %v1595_v53 = vmul.f32 %v5987_v47, %v1594_v25  ;;  %v7334_v25 = vperm.slane %v754_v35, 0 }
 0x2e5   : > { %1414 = vadd.xlane.f32.xlu1 %v1413_v8  ;;  %1420 = vadd.xlane.f32.xlu2 %v1419_v1  ;;  %v1618_v8 = vand.u32 2147483648, %v1574_v48  ;;  %v1082_v35 = vpop.f32.mrf.mxu2 }
 0x2e6   : > { %v1596_v62 = vadd.f32 %v5987_v47, %v1595_v53  ;;  %v1273_v53 = vsel %vm759_vm1, %v1226_v27, 0.0 }
 0x2e7   : > { %v5989_v30 = vpop.eup %5988  ;;  %1426 = vadd.xlane.f32.xlu0 %v1425_v7  ;;  %v7339_v7 = vadd.f32 %v6821_v16, %v7334_v25  ;;  %v7349_v16 = vadd.f32 %v1079_v12, %v7334_v25 }
 0x2e8   : > { %v1600_v19 = vsel %vm1599_vm4, %v5987_v47, %v1596_v62  ;;  %v1608_v24 = vmul.f32 %v5989_v30, %v1574_v48  ;;  %vm1613_vm6 = vweird.f32 %v5989_v30 }
 0x2e9   : > { %v1605_v1 = vsel %vm1602_vm5, %v1604_v54, %v1600_v19  ;;  %11521 = vst [vmem:[#allocation86_spill] sm:$0xff] %v7339_v7  ;;  %v7345_v54 = vadd.f32 %v6835_v38, %v7334_v25  ;;  %vm1614_vm8 = vmor %vm1612_vm7, %vm1613_vm6  ;;  %v1619_v19 = vor.u32 1.1754944e-38, %v1618_v8 }
 0x2ea   : > { %v1609_v56 = vsub.f32 1.0, %v1608_v24  ;;  %v1877_v13 = vmul.f32 %v7296_v26, %v1605_v1  ;;  %v1915_v47 = vmul.f32 %v5981_v39, %v1605_v1  ;;  %11523 = vst [vmem:[#allocation88_spill] sm:$0xff] %v7349_v16  ;;  %v1227_v24 = vmul.f32 %v7214_v57, %v6953_v10 }
 0x2eb   : > { %11522 = vst [vmem:[#allocation87_spill] sm:$0xff] %v7345_v54  ;;  %v7354_v26 = vadd.f32 %v1082_v35, %v7334_v25 }
 0x2ec   : > { %v1394_v31 = vpop.xlane.xlu1 %1393  ;;  %v1610_v43 = vmul.f32 %v5989_v30, %v1609_v56  ;;  %v1934_v12 = vmul.f32 %v1915_v47, %v7349_v16 }
 0x2ed   : > { %v1443_v5 = vmax.f32 %v7176_v60, %v1394_v31  ;;  %1274 = vadd.xlane.f32.xlu1 %v1273_v53  ;;  %11524 = vst [vmem:[#allocation89_spill] sm:$0xff] %v7354_v26 }
 0x2ee   : > { %v1611_v62 = vadd.f32 %v5989_v30, %v1610_v43 }
 0x2ef   : > { %v1462_v55 = vsub.f32 %v7176_v60, %v1443_v5  ;;  %v1519_v27 = vsub.f32 %v1394_v31, %v1443_v5  ;;  %v1896_v31 = vmul.f32 %v1877_v13, %v7339_v7  ;;  %v7364_v5 = vpop.permute.xlu0 %1333  ;;  %v1002_v13 = vpop.f32.mrf.mxu1 }
 0x2f0   : > { %v1615_v56 = vsel %vm1614_vm8, %v5989_v30, %v1611_v62  ;;  %v1276_v30 = vsel %vm759_vm1, %v1227_v24, 0.0 }
 0x2f1   : > { %v1484_v39 = vmul.f32 1.442695, %v1462_v55  ;;  %v1541_v48 = vmul.f32 1.442695, %v1519_v27  ;;  %v1620_v38 = vsel %vm1617_vm9, %v1619_v19, %v1615_v56  ;;  %v1953_v62 = vadd.f32 %v1934_v12, %v1896_v31 }
 0x2f2   : > { %v1391_v1 = vpop.xlane.xlu2 %1390  ;;  %v1878_v60 = vmul.f32 %v7314_v51, %v1620_v38  ;;  %v1916_v8 = vmul.f32 %v7316_v46, %v1620_v38  ;;  %v1377_v19 = vmul.f32 %v7364_v5, %v6923_v15  ;;  %v7370_v56 = vadd.f32 %v1002_v13, %v6730_v63 }
 0x2f3   : > { %5990 = vpow2.f32 %v1484_v39  ;;  %v1442_v53 = vmax.f32 %v7132_v32, %v1391_v1 }
 0x2f4   : > { %5992 = vpow2.f32 %v1541_v48  ;;  %v1897_v43 = vmul.f32 %v1878_v60, %v7345_v54  ;;  %v1935_v37 = vmul.f32 %v1916_v8, %v7354_v26  ;;  %v1422_v48 = vsel %vm759_vm1, %v1377_v19, 0.0  ;;  %v1397_v31 = vpop.xlane.xlu1 %1396  ;;  %v1085_v8 = vpop.f32.mrf.mxu2 }
 0x2f5   : > { %v1461_v51 = vsub.f32 %v7132_v32, %v1442_v53  ;;  %v1518_v35 = vsub.f32 %v1391_v1, %v1442_v53  ;;  %1277 = vadd.xlane.f32.xlu1 %v1276_v30 }
 0x2f6   : > { %v1954_v46 = vadd.f32 %v1935_v37, %v1897_v43 }
 0x2f7   : > { %v1482_v47 = vmul.f32 1.442695, %v1461_v51  ;;  %v1539_v55 = vmul.f32 1.442695, %v1518_v35 }
 0x2f8   : > { %v2656_v27 = vpack.c.bf16 %v1954_v46, %v1953_v62 }
 0x2f9   : > { %v5991_v24 = vpop.eup %5990  ;;  %5994 = vpow2.f32 %v1482_v47 }
 0x2fa   : > { %v5993_v39 = vpop.eup %5992  ;;  %5996 = vpow2.f32 %v1539_v55  ;;  %5784 = vmatmul.msk.bf16.vlgmr.msra.gmra.mxu3 %vm759_vm1, %v2656_v27 }
 0x2fb   : > { %v1576_v32 = vadd.f32 %v5993_v39, %v5991_v24 }
 0x2fd   : > { %5998 = vrcp.f32 %v1576_v32  ;;  %1423 = vadd.xlane.f32.xlu1 %v1422_v48  ;;  %1343 = vrot.lane.b32.xlu2 %v7370_v56, %s6371_s22  ;;  %v1648_v53 = vand.u32 2147483648, %v1576_v32  ;;  %v1646_v43 = vand.u32 2147483647, %v1576_v32  ;;  %vm1642_vm11 = vweird.f32 %v1576_v32 }
 0x2ff   : > { %v5995_v38 = vpop.eup %5994  ;;  %v1649_v62 = vor.u32 1.1754944e-38, %v1648_v53  ;;  %vm1647_vm13 = vcmp.eq.f32.partialorder %v1646_v43, 8.507059e+37 }
 0x300   : > { %v5997_v1 = vpop.eup %5996 }
 0x301   : > { %v1575_v15 = vadd.f32 %v5997_v1, %v5995_v38 }
 0x303   : > { %v5999_v60 = vpop.eup %5998  ;;  %6000 = vrcp.f32 %v1575_v15  ;;  %v1633_v27 = vand.u32 2147483648, %v1575_v15  ;;  %vm1627_vm15 = vweird.f32 %v1575_v15 }
 0x304   : > { %v1638_v63 = vmul.f32 %v5999_v60, %v1576_v32  ;;  %vm1643_vm10 = vweird.f32 %v5999_v60 }
 0x305   : > { %vm1644_vm12 = vmor %vm1642_vm11, %vm1643_vm10  ;;  %v1634_v43 = vor.u32 1.1754944e-38, %v1633_v27 }
 0x306   : > { %v1639_v12 = vsub.f32 1.0, %v1638_v63  ;;  %v1631_v63 = vand.u32 2147483647, %v1575_v15 }
 0x308   : > { %v1640_v30 = vmul.f32 %v5999_v60, %v1639_v12  ;;  %v1088_v12 = vpop.f32.mrf.mxu2  ;;  %vm1632_vm2 = vcmp.eq.f32.partialorder %v1631_v63, 8.507059e+37  ;;  %v7406_v63 = vpop.permute.xlu2 %1339 }
 0x309   : > { %v6001_v37 = vpop.eup %6000 }
 0x30a   : > { %v1623_v51 = vmul.f32 %v6001_v37, %v1575_v15  ;;  %v1641_v35 = vadd.f32 %v5999_v60, %v1640_v30  ;;  %vm1628_vm14 = vweird.f32 %v6001_v37  ;;  %v7381_v30 = vpop.permute.xlu0 %1337 }
 0x30b   : > { %vm1629_vm0 = vmor %vm1627_vm15, %vm1628_vm14 }
 0x30c   : > { %v7376_v46 = vpop.permute.xlu1 %1189  ;;  %v1624_v13 = vsub.f32 1.0, %v1623_v51  ;;  %v1645_v47 = vsel %vm1644_vm12, %v5999_v60, %v1641_v35  ;;  %v1444_v60 = vmax.f32 %v7216_v42, %v1397_v31  ;;  %v7386_v35 = vadd.f32 %v6875_v29, %v7334_v25 }
 0x30d   : > { %11525 = vst [vmem:[#allocation90_spill] sm:$0xff] %v7376_v46  ;;  %v1229_v55 = vmul.f32 %v7376_v46, %v7225_v34  ;;  %v1650_v19 = vsel %vm1647_vm13, %v1649_v62, %v1645_v47  ;;  %v7389_v62 = vadd.f32 %v1088_v12, %v7334_v25  ;;  %v11551_v46 = vld [vmem:[#allocation55_spill] sm:$0xff] }
 0x30e   : > { %v1625_v48 = vmul.f32 %v6001_v37, %v1624_v13  ;;  %v1880_v53 = vmul.f32 %v5991_v24, %v1650_v19  ;;  %v1918_v51 = vmul.f32 %v5993_v39, %v1650_v19  ;;  %11526 = vst [vmem:[#allocation91_spill] sm:$0xff] %v7386_v35  ;;  %v7396_v24 = vadd.f32 %v1085_v8, %v7334_v25 }
 0x30f   : > { %v1282_v26 = vsel %vm759_vm1, %v1229_v55, 0.0  ;;  %11527 = vst [vmem:[#allocation92_spill] sm:$0xff] %v7389_v62  ;;  %v1379_v39 = vmul.f32 %v7381_v30, %v6953_v10  ;;  %v1520_v19 = vsub.f32 %v1397_v31, %v1444_v60 }
 0x310   : > { %1283 = vadd.xlane.f32.xlu1 %v1282_v26  ;;  %v1626_v32 = vadd.f32 %v6001_v37, %v1625_v48  ;;  %v7393_v26 = vadd.f32 %v6855_v4, %v7334_v25  ;;  %11529 = vst [vmem:[#allocation94_spill] sm:$0xff] %v7396_v24  ;;  %v1899_v29 = vmul.f32 %v1880_v53, %v7386_v35 }
 0x311   : > { %v1937_v27 = vmul.f32 %v1918_v51, %v7389_v62  ;;  %v1428_v8 = vsel %vm759_vm1, %v1379_v39, 0.0  ;;  %v1228_v51 = vmul.f32 %v7169_v22, %v7036_v50 }
 0x312   : > { %v1630_v13 = vsel %vm1629_vm0, %v6001_v37, %v1626_v32  ;;  %11528 = vst [vmem:[#allocation93_spill] sm:$0xff] %v7393_v26  ;;  %v1463_v37 = vsub.f32 %v7216_v42, %v1444_v60  ;;  %v1543_v32 = vmul.f32 1.442695, %v1520_v19  ;;  %v7411_v42 = vpop.permute.xlu0 %1341  ;;  %v2049_v19 = vmul.f32 %v7146_v6, %v7029_v59 }
 0x313   : > { %v1635_v15 = vsel %vm1632_vm2, %v1634_v43, %v1630_v13  ;;  %v1956_v12 = vadd.f32 %v1937_v27, %v1899_v29  ;;  %11530 = vst [vmem:[#allocation95_spill] sm:$0xff] %v7411_v42  ;;  %v1381_v43 = vmul.f32 %v7411_v42, %v7225_v34  ;;  %v1279_v39 = vsel %vm759_vm1, %v1228_v51, 0.0 }
 0x314   : > { %v1879_v47 = vmul.f32 %v5995_v38, %v1635_v15  ;;  %v1917_v55 = vmul.f32 %v5997_v1, %v1635_v15  ;;  %v1486_v38 = vmul.f32 1.442695, %v1463_v37  ;;  %v1380_v1 = vmul.f32 %v7406_v63, %v7036_v50 }
 0x315   : > { %v1434_v29 = vsel %vm759_vm1, %v1381_v43, 0.0  ;;  %v2048_v50 = vmul.f32 %v7136_v41, %v7024_v36  ;;  %v1972_v6 = vmul.f32 %v6947_v61, %v7024_v36  ;;  %v1976_v51 = vmul.f32 %v7013_v44, %v7083_v28 }
 0x316   : > { %v1898_v48 = vmul.f32 %v1879_v47, %v7393_v26  ;;  %v1936_v4 = vmul.f32 %v1917_v55, %v7396_v24  ;;  %6002 = vpow2.f32 %v1486_v38  ;;  %v1431_v31 = vsel %vm759_vm1, %v1380_v1, 0.0  ;;  %v11552_v24 = vld [vmem:[#allocation78_spill] sm:$0xff] }
 0x317   : > { %6004 = vpow2.f32 %v1543_v32  ;;  %v2067_v34 = vsel %vm759_vm1, %v2048_v50, 0.0  ;;  %v1991_v43 = vsel %vm759_vm1, %v1972_v6, 0.0  ;;  %v2003_v50 = vsel %vm759_vm1, %v1976_v51, 0.0 }
 0x318   : > { %1429 = vadd.xlane.f32.xlu1 %v1428_v8  ;;  %v1955_v10 = vadd.f32 %v1936_v4, %v1898_v48  ;;  %v1974_v61 = vmul.f32 %v6975_v17, %v7078_v23  ;;  %v7463_v44 = vadd.f32 %v6891_v58, %v7334_v25  ;;  %v2055_v26 = vmul.f32 %v11552_v24, %v11551_v46 }
 0x31a   : > { %v2657_v53 = vpack.c.bf16 %v1956_v12, %v1955_v10  ;;  %v7446_v10 = vpop.f32.mrf.mxu2  ;;  %v2070_v12 = vsel %vm759_vm1, %v2049_v19, 0.0  ;;  %11532 = vst [vmem:[#allocation97_spill] sm:$0xff] %v7463_v44 }
 0x31c   : > { %5785 = vmatmul.msk.bf16.gmra.mxu3 %vm759_vm1, %v2657_v53  ;;  %v7416_v60 = vpop.eup %6002  ;;  %v7427_v47 = vpop.xlane.xlu0 %1271 }
 0x31d   : > { %v7420_v13 = vpop.eup %6004 }
 0x31e   : > { %v7425_v15 = vadd.f32 %v7420_v13, %v7416_v60 }
 0x320   : > { %1432 = vadd.xlane.f32.xlu1 %v1431_v31  ;;  %6006 = vrcp.f32 %v7425_v15  ;;  %vm1657_vm4 = vweird.f32 %v7425_v15  ;;  %v1661_v6 = vand.u32 2147483647, %v7425_v15 }
 0x322   : > { %v1094_v19 = vpop.f32.mrf.mxu2  ;;  %vm1662_vm6 = vcmp.eq.f32.partialorder %v1661_v6, 8.507059e+37  ;;  %v11543_v6 = vld [vmem:[#allocation57_spill] sm:$0xff] }
 0x326   : > { %1280 = vadd.xlane.f32.xlu2 %v1279_v39  ;;  %v7438_v37 = vpop.eup %6006 }
 0x327   : > { %v1653_v8 = vmul.f32 %v7438_v37, %v7425_v15  ;;  %vm1658_vm3 = vweird.f32 %v7438_v37 }
 0x328   : > { %1435 = vadd.xlane.f32.xlu1 %v1434_v29  ;;  %vm7493_vm5 = vmor %vm1657_vm4, %vm1658_vm3 }
 0x329   : > { %v1654_v31 = vsub.f32 1.0, %v1653_v8 }
 0x32e   : > { %2068 = vadd.xlane.f32.xlu2 %v2067_v34 }
 0x32f   : > { %v7434_v55 = vpop.permute.xlu0 %1191 }
 0x330   : > { %11531 = vst [vmem:[#allocation96_spill] sm:$0xff] %v7434_v55  ;;  %v1230_v27 = vmul.f32 %v7434_v55, %v7248_v9 }
 0x332   : > { %v1285_v48 = vsel %vm759_vm1, %v1230_v27, 0.0  ;;  %v7467_v27 = vadd.f32 %v6905_v40, %v7334_v25  ;;  %v1997_v40 = vsel %vm759_vm1, %v1974_v61, 0.0  ;;  %v11539_v61 = vld [vmem:[#allocation37_spill] sm:$0xff] }
 0x333   : > { %v1400_v4 = vpop.xlane.xlu2 %1399  ;;  %1286 = vadd.xlane.f32.xlu1 %v1285_v48  ;;  %v1977_v48 = vmul.f32 %v7020_v21, %v7057_v2  ;;  %v1973_v21 = vmul.f32 %v6961_v20, %v7029_v59  ;;  %v7499_v59 = vadd.f32 %v6925_v0, %v7334_v25  ;;  %v11538_v0 = vld [vmem:[#allocation35_spill] sm:$0xff]  ;;  %v11546_v20 = vld [vmem:[#allocation73_spill] sm:$0xff] }
 0x334   : > { %v1445_v41 = vmax.f32 %v7185_v18, %v1400_v4  ;;  %11533 = vst [vmem:[#allocation98_spill] sm:$0xff] %v7467_v27 }
 0x336   : > { %v1464_v38 = vsub.f32 %v7185_v18, %v1445_v41  ;;  %v1521_v32 = vsub.f32 %v1400_v4, %v1445_v41  ;;  %2071 = vadd.xlane.f32.xlu2 %v2070_v12  ;;  %v1655_v18 = vmul.f32 %v7438_v37, %v1654_v31  ;;  %v1975_v31 = vmul.f32 %v6998_v45, %v7071_v52 }
 0x338   : > { %v1488_v53 = vmul.f32 1.442695, %v1464_v38  ;;  %v1545_v1 = vmul.f32 1.442695, %v1521_v32  ;;  %v1663_v38 = vand.u32 2147483648, %v7425_v15  ;;  %v2006_v15 = vsel %vm759_vm1, %v1977_v48, 0.0 }
 0x339   : > { %v7524_v48 = vsel %vm759_vm1, %v1973_v21, 0.0  ;;  %v7541_v21 = vadd.f32 %v1094_v19, %v7334_v25 }
 0x33a   : > { %6008 = vpow2.f32 %v1488_v53 }
 0x33b   : > { %6010 = vpow2.f32 %v1545_v1  ;;  %v1403_v39 = vpop.xlane.xlu2 %1402  ;;  %1992 = vadd.xlane.f32.xlu1 %v1991_v43  ;;  %v1664_v43 = vor.u32 1.1754944e-38, %v1663_v38  ;;  %11545 = vst [vmem:[#allocation37_spill] sm:$0xff] %v7541_v21 }
 0x33c   : > { %v1446_v29 = vmax.f32 %v7181_v11, %v1403_v39 }
 0x33e   : > { %v1465_v36 = vsub.f32 %v7181_v11, %v1446_v29  ;;  %v1522_v34 = vsub.f32 %v1403_v39, %v1446_v29  ;;  %2004 = vadd.xlane.f32.xlu2 %v2003_v50  ;;  %v1656_v11 = vadd.f32 %v7438_v37, %v1655_v18  ;;  %v1980_v39 = vmul.f32 %v7040_v49, %v7091_v33  ;;  %v11536_v29 = vld [vmem:[#allocation33_spill] sm:$0xff] }
 0x33f   : > { %v7510_v18 = vadd.f32 %v11536_v29, %v7334_v25  ;;  %v7514_v50 = vadd.f32 %v11538_v0, %v7334_v25  ;;  %v11549_v0 = vld [vmem:[#allocation69_spill] sm:$0xff] }
 0x340   : > { %v7471_v4 = vpop.eup %6008  ;;  %v1490_v41 = vmul.f32 1.442695, %v1465_v36  ;;  %v1547_v17 = vmul.f32 1.442695, %v1522_v34  ;;  %v1406_v8 = vpop.xlane.xlu1 %1405  ;;  %v7518_v36 = vadd.f32 %v11539_v61, %v7334_v25  ;;  %v2000_v34 = vsel %vm759_vm1, %v1975_v31, 0.0 }
 0x341   : > { %v7475_v12 = vpop.eup %6010  ;;  %v1447_v58 = vmax.f32 %v7238_v14, %v1406_v8  ;;  %11537 = vst [vmem:[#allocation33_spill] sm:$0xff] %v7510_v18  ;;  %v2053_v61 = vmul.f32 %v11549_v0, %v7057_v2 }
 0x342   : > { %v7484_v32 = vadd.f32 %v7475_v12, %v7471_v4  ;;  %6012 = vpow2.f32 %v1490_v41 }
 0x343   : > { %6014 = vpow2.f32 %v1547_v17  ;;  %v1466_v53 = vsub.f32 %v7238_v14, %v1447_v58  ;;  %v1523_v1 = vsub.f32 %v1406_v8, %v1447_v58  ;;  %1998 = vadd.xlane.f32.xlu1 %v1997_v40  ;;  %v1660_v14 = vsel %vm7493_vm5, %v7438_v37, %v1656_v11  ;;  %v7520_v37 = vpop.f32.mrf.mxu2  ;;  %v11541_v58 = vld [vmem:[#allocation51_spill] sm:$0xff]  ;;  %v11542_v40 = vld [vmem:[#allocation46_spill] sm:$0xff] }
 0x344   : > { %6016 = vrcp.f32 %v7484_v32  ;;  %v1665_v49 = vsel %vm1662_vm6, %v1664_v43, %v1660_v14  ;;  %v7530_v17 = vadd.f32 %v7446_v10, %v7334_v25  ;;  %v1982_v38 = vmul.f32 %v11542_v40, %v11541_v58  ;;  %v11547_v14 = vld [vmem:[#allocation49_spill] sm:$0xff]  ;;  %v11548_v10 = vld [vmem:[#allocation72_spill] sm:$0xff] }
 0x345   : > { %v1492_v51 = vmul.f32 1.442695, %v1466_v53  ;;  %v1549_v45 = vmul.f32 1.442695, %v1523_v1  ;;  %v11544_v53 = vld [vmem:[#allocation53_spill] sm:$0xff]  ;;  %v1881_v40 = vmul.f32 %v7416_v60, %v1665_v49  ;;  %v1919_v19 = vmul.f32 %v7420_v13, %v1665_v49 }
 0x346   : > { %2007 = vadd.xlane.f32.xlu2 %v2006_v15  ;;  %11540 = vst [vmem:[#allocation35_spill] sm:$0xff] %v7530_v17  ;;  %v1981_v1 = vmul.f32 %v11544_v53, %v11543_v6  ;;  %v7565_v2 = vsel %vm759_vm1, %v1982_v38, 0.0  ;;  %v1678_v24 = vand.u32 2147483648, %v7484_v32  ;;  %vm1672_vm8 = vweird.f32 %v7484_v32 }
 0x347   : > { %6018 = vpow2.f32 %v1492_v51  ;;  %v2054_v51 = vmul.f32 %v11548_v10, %v11547_v14  ;;  %v11550_v10 = vld [vmem:[#allocation65_spill] sm:$0xff]  ;;  %v1900_v38 = vmul.f32 %v1881_v40, %v7463_v44  ;;  %v11553_v40 = vld [vmem:[#allocation68_spill] sm:$0xff] }
 0x348   : > { %v7526_v41 = vpop.eup %6012  ;;  %6020 = vpow2.f32 %v1549_v45  ;;  %v7532_v8 = vpop.xlane.xlu1 %1268  ;;  %v7547_v45 = vsel %vm759_vm1, %v1980_v39, 0.0  ;;  %v2052_v39 = vmul.f32 %v11550_v10, %v7083_v28  ;;  %v7568_v60 = vsel %vm759_vm1, %v1981_v1, 0.0 }
 0x349   : > { %v1412_v11 = vpop.xlane.xlu2 %1411  ;;  %v7538_v31 = vpop.eup %6014  ;;  %v1938_v1 = vmul.f32 %v1919_v19, %v7530_v17  ;;  %v1676_v10 = vand.u32 2147483647, %v7484_v32  ;;  %v11554_v17 = vld [vmem:[#allocation76_spill] sm:$0xff] }
 0x34a   : > { %v1449_v15 = vmax.f32 %v11546_v20, %v1412_v11  ;;  %v6017_v43 = vpop.eup %6016  ;;  %v7551_v29 = vadd.f32 %v7538_v31, %v7526_v41 }
 0x34b   : > { %2001 = vadd.xlane.f32.xlu1 %v2000_v34  ;;  %v1668_v35 = vmul.f32 %v6017_v43, %v7484_v32  ;;  %vm1673_vm7 = vweird.f32 %v6017_v43  ;;  %vm1677_vm10 = vcmp.eq.f32.partialorder %v1676_v10, 8.507059e+37 }
 0x34c   : > { %v1468_v53 = vsub.f32 %v11546_v20, %v1449_v15  ;;  %v1525_v62 = vsub.f32 %v1412_v11, %v1449_v15  ;;  %6022 = vrcp.f32 %v7551_v29  ;;  %v2085_v11 = vsel %vm759_vm1, %v2054_v51, 0.0  ;;  %vm1674_vm9 = vmor %vm1672_vm8, %vm1673_vm7 }
 0x34d   : > { %v7570_v13 = vpop.eup %6018  ;;  %v1669_v28 = vsub.f32 1.0, %v1668_v35  ;;  %v7576_v15 = vsel %vm759_vm1, %v2053_v61, 0.0  ;;  %v2088_v61 = vsel %vm759_vm1, %v2055_v26, 0.0  ;;  %v1691_v26 = vand.u32 2147483647, %v7551_v29 }
 0x34e   : > { %v1496_v49 = vmul.f32 1.442695, %v1468_v53  ;;  %v1553_v34 = vmul.f32 1.442695, %v1525_v62  ;;  %v7573_v20 = vpop.eup %6020  ;;  %2086 = vadd.xlane.f32.xlu2 %v2085_v11  ;;  %v2079_v62 = vsel %vm759_vm1, %v2052_v39, 0.0  ;;  %v7588_v11 = vpop.f32.mrf.mxu2  ;;  %v1679_v39 = vor.u32 1.1754944e-38, %v1678_v24 }
 0x34f   : > { %v7583_v0 = vadd.f32 %v7573_v20, %v7570_v13  ;;  %v1670_v35 = vmul.f32 %v6017_v43, %v1669_v28  ;;  %vm1687_vm11 = vweird.f32 %v7551_v29  ;;  %vm7613_vm13 = vcmp.eq.f32.partialorder %v1691_v26, 8.507059e+37 }
 0x350   : > { %6024 = vpow2.f32 %v1496_v49  ;;  %v1409_v51 = vpop.xlane.xlu1 %1408 }
 0x351   : > { %6026 = vpow2.f32 %v1553_v34  ;;  %v1418_v53 = vpop.xlane.xlu2 %1417  ;;  %v1448_v19 = vmax.f32 %v11553_v40, %v1409_v51  ;;  %v1671_v49 = vadd.f32 %v6017_v43, %v1670_v35  ;;  %v1957_v34 = vadd.f32 %v1938_v1, %v1900_v38 }
 0x352   : > { %6028 = vrcp.f32 %v7583_v0  ;;  %v1451_v44 = vmax.f32 %v11554_v17, %v1418_v53  ;;  %v7593_v54 = vpop.eup %6022  ;;  %vm1702_vm0 = vweird.f32 %v7583_v0 }
 0x353   : > { %v1467_v28 = vsub.f32 %v11553_v40, %v1448_v19  ;;  %v1524_v42 = vsub.f32 %v1409_v51, %v1448_v19  ;;  %2080 = vadd.xlane.f32.xlu1 %v2079_v62  ;;  %v1675_v55 = vsel %vm1674_vm9, %v6017_v43, %v1671_v49  ;;  %v1683_v35 = vmul.f32 %v7593_v54, %v7551_v29 }
 0x354   : > { %v1470_v16 = vsub.f32 %v11554_v17, %v1451_v44  ;;  %v1527_v7 = vsub.f32 %v1418_v53, %v1451_v44  ;;  %v1680_v1 = vsel %vm1677_vm10, %v1679_v39, %v1675_v55  ;;  %v1693_v51 = vand.u32 2147483648, %v7551_v29 }
 0x355   : > { %v1494_v24 = vmul.f32 1.442695, %v1467_v28  ;;  %v1551_v38 = vmul.f32 1.442695, %v1524_v42  ;;  %v1882_v17 = vmul.f32 %v7471_v4, %v1680_v1  ;;  %v1920_v43 = vmul.f32 %v7475_v12, %v1680_v1  ;;  %v11558_v42 = vld [vmem:[#allocation47_spill] sm:$0xff] }
 0x356   : > { %v7603_v32 = vpop.eup %6024  ;;  %v1500_v44 = vmul.f32 1.442695, %v1470_v16  ;;  %2089 = vadd.xlane.f32.xlu2 %v2088_v61  ;;  %v1684_v62 = vsub.f32 1.0, %v1683_v35  ;;  %v1557_v10 = vmul.f32 1.442695, %v1527_v7  ;;  %vm1688_vm12 = vweird.f32 %v7593_v54  ;;  %v11557_v7 = vld [vmem:[#allocation70_spill] sm:$0xff] }
 0x357   : > { %v7606_v40 = vpop.eup %6026  ;;  %6030 = vpow2.f32 %v1494_v24  ;;  %v1901_v16 = vmul.f32 %v1882_v17, %v7467_v27  ;;  %v1939_v4 = vmul.f32 %v1920_v43, %v7541_v21  ;;  %v1694_v24 = vor.u32 1.1754944e-38, %v1693_v51  ;;  %vm1689_vm14 = vmor %vm1687_vm11, %vm1688_vm12 }
 0x358   : > { %v7610_v53 = vpop.eup %6028  ;;  %6032 = vpow2.f32 %v1551_v38  ;;  %v1415_v55 = vpop.xlane.xlu1 %1414  ;;  %v1685_v12 = vmul.f32 %v7593_v54, %v1684_v62  ;;  %v7622_v61 = vadd.f32 %v7606_v40, %v7603_v32 }
 0x359   : > { %v1421_v19 = vpop.xlane.xlu2 %1420  ;;  %v1450_v49 = vmax.f32 %v11557_v7, %v1415_v55  ;;  %v1698_v26 = vmul.f32 %v7610_v53, %v7583_v0  ;;  %6034 = vpow2.f32 %v1500_v44  ;;  %v1958_v28 = vadd.f32 %v1939_v4, %v1901_v16  ;;  %v7629_v38 = vpop.f32.mrf.mxu2 }
 0x35a   : > { %v1452_v39 = vmax.f32 %v7532_v8, %v1421_v19  ;;  %v1686_v35 = vadd.f32 %v7593_v54, %v1685_v12  ;;  %6036 = vpow2.f32 %v1557_v10  ;;  %vm1703_vm15 = vweird.f32 %v7610_v53 }
 0x35b   : > { %v1469_v1 = vsub.f32 %v11557_v7, %v1450_v49  ;;  %v1526_v17 = vsub.f32 %v1415_v55, %v1450_v49  ;;  %2083 = vadd.xlane.f32.xlu1 %v7576_v15  ;;  %v2658_v62 = vpack.c.bf16 %v1958_v28, %v1957_v34  ;;  %v1699_v51 = vsub.f32 1.0, %v1698_v26  ;;  %v11559_v26 = vld [vmem:[#allocation54_spill] sm:$0xff]  ;;  %vm7673_vm2 = vmor %vm1702_vm0, %vm1703_vm15 }
 0x35c   : > { %v1471_v43 = vsub.f32 %v7532_v8, %v1452_v39  ;;  %v1528_v44 = vsub.f32 %v1421_v19, %v1452_v39  ;;  %v1690_v16 = vsel %vm1689_vm14, %v7593_v54, %v1686_v35  ;;  %6038 = vrcp.f32 %v7622_v61 }
 0x35d   : > { %v7639_v4 = vpop.eup %6030  ;;  %v1498_v10 = vmul.f32 1.442695, %v1469_v1  ;;  %v1555_v55 = vmul.f32 1.442695, %v1526_v17  ;;  %v1708_v8 = vand.u32 2147483648, %v7583_v0  ;;  %5786 = vmatmul.msk.bf16.gmra.mxu3 %vm759_vm1, %v2658_v62  ;;  %v1695_v29 = vsel %vm7613_vm13, %v1694_v24, %v1690_v16 }
 0x35e   : > { %v7643_v12 = vpop.eup %6032  ;;  %v1502_v15 = vmul.f32 1.442695, %v1471_v43  ;;  %2022 = vadd.xlane.f32.xlu2 %v7565_v2  ;;  %v1700_v54 = vmul.f32 %v7610_v53, %v1699_v51  ;;  %v1559_v19 = vmul.f32 1.442695, %v1528_v44  ;;  %v1706_v7 = vand.u32 2147483647, %v7583_v0 }
 0x35f   : > { %v7653_v34 = vadd.f32 %v7643_v12, %v7639_v4  ;;  %6040 = vpow2.f32 %v1498_v10  ;;  %v7656_v49 = vpop.eup %6034  ;;  %v1984_v28 = vmul.f32 %v11559_v26, %v11558_v42  ;;  %v1709_v43 = vor.u32 1.1754944e-38, %v1708_v8  ;;  %v11563_v10 = vld [vmem:[#allocation52_spill] sm:$0xff] }
 0x360   : > { %6042 = vpow2.f32 %v1555_v55  ;;  %v7658_v39 = vpop.xlane.xlu1 %1274  ;;  %v1701_v35 = vadd.f32 %v7610_v53, %v1700_v54  ;;  %v7666_v24 = vpop.eup %6036  ;;  %v1883_v44 = vmul.f32 %v7526_v41, %v1695_v29  ;;  %vm1707_vm3 = vcmp.eq.f32.partialorder %v1706_v7, 8.507059e+37  ;;  %v11562_v41 = vld [vmem:[#allocation59_spill] sm:$0xff] }
 0x361   : > { %v7660_v2 = vpop.permute.xlu2 %1343  ;;  %6044 = vrcp.f32 %v7653_v34  ;;  %v7680_v62 = vadd.f32 %v7666_v24, %v7656_v49  ;;  %v1983_v55 = vmul.f32 %v11563_v10, %v11562_v41  ;;  %v7694_v8 = vadd.f32 %v7520_v37, %v7334_v25  ;;  %v11565_v37 = vld [vmem:[#allocation63_spill] sm:$0xff] }
 0x362   : > { %v1382_v1 = vmul.f32 %v7660_v2, %v7248_v9  ;;  %6046 = vpow2.f32 %v1502_v15  ;;  %v1705_v0 = vsel %vm7673_vm2, %v7610_v53, %v1701_v35  ;;  %v1921_v9 = vmul.f32 %v7538_v31, %v1695_v29  ;;  %v7686_v16 = vpop.eup %6038 }
 0x363   : > { %6048 = vpow2.f32 %v1559_v19  ;;  %2016 = vadd.xlane.f32.xlu1 %v7547_v45  ;;  %v7698_v53 = vadd.f32 %v7588_v11, %v7334_v25  ;;  %v1710_v31 = vsel %vm1707_vm3, %v1709_v43, %v1705_v0  ;;  %v1106_v45 = vpop.f32.mrf.mxu2  ;;  %v2027_v29 = vsel %vm759_vm1, %v1984_v28, 0.0 }
 0x364   : > { %v1437_v51 = vsel %vm759_vm1, %v1382_v1, 0.0  ;;  %6050 = vrcp.f32 %v7680_v62  ;;  %v1884_v54 = vmul.f32 %v7570_v13, %v1710_v31  ;;  %v1922_v19 = vmul.f32 %v7573_v20, %v1710_v31  ;;  %v11566_v1 = vld [vmem:[#allocation75_spill] sm:$0xff]  ;;  %v11568_v31 = vld [vmem:[#allocation62_spill] sm:$0xff] }
 0x365   : > { %11564 = vst [vmem:[#allocation51_spill] sm:$0xff] %v7698_v53  ;;  %1438 = vadd.xlane.f32.xlu0 %v1437_v51  ;;  %v7701_v15 = vpop.eup %6040  ;;  %v2050_v7 = vmul.f32 %v11565_v37, %v7078_v23  ;;  %v1902_v11 = vmul.f32 %v1883_v44, %v7499_v59  ;;  %v1940_v35 = vmul.f32 %v1921_v9, %v7694_v8  ;;  %v7723_v0 = vsel %vm759_vm1, %v1983_v55, 0.0 }
 0x366   : > { %v7708_v26 = vpop.eup %6042  ;;  %2028 = vadd.xlane.f32.xlu2 %v2027_v29  ;;  %v2058_v17 = vmul.f32 %v11566_v1, %v11541_v58  ;;  %v1728_v28 = vmul.f32 %v7686_v16, %v7622_v61  ;;  %v1903_v23 = vmul.f32 %v1884_v54, %v7510_v18  ;;  %v1941_v20 = vmul.f32 %v1922_v19, %v7698_v53 }
 0x367   : > { %v6045_v43 = vpop.eup %6044  ;;  %v7718_v13 = vadd.f32 %v7708_v26, %v7701_v15  ;;  %v7729_v58 = vadd.f32 %v7629_v38, %v7334_v25  ;;  %v7732_v9 = vadd.f32 %v1106_v45, %v7334_v25  ;;  %v7739_v29 = vmul.f32 %v11568_v31, %v7071_v52 }
 0x368   : > { %v7725_v44 = vpop.eup %6046  ;;  %v7734_v51 = vpop.xlane.xlu1 %1277  ;;  %v1713_v10 = vmul.f32 %v6045_v43, %v7653_v34  ;;  %v1960_v55 = vadd.f32 %v1941_v20, %v1903_v23  ;;  %v2073_v19 = vsel %vm759_vm1, %v2050_v7, 0.0  ;;  %v1729_v38 = vsub.f32 1.0, %v1728_v28 }
 0x369   : > { %11567 = vst [vmem:[#allocation46_spill] sm:$0xff] %v7732_v9  ;;  %v7741_v54 = vpop.eup %6048  ;;  %6052 = vrcp.f32 %v7718_v13  ;;  %v1959_v45 = vadd.f32 %v1940_v35, %v1902_v11  ;;  %v2097_v1 = vsel %vm759_vm1, %v2058_v17, 0.0  ;;  %v1738_v18 = vand.u32 2147483648, %v7622_v61 }
 0x36a   : > { %v7745_v37 = vpop.eup %6050  ;;  %v1714_v53 = vsub.f32 1.0, %v1713_v10  ;;  %v1723_v52 = vand.u32 2147483648, %v7653_v34  ;;  %v1730_v31 = vmul.f32 %v7686_v16, %v1729_v38  ;;  %vm1733_vm4 = vweird.f32 %v7686_v16 }
 0x36b   : > { %2019 = vadd.xlane.f32.xlu1 %v7568_v60  ;;  %v1736_v23 = vand.u32 2147483647, %v7622_v61  ;;  %v2659_v7 = vpack.c.bf16 %v1960_v55, %v1959_v45  ;;  %vm1718_vm5 = vweird.f32 %v6045_v43  ;;  %v1721_v11 = vand.u32 2147483647, %v7653_v34  ;;  %v1427_v60 = vpop.xlane.xlu0 %1426 }
 0x36c   : > { %v1715_v28 = vmul.f32 %v6045_v43, %v1714_v53  ;;  %v7758_v35 = vadd.f32 %v7741_v54, %v7725_v44  ;;  %v1731_v17 = vadd.f32 %v7686_v16, %v1730_v31  ;;  %vm1732_vm6 = vweird.f32 %v7622_v61  ;;  %v7772_v31 = vpop.f32.mrf.mxu2 }
 0x36d   : > { %1995 = vadd.xlane.f32.xlu0 %v7524_v48  ;;  %v1758_v20 = vmul.f32 %v7745_v37, %v7680_v62  ;;  %v1454_v10 = vmax.f32 %v7658_v39, %v1427_v60  ;;  %5787 = vmatmul.msk.bf16.gmra.mxu3 %vm759_vm1, %v2659_v7  ;;  %vm1717_vm7 = vweird.f32 %v7653_v34  ;;  %vm1734_vm8 = vmor %vm1732_vm6, %vm1733_vm4  ;;  %v1739_v53 = vor.u32 1.1754944e-38, %v1738_v18 }
 0x36e   : > { %v1716_v48 = vadd.f32 %v6045_v43, %v1715_v28  ;;  %vm1719_vm9 = vmor %vm1717_vm7, %vm1718_vm5  ;;  %v1724_v38 = vor.u32 1.1754944e-38, %v1723_v52  ;;  %v1735_v61 = vsel %vm1734_vm8, %v7686_v16, %v1731_v17  ;;  %vm1737_vm10 = vcmp.eq.f32.partialorder %v1736_v23, 8.507059e+37 }
 0x36f   : > { %v7769_v55 = vpop.eup %6052  ;;  %v1759_v45 = vsub.f32 1.0, %v1758_v20  ;;  %vm1722_vm11 = vcmp.eq.f32.partialorder %v1721_v11, 8.507059e+37  ;;  %v1740_v7 = vsel %vm1737_vm10, %v1739_v53, %v1735_v61  ;;  %6054 = vrcp.f32 %v7758_v35 }
 0x370   : > { %v1424_v21 = vpop.xlane.xlu1 %1423  ;;  %v1720_v27 = vsel %vm1719_vm9, %v6045_v43, %v1716_v48  ;;  %v1743_v34 = vmul.f32 %v7769_v55, %v7718_v13  ;;  %v1886_v52 = vmul.f32 %v7603_v32, %v1740_v7  ;;  %v1924_v17 = vmul.f32 %v7606_v40, %v1740_v7 }
 0x371   : > { %v1453_v18 = vmax.f32 %v7427_v47, %v1424_v21  ;;  %v1725_v28 = vsel %vm1722_vm11, %v1724_v38, %v1720_v27  ;;  %v1473_v43 = vsub.f32 %v7658_v39, %v1454_v10  ;;  %v1760_v53 = vmul.f32 %v7745_v37, %v1759_v45 }
 0x372   : > { %v1885_v16 = vmul.f32 %v7639_v4, %v1725_v28  ;;  %v1923_v23 = vmul.f32 %v7643_v12, %v1725_v28  ;;  %v1744_v20 = vsub.f32 1.0, %v1743_v34  ;;  %v1530_v61 = vsub.f32 %v1427_v60, %v1454_v10 }
 0x373   : > { %v1472_v11 = vsub.f32 %v7427_v47, %v1453_v18  ;;  %v1529_v48 = vsub.f32 %v1424_v21, %v1453_v18  ;;  %2098 = vadd.xlane.f32.xlu1 %v2097_v1  ;;  %vm1747_vm12 = vweird.f32 %v7718_v13  ;;  %vm1748_vm13 = vweird.f32 %v7769_v55  ;;  %v354_v1 = vld [vmem:[%s11279_s2] sm:$0xff] }
 0x374   : > { %v1904_v27 = vmul.f32 %v1885_v16, %v7514_v50  ;;  %v1942_v32 = vmul.f32 %v1923_v23, %v7729_v58  ;;  %v1745_v4 = vmul.f32 %v7769_v55, %v1744_v20  ;;  %v1905_v47 = vmul.f32 %v1886_v52, %v7518_v36  ;;  %vm7804_vm15 = vmor %vm1747_vm12, %vm1748_vm13  ;;  %v1112_v23 = vpop.f32.mrf.mxu2 }
 0x375   : > { %2074 = vadd.xlane.f32.xlu0 %v2073_v19  ;;  %v1504_v12 = vmul.f32 1.442695, %v1472_v11  ;;  %v1561_v38 = vmul.f32 1.442695, %v1529_v48  ;;  %v1943_v21 = vmul.f32 %v1924_v17, %v7732_v9  ;;  %v1753_v39 = vand.u32 2147483648, %v7718_v13  ;;  %v7794_v19 = vpop.eup %6054 }
 0x376   : > { %v1746_v40 = vadd.f32 %v7769_v55, %v1745_v4  ;;  %v1751_v60 = vand.u32 2147483647, %v7718_v13  ;;  %v1761_v10 = vadd.f32 %v7745_v37, %v1760_v53  ;;  %vm1763_vm14 = vweird.f32 %v7745_v37 }
 0x377   : > { %6056 = vpow2.f32 %v1504_v12  ;;  %v1506_v45 = vmul.f32 1.442695, %v1473_v43  ;;  %v1961_v7 = vadd.f32 %v1942_v32, %v1904_v27  ;;  %v1768_v18 = vand.u32 2147483648, %v7680_v62 }
 0x378   : > { %6058 = vpow2.f32 %v1561_v38  ;;  %v1563_v28 = vmul.f32 1.442695, %v1530_v61  ;;  %v1750_v52 = vsel %vm7804_vm15, %v7769_v55, %v1746_v40  ;;  %vm1762_vm0 = vweird.f32 %v7680_v62 }
 0x379   : > { %v1766_v16 = vand.u32 2147483647, %v7680_v62  ;;  %v7814_v17 = vperm.slane %v354_v1, 0  ;;  %v1962_v20 = vadd.f32 %v1943_v21, %v1905_v47  ;;  %v1754_v13 = vor.u32 1.1754944e-38, %v1753_v39  ;;  %vm7816_vm2 = vmor %vm1762_vm0, %vm1763_vm14  ;;  %v11574_v21 = vld [vmem:[#allocation43_spill] sm:$0xff] }
 0x37a   : > { %v1773_v11 = vmul.f32 %v7794_v19, %v7758_v35  ;;  %v2076_v55 = vsel %vm759_vm1, %v7739_v29, 0.0  ;;  %vm1752_vm3 = vcmp.eq.f32.partialorder %v1751_v60, 8.507059e+37  ;;  %v1765_v62 = vsel %vm7816_vm2, %v7745_v37, %v1761_v10  ;;  %v11573_v29 = vld [vmem:[#allocation82_spill] sm:$0xff]  ;;  %v11575_v60 = vld [vmem:[#allocation40_spill] sm:$0xff] }
 0x37b   : > { %2025 = vadd.xlane.f32.xlu1 %v7723_v0  ;;  %6060 = vpow2.f32 %v1506_v45  ;;  %v2660_v48 = vpack.c.bf16 %v1962_v20, %v1961_v7  ;;  %v1755_v53 = vsel %vm1752_vm3, %v1754_v13, %v1750_v52  ;;  %v1769_v61 = vor.u32 1.1754944e-38, %v1768_v18  ;;  %v11577_v45 = vld [vmem:[#allocation2_spill] sm:$0xff] }
 0x37c   : > { %6062 = vpow2.f32 %v1563_v28  ;;  %vm1767_vm4 = vcmp.eq.f32.partialorder %v1766_v16, 8.507059e+37  ;;  %v2060_v12 = vmul.f32 %v11573_v29, %v11558_v42  ;;  %v1774_v38 = vsub.f32 1.0, %v1773_v11  ;;  %v1115_v11 = vpop.f32.mrf.mxu2  ;;  %v11585_v29 = vld [vmem:[#allocation48_spill] sm:$0xff] }
 0x37d   : > { %2077 = vadd.xlane.f32.xlu0 %v2076_v55  ;;  %v7828_v27 = vpop.eup %6056  ;;  %v2774_v32 = vpop.f32.mrf.mxu3  ;;  %5788 = vmatmul.msk.bf16.gmra.mxu3 %vm759_vm1, %v2660_v48  ;;  %v1770_v37 = vsel %vm1767_vm4, %v1769_v61, %v1765_v62  ;;  %v1978_v40 = vmul.f32 %v11574_v21, %v11547_v14  ;;  %v1887_v39 = vmul.f32 %v7701_v15, %v1755_v53  ;;  %v11582_v55 = vld [vmem:[#allocation60_spill] sm:$0xff]  ;;  %v11583_v62 = vld [vmem:[#allocation66_spill] sm:$0xff]  ;;  %vm1778_vm5 = vweird.f32 %v7794_v19 }
 0x37e   : > { %v7830_v4 = vpop.eup %6058  ;;  %v2775_v0 = vadd.f32 %v2774_v32, %v7814_v17  ;;  %v1925_v1 = vmul.f32 %v7708_v26, %v1755_v53  ;;  %v7846_v10 = vadd.f32 %v11575_v60, %v7334_v25  ;;  %v7853_v42 = vadd.f32 %v7772_v31, %v7334_v25  ;;  %v11579_v26 = vld [vmem:[#allocation42_spill] sm:$0xff] }
 0x37f   : > { %v7838_v47 = vadd.f32 %v7830_v4, %v7828_v27  ;;  %v1888_v34 = vmul.f32 %v7656_v49, %v1770_v37  ;;  %v1926_v14 = vmul.f32 %v7666_v24, %v1770_v37  ;;  %v7862_v18 = vadd.f32 %v11579_v26, %v7334_v25  ;;  %v11584_v61 = vld [vmem:[#allocation50_spill] sm:$0xff] }
 0x380   : > { %11576 = vst [vmem:[#allocation57_spill] sm:$0xff] %v7846_v10  ;;  %v7849_v7 = vadd.f32 %v2775_v0, %v11577_v45  ;;  %v2103_v52 = vsel %vm759_vm1, %v2060_v12, 0.0  ;;  %v1775_v31 = vmul.f32 %v7794_v19, %v1774_v38  ;;  %v7871_v20 = vadd.f32 %v1112_v23, %v7334_v25 }
 0x381   : > { %11578 = vst [vmem:[#allocation53_spill] sm:$0xff] %v7853_v42  ;;  %6064 = vrcp.f32 %v7838_v47  ;;  %v7858_v15 = vpop.eup %6060  ;;  %v2009_v24 = vsel %vm759_vm1, %v1978_v40, 0.0  ;;  %v1906_v13 = vmul.f32 %v1887_v39, %v7846_v10  ;;  %v1944_v43 = vmul.f32 %v1925_v1, %v7853_v42 }
 0x382   : > { %11580 = vst [vmem:[#allocation73_spill] sm:$0xff] %v7862_v18  ;;  %v2907_v28 = vsel %vm759_vm1, %v7849_v7, 0.0  ;;  %v7868_v16 = vpop.eup %6062  ;;  %v1985_v48 = vmul.f32 %v11583_v62, %v11582_v55  ;;  %v1907_v53 = vmul.f32 %v1888_v34, %v7862_v18  ;;  %v1945_v23 = vmul.f32 %v1926_v14, %v7871_v20  ;;  %v11588_v62 = vld [vmem:[#allocation85_spill] sm:$0xff]  ;;  %v11640_v18 = vld [vmem:[#allocation94_spill] sm:$0xff] }
 0x383   : > { %11581 = vst [vmem:[#allocation49_spill] sm:$0xff] %v7871_v20  ;;  %2908 = vadd.xlane.f32.xlu2 %v2907_v28  ;;  %v7873_v49 = vpop.xlane.xlu1 %1283  ;;  %2104 = vadd.xlane.f32.xlu1 %v2103_v52  ;;  %v1979_v32 = vmul.f32 %v11584_v61, %v11551_v46  ;;  %v7886_v0 = vadd.f32 %v7868_v16, %v7858_v15  ;;  %v1781_v40 = vand.u32 2147483647, %v7758_v35  ;;  %v1783_v39 = vand.u32 2147483648, %v7758_v35  ;;  %v11639_v20 = vld [vmem:[#allocation93_spill] sm:$0xff] }
 0x384   : > { %v1986_v12 = vmul.f32 %v7140_v3, %v11585_v29  ;;  %v1776_v37 = vadd.f32 %v7794_v19, %v1775_v31  ;;  %v1963_v21 = vadd.f32 %v1944_v43, %v1906_v13  ;;  %vm1777_vm6 = vweird.f32 %v7758_v35 }
 0x385   : > { %2010 = vadd.xlane.f32.xlu0 %v2009_v24  ;;  %v2030_v1 = vsel %vm759_vm1, %v1985_v48, 0.0  ;;  %v1964_v60 = vadd.f32 %v1945_v23, %v1907_v53  ;;  %v2012_v45 = vsel %vm759_vm1, %v1979_v32, 0.0  ;;  %vm7898_vm7 = vmor %vm1777_vm6, %vm1778_vm5  ;;  %6066 = vrcp.f32 %v7886_v0  ;;  %v1118_v53 = vpop.f32.mrf.mxu2 }
 0x386   : > { %v2033_v34 = vsel %vm759_vm1, %v1986_v12, 0.0  ;;  %v1780_v14 = vsel %vm7898_vm7, %v7794_v19, %v1776_v37  ;;  %vm1782_vm8 = vcmp.eq.f32.partialorder %v1781_v40, 8.507059e+37  ;;  %v1784_v52 = vor.u32 1.1754944e-38, %v1783_v39  ;;  %v11589_v12 = vld [vmem:[#allocation45_spill] sm:$0xff] }
 0x387   : > { %v6065_v38 = vpop.eup %6064  ;;  %v2661_v28 = vpack.c.bf16 %v1964_v60, %v1963_v21  ;;  %v1798_v31 = vand.u32 2147483648, %v7838_v47  ;;  %v1796_v43 = vand.u32 2147483647, %v7838_v47  ;;  %v2062_v48 = vmul.f32 %v11588_v62, %v11585_v29  ;;  %v11591_v21 = vld [vmem:[#allocation58_spill] sm:$0xff]  ;;  %v11593_v29 = vld [vmem:[#allocation79_spill] sm:$0xff]  ;;  %v11597_v62 = vld [vmem:[#allocation81_spill] sm:$0xff] }
 0x388   : > { %v1788_v46 = vmul.f32 %v6065_v38, %v7838_v47  ;;  %vm1793_vm9 = vweird.f32 %v6065_v38  ;;  %v1785_v19 = vsel %vm1782_vm8, %v1784_v52, %v1780_v14  ;;  %vm1792_vm10 = vweird.f32 %v7838_v47 }
 0x389   : > { %v7917_v37 = vadd.f32 %v11589_v12, %v7334_v25  ;;  %v7921_v40 = vadd.f32 %v11591_v21, %v7334_v25  ;;  %v2056_v39 = vmul.f32 %v11593_v29, %v7091_v33  ;;  %vm1794_vm11 = vmor %vm1792_vm10, %vm1793_vm9  ;;  %vm1797_vm12 = vcmp.eq.f32.partialorder %v1796_v43, 8.507059e+37 }
 0x38a   : > { %v1789_v35 = vsub.f32 1.0, %v1788_v46  ;;  %v1799_v46 = vor.u32 1.1754944e-38, %v1798_v31  ;;  %v7928_v47 = vadd.f32 %v1118_v53, %v7334_v25  ;;  %v1927_v14 = vmul.f32 %v7741_v54, %v1785_v19 }
 0x38b   : > { %2034 = vadd.xlane.f32.xlu2 %v2033_v34  ;;  %v1430_v26 = vpop.xlane.xlu1 %1429  ;;  %2031 = vadd.xlane.f32.xlu1 %v2030_v1  ;;  %11590 = vst [vmem:[#allocation72_spill] sm:$0xff] %v7917_v37  ;;  %v1889_v34 = vmul.f32 %v7725_v44, %v1785_v19  ;;  %v2091_v52 = vsel %vm759_vm1, %v2056_v39, 0.0  ;;  %vm1807_vm14 = vweird.f32 %v7886_v0 }
 0x38c   : > { %v1455_v24 = vmax.f32 %v7734_v51, %v1430_v26  ;;  %v1790_v13 = vmul.f32 %v6065_v38, %v1789_v35  ;;  %11592 = vst [vmem:[#allocation69_spill] sm:$0xff] %v7921_v40  ;;  %v2109_v35 = vsel %vm759_vm1, %v2062_v48, 0.0  ;;  %v2057_v48 = vmul.f32 %v11597_v62, %v11543_v6  ;;  %v11600_v62 = vld [vmem:[#allocation4_spill] sm:$0xff] }
 0x38d   : > { %2013 = vadd.xlane.f32.xlu0 %v2012_v45  ;;  %5789 = vmatmul.msk.bf16.gmra.mxu3 %vm759_vm1, %v2661_v28  ;;  %11594 = vst [vmem:[#allocation65_spill] sm:$0xff] %v7928_v47  ;;  %v7936_v28 = vadd.f32 %v1115_v11, %v7334_v25 }
 0x38e   : > { %v1474_v23 = vsub.f32 %v7734_v51, %v1455_v24  ;;  %v1531_v61 = vsub.f32 %v1430_v26, %v1455_v24  ;;  %v1791_v32 = vadd.f32 %v6065_v38, %v1790_v13  ;;  %v7925_v51 = vpop.eup %6066  ;;  %v11596_v24 = vld [vmem:[#allocation61_spill] sm:$0xff]  ;;  %v2776_v13 = vpop.f32.mrf.mxu3 }
 0x38f   : > { %11595 = vst [vmem:[#allocation55_spill] sm:$0xff] %v7936_v28  ;;  %v1803_v44 = vmul.f32 %v7925_v51, %v7886_v0  ;;  %v1987_v11 = vmul.f32 %v7214_v57, %v11596_v24  ;;  %vm1808_vm13 = vweird.f32 %v7925_v51 }
 0x390   : > { %v1508_v1 = vmul.f32 1.442695, %v1474_v23  ;;  %v1565_v60 = vmul.f32 1.442695, %v1531_v61  ;;  %v1795_v45 = vsel %vm1794_vm11, %v6065_v38, %v1791_v32  ;;  %vm1809_vm15 = vmor %vm1807_vm14, %vm1808_vm13 }
 0x391   : > { %v1800_v3 = vsel %vm1797_vm12, %v1799_v46, %v1795_v45  ;;  %v1804_v19 = vsub.f32 1.0, %v1803_v44  ;;  %v2036_v29 = vsel %vm759_vm1, %v1987_v11, 0.0  ;;  %v2094_v46 = vsel %vm759_vm1, %v2057_v48, 0.0 }
 0x392   : > { %6068 = vpow2.f32 %v1508_v1  ;;  %v1890_v33 = vmul.f32 %v7828_v27, %v1800_v3  ;;  %v1928_v26 = vmul.f32 %v7830_v4, %v1800_v3  ;;  %v1908_v27 = vmul.f32 %v1889_v34, %v7917_v37  ;;  %v11598_v3 = vld [vmem:[#allocation67_spill] sm:$0xff]  ;;  %v11629_v37 = vld [vmem:[#allocation88_spill] sm:$0xff] }
 0x393   : > { %6070 = vpow2.f32 %v1565_v60  ;;  %v1433_v38 = vpop.xlane.xlu1 %1432  ;;  %2110 = vadd.xlane.f32.xlu1 %v2109_v35  ;;  %v1946_v4 = vmul.f32 %v1927_v14, %v7936_v28  ;;  %v1805_v6 = vmul.f32 %v7925_v51, %v1804_v19  ;;  %v2064_v34 = vmul.f32 %v7406_v63, %v11598_v3  ;;  %v11599_v14 = vld [vmem:[#allocation83_spill] sm:$0xff]  ;;  %v11628_v28 = vld [vmem:[#allocation86_spill] sm:$0xff] }
 0x394   : > { %v1909_v54 = vmul.f32 %v1890_v33, %v7921_v40  ;;  %v1947_v31 = vmul.f32 %v1928_v26, %v7928_v47  ;;  %v2059_v35 = vmul.f32 %v11599_v14, %v11562_v41  ;;  %v11602_v14 = vld [vmem:[#allocation71_spill] sm:$0xff] }
 0x395   : > { %2092 = vadd.xlane.f32.xlu0 %v2091_v52  ;;  %v1965_v32 = vadd.f32 %v1946_v4, %v1908_v27  ;;  %v1121_v27 = vpop.f32.mrf.mxu2 }
 0x396   : > { %v1966_v43 = vadd.f32 %v1947_v31, %v1909_v54  ;;  %v1806_v31 = vadd.f32 %v7925_v51, %v1805_v6  ;;  %v2100_v19 = vsel %vm759_vm1, %v2059_v35, 0.0  ;;  %v7999_v35 = vadd.f32 %v11602_v14, %v7334_v25 }
 0x398   : > { %v7949_v53 = vpop.eup %6068  ;;  %v2662_v39 = vpack.c.bf16 %v1966_v43, %v1965_v32  ;;  %v2115_v43 = vsel %vm759_vm1, %v2064_v34, 0.0  ;;  %v1810_v32 = vsel %vm1809_vm15, %v7925_v51, %v1806_v31  ;;  %11603 = vst [vmem:[#allocation78_spill] sm:$0xff] %v7999_v35 }
 0x399   : > { %v7951_v23 = vpop.eup %6070  ;;  %v1281_v61 = vpop.xlane.xlu2 %1280 }
 0x39a   : > { %v7955_v12 = vadd.f32 %v7951_v23, %v7949_v53  ;;  %v1456_v21 = vmax.f32 %v1281_v61, %v1433_v38 }
 0x39b   : > { %v1436_v57 = vpop.xlane.xlu1 %1435  ;;  %2037 = vadd.xlane.f32.xlu1 %v2036_v29 }
 0x39c   : > { %6072 = vrcp.f32 %v7955_v12  ;;  %v1475_v1 = vsub.f32 %v1281_v61, %v1456_v21  ;;  %v1532_v60 = vsub.f32 %v1433_v38, %v1456_v21  ;;  %v1457_v45 = vmax.f32 %v7873_v49, %v1436_v57 }
 0x39d   : > { %2095 = vadd.xlane.f32.xlu0 %v2094_v46  ;;  %5790 = vmatmul.msk.bf16.gmra.mxu3 %vm759_vm1, %v2662_v39  ;;  %v1813_v38 = vand.u32 2147483648, %v7886_v0  ;;  %v2777_v61 = vadd.f32 %v2776_v13, %v7814_v17  ;;  %v1828_v6 = vand.u32 2147483648, %v7955_v12  ;;  %vm1822_vm3 = vweird.f32 %v7955_v12 }
 0x39e   : > { %v1510_v33 = vmul.f32 1.442695, %v1475_v1  ;;  %v1567_v26 = vmul.f32 1.442695, %v1532_v60  ;;  %v1476_v52 = vsub.f32 %v7873_v49, %v1457_v45  ;;  %v1533_v44 = vsub.f32 %v1436_v57, %v1457_v45  ;;  %v11601_v1 = vld [vmem:[#allocation3_spill] sm:$0xff] }
 0x39f   : > { %v2779_v54 = vpop.f32.mrf.mxu3  ;;  %v1811_v49 = vand.u32 2147483647, %v7886_v0  ;;  %v1814_v29 = vor.u32 1.1754944e-38, %v1813_v38  ;;  %v7992_v60 = vadd.f32 %v2777_v61, %v11601_v1  ;;  %v1826_v45 = vand.u32 2147483647, %v7955_v12 }
 0x3a0   : > { %6074 = vpow2.f32 %v1510_v33  ;;  %v1512_v63 = vmul.f32 1.442695, %v1476_v52  ;;  %v1569_v4 = vmul.f32 1.442695, %v1533_v44  ;;  %v2780_v41 = vadd.f32 %v2779_v54, %v7814_v17  ;;  %v1124_v33 = vpop.f32.mrf.mxu2 }
 0x3a1   : > { %6076 = vpow2.f32 %v1567_v26  ;;  %vm1812_vm0 = vcmp.eq.f32.partialorder %v1811_v49, 8.507059e+37  ;;  %v1988_v52 = vmul.f32 %v7169_v22, %v11598_v3  ;;  %v8018_v49 = vpop.xlane.xlu2 %2068  ;;  %v1829_v22 = vor.u32 1.1754944e-38, %v1828_v6 }
 0x3a2   : > { %v6073_v11 = vpop.eup %6072  ;;  %6078 = vpow2.f32 %v1512_v63  ;;  %v7976_v48 = vadd.f32 %v2780_v41, %v11600_v62  ;;  %v1815_v46 = vsel %vm1812_vm0, %v1814_v29, %v1810_v32  ;;  %v11604_v63 = vld [vmem:[#allocation74_spill] sm:$0xff]  ;;  %vm1827_vm5 = vcmp.eq.f32.partialorder %v1826_v45, 8.507059e+37 }
 0x3a3   : > { %6080 = vpow2.f32 %v1569_v4  ;;  %2116 = vadd.xlane.f32.xlu1 %v2115_v43  ;;  %v1818_v0 = vmul.f32 %v6073_v11, %v7955_v12  ;;  %vm1823_vm2 = vweird.f32 %v6073_v11  ;;  %v1891_v31 = vmul.f32 %v7858_v15, %v1815_v46 }
 0x3a4   : > { %v2913_v21 = vsel %vm759_vm1, %v7976_v48, 0.0  ;;  %v1929_v38 = vmul.f32 %v7868_v16, %v1815_v46  ;;  %v8012_v4 = vadd.f32 %v11604_v63, %v7334_v25  ;;  %vm1824_vm4 = vmor %vm1822_vm3, %vm1823_vm2  ;;  %v8022_v12 = vadd.f32 %v1121_v27, %v7334_v25 }
 0x3a5   : > { %2101 = vadd.xlane.f32.xlu0 %v2100_v19  ;;  %2914 = vadd.xlane.f32.xlu2 %v2913_v21  ;;  %v1819_v57 = vsub.f32 1.0, %v1818_v0  ;;  %v2910_v15 = vsel %vm759_vm1, %v7992_v60, 0.0  ;;  %v8027_v3 = vadd.f32 %v1124_v33, %v7334_v25  ;;  %v2039_v43 = vsel %vm759_vm1, %v1988_v52, 0.0 }
 0x3a6   : > { %v7986_v39 = vpop.eup %6074  ;;  %11605 = vst [vmem:[#allocation68_spill] sm:$0xff] %v8012_v4  ;;  %v1910_v27 = vmul.f32 %v1891_v31, %v7999_v35  ;;  %v1948_v32 = vmul.f32 %v1929_v38, %v8022_v12  ;;  %v2061_v21 = vmul.f32 %v7364_v5, %v11582_v55  ;;  %v8040_v14 = vpop.xlane.xlu1 %1286 }
 0x3a7   : > { %v7989_v13 = vpop.eup %6076  ;;  %v1820_v51 = vmul.f32 %v6073_v11, %v1819_v57  ;;  %11606 = vst [vmem:[#allocation76_spill] sm:$0xff] %v8022_v12  ;;  %v2781_v57 = vpop.f32.mrf.mxu3  ;;  %v11622_v12 = vld [vmem:[#allocation84_spill] sm:$0xff] }
 0x3a8   : > { %v7995_v34 = vpop.eup %6078  ;;  %v1589_v26 = vadd.f32 %v7989_v13, %v7986_v39  ;;  %11607 = vst [vmem:[#allocation70_spill] sm:$0xff] %v8027_v3  ;;  %v1967_v46 = vadd.f32 %v1948_v32, %v1910_v27  ;;  %v2782_v45 = vadd.f32 %v2781_v57, %v7814_v17  ;;  %v2106_v33 = vsel %vm759_vm1, %v2061_v21, 0.0 }
 0x3a9   : > { %v8005_v44 = vpop.eup %6080  ;;  %v1821_v54 = vadd.f32 %v6073_v11, %v1820_v51  ;;  %v8198_v35 = vadd.f32 %v11622_v12, %v7334_v25 }
 0x3aa   : > { %6082 = vrcp.f32 %v1589_v26  ;;  %v8016_v41 = vadd.f32 %v8005_v44, %v7995_v34  ;;  %v1843_v31 = vand.u32 2147483648, %v1589_v26  ;;  %v1841_v38 = vand.u32 2147483647, %v1589_v26 }
 0x3ab   : > { %v1825_v16 = vsel %vm1824_vm4, %v6073_v11, %v1821_v54  ;;  %v8043_v54 = vpop.xlane.xlu2 %2071  ;;  %vm1837_vm7 = vweird.f32 %v1589_v26  ;;  %11623 = vst [vmem:[#allocation62_spill] sm:$0xff] %v8198_v35 }
 0x3ac   : > { %6084 = vrcp.f32 %v8016_v41  ;;  %v1830_v62 = vsel %vm1827_vm5, %v1829_v22, %v1825_v16  ;;  %v11608_v22 = vld [vmem:[#allocation5_spill] sm:$0xff]  ;;  %v1856_v27 = vand.u32 2147483647, %v8016_v41  ;;  %vm1842_vm10 = vcmp.eq.f32.partialorder %v1841_v38, 8.507059e+37 }
 0x3ad   : > { %2911 = vadd.xlane.f32.xlu0 %v2910_v15  ;;  %2040 = vadd.xlane.f32.xlu2 %v2039_v43  ;;  %v1892_v19 = vmul.f32 %v7949_v53, %v1830_v62  ;;  %v1930_v61 = vmul.f32 %v7951_v23, %v1830_v62  ;;  %v1127_v53 = vpop.f32.mrf.mxu2  ;;  %v8048_v15 = vadd.f32 %v2782_v45, %v11608_v22  ;;  %v1858_v43 = vand.u32 2147483648, %v8016_v41 }
 0x3ae   : > { %v1844_v62 = vor.u32 1.1754944e-38, %v1843_v31  ;;  %vm1852_vm11 = vweird.f32 %v8016_v41  ;;  %vm1857_vm13 = vcmp.eq.f32.partialorder %v1856_v27, 8.507059e+37 }
 0x3af   : > { %v1911_v11 = vmul.f32 %v1892_v19, %v8012_v4  ;;  %v1949_v0 = vmul.f32 %v1930_v61, %v8027_v3  ;;  %v2916_v21 = vsel %vm759_vm1, %v8048_v15, 0.0 }
 0x3b0   : > { %v6083_v29 = vpop.eup %6082 }
 0x3b1   : > { %v1968_v6 = vadd.f32 %v1949_v0, %v1911_v11  ;;  %v1833_v1 = vmul.f32 %v6083_v29, %v1589_v26  ;;  %vm1838_vm6 = vweird.f32 %v6083_v29  ;;  %v1859_v26 = vor.u32 1.1754944e-38, %v1858_v43 }
 0x3b2   : > { %v6085_v51 = vpop.eup %6084  ;;  %vm1839_vm8 = vmor %vm1837_vm7, %vm1838_vm6 }
 0x3b3   : > { %v2663_v23 = vpack.c.bf16 %v1968_v6, %v1967_v46  ;;  %v1834_v52 = vsub.f32 1.0, %v1833_v1  ;;  %v1848_v5 = vmul.f32 %v6085_v51, %v8016_v41  ;;  %vm1853_vm9 = vweird.f32 %v6085_v51  ;;  %v11609_v6 = vld [vmem:[#allocation77_spill] sm:$0xff]  ;;  %v11612_v41 = vld [vmem:[#allocation80_spill] sm:$0xff] }
 0x3b4   : > { %vm1854_vm12 = vmor %vm1852_vm11, %vm1853_vm9  ;;  %v8059_v1 = vadd.f32 %v11609_v6, %v7334_v25 }
 0x3b5   : > { %2107 = vadd.xlane.f32.xlu0 %v2106_v33  ;;  %5791 = vmatmul.msk.bf16.gmra.mxu3 %vm759_vm1, %v2663_v23  ;;  %v1835_v55 = vmul.f32 %v6083_v29, %v1834_v52  ;;  %v1849_v63 = vsub.f32 1.0, %v1848_v5  ;;  %v1130_v32 = vpop.f32.mrf.mxu2  ;;  %v8066_v23 = vadd.f32 %v11612_v41, %v7334_v25 }
 0x3b6   : > { %11610 = vst [vmem:[#allocation47_spill] sm:$0xff] %v8059_v1  ;;  %v8069_v33 = vadd.f32 %v1130_v32, %v7334_v25 }
 0x3b7   : > { %v1836_v16 = vadd.f32 %v6083_v29, %v1835_v55  ;;  %v1850_v19 = vmul.f32 %v6085_v51, %v1849_v63  ;;  %11613 = vst [vmem:[#allocation59_spill] sm:$0xff] %v8066_v23  ;;  %v2063_v55 = vmul.f32 %v7381_v30, %v11596_v24 }
 0x3b8   : > { %11614 = vst [vmem:[#allocation52_spill] sm:$0xff] %v8069_v33 }
 0x3b9   : > { %v1840_v61 = vsel %vm1839_vm8, %v6083_v29, %v1836_v16  ;;  %v1851_v0 = vadd.f32 %v6085_v51, %v1850_v19  ;;  %v8062_v29 = vadd.f32 %v1127_v53, %v7334_v25 }
 0x3ba   : > { %v1845_v11 = vsel %vm1842_vm10, %v1844_v62, %v1840_v61  ;;  %v2112_v62 = vsel %vm759_vm1, %v2063_v55, 0.0 }
 0x3bb   : > { %v1893_v57 = vmul.f32 %v7986_v39, %v1845_v11  ;;  %v1931_v46 = vmul.f32 %v7989_v13, %v1845_v11  ;;  %11611 = vst [vmem:[#allocation54_spill] sm:$0xff] %v8062_v29  ;;  %v1855_v45 = vsel %vm1854_vm12, %v6085_v51, %v1851_v0  ;;  %v1993_v39 = vpop.xlane.xlu1 %1992  ;;  %v8071_v13 = vpop.xlane.xlu2 %2004 }
 0x3bc   : > { %v1860_v52 = vsel %vm1857_vm13, %v1859_v26, %v1855_v45  ;;  %v2124_v38 = vmax.f32 %v1993_v39, %v8018_v49 }
 0x3bd   : > { %2917 = vadd.xlane.f32.xlu0 %v2916_v21  ;;  %v1894_v31 = vmul.f32 %v7995_v34, %v1860_v52  ;;  %v1912_v5 = vmul.f32 %v1893_v57, %v8059_v1  ;;  %v1932_v53 = vmul.f32 %v8005_v44, %v1860_v52  ;;  %v1950_v51 = vmul.f32 %v1931_v46, %v8062_v29 }
 0x3be   : > { %v2143_v34 = vsub.f32 %v1993_v39, %v2124_v38  ;;  %v2200_v44 = vsub.f32 %v8018_v49, %v2124_v38 }
 0x3bf   : > { %v1913_v63 = vmul.f32 %v1894_v31, %v8066_v23  ;;  %v1951_v22 = vmul.f32 %v1932_v53, %v8069_v33  ;;  %v1969_v16 = vadd.f32 %v1950_v51, %v1912_v5  ;;  %v6372_v31 = vmov 64.0  }
 0x3c0   : > { %v2162_v27 = vmul.f32 1.442695, %v2143_v34  ;;  %v2219_v30 = vmul.f32 1.442695, %v2200_v44 }
 0x3c1   : > { %v1970_v43 = vadd.f32 %v1951_v22, %v1913_v63  ;;  %v11615_v63 = vld [vmem:[#allocation6_spill] sm:$0xff] }
 0x3c2   : > { %6086 = vpow2.f32 %v2162_v27 }
 0x3c3   : > { %v2664_v19 = vpack.c.bf16 %v1970_v43, %v1969_v16  ;;  %v8085_v61 = vpop.xlane.xlu2 %2007  ;;  %6088 = vpow2.f32 %v2219_v30  ;;  %v1999_v24 = vpop.xlane.xlu1 %1998 }
 0x3c5   : > { %2113 = vadd.xlane.f32.xlu0 %v2112_v62  ;;  %5792 = vmatmul.msk.bf16.gmra.mxu3 %vm759_vm1, %v2664_v19 }
 0x3c8   : > { %v8087_v32 = vpop.eup %6086 }
 0x3c9   : > { %v8091_v0 = vpop.eup %6088 }
 0x3ca   : > { %v8095_v21 = vadd.f32 %v8091_v0, %v8087_v32 }
 0x3cb   : > { %v8089_v11 = vpop.xlane.xlu2 %2086  ;;  %v8100_v6 = vpop.xlane.xlu1 %2001 }
 0x3cc   : > { %6090 = vrcp.f32 %v8095_v21  ;;  %vm2281_vm15 = vweird.f32 %v8095_v21 }
 0x3d2   : > { %v8104_v5 = vpop.eup %6090 }
 0x3d3   : > { %v8102_v45 = vpop.xlane.xlu2 %2089  ;;  %v8117_v43 = vpop.xlane.xlu1 %2080  ;;  %vm2282_vm14 = vweird.f32 %v8104_v5 }
 0x3d4   : > { %vm8153_vm0 = vmor %vm2281_vm15, %vm2282_vm14  ;;  %v2128_v12 = vmax.f32 %v8071_v13, %v8117_v43 }
 0x3d8   : > { %v1439_v49 = vpop.xlane.xlu0 %1438 }
 0x3d9   : > { %v1458_v26 = vmax.f32 %v8040_v14, %v1439_v49 }
 0x3db   : > { %v1477_v57 = vsub.f32 %v8040_v14, %v1458_v26  ;;  %v1534_v46 = vsub.f32 %v1439_v49, %v1458_v26  ;;  %v2277_v14 = vmul.f32 %v8104_v5, %v8095_v21  ;;  %v8121_v19 = vpop.xlane.xlu2 %2022  ;;  %v8139_v29 = vpop.xlane.xlu1 %2083 }
 0x3dd   : > { %v1514_v41 = vmul.f32 1.442695, %v1477_v57  ;;  %v1571_v39 = vmul.f32 1.442695, %v1534_v46  ;;  %v2278_v26 = vsub.f32 1.0, %v2277_v14 }
 0x3df   : > { %6092 = vpow2.f32 %v1514_v41 }
 0x3e0   : > { %v1996_v52 = vpop.xlane.xlu0 %1995  ;;  %6094 = vrcp.f32 %v6372_v31  ;;  %v2784_v53 = vpop.f32.mrf.mxu3 }
 0x3e1   : > { %6096 = vpow2.f32 %v1571_v39  ;;  %v2125_v51 = vmax.f32 %v1996_v52, %v8043_v54  ;;  %v2785_v55 = vadd.f32 %v2784_v53, %v7814_v17 }
 0x3e3   : > { %v8113_v22 = vadd.f32 %v2785_v55, %v11615_v63  ;;  %v2144_v62 = vsub.f32 %v1996_v52, %v2125_v51  ;;  %v2201_v44 = vsub.f32 %v8043_v54, %v2125_v51  ;;  %v2279_v51 = vmul.f32 %v8104_v5, %v2278_v26  ;;  %v11616_v63 = vld [vmem:[#allocation7_spill] sm:$0xff] }
 0x3e5   : > { %v8110_v38 = vpop.eup %6092  ;;  %v2919_v27 = vsel %vm759_vm1, %v8113_v22, 0.0  ;;  %v2164_v41 = vmul.f32 1.442695, %v2144_v62  ;;  %v2221_v52 = vmul.f32 1.442695, %v2201_v44 }
 0x3e6   : > { %v8115_v16 = vpop.eup %6094  ;;  %2920 = vadd.xlane.f32.xlu2 %v2919_v27 }
 0x3e7   : > { %v8119_v34 = vpop.eup %6096  ;;  %v3022_v46 = vmul.f32 64.0, %v8115_v16  ;;  %vm3026_vm2 = vweird.f32 %v8115_v16 }
 0x3e8   : > { %v8128_v30 = vadd.f32 %v8119_v34, %v8110_v38  ;;  %v2075_v49 = vpop.xlane.xlu0 %2074  ;;  %v2786_v39 = vpop.f32.mrf.mxu3 }
 0x3e9   : > { %v2126_v57 = vmax.f32 %v1999_v24, %v2075_v49  ;;  %v2787_v54 = vadd.f32 %v2786_v39, %v7814_v17  ;;  %v3023_v27 = vsub.f32 1.0, %v3022_v46  ;;  %v2287_v46 = vand.u32 2147483648, %v8095_v21 }
 0x3ea   : > { %6098 = vrcp.f32 %v8128_v30  ;;  %vm1867_vm5 = vweird.f32 %v8128_v30 }
 0x3eb   : > { %v2145_v31 = vsub.f32 %v1999_v24, %v2126_v57  ;;  %v2202_v53 = vsub.f32 %v2075_v49, %v2126_v57  ;;  %v8135_v33 = vadd.f32 %v2787_v54, %v11616_v63  ;;  %6100 = vpow2.f32 %v2164_v41  ;;  %v8145_v49 = vpop.xlane.xlu2 %2028 }
 0x3ec   : > { %6102 = vpow2.f32 %v2221_v52  ;;  %v2280_v24 = vadd.f32 %v8104_v5, %v2279_v51  ;;  %v3024_v26 = vmul.f32 %v8115_v16, %v3023_v27  ;;  %v1871_v54 = vand.u32 2147483647, %v8128_v30 }
 0x3ed   : > { %v2166_v55 = vmul.f32 1.442695, %v2145_v31  ;;  %11617 = vst [vmem:[#allocation63_spill] sm:$0xff] %v8135_v33  ;;  %v2223_v14 = vmul.f32 1.442695, %v2202_v53  ;;  %v2922_v23 = vsel %vm759_vm1, %v8135_v33, 0.0 }
 0x3ee   : > { %2923 = vadd.xlane.f32.xlu0 %v2922_v23  ;;  %v2285_v23 = vand.u32 2147483647, %v8095_v21  ;;  %v2284_v53 = vsel %vm8153_vm0, %v8104_v5, %v2280_v24  ;;  %v3025_v21 = vadd.f32 %v8115_v16, %v3024_v26  ;;  %vm1872_vm7 = vcmp.eq.f32.partialorder %v1871_v54, 8.507059e+37  ;;  %v11626_v54 = vld [vmem:[#allocation9_spill] sm:$0xff] }
 0x3ef   : > { %6104 = vpow2.f32 %v2166_v55  ;;  %v11620_v55 = vld [vmem:[#allocation8_spill] sm:$0xff] }
 0x3f0   : > { %v6099_v62 = vpop.eup %6098  ;;  %v8141_v44 = vpop.xlane.xlu0 %2077  ;;  %6106 = vpow2.f32 %v2223_v14  ;;  %v2288_v14 = vor.u32 1.1754944e-38, %v2287_v46  ;;  %vm2286_vm4 = vcmp.eq.f32.partialorder %v2285_v23, 8.507059e+37 }
 0x3f1   : > { %v1863_v57 = vmul.f32 %v6099_v62, %v8128_v30  ;;  %v2789_v41 = vpop.f32.mrf.mxu3  ;;  %v8157_v31 = vpop.eup %6100  ;;  %vm1868_vm3 = vweird.f32 %v6099_v62 }
 0x3f2   : > { %v2790_v39 = vadd.f32 %v2789_v41, %v7814_v17  ;;  %v8162_v51 = vpop.eup %6102  ;;  %v1133_v23 = vpop.f32.mrf.mxu2  ;;  %vm1869_vm6 = vmor %vm1867_vm5, %vm1868_vm3 }
 0x3f3   : > { %v1864_v52 = vsub.f32 1.0, %v1863_v57  ;;  %v1873_v57 = vand.u32 2147483648, %v8128_v30  ;;  %v8179_v26 = vadd.f32 %v8162_v51, %v8157_v31 }
 0x3f4   : > { %v8165_v63 = vadd.f32 %v2790_v39, %v11620_v55  ;;  %v2289_v39 = vsel %vm2286_vm4, %v2288_v14, %v2284_v53  ;;  %v8192_v14 = vpop.xlane.xlu1 %2016 }
 0x3f5   : > { %v1865_v27 = vmul.f32 %v6099_v62, %v1864_v52  ;;  %v8170_v41 = vpop.eup %6104  ;;  %v2129_v52 = vmax.f32 %v8085_v61, %v8139_v29  ;;  %v1874_v3 = vor.u32 1.1754944e-38, %v1873_v57  ;;  %v2561_v4 = vmul.f32 %v8087_v32, %v2289_v39 }
 0x3f6   : > { %11621 = vst [vmem:[#allocation75_spill] sm:$0xff] %v8165_v63  ;;  %v2925_v5 = vsel %vm759_vm1, %v8165_v63, 0.0  ;;  %v8175_v55 = vpop.eup %6106  ;;  %v2909_v53 = vpop.xlane.xlu2 %2908  ;;  %v2599_v30 = vmul.f32 %v8091_v0, %v2289_v39  ;;  %6108 = vrcp.f32 %v8179_v26  ;;  %v8210_v0 = vadd.f32 %v1133_v23, %v7334_v25 }
 0x3f7   : > { %v1866_v24 = vadd.f32 %v6099_v62, %v1865_v27  ;;  %2926 = vadd.xlane.f32.xlu1 %v2925_v5  ;;  %v8189_v27 = vsel %vm3026_vm2, %v8115_v16, %v3025_v21  ;;  %v8202_v16 = vadd.f32 %v8175_v55, %v8170_v41  ;;  %v11624_v21 = vld [vmem:[#allocation96_spill] sm:$0xff]  ;;  %vm2296_vm9 = vweird.f32 %v8179_v26 }
 0x3f8   : > { %v8181_v46 = vpop.xlane.xlu0 %2010  ;;  %v1990_v47 = vmul.f32 %v11624_v21, %v7370_v56  ;;  %11625 = vst [vmem:[#allocation82_spill] sm:$0xff] %v8210_v0  ;;  %v2148_v21 = vsub.f32 %v8085_v61, %v2129_v52 }
 0x3f9   : > { %v2791_v1 = vpop.f32.mrf.mxu3  ;;  %v1870_v5 = vsel %vm1869_vm6, %v6099_v62, %v1866_v24  ;;  %v3028_v62 = vmul.f32 %v8189_v27, %v2909_v53  ;;  %v2580_v53 = vmul.f32 %v2561_v4, %v11628_v28  ;;  %6110 = vrcp.f32 %v8202_v16 }
 0x3fa   : > { %v2792_v32 = vadd.f32 %v2791_v1, %v7814_v17  ;;  %v1875_v57 = vsel %vm1872_vm7, %v1874_v3, %v1870_v5  ;;  %v2618_v1 = vmul.f32 %v2599_v30, %v11629_v37  ;;  %v2205_v3 = vsub.f32 %v8139_v29, %v2129_v52 }
 0x3fb   : > { %v1895_v24 = vmul.f32 %v8110_v38, %v1875_v57  ;;  %v1933_v39 = vmul.f32 %v8119_v34, %v1875_v57  ;;  %v2045_v25 = vsel %vm759_vm1, %v1990_v47, 0.0  ;;  %v8227_v38 = vsub.f32 %v7849_v7, %v3028_v62 }
 0x3fc   : > { %v8218_v40 = vadd.f32 %v2792_v32, %v11626_v54  ;;  %v2147_v37 = vsub.f32 %v8071_v13, %v2128_v12  ;;  %v8235_v4 = vpop.eup %6108  ;;  %v2204_v47 = vsub.f32 %v8117_v43, %v2128_v12  ;;  %v2172_v29 = vmul.f32 1.442695, %v2148_v21  ;;  %v8238_v30 = vpop.xlane.xlu1 %2019 }
 0x3fd   : > { %v1914_v23 = vmul.f32 %v1895_v24, %v8198_v35  ;;  %11630 = vst [vmem:[#allocation40_spill] sm:$0xff] %v8227_v38  ;;  %v1952_v28 = vmul.f32 %v1933_v39, %v8210_v0  ;;  %v2637_v5 = vadd.f32 %v2618_v1, %v2580_v53  ;;  %v2229_v7 = vmul.f32 1.442695, %v2205_v3 }
 0x3fe   : > { %11627 = vst [vmem:[#allocation43_spill] sm:$0xff] %v8218_v40  ;;  %v2928_v61 = vsel %vm759_vm1, %v8218_v40, 0.0  ;;  %v2127_v62 = vmax.f32 %v8100_v6, %v8141_v44  ;;  %v3104_v57 = vmul.f32 %v8227_v38, %v8227_v38  ;;  %v2170_v13 = vmul.f32 1.442695, %v2147_v37  ;;  %v11631_v37 = vld [vmem:[#allocation64_spill] sm:$0xff] }
 0x3ff   : > { %2046 = vadd.xlane.f32.xlu1 %v2045_v25  ;;  %2929 = vadd.xlane.f32.xlu2 %v2928_v61  ;;  %v1971_v52 = vadd.f32 %v1952_v28, %v1914_v23  ;;  %v8244_v24 = vpop.eup %6110  ;;  %v2292_v39 = vmul.f32 %v8235_v4, %v8179_v26  ;;  %v2227_v43 = vmul.f32 1.442695, %v2204_v47  ;;  %6112 = vpow2.f32 %v2172_v29  ;;  %v11632_v47 = vld [vmem:[#allocation95_spill] sm:$0xff] }
 0x400   : > { %v8231_v34 = vpop.xlane.xlu0 %2013  ;;  %v2130_v12 = vmax.f32 %v8181_v46, %v8089_v11  ;;  %6114 = vpow2.f32 %v2229_v7  ;;  %v2146_v21 = vsub.f32 %v8100_v6, %v2127_v62  ;;  %v3142_v54 = vsel %vm759_vm1, %v3104_v57, 0.0 }
 0x401   : > { %v2665_v32 = vpack.c.bf16 %v2637_v5, %v1971_v52  ;;  %v2307_v1 = vmul.f32 %v8244_v24, %v8202_v16  ;;  %6116 = vpow2.f32 %v2170_v13  ;;  %v2203_v3 = vsub.f32 %v8141_v44, %v2127_v62 }
 0x402   : > { %v2293_v25 = vsub.f32 1.0, %v2292_v39  ;;  %6118 = vpow2.f32 %v2227_v43  ;;  %v2149_v23 = vsub.f32 %v8181_v46, %v2130_v12  ;;  %v2206_v61 = vsub.f32 %v8089_v11, %v2130_v12 }
 0x403   : > { %5793 = vmatmul.msk.bf16.gmra.mxu3 %vm759_vm1, %v2665_v32  ;;  %v2168_v6 = vmul.f32 1.442695, %v2146_v21  ;;  %v2065_v29 = vmul.f32 %v11632_v47, %v11631_v37  ;;  %v2308_v52 = vsub.f32 1.0, %v2307_v1  ;;  %v2225_v7 = vmul.f32 1.442695, %v2203_v3 }
 0x404   : > { %v2294_v32 = vmul.f32 %v8235_v4, %v2293_v25  ;;  %v2099_v44 = vpop.xlane.xlu1 %2098  ;;  %v2174_v62 = vmul.f32 1.442695, %v2149_v23  ;;  %v2231_v13 = vmul.f32 1.442695, %v2206_v61  ;;  %vm2297_vm8 = vweird.f32 %v8235_v4 }
 0x405   : > { %v8260_v28 = vpop.eup %6112  ;;  %6120 = vpow2.f32 %v2168_v6  ;;  %v2118_v39 = vsel %vm759_vm1, %v2065_v29, 0.0  ;;  %v2309_v43 = vmul.f32 %v8244_v24, %v2308_v52  ;;  %v2134_v12 = vmax.f32 %v8121_v19, %v2099_v44  ;;  %vm8289_vm10 = vmor %vm2296_vm9, %vm2297_vm8 }
 0x406   : > { %v8264_v5 = vpop.eup %6114  ;;  %6122 = vpow2.f32 %v2225_v7  ;;  %v2295_v21 = vadd.f32 %v8235_v4, %v2294_v32  ;;  %v2302_v1 = vand.u32 2147483648, %v8179_v26  ;;  %v2300_v25 = vand.u32 2147483647, %v8179_v26 }
 0x407   : > { %3143 = vadd.xlane.f32.xlu2 %v3142_v54  ;;  %v8267_v57 = vpop.eup %6116  ;;  %v8273_v11 = vadd.f32 %v8264_v5, %v8260_v28  ;;  %6124 = vpow2.f32 %v2174_v62  ;;  %v2310_v61 = vadd.f32 %v8244_v24, %v2309_v43  ;;  %vm2312_vm11 = vweird.f32 %v8244_v24 }
 0x408   : > { %v8253_v53 = vpop.xlane.xlu0 %2092  ;;  %v8269_v46 = vpop.eup %6118  ;;  %6126 = vpow2.f32 %v2231_v13  ;;  %v2153_v6 = vsub.f32 %v8121_v19, %v2134_v12  ;;  %v2299_v47 = vsel %vm8289_vm10, %v8235_v4, %v2295_v21  ;;  %v2317_v29 = vand.u32 2147483648, %v8202_v16 }
 0x409   : > { %v8285_v3 = vadd.f32 %v8269_v46, %v8267_v57  ;;  %6128 = vrcp.f32 %v8273_v11  ;;  %v2132_v26 = vmax.f32 %v8192_v14, %v8253_v53  ;;  %v2303_v7 = vor.u32 1.1754944e-38, %v2302_v1  ;;  %v8316_v13 = vpop.xlane.xlu2 %2034 }
 0x40a   : > { %vm2311_vm12 = vweird.f32 %v8202_v16  ;;  %v2315_v32 = vand.u32 2147483647, %v8202_v16  ;;  %vm2301_vm13 = vcmp.eq.f32.partialorder %v2300_v25, 8.507059e+37  ;;  %v2182_v1 = vmul.f32 1.442695, %v2153_v6 }
 0x40b   : > { %v8301_v52 = vpop.eup %6120  ;;  %6130 = vrcp.f32 %v8285_v3  ;;  %vm8310_vm14 = vmor %vm2311_vm12, %vm2312_vm11  ;;  %v2304_v43 = vsel %vm2301_vm13, %v2303_v7, %v2299_v47  ;;  %v2210_v25 = vsub.f32 %v2099_v44, %v2134_v12  ;;  %v2318_v23 = vor.u32 1.1754944e-38, %v2317_v29 }
 0x40c   : > { %v8307_v62 = vpop.eup %6122  ;;  %v2314_v16 = vsel %vm8310_vm14, %v8244_v24, %v2310_v61  ;;  %v2151_v35 = vsub.f32 %v8192_v14, %v2132_v26  ;;  %vm2316_vm15 = vcmp.eq.f32.partialorder %v2315_v32, 8.507059e+37  ;;  %v2208_v47 = vsub.f32 %v8253_v53, %v2132_v26  ;;  %v8335_v61 = vpop.xlane.xlu1 %2025 }
 0x40d   : > { %v8314_v4 = vpop.eup %6124  ;;  %v8327_v0 = vadd.f32 %v8307_v62, %v8301_v52  ;;  %v2319_v7 = vsel %vm2316_vm15, %v2318_v23, %v2314_v16  ;;  %v2562_v19 = vmul.f32 %v8157_v31, %v2304_v43  ;;  %v2600_v24 = vmul.f32 %v8162_v51, %v2304_v43  ;;  %v11637_v43 = vld [vmem:[#allocation87_spill] sm:$0xff]  ;;  %v11638_v23 = vld [vmem:[#allocation89_spill] sm:$0xff] }
 0x40e   : > { %v8323_v21 = vpop.eup %6126  ;;  %6132 = vpow2.f32 %v2182_v1  ;;  %v2239_v29 = vmul.f32 1.442695, %v2210_v25  ;;  %v2178_v51 = vmul.f32 1.442695, %v2151_v35  ;;  %v2563_v26 = vmul.f32 %v8170_v41, %v2319_v7 }
 0x40f   : > { %2119 = vadd.xlane.f32.xlu2 %v2118_v39  ;;  %v2131_v39 = vmax.f32 %v8231_v34, %v8102_v45  ;;  %v8330_v38 = vpop.eup %6128  ;;  %v8339_v44 = vadd.f32 %v8323_v21, %v8314_v4  ;;  %6134 = vrcp.f32 %v8327_v0  ;;  %v2235_v32 = vmul.f32 1.442695, %v2208_v47 }
 0x410   : > { %v8280_v54 = vpop.xlane.xlu0 %2095  ;;  %v2352_v31 = vmul.f32 %v8330_v38, %v8273_v11  ;;  %v2581_v16 = vmul.f32 %v2562_v19, %v11637_v43  ;;  %v2619_v40 = vmul.f32 %v2600_v24, %v11638_v23  ;;  %v2582_v35 = vmul.f32 %v2563_v26, %v11639_v20 }
 0x411   : > { %v2150_v12 = vsub.f32 %v8231_v34, %v2131_v39  ;;  %v8344_v14 = vpop.eup %6130  ;;  %v2207_v53 = vsub.f32 %v8102_v45, %v2131_v39  ;;  %v2601_v34 = vmul.f32 %v8175_v55, %v2319_v7  ;;  %6136 = vrcp.f32 %v8339_v44 }
 0x412   : > { %v2337_v45 = vmul.f32 %v8344_v14, %v8285_v3  ;;  %6138 = vpow2.f32 %v2239_v29  ;;  %v2353_v47 = vsub.f32 1.0, %v2352_v31  ;;  %v2638_v55 = vadd.f32 %v2619_v40, %v2581_v16  ;;  %v11641_v31 = vld [vmem:[#allocation90_spill] sm:$0xff] }
 0x413   : > { %v2176_v1 = vmul.f32 1.442695, %v2150_v12  ;;  %v2233_v39 = vmul.f32 1.442695, %v2207_v53  ;;  %v2620_v41 = vmul.f32 %v2601_v34, %v11640_v18  ;;  %6140 = vpow2.f32 %v2178_v51 }
 0x414   : > { %v8359_v19 = vpop.eup %6132  ;;  %6142 = vpow2.f32 %v2235_v32  ;;  %v2338_v43 = vsub.f32 1.0, %v2337_v45  ;;  %v8366_v20 = vpop.xlane.xlu1 %2104  ;;  %v1989_v51 = vmul.f32 %v11641_v31, %v11631_v37  ;;  %v2354_v40 = vmul.f32 %v8330_v38, %v2353_v47 }
 0x415   : > { %v2639_v7 = vadd.f32 %v2620_v41, %v2582_v35  ;;  %v8362_v12 = vpop.eup %6134  ;;  %6144 = vpow2.f32 %v2176_v1  ;;  %v8373_v32 = vpop.f32.mrf.mxu3  ;;  %v2133_v16 = vmax.f32 %v8238_v30, %v8280_v54  ;;  %v8388_v37 = vmax.f32 %v8145_v49, %v8366_v20 }
 0x416   : > { %6146 = vpow2.f32 %v2233_v39  ;;  %v2339_v1 = vmul.f32 %v8344_v14, %v2338_v43  ;;  %v2360_v41 = vand.u32 2147483647, %v8273_v11  ;;  %vm2341_vm0 = vweird.f32 %v8285_v3 }
 0x417   : > { %v2666_v29 = vpack.c.bf16 %v2639_v7, %v2638_v55  ;;  %v8364_v53 = vpop.eup %6136  ;;  %v8402_v55 = vsel %vm759_vm1, %v1989_v51, 0.0  ;;  %v2152_v43 = vsub.f32 %v8238_v30, %v2133_v16  ;;  %vm2342_vm2 = vweird.f32 %v8344_v14 }
 0x418   : > { %v8342_v6 = vpop.xlane.xlu0 %2101  ;;  %v2915_v25 = vpop.xlane.xlu2 %2914  ;;  %v2367_v45 = vmul.f32 %v8364_v53, %v8339_v44  ;;  %v2155_v30 = vsub.f32 %v8145_v49, %v8388_v37  ;;  %vm2327_vm3 = vweird.f32 %v8362_v12  ;;  %vm2357_vm4 = vweird.f32 %v8330_v38  ;;  %vm8444_vm6 = vmor %vm2341_vm0, %vm2342_vm2 }
 0x419   : > { %v3030_v24 = vmul.f32 %v8189_v27, %v2915_v25  ;;  %v8370_v26 = vpop.eup %6138  ;;  %5794 = vmatmul.msk.bf16.gmra.mxu3 %vm759_vm1, %v2666_v29  ;;  %v2209_v29 = vsub.f32 %v8280_v54, %v2133_v16  ;;  %v2340_v54 = vadd.f32 %v8344_v14, %v2339_v1  ;;  %vm2326_vm5 = vweird.f32 %v8327_v0 }
 0x41a   : > { %v8381_v23 = vpop.eup %6140  ;;  %v8420_v51 = vadd.f32 %v8370_v26, %v8359_v19  ;;  %vm2356_vm7 = vweird.f32 %v8273_v11  ;;  %vm2328_vm8 = vmor %vm2326_vm5, %vm2327_vm3  ;;  %v2186_v9 = vmul.f32 1.442695, %v2155_v30  ;;  %vm2372_vm11 = vweird.f32 %v8364_v53 }
 0x41b   : > { %v8379_v34 = vsub.f32 %v7976_v48, %v3030_v24  ;;  %v8384_v25 = vpop.eup %6142  ;;  %v2322_v48 = vmul.f32 %v8362_v12, %v8327_v0  ;;  %v8407_v24 = vadd.f32 %v8330_v38, %v2354_v40  ;;  %v2368_v40 = vsub.f32 1.0, %v2367_v45  ;;  %vm8511_vm15 = vmor %vm2356_vm7, %vm2357_vm4 }
 0x41c   : > { %v8396_v35 = vpop.eup %6144  ;;  %v2237_v33 = vmul.f32 1.442695, %v2209_v29  ;;  %v2332_v45 = vand.u32 2147483648, %v8327_v0  ;;  %v2344_v10 = vsel %vm8444_vm6, %v8344_v14, %v2340_v54  ;;  %vm8471_vm12 = vcmp.eq.f32.partialorder %v2360_v41, 8.507059e+37  ;;  %v8475_v14 = vpop.xlane.xlu1 %2031 }
 0x41d   : > { %11642 = vst [vmem:[#allocation2_spill] sm:$0xff] %v8379_v34  ;;  %v3106_v39 = vmul.f32 %v8379_v34, %v8379_v34  ;;  %v8404_v7 = vpop.eup %6146  ;;  %v8414_v34 = vadd.f32 %v8384_v25, %v8381_v23  ;;  %v2323_v63 = vsub.f32 1.0, %v2322_v48  ;;  %v2180_v48 = vmul.f32 1.442695, %v2152_v43 }
 0x41e   : > { %v2212_v43 = vsub.f32 %v8366_v20, %v8388_v37  ;;  %v2369_v29 = vmul.f32 %v8364_v53, %v2368_v40  ;;  %v2135_v30 = vmax.f32 %v8335_v61, %v8342_v6  ;;  %vm2371_vm13 = vweird.f32 %v8339_v44 }
 0x41f   : > { %v3148_v47 = vsel %vm759_vm1, %v3106_v39, 0.0  ;;  %v2324_v16 = vmul.f32 %v8362_v12, %v2323_v63  ;;  %v2330_v39 = vand.u32 2147483647, %v8327_v0  ;;  %6148 = vrcp.f32 %v8414_v34  ;;  %v2796_v0 = vpop.f32.mrf.mxu3  ;;  %vm8499_vm14 = vmor %vm2371_vm13, %vm2372_vm11 }
 0x420   : > { %v2912_v18 = vpop.xlane.xlu0 %2911  ;;  %3149 = vadd.xlane.f32.xlu1 %v3148_v47  ;;  %v2345_v47 = vand.u32 2147483647, %v8285_v3  ;;  %vm2401_vm4 = vweird.f32 %v8414_v34 }
 0x421   : > { %v3029_v31 = vmul.f32 %v8189_v27, %v2912_v18  ;;  %v8427_v18 = vadd.f32 %v8404_v7, %v8396_v35  ;;  %v2325_v1 = vadd.f32 %v8362_v12, %v2324_v16  ;;  %v2347_v16 = vand.u32 2147483648, %v8285_v3 }
 0x422   : > { %vm2331_vm9 = vcmp.eq.f32.partialorder %v2330_v39, 8.507059e+37  ;;  %vm2346_vm10 = vcmp.eq.f32.partialorder %v2345_v47, 8.507059e+37  ;;  %v2370_v3 = vadd.f32 %v8364_v53, %v2369_v29  ;;  %v2375_v29 = vand.u32 2147483647, %v8339_v44 }
 0x423   : > { %v8434_v49 = vsub.f32 %v7992_v60, %v3029_v31  ;;  %v2333_v31 = vor.u32 1.1754944e-38, %v2332_v45  ;;  %6150 = vrcp.f32 %v8427_v18  ;;  %v2329_v42 = vsel %vm2328_vm8, %v8362_v12, %v2325_v1 }
 0x424   : > { %6152 = vpow2.f32 %v2180_v48  ;;  %v2348_v37 = vor.u32 1.1754944e-38, %v2347_v16  ;;  %v2797_v45 = vadd.f32 %v2796_v0, %v7814_v17  ;;  %v11648_v0 = vld [vmem:[#allocation97_spill] sm:$0xff]  ;;  %v11649_v16 = vld [vmem:[#allocation92_spill] sm:$0xff]  ;;  %vm2376_vm0 = vcmp.eq.f32.partialorder %v2375_v29, 8.507059e+37 }
 0x425   : > { %v2334_v20 = vsel %vm2331_vm9, %v2333_v31, %v2329_v42  ;;  %v3105_v40 = vmul.f32 %v8434_v49, %v8434_v49  ;;  %6154 = vpow2.f32 %v2237_v33  ;;  %v8469_v1 = vpop.eup %6148  ;;  %vm2386_vm5 = vweird.f32 %v8427_v18 }
 0x426   : > { %v2349_v12 = vsel %vm2346_vm10, %v2348_v37, %v2344_v10  ;;  %v2564_v39 = vmul.f32 %v8301_v52, %v2334_v20  ;;  %v2602_v54 = vmul.f32 %v8307_v62, %v2334_v20  ;;  %v2377_v10 = vand.u32 2147483648, %v8339_v44  ;;  %v11647_v52 = vld [vmem:[#allocation91_spill] sm:$0xff] }
 0x427   : > { %v2565_v33 = vmul.f32 %v8267_v57, %v2349_v12  ;;  %v2603_v48 = vmul.f32 %v8269_v46, %v2349_v12  ;;  %v3145_v63 = vsel %vm759_vm1, %v3105_v40, 0.0  ;;  %v11650_v37 = vld [vmem:[#allocation35_spill] sm:$0xff]  ;;  %v11651_v20 = vand.u32 2147483648, %v8273_v11 }
 0x428   : > { %v8449_v60 = vpop.xlane.xlu0 %2107  ;;  %v2583_v41 = vmul.f32 %v2564_v39, %v11647_v52  ;;  %v2621_v57 = vmul.f32 %v2602_v54, %v11649_v16  ;;  %3146 = vadd.xlane.f32.xlu0 %v3145_v63  ;;  %6156 = vrcp.f32 %v8420_v51  ;;  %v2243_v39 = vmul.f32 1.442695, %v2212_v43  ;;  %v8548_v54 = vpop.xlane.xlu1 %2110 }
 0x429   : > { %v8486_v47 = vpop.eup %6150  ;;  %v2584_v31 = vmul.f32 %v2565_v33, %v11648_v0  ;;  %v2622_v62 = vmul.f32 %v2603_v48, %v11650_v37  ;;  %v2363_v12 = vor.u32 1.1754944e-38, %v11651_v20  ;;  %v2397_v44 = vmul.f32 %v8469_v1, %v8414_v34  ;;  %v2799_v37 = vpop.f32.mrf.mxu3 }
 0x42a   : > { %v8492_v46 = vpop.eup %6152  ;;  %v2374_v43 = vsel %vm8499_vm14, %v8364_v53, %v2370_v3  ;;  %v2154_v48 = vsub.f32 %v8335_v61, %v2135_v30  ;;  %v2640_v52 = vadd.f32 %v2621_v57, %v2583_v41  ;;  %v2359_v16 = vsel %vm8511_vm15, %v8330_v38, %v8407_v24  ;;  %v11656_v3 = vld [vmem:[#allocation11_spill] sm:$0xff] }
 0x42b   : > { %v8505_v33 = vpop.eup %6154  ;;  %v2641_v63 = vadd.f32 %v2622_v62, %v2584_v31  ;;  %6158 = vpow2.f32 %v2186_v9  ;;  %v2378_v11 = vor.u32 1.1754944e-38, %v2377_v10  ;;  %v2211_v20 = vsub.f32 %v8342_v6, %v2135_v30 }
 0x42c   : > { %v2382_v40 = vmul.f32 %v8486_v47, %v8427_v18  ;;  %v8527_v61 = vadd.f32 %v2797_v45, %v11656_v3  ;;  %v2398_v31 = vsub.f32 1.0, %v2397_v44  ;;  %v8531_v57 = vadd.f32 %v8505_v33, %v8492_v46 }
 0x42d   : > { %v2667_v53 = vpack.c.bf16 %v2641_v63, %v2640_v52  ;;  %v2379_v41 = vsel %vm2376_vm0, %v2378_v11, %v2374_v43  ;;  %6160 = vpow2.f32 %v2243_v39  ;;  %v2800_v38 = vadd.f32 %v2799_v37, %v7814_v17 }
 0x42e   : > { %v2184_v6 = vmul.f32 1.442695, %v2154_v48  ;;  %v2934_v24 = vsel %vm759_vm1, %v8527_v61, 0.0  ;;  %v8538_v30 = vpop.eup %6156  ;;  %v2364_v45 = vsel %vm8471_vm12, %v2363_v12, %v2359_v16  ;;  %v2241_v10 = vmul.f32 1.442695, %v2211_v20  ;;  %v11657_v12 = vld [vmem:[#allocation12_spill] sm:$0xff] }
 0x42f   : > { %5795 = vmatmul.msk.bf16.gmra.mxu3 %vm759_vm1, %v2667_v53  ;;  %2935 = vadd.xlane.f32.xlu1 %v2934_v24  ;;  %v2066_v62 = vmul.f32 %v7660_v2, %v7370_v56  ;;  %v2567_v39 = vmul.f32 %v8314_v4, %v2379_v41  ;;  %v2383_v44 = vsub.f32 1.0, %v2382_v40  ;;  %v2605_v43 = vmul.f32 %v8323_v21, %v2379_v41  ;;  %v11658_v20 = vld [vmem:[#allocation98_spill] sm:$0xff]  ;;  %v11659_v53 = vld [vmem:[#allocation37_spill] sm:$0xff] }
 0x430   : > { %v2918_v0 = vpop.xlane.xlu0 %2917  ;;  %2043 = vadd.xlane.f32.xlu0 %v8402_v55  ;;  %v2399_v42 = vmul.f32 %v8469_v1, %v2398_v31  ;;  %6162 = vrcp.f32 %v8531_v57  ;;  %v8558_v56 = vadd.f32 %v2800_v38, %v11657_v12  ;;  %v2566_v2 = vmul.f32 %v8260_v28, %v2364_v45 }
 0x431   : > { %v3031_v9 = vmul.f32 %v8189_v27, %v2918_v0  ;;  %v8552_v48 = vpop.eup %6158  ;;  %6164 = vpow2.f32 %v2184_v6  ;;  %v2121_v4 = vsel %vm759_vm1, %v2066_v62, 0.0  ;;  %v8568_v52 = vmul.f32 %v8538_v30, %v8420_v51 }
 0x432   : > { %6166 = vpow2.f32 %v2241_v10  ;;  %v2586_v63 = vmul.f32 %v2567_v39, %v7499_v59  ;;  %v2624_v0 = vmul.f32 %v2605_v43, %v7694_v8  ;;  %v2795_v28 = vadd.f32 %v8373_v32, %v7814_v17 }
 0x433   : > { %v8543_v29 = vsub.f32 %v8048_v15, %v3031_v9  ;;  %v2604_v15 = vmul.f32 %v8264_v5, %v2364_v45  ;;  %v8564_v55 = vpop.eup %6160  ;;  %v2384_v5 = vmul.f32 %v8486_v47, %v2383_v44  ;;  %v2138_v16 = vmax.f32 %v8316_v13, %v8548_v54 }
 0x434   : > { %v2400_v11 = vadd.f32 %v8469_v1, %v2399_v42  ;;  %vm2402_vm2 = vweird.f32 %v8469_v1  ;;  %v2937_v37 = vsel %vm759_vm1, %v8558_v56, 0.0  ;;  %v2585_v40 = vmul.f32 %v2566_v2, %v11658_v20  ;;  %v8615_v42 = vpop.xlane.xlu1 %2037  ;;  %v11664_v2 = vld [vmem:[#allocation10_spill] sm:$0xff] }
 0x435   : > { %v3107_v21 = vmul.f32 %v8543_v29, %v8543_v29  ;;  %v2623_v3 = vmul.f32 %v2604_v15, %v11659_v53  ;;  %v8588_v32 = vadd.f32 %v8564_v55, %v8552_v48  ;;  %v2405_v41 = vand.u32 2147483647, %v8414_v34  ;;  %vm8607_vm6 = vmor %vm2401_vm4, %vm2402_vm2 }
 0x436   : > { %v8584_v8 = vpop.eup %6162  ;;  %v2407_v31 = vand.u32 2147483648, %v8414_v34  ;;  %v2137_v9 = vmax.f32 %v8475_v14, %v8449_v60  ;;  %v2385_v6 = vadd.f32 %v8486_v47, %v2384_v5  ;;  %vm2387_vm3 = vweird.f32 %v8486_v47 }
 0x437   : > { %v3151_v59 = vsel %vm759_vm1, %v3107_v21, 0.0  ;;  %2938 = vadd.xlane.f32.xlu1 %v2937_v37  ;;  %v8594_v38 = vpop.eup %6164  ;;  %v2643_v24 = vadd.f32 %v2624_v0, %v2586_v63  ;;  %v2392_v10 = vand.u32 2147483648, %v8427_v18  ;;  %v2157_v62 = vsub.f32 %v8316_v13, %v2138_v16  ;;  %vm8621_vm7 = vmor %vm2386_vm5, %vm2387_vm3 }
 0x438   : > { %3152 = vadd.xlane.f32.xlu2 %v3151_v59  ;;  %2122 = vadd.xlane.f32.xlu0 %v2121_v4  ;;  %v8599_v45 = vpop.eup %6166  ;;  %v2214_v39 = vsub.f32 %v8548_v54, %v2138_v16  ;;  %v2390_v34 = vand.u32 2147483647, %v8427_v18  ;;  %v2404_v43 = vsel %vm8607_vm6, %v8469_v1, %v2400_v11  ;;  %v2412_v15 = vmul.f32 %v8584_v8, %v8531_v57 }
 0x439   : > { %v2642_v13 = vadd.f32 %v2623_v3, %v2585_v40  ;;  %vm2406_vm8 = vcmp.eq.f32.partialorder %v2405_v41, 8.507059e+37  ;;  %v2408_v12 = vor.u32 1.1754944e-38, %v2407_v31  ;;  %v2156_v18 = vsub.f32 %v8475_v14, %v2137_v9  ;;  %v2041_v31 = vpop.xlane.xlu2 %2040 }
 0x43a   : > { %v8627_v4 = vadd.f32 %v2795_v28, %v11664_v2  ;;  %v2389_v1 = vsel %vm8621_vm7, %v8486_v47, %v2385_v6  ;;  %v8634_v21 = vadd.f32 %v8599_v45, %v8594_v38  ;;  %v2213_v5 = vsub.f32 %v8449_v60, %v2137_v9  ;;  %v11673_v2 = vld [vmem:[#allocation46_spill] sm:$0xff] }
 0x43b   : > { %v2668_v63 = vpack.c.bf16 %v2643_v24, %v2642_v13  ;;  %v2428_v0 = vsub.f32 1.0, %v8568_v52  ;;  %v2393_v16 = vor.u32 1.1754944e-38, %v2392_v10  ;;  %v2190_v11 = vmul.f32 1.442695, %v2157_v62  ;;  %v2114_v24 = vpop.xlane.xlu0 %2113 }
 0x43c   : > { %v2409_v37 = vsel %vm2406_vm8, %v2408_v12, %v2404_v43  ;;  %vm2391_vm9 = vcmp.eq.f32.partialorder %v2390_v34, 8.507059e+37  ;;  %v2247_v14 = vmul.f32 1.442695, %v2214_v39  ;;  %v2413_v28 = vsub.f32 1.0, %v2412_v15  ;;  %v2117_v6 = vpop.xlane.xlu1 %2116  ;;  %v11665_v43 = vld [vmem:[#allocation33_spill] sm:$0xff] }
 0x43d   : > { %6168 = vrcp.f32 %v8588_v32  ;;  %v2394_v47 = vsel %vm2391_vm9, %v2393_v16, %v2389_v1  ;;  %v2188_v20 = vmul.f32 1.442695, %v2156_v18  ;;  %v2931_v40 = vsel %vm759_vm1, %v8627_v4, 0.0  ;;  %v11674_v16 = vld [vmem:[#allocation57_spill] sm:$0xff] }
 0x43e   : > { %v2607_v60 = vmul.f32 %v8384_v25, %v2409_v37  ;;  %6170 = vrcp.f32 %v8634_v21  ;;  %v2245_v52 = vmul.f32 1.442695, %v2213_v5  ;;  %v2569_v53 = vmul.f32 %v8381_v23, %v2409_v37 }
 0x43f   : > { %5796 = vmatmul.msk.bf16.gmra.mxu3 %vm759_vm1, %v2668_v63  ;;  %v2429_v3 = vmul.f32 %v8538_v30, %v2428_v0  ;;  %6172 = vpow2.f32 %v2190_v11  ;;  %v2568_v59 = vmul.f32 %v8396_v35, %v2394_v47  ;;  %v2414_v41 = vmul.f32 %v8584_v8, %v2413_v28  ;;  %v2801_v28 = vpop.f32.mrf.mxu3 }
 0x440   : > { %2932 = vadd.xlane.f32.xlu0 %v2931_v40  ;;  %6174 = vpow2.f32 %v2247_v14  ;;  %v2606_v9 = vmul.f32 %v8404_v7, %v2394_v47  ;;  %v2435_v25 = vand.u32 2147483647, %v8420_v51  ;;  %v2588_v10 = vmul.f32 %v2569_v53, %v7514_v50  ;;  %v11666_v50 = vld [vmem:[#allocation51_spill] sm:$0xff] }
 0x441   : > { %6176 = vpow2.f32 %v2188_v20  ;;  %v2626_v23 = vmul.f32 %v2607_v60, %v7729_v58  ;;  %v2430_v35 = vadd.f32 %v8538_v30, %v2429_v3  ;;  %vm2432_vm10 = vweird.f32 %v8538_v30 }
 0x442   : > { %6178 = vpow2.f32 %v2245_v52  ;;  %v2437_v39 = vand.u32 2147483648, %v8420_v51  ;;  %v2140_v44 = vmax.f32 %v2041_v31, %v2117_v6  ;;  %v2415_v34 = vadd.f32 %v8584_v8, %v2414_v41 }
 0x443   : > { %v8652_v62 = vpop.eup %6168  ;;  %vm2417_vm11 = vweird.f32 %v8584_v8  ;;  %v2587_v15 = vmul.f32 %v2568_v59, %v11665_v43  ;;  %v2625_v13 = vmul.f32 %v2606_v9, %v11666_v50  ;;  %vm2431_vm12 = vweird.f32 %v8420_v51 }
 0x444   : > { %v8657_v7 = vpop.eup %6170  ;;  %v2422_v54 = vand.u32 2147483648, %v8531_v57  ;;  %v2139_v12 = vmax.f32 %v8615_v42, %v2114_v24  ;;  %vm8670_vm13 = vmor %vm2431_vm12, %vm2432_vm10  ;;  %vm2416_vm14 = vweird.f32 %v8531_v57  ;;  %v2420_v1 = vand.u32 2147483647, %v8531_v57 }
 0x445   : > { %v8663_v58 = vpop.eup %6172  ;;  %v2645_v5 = vadd.f32 %v2626_v23, %v2588_v10  ;;  %vm8678_vm15 = vcmp.eq.f32.partialorder %v2435_v25, 8.507059e+37  ;;  %v2438_v51 = vor.u32 1.1754944e-38, %v2437_v39  ;;  %vm8684_vm0 = vmor %vm2416_vm14, %vm2417_vm11  ;;  %v2442_v11 = vmul.f32 %v8657_v7, %v8634_v21 }
 0x446   : > { %v8668_v18 = vpop.eup %6174  ;;  %v2434_v57 = vsel %vm8670_vm13, %v8538_v30, %v2430_v35  ;;  %v2419_v14 = vsel %vm8684_vm0, %v8584_v8, %v2415_v34  ;;  %v2159_v47 = vsub.f32 %v2041_v31, %v2140_v44  ;;  %v2644_v20 = vadd.f32 %v2625_v13, %v2587_v15 }
 0x447   : > { %v8676_v63 = vpop.eup %6176  ;;  %v2457_v40 = vmul.f32 %v8652_v62, %v8588_v32  ;;  %v8702_v60 = vadd.f32 %v8668_v18, %v8663_v58  ;;  %v2423_v52 = vor.u32 1.1754944e-38, %v2422_v54  ;;  %v2158_v53 = vsub.f32 %v8615_v42, %v2139_v12 }
 0x448   : > { %v8690_v37 = vpop.eup %6178  ;;  %vm2421_vm2 = vcmp.eq.f32.partialorder %v2420_v1, 8.507059e+37  ;;  %v2215_v30 = vsub.f32 %v2114_v24, %v2139_v12  ;;  %v2669_v59 = vpack.c.bf16 %v2645_v5, %v2644_v20  ;;  %v2443_v9 = vsub.f32 1.0, %v2442_v11  ;;  %v2804_v12 = vpop.f32.mrf.mxu3 }
 0x449   : > { %v2424_v8 = vsel %vm2421_vm2, %v2423_v52, %v2419_v14  ;;  %v2216_v31 = vsub.f32 %v2117_v6, %v2140_v44  ;;  %v8708_v25 = vadd.f32 %v8690_v37, %v8676_v63  ;;  %v2439_v10 = vsel %vm8678_vm15, %v2438_v51, %v2434_v57  ;;  %v11675_v57 = vld [vmem:[#allocation53_spill] sm:$0xff] }
 0x44a   : > { %v2194_v23 = vmul.f32 1.442695, %v2159_v47  ;;  %v2458_v24 = vsub.f32 1.0, %v2457_v40  ;;  %6180 = vrcp.f32 %v8702_v60  ;;  %v2192_v35 = vmul.f32 1.442695, %v2158_v53 }
 0x44b   : > { %v2608_v39 = vmul.f32 %v8505_v33, %v2424_v8  ;;  %v2249_v6 = vmul.f32 1.442695, %v2215_v30  ;;  %v2570_v44 = vmul.f32 %v8492_v46, %v2424_v8  ;;  %v2609_v43 = vmul.f32 %v8370_v26, %v2439_v10 }
 0x44c   : > { %v2444_v15 = vmul.f32 %v8657_v7, %v2443_v9  ;;  %v2251_v50 = vmul.f32 1.442695, %v2216_v31  ;;  %6182 = vrcp.f32 %v8708_v25  ;;  %v2571_v13 = vmul.f32 %v8359_v19, %v2439_v10 }
 0x44d   : > { %6184 = vpow2.f32 %v2194_v23  ;;  %v2459_v54 = vmul.f32 %v8652_v62, %v2458_v24  ;;  %v2589_v26 = vmul.f32 %v2570_v44, %v7518_v36  ;;  %v2627_v1 = vmul.f32 %v2608_v39, %v11673_v2  ;;  %v11677_v36 = vld [vmem:[#allocation13_spill] sm:$0xff] }
 0x44e   : > { %6186 = vpow2.f32 %v2192_v35  ;;  %v2467_v51 = vand.u32 2147483648, %v8588_v32  ;;  %v2445_v19 = vadd.f32 %v8657_v7, %v2444_v15  ;;  %vm2447_vm3 = vweird.f32 %v8657_v7 }
 0x44f   : > { %5797 = vmatmul.msk.bf16.gmra.mxu3 %vm759_vm1, %v2669_v59  ;;  %6188 = vpow2.f32 %v2249_v6  ;;  %v2590_v11 = vmul.f32 %v2571_v13, %v11674_v16  ;;  %v2628_v14 = vmul.f32 %v2609_v43, %v11675_v57  ;;  %v2460_v52 = vadd.f32 %v8652_v62, %v2459_v54 }
 0x450   : > { %v8731_v0 = vpop.eup %6180  ;;  %6190 = vpow2.f32 %v2251_v50  ;;  %vm2462_vm4 = vweird.f32 %v8652_v62  ;;  %vm2446_vm5 = vweird.f32 %v8634_v21  ;;  %v2452_v53 = vand.u32 2147483648, %v8634_v21 }
 0x451   : > { %vm8752_vm6 = vmor %vm2446_vm5, %vm2447_vm3  ;;  %v2450_v59 = vand.u32 2147483647, %v8634_v21  ;;  %vm2461_vm7 = vweird.f32 %v8588_v32  ;;  %v2465_v31 = vand.u32 2147483647, %v8588_v32  ;;  %v2805_v23 = vadd.f32 %v2804_v12, %v7814_v17 }
 0x452   : > { %v8744_v40 = vpop.eup %6182  ;;  %v2449_v10 = vsel %vm8752_vm6, %v8657_v7, %v2445_v19  ;;  %vm8769_vm8 = vmor %vm2461_vm7, %vm2462_vm4  ;;  %v2647_v39 = vadd.f32 %v2628_v14, %v2590_v11  ;;  %v2453_v43 = vor.u32 1.1754944e-38, %v2452_v53  ;;  %v2487_v50 = vmul.f32 %v8731_v0, %v8702_v60 }
 0x453   : > { %v2472_v35 = vmul.f32 %v8744_v40, %v8708_v25  ;;  %v2464_v7 = vsel %vm8769_vm8, %v8652_v62, %v2460_v52  ;;  %vm2451_vm9 = vcmp.eq.f32.partialorder %v2450_v59, 8.507059e+37  ;;  %vm2466_vm10 = vcmp.eq.f32.partialorder %v2465_v31, 8.507059e+37  ;;  %v2806_v62 = vpop.f32.mrf.mxu3  ;;  %v11685_v59 = vld [vmem:[#allocation49_spill] sm:$0xff] }
 0x454   : > { %v2488_v19 = vsub.f32 1.0, %v2487_v50  ;;  %vm2477_vm11 = vweird.f32 %v8744_v40  ;;  %vm2491_vm12 = vweird.f32 %v8702_v60  ;;  %vm2492_vm13 = vweird.f32 %v8731_v0 }
 0x455   : > { %v2473_v12 = vsub.f32 1.0, %v2472_v35  ;;  %v11687_v35 = vld [vmem:[#allocation55_spill] sm:$0xff]  ;;  %vm2476_vm14 = vweird.f32 %v8708_v25  ;;  %vm8860_vm0 = vmor %vm2491_vm12, %vm2492_vm13 }
 0x456   : > { %vm8842_vm15 = vmor %vm2476_vm14, %vm2477_vm11 }
 0x459   : > { %v2921_v3 = vpop.xlane.xlu2 %2920 }
 0x45a   : > { %v3032_v41 = vmul.f32 %v8189_v27, %v2921_v3  ;;  %v8750_v3 = vpop.eup %6184 }
 0x45b   : > { %v8759_v9 = vpop.eup %6186 }
 0x45c   : > { %v8714_v42 = vsub.f32 %v8113_v22, %v3032_v41  ;;  %v2802_v22 = vadd.f32 %v2801_v28, %v7814_v17  ;;  %v11676_v28 = vld [vmem:[#allocation63_spill] sm:$0xff]  ;;  %v2646_v41 = vadd.f32 %v2627_v1, %v2589_v26  ;;  %v8767_v24 = vpop.eup %6188  ;;  %v11683_v1 = vld [vmem:[#allocation14_spill] sm:$0xff] }
 0x45d   : > { %v8778_v44 = vpop.eup %6190  ;;  %v8788_v54 = vadd.f32 %v8767_v24, %v8759_v9  ;;  %v11682_v26 = vld [vmem:[#allocation75_spill] sm:$0xff] }
 0x45e   : > { %v3108_v34 = vmul.f32 %v8714_v42, %v8714_v42  ;;  %v8742_v20 = vadd.f32 %v2802_v22, %v11677_v36  ;;  %v2670_v22 = vpack.c.bf16 %v2647_v39, %v2646_v41  ;;  %v2474_v36 = vmul.f32 %v8744_v40, %v2473_v12 }
 0x45f   : > { %6192 = vrcp.f32 %v8788_v54  ;;  %vm2506_vm6 = vweird.f32 %v8788_v54 }
 0x460   : > { %v3154_v33 = vsel %vm759_vm1, %v3108_v34, 0.0  ;;  %v2940_v32 = vsel %vm759_vm1, %v8742_v20, 0.0  ;;  %v2468_v34 = vor.u32 1.1754944e-38, %v2467_v51  ;;  %5798 = vmatmul.msk.bf16.gmra.mxu3 %vm759_vm1, %v2670_v22  ;;  %v8799_v51 = vadd.f32 %v8778_v44, %v8750_v3 }
 0x461   : > { %v2924_v46 = vpop.xlane.xlu0 %2923  ;;  %3155 = vadd.xlane.f32.xlu2 %v3154_v33  ;;  %v2454_v33 = vsel %vm2451_vm9, %v2453_v43, %v2449_v10  ;;  %v2475_v31 = vadd.f32 %v8744_v40, %v2474_v36  ;;  %v2809_v10 = vpop.f32.mrf.mxu3  ;;  %v11689_v43 = vld [vmem:[#allocation43_spill] sm:$0xff]  ;;  %v2480_v22 = vand.u32 2147483647, %v8708_v25 }
 0x462   : > { %v3033_v5 = vmul.f32 %v8189_v27, %v2924_v46  ;;  %v2469_v46 = vsel %vm2466_vm10, %v2468_v34, %v2464_v7  ;;  %v2610_v16 = vmul.f32 %v8599_v45, %v2454_v33  ;;  %v2572_v11 = vmul.f32 %v8594_v38, %v2454_v33 }
 0x463   : > { %v2611_v14 = vmul.f32 %v8564_v55, %v2469_v46  ;;  %v2573_v52 = vmul.f32 %v8552_v48, %v2469_v46  ;;  %6194 = vrcp.f32 %v8799_v51  ;;  %v2489_v38 = vmul.f32 %v8731_v0, %v2488_v19  ;;  %v11684_v55 = vld [vmem:[#allocation73_spill] sm:$0xff] }
 0x464   : > { %v8739_v47 = vsub.f32 %v11676_v28, %v3033_v5  ;;  %v8795_v5 = vadd.f32 %v2805_v23, %v11683_v1  ;;  %v2807_v28 = vadd.f32 %v2806_v62, %v7814_v17  ;;  %v2591_v30 = vmul.f32 %v2572_v11, %v11684_v55  ;;  %v11686_v23 = vld [vmem:[#allocation72_spill] sm:$0xff] }
 0x465   : > { %v2629_v41 = vmul.f32 %v2610_v16, %v11685_v59  ;;  %v2592_v21 = vmul.f32 %v2573_v52, %v11686_v23  ;;  %v2630_v39 = vmul.f32 %v2611_v14, %v11687_v35  ;;  %v8825_v7 = vpop.eup %6192  ;;  %v2482_v34 = vand.u32 2147483648, %v8708_v25 }
 0x466   : > { %v3109_v8 = vmul.f32 %v8739_v47, %v8739_v47  ;;  %v2943_v45 = vsel %vm759_vm1, %v8795_v5, 0.0  ;;  %v2490_v50 = vadd.f32 %v8731_v0, %v2489_v38  ;;  %v2495_v46 = vand.u32 2147483647, %v8702_v60  ;;  %v11694_v38 = vld [vmem:[#allocation16_spill] sm:$0xff] }
 0x467   : > { %v2497_v62 = vand.u32 2147483648, %v8702_v60  ;;  %v2479_v25 = vsel %vm8842_vm15, %v8744_v40, %v2475_v31  ;;  %v2502_v19 = vmul.f32 %v8825_v7, %v8788_v54  ;;  %v2649_v16 = vadd.f32 %v2630_v39, %v2592_v21  ;;  %v11695_v21 = vld [vmem:[#allocation69_spill] sm:$0xff] }
 0x468   : > { %v3157_v6 = vsel %vm759_vm1, %v3109_v8, 0.0  ;;  %v2483_v14 = vor.u32 1.1754944e-38, %v2482_v34  ;;  %v2494_v40 = vsel %vm8860_vm0, %v8731_v0, %v2490_v50  ;;  %vm2481_vm2 = vcmp.eq.f32.partialorder %v2480_v22, 8.507059e+37  ;;  %v11696_v39 = vld [vmem:[#allocation65_spill] sm:$0xff]  ;;  %v11698_v34 = vld [vmem:[#allocation76_spill] sm:$0xff] }
 0x469   : > { %3158 = vadd.xlane.f32.xlu0 %v3157_v6  ;;  %2941 = vadd.xlane.f32.xlu2 %v2940_v32  ;;  %v11688_v6 = vld [vmem:[#allocation15_spill] sm:$0xff]  ;;  %v8836_v33 = vpop.eup %6194  ;;  %vm2496_vm3 = vcmp.eq.f32.partialorder %v2495_v46, 8.507059e+37  ;;  %vm2507_vm4 = vweird.f32 %v8825_v7  ;;  %v2510_v22 = vand.u32 2147483647, %v8788_v54  ;;  %v2527_v46 = vand.u32 2147483648, %v8799_v51 }
 0x46a   : > { %v2927_v15 = vpop.xlane.xlu1 %2926  ;;  %v8823_v32 = vadd.f32 %v2807_v28, %v11688_v6  ;;  %v2517_v36 = vmul.f32 %v8836_v33, %v8799_v51  ;;  %v2484_v60 = vsel %vm2481_vm2, %v2483_v14, %v2479_v25  ;;  %vm2522_vm5 = vweird.f32 %v8836_v33  ;;  %vm2508_vm7 = vmor %vm2506_vm6, %vm2507_vm4 }
 0x46b   : > { %v3034_v13 = vmul.f32 %v8189_v27, %v2927_v15  ;;  %v2574_v0 = vmul.f32 %v8676_v63, %v2484_v60  ;;  %v11697_v63 = vld [vmem:[#allocation78_spill] sm:$0xff]  ;;  %vm2521_vm8 = vweird.f32 %v8799_v51  ;;  %vm2511_vm10 = vcmp.eq.f32.partialorder %v2510_v22, 8.507059e+37 }
 0x46c   : > { %v2946_v11 = vsel %vm759_vm1, %v8823_v32, 0.0  ;;  %v2518_v59 = vsub.f32 1.0, %v2517_v36  ;;  %vm2523_vm9 = vmor %vm2521_vm8, %vm2522_vm5 }
 0x46d   : > { %v8792_v2 = vsub.f32 %v11682_v26, %v3034_v13  ;;  %v2648_v13 = vadd.f32 %v2629_v41, %v2591_v30  ;;  %v2810_v26 = vadd.f32 %v2809_v10, %v7814_v17  ;;  %v2612_v41 = vmul.f32 %v8690_v37, %v2484_v60  ;;  %v11701_v60 = vld [vmem:[#allocation47_spill] sm:$0xff] }
 0x46e   : > { %v2519_v23 = vmul.f32 %v8836_v33, %v2518_v59  ;;  %v2593_v35 = vmul.f32 %v2574_v0, %v11695_v21 }
 0x46f   : > { %v3110_v57 = vmul.f32 %v8792_v2, %v8792_v2  ;;  %v2671_v52 = vpack.c.bf16 %v2649_v16, %v2648_v13  ;;  %v8872_v55 = vadd.f32 %v2810_v26, %v11694_v38  ;;  %v2631_v6 = vmul.f32 %v2612_v41, %v11696_v39  ;;  %v11702_v38 = vld [vmem:[#allocation54_spill] sm:$0xff] }
 0x470   : > { %v2520_v50 = vadd.f32 %v8836_v33, %v2519_v23  ;;  %v2528_v16 = vor.u32 1.1754944e-38, %v2527_v46 }
 0x471   : > { %v3160_v53 = vsel %vm759_vm1, %v3110_v57, 0.0  ;;  %2944 = vadd.xlane.f32.xlu2 %v2943_v45  ;;  %v2503_v45 = vsub.f32 1.0, %v2502_v19  ;;  %5799 = vmatmul.msk.bf16.gmra.mxu3 %vm759_vm1, %v2671_v52  ;;  %v2949_v10 = vsel %vm759_vm1, %v8872_v55, 0.0  ;;  %v2650_v13 = vadd.f32 %v2631_v6, %v2593_v35  ;;  %v11700_v52 = vld [vmem:[#allocation70_spill] sm:$0xff] }
 0x472   : > { %3161 = vadd.xlane.f32.xlu0 %v3160_v53  ;;  %v2930_v8 = vpop.xlane.xlu2 %2929  ;;  %v2498_v53 = vor.u32 1.1754944e-38, %v2497_v62  ;;  %v2525_v62 = vand.u32 2147483647, %v8799_v51  ;;  %v2524_v25 = vsel %vm2523_vm9, %v8836_v33, %v2520_v50  ;;  %v11699_v33 = vld [vmem:[#allocation68_spill] sm:$0xff]  ;;  %v8908_v0 = vpop.xlane.xlu1 %2046 }
 0x473   : > { %v3035_v48 = vmul.f32 %v8189_v27, %v2930_v8 }
 0x474   : > { %v2499_v30 = vsel %vm2496_vm3, %v2498_v53, %v2494_v40  ;;  %vm2526_vm11 = vcmp.eq.f32.partialorder %v2525_v62, 8.507059e+37  ;;  %v5829_v62 = vld [vmem:[%s11284_s7 + $0x30] sm:$0xf] }
 0x475   : > { %v8831_v15 = vsub.f32 %v11689_v43, %v3035_v48  ;;  %v2613_v8 = vmul.f32 %v8668_v18, %v2499_v30  ;;  %v2504_v48 = vmul.f32 %v8825_v7, %v2503_v45  ;;  %v2575_v31 = vmul.f32 %v8663_v58, %v2499_v30 }
 0x476   : > { %v2512_v58 = vand.u32 2147483648, %v8788_v54  ;;  %v2529_v54 = vsel %vm2526_vm11, %v2528_v16, %v2524_v25 }
 0x477   : > { %v3111_v1 = vmul.f32 %v8831_v15, %v8831_v15  ;;  %v2505_v37 = vadd.f32 %v8825_v7, %v2504_v48  ;;  %v2594_v18 = vmul.f32 %v2575_v31, %v11697_v63  ;;  %v2632_v43 = vmul.f32 %v2613_v8, %v11698_v34  ;;  %v8912_v31 = vpop.f32.mrf.mxu3 }
 0x479   : > { %v3163_v28 = vsel %vm759_vm1, %v3111_v1, 0.0  ;;  %v2509_v12 = vsel %vm2508_vm7, %v8825_v7, %v2505_v37  ;;  %v2651_v26 = vadd.f32 %v2632_v43, %v2594_v18  ;;  %v2513_v1 = vor.u32 1.1754944e-38, %v2512_v58 }
 0x47a   : > { %2947 = vadd.xlane.f32.xlu0 %v2946_v11  ;;  %3164 = vadd.xlane.f32.xlu1 %v3163_v28  ;;  %v3144_v51 = vpop.xlane.xlu2 %3143  ;;  %v2577_v7 = vmul.f32 %v8750_v3, %v2529_v54  ;;  %v2615_v28 = vmul.f32 %v8778_v44, %v2529_v54 }
 0x47b   : > { %v2672_v19 = vpack.c.bf16 %v2651_v26, %v2650_v13  ;;  %v2514_v11 = vsel %vm2511_vm10, %v2513_v1, %v2509_v12  ;;  %v3256_v40 = vmul.f32 %v3144_v51, %v8189_v27  ;;  %v5950_v12 = vld [vmem:[%s11284_s7 + $0x34] sm:$0xf0]  ;;  %v5949_v26 = vld [vmem:[%s11284_s7 + $0x34] sm:$0xf] }
 0x47c   : > { %v2614_v57 = vmul.f32 %v8767_v24, %v2514_v11  ;;  %v2576_v14 = vmul.f32 %v8759_v9, %v2514_v11  ;;  %v2596_v45 = vmul.f32 %v2577_v7, %v11701_v60  ;;  %v2634_v30 = vmul.f32 %v2615_v28, %v11702_v38  ;;  %v6360_v38 = vld [vmem:[%s11279_s2] sm:$0xff] }
 0x47d   : > { %v3294_v59 = vadd.f32 1e-05, %v3256_v40  ;;  %v5830_v16 = vor.u32 %v5950_v12, %v5829_v62  ;;  %v5946_v62 = vld [vmem:[%s11284_s7 + $0x14] sm:$0xf0]  ;;  %v5945_v12 = vld [vmem:[%s11284_s7 + $0x14] sm:$0xf] }
 0x47e   : > { %v2595_v36 = vmul.f32 %v2576_v14, %v11699_v33  ;;  %v2633_v53 = vmul.f32 %v2614_v57, %v11700_v52  ;;  %v2653_v24 = vadd.f32 %v2634_v30, %v2596_v45  ;;  %v8961_v30 = vperm.slane %v6360_v38, 2 }
 0x47f   : > { %6196 = vrsqrt.f32 %v3294_v59  ;;  %v8921_v63 = vpop.f32.mrf.mxu3  ;;  %vm3338_vm13 = vweird.f32 %v3294_v59  ;;  %3962 = vmatpush.bf16.msrb.mxu0 %v5830_v16 }
 0x480   : > { %v2652_v41 = vadd.f32 %v2633_v53, %v2595_v36 }
 0x481   : > { %5800 = vmatmul.msk.bf16.gmra.mxu3 %vm759_vm1, %v2672_v19 }
 0x482   : > { %2950 = vadd.xlane.f32.xlu0 %v2949_v10  ;;  %v2673_v9 = vpack.c.bf16 %v2653_v24, %v2652_v41  ;;  %v2120_v34 = vpop.xlane.xlu2 %2119  ;;  %v11705_v41 = vld [vmem:[#allocation40_spill] sm:$0xff] }
 0x485   : > { %v6197_v3 = vpop.eup %6196 }
 0x486   : > { %v3333_v8 = vmul.f32 %v6197_v3, %v3294_v59  ;;  %vm3339_vm12 = vweird.f32 %v6197_v3  ;;  %v8963_v59 = vperm.slane %v6360_v38, 1 }
 0x487   : > { %vm8947_vm14 = vmor %vm3338_vm13, %vm3339_vm12 }
 0x488   : > { %v3334_v10 = vmul.f32 %v6197_v3, %v3333_v8 }
 0x48a   : > { %v3335_v39 = vmul.f32 0.5, %v3334_v10 }
 0x48c   : > { %v3336_v37 = vsub.f32 1.5, %v3335_v39 }
 0x48e   : > { %v3337_v13 = vmul.f32 %v6197_v3, %v3336_v37 }
 0x490   : > { %v3341_v28 = vsel %vm8947_vm14, %v6197_v3, %v3337_v13  ;;  %v2816_v3 = vpop.f32.mrf.mxu3 }
 0x491   : > { %5801 = vmatmul.msk.bf16.gmra.mxu3 %vm759_vm1, %v2673_v9  ;;  %v3712_v24 = vmul.f32 %v3341_v28, %v11705_v41  ;;  %v5944_v28 = vld [vmem:[%s11284_s7 + $0x4] sm:$0xf0] }
 0x493   : > { %v3150_v44 = vpop.xlane.xlu1 %3149 }
 0x494   : > { %v3258_v48 = vmul.f32 %v3150_v44, %v8189_v27 }
 0x496   : > { %v8914_v23 = vadd.f32 1e-05, %v3258_v48 }
 0x498   : > { %6198 = vrsqrt.f32 %v8914_v23  ;;  %v2819_v38 = vpop.f32.mrf.mxu3  ;;  %vm3358_vm4 = vweird.f32 %v8914_v23 }
 0x49b   : > { %v3147_v21 = vpop.xlane.xlu0 %3146 }
 0x49c   : > { %v3257_v35 = vmul.f32 %v3147_v21, %v8189_v27  ;;  %v5821_v21 = vld [vmem:[%s11284_s7 + $0x20] sm:$0xf] }
 0x49e   : > { %v8917_v6 = vadd.f32 1e-05, %v3257_v35  ;;  %v8924_v22 = vpop.eup %6198  ;;  %v5948_v35 = vld [vmem:[%s11284_s7 + $0x24] sm:$0xf0] }
 0x49f   : > { %v3353_v40 = vmul.f32 %v8924_v22, %v8914_v23  ;;  %vm3359_vm3 = vweird.f32 %v8924_v22 }
 0x4a0   : > { %6200 = vrsqrt.f32 %v8917_v6  ;;  %vm3348_vm0 = vweird.f32 %v8917_v6  ;;  %vm9079_vm5 = vmor %vm3358_vm4, %vm3359_vm3 }
 0x4a1   : > { %v3354_v44 = vmul.f32 %v8924_v22, %v3353_v40  ;;  %v3751_v40 = vmul.f32 %v8963_v59, %v3712_v24  ;;  %v11706_v24 = vld [vmem:[#allocation19_spill] sm:$0xff] }
 0x4a2   : > { %v2936_v18 = vpop.xlane.xlu1 %2935 }
 0x4a3   : > { %v3037_v43 = vmul.f32 %v8189_v27, %v2936_v18  ;;  %v2044_v58 = vpop.xlane.xlu0 %2043 }
 0x4a4   : > { %v2141_v50 = vmax.f32 %v2044_v58, %v2120_v34 }
 0x4a5   : > { %v8927_v46 = vsub.f32 %v8527_v61, %v3037_v43  ;;  %v5831_v61 = vld [vmem:[%s11284_s7 + $0x38] sm:$0xf0]  ;;  %v5823_v43 = vld [vmem:[%s11284_s7 + $0x28] sm:$0xf0] }
 0x4a6   : > { %v8938_v1 = vpop.eup %6200  ;;  %v2160_v25 = vsub.f32 %v2044_v58, %v2141_v50  ;;  %v2217_v19 = vsub.f32 %v2120_v34, %v2141_v50  ;;  %v5834_v7 = vor.u32 %v5949_v26, %v5831_v61  ;;  %v5822_v34 = vor.u32 %v5948_v35, %v5821_v21  ;;  %v5813_v58 = vld [vmem:[%s11284_s7 + $0x10] sm:$0xf]  ;;  %v5815_v26 = vld [vmem:[%s11284_s7 + $0x18] sm:$0xf0] }
 0x4a7   : > { %v3343_v11 = vmul.f32 %v8938_v1, %v8917_v6  ;;  %v3113_v54 = vmul.f32 %v8927_v46, %v8927_v46  ;;  %vm3349_vm15 = vweird.f32 %v8938_v1  ;;  %v5814_v61 = vor.u32 %v5946_v62, %v5813_v58 }
 0x4a8   : > { %v2196_v14 = vmul.f32 1.442695, %v2160_v25  ;;  %v2253_v51 = vmul.f32 1.442695, %v2217_v19  ;;  %4066 = vmatpush.bf16.msrb.mxu1 %v5834_v7  ;;  %vm3350_vm2 = vmor %vm3348_vm0, %vm3349_vm15  ;;  %3963 = vmatpush.bf16.msrb.mxu0 %v5822_v34  ;;  %v5805_v7 = vld [vmem:[%s11284_s7] sm:$0xf]  ;;  %v2820_v35 = vadd.f32 %v2819_v38, %v7814_v17 }
 0x4a9   : > { %v3344_v33 = vmul.f32 %v8938_v1, %v3343_v11  ;;  %v3169_v36 = vsel %vm759_vm1, %v3113_v54, 0.0  ;;  %v2817_v54 = vadd.f32 %v2816_v3, %v7814_v17 }
 0x4aa   : > { %6202 = vpow2.f32 %v2196_v14  ;;  %3170 = vadd.xlane.f32.xlu2 %v3169_v36  ;;  %v2939_v52 = vpop.xlane.xlu1 %2938 }
 0x4ab   : > { %v3345_v53 = vmul.f32 0.5, %v3344_v33  ;;  %6204 = vpow2.f32 %v2253_v51  ;;  %v3038_v60 = vmul.f32 %v8189_v27, %v2939_v52  ;;  %v2123_v45 = vpop.xlane.xlu0 %2122  ;;  %v3153_v10 = vpop.xlane.xlu2 %3152  ;;  %v5818_v51 = vor.u32 %v5945_v12, %v5815_v26  ;;  %v5807_v52 = vld [vmem:[%s11284_s7 + $0x8] sm:$0xf0] }
 0x4ac   : > { %v2142_v9 = vmax.f32 %v8908_v0, %v2123_v45  ;;  %v3259_v18 = vmul.f32 %v3153_v10, %v8189_v27  ;;  %3964 = vmatpush.bf16.msrb.mxu0 %v5814_v61 }
 0x4ad   : > { %v3346_v8 = vsub.f32 1.5, %v3345_v53  ;;  %v8970_v48 = vsub.f32 %v8558_v56, %v3038_v60  ;;  %v5947_v56 = vld [vmem:[%s11284_s7 + $0x24] sm:$0xf]  ;;  %v3355_v60 = vmul.f32 0.5, %v3354_v44 }
 0x4ae   : > { %v2161_v39 = vsub.f32 %v8908_v0, %v2142_v9  ;;  %v2218_v37 = vsub.f32 %v2123_v45, %v2142_v9  ;;  %v5826_v13 = vor.u32 %v5947_v56, %v5823_v43  ;;  %v9006_v16 = vadd.f32 1e-05, %v3259_v18 }
 0x4af   : > { %v3347_v50 = vmul.f32 %v8938_v1, %v3346_v8  ;;  %v3114_v0 = vmul.f32 %v8970_v48, %v8970_v48  ;;  %v9036_v9 = vadd.f32 %v2817_v54, %v11706_v24  ;;  %v9039_v8 = vadd.f32 %v8961_v30, %v3751_v40 }
 0x4b0   : > { %v9002_v25 = vpop.eup %6202  ;;  %v2198_v6 = vmul.f32 1.442695, %v2161_v39  ;;  %v2255_v19 = vmul.f32 1.442695, %v2218_v37  ;;  %4067 = vmatpush.bf16.msrb.mxu1 %v5826_v13  ;;  %v3356_v39 = vsub.f32 1.5, %v3355_v60  ;;  %v2812_v43 = vadd.f32 %v8912_v31, %v7814_v17  ;;  %v11707_v31 = vld [vmem:[#allocation20_spill] sm:$0xff] }
 0x4b1   : > { %v9008_v11 = vpop.eup %6204  ;;  %v3351_v57 = vsel %vm3350_vm2, %v8938_v1, %v3347_v50  ;;  %v3172_v14 = vsel %vm759_vm1, %v3114_v0, 0.0  ;;  %v5943_v1 = vld [vmem:[%s11284_s7 + $0x4] sm:$0xf]  ;;  %v2958_v34 = vsel %vm759_vm1, %v9036_v9, 0.0  ;;  %v9072_v12 = vadd.f32 %v2820_v35, %v11707_v31 }
 0x4b2   : > { %v3713_v33 = vmul.f32 %v3351_v57, %v8434_v49  ;;  %v9023_v36 = vadd.f32 %v9008_v11, %v9002_v25  ;;  %6206 = vpow2.f32 %v2198_v6  ;;  %3173 = vadd.xlane.f32.xlu2 %v3172_v14  ;;  %v5806_v49 = vor.u32 %v5944_v28, %v5805_v7 }
 0x4b3   : > { %6208 = vpow2.f32 %v2255_v19  ;;  %v2933_v53 = vpop.xlane.xlu0 %2932  ;;  %v5810_v3 = vor.u32 %v5943_v1, %v5807_v52  ;;  %v3357_v62 = vmul.f32 %v8924_v22, %v3356_v39  ;;  %v11708_v19 = vld [vmem:[#allocation17_spill] sm:$0xff]  ;;  %v2961_v28 = vsel %vm759_vm1, %v9072_v12, 0.0 }
 0x4b4   : > { %v3752_v45 = vmul.f32 %v8963_v59, %v3713_v33  ;;  %6210 = vrcp.f32 %v9023_v36  ;;  %4068 = vmatpush.bf16.msrb.mxu1 %v5818_v51  ;;  %v3036_v41 = vmul.f32 %v8189_v27, %v2933_v53  ;;  %3965 = vmatpush.bf16.msrb.mxu0 %v5806_v49  ;;  %v9077_v61 = vadd.f32 %v2812_v43, %v11708_v19 }
 0x4b5   : > { %6212 = vrsqrt.f32 %v9006_v16  ;;  %v3361_v51 = vsel %vm9079_vm5, %v8924_v22, %v3357_v62  ;;  %v2542_v7 = vand.u32 2147483648, %v9023_v36  ;;  %vm2536_vm7 = vweird.f32 %v9023_v36 }
 0x4b6   : > { %v9042_v44 = vadd.f32 %v8961_v30, %v3752_v45  ;;  %v9045_v10 = vsub.f32 %v8627_v4, %v3036_v41  ;;  %v2540_v40 = vand.u32 2147483647, %v9023_v36  ;;  %v2815_v52 = vadd.f32 %v8921_v63, %v7814_v17 }
 0x4b7   : > { %v2952_v22 = vsel %vm759_vm1, %v9077_v61, 0.0  ;;  %v2543_v41 = vor.u32 1.1754944e-38, %v2542_v7  ;;  %vm3368_vm11 = vweird.f32 %v9006_v16 }
 0x4b8   : > { %v9047_v21 = vpop.eup %6206  ;;  %v3828_v37 = vpack.c.bf16 %v9042_v44, %v9039_v8  ;;  %4069 = vmatpush.bf16.msrb.mxu1 %v5810_v3  ;;  %v3112_v56 = vmul.f32 %v9045_v10, %v9045_v10  ;;  %vm2541_vm10 = vcmp.eq.f32.partialorder %v2540_v40, 8.507059e+37  ;;  %v11714_v3 = vld [vmem:[#allocation18_spill] sm:$0xff] }
 0x4b9   : > { %v9052_v18 = vpop.eup %6208  ;;  %v9105_v35 = vadd.f32 %v2815_v52, %v11714_v3  ;;  %v11717_v52 = vld [vmem:[#allocation62_spill] sm:$0xff] }
 0x4ba   : > { %v6211_v4 = vpop.eup %6210  ;;  %v9062_v58 = vadd.f32 %v9052_v18, %v9047_v21  ;;  %2959 = vadd.xlane.f32.xlu2 %v2958_v34  ;;  %5835 = vmatmul.msk.bf16.vlgmr.msrb.gmra.mxu0 %vm759_vm1, %v3828_v37  ;;  %v3166_v13 = vsel %vm759_vm1, %v3112_v56, 0.0 }
 0x4bb   : > { %v6213_v50 = vpop.eup %6212  ;;  %v2532_v0 = vmul.f32 %v6211_v4, %v9023_v36  ;;  %5854 = vmatmul.msk.bf16.vlgmr.msrb.gmra.mxu1 %vm759_vm1, %v3828_v37  ;;  %3167 = vadd.xlane.f32.xlu1 %v3166_v13  ;;  %vm2537_vm6 = vweird.f32 %v6211_v4  ;;  %v11713_v36 = vld [vmem:[#allocation2_spill] sm:$0xff] }
 0x4bc   : > { %6214 = vrcp.f32 %v9062_v58  ;;  %v3363_v6 = vmul.f32 %v6213_v50, %v9006_v16  ;;  %vm9093_vm8 = vmor %vm2536_vm7, %vm2537_vm6  ;;  %vm3369_vm9 = vweird.f32 %v6213_v50  ;;  %v3714_v38 = vmul.f32 %v3361_v51, %v11713_v36  ;;  %v11715_v51 = vld [vmem:[#allocation59_spill] sm:$0xff] }
 0x4bd   : > { %v2533_v26 = vsub.f32 1.0, %v2532_v0  ;;  %v2555_v37 = vand.u32 2147483647, %v9062_v58  ;;  %v2557_v34 = vand.u32 2147483648, %v9062_v58  ;;  %vm3370_vm12 = vmor %vm3368_vm11, %vm3369_vm9  ;;  %vm2551_vm14 = vweird.f32 %v9062_v58 }
 0x4be   : > { %v3364_v14 = vmul.f32 %v6213_v50, %v3363_v6  ;;  %v3753_v16 = vmul.f32 %v8963_v59, %v3714_v38 }
 0x4bf   : > { %v2534_v57 = vmul.f32 %v6211_v4, %v2533_v26  ;;  %v2558_v19 = vor.u32 1.1754944e-38, %v2557_v34  ;;  %vm2556_vm0 = vcmp.eq.f32.partialorder %v2555_v37, 8.507059e+37  ;;  %v2821_v37 = vpop.f32.mrf.mxu3 }
 0x4c0   : > { %v3365_v33 = vmul.f32 0.5, %v3364_v14 }
 0x4c1   : > { %v2535_v23 = vadd.f32 %v6211_v4, %v2534_v57 }
 0x4c2   : > { %v6215_v1 = vpop.eup %6214  ;;  %2962 = vadd.xlane.f32.xlu2 %v2961_v28  ;;  %v3366_v49 = vsub.f32 1.5, %v3365_v33  ;;  %v11716_v28 = vld [vmem:[#allocation52_spill] sm:$0xff] }
 0x4c3   : > { %v2539_v60 = vsel %vm9093_vm8, %v6211_v4, %v2535_v23  ;;  %v2547_v45 = vmul.f32 %v6215_v1, %v9062_v58  ;;  %2953 = vadd.xlane.f32.xlu1 %v2952_v22  ;;  %vm2552_vm13 = vweird.f32 %v6215_v1  ;;  %v11718_v22 = vld [vmem:[#allocation82_spill] sm:$0xff] }
 0x4c4   : > { %v3367_v24 = vmul.f32 %v6213_v50, %v3366_v49  ;;  %v2544_v39 = vsel %vm2541_vm10, %v2543_v41, %v2539_v60  ;;  %vm2553_vm15 = vmor %vm2551_vm14, %vm2552_vm13 }
 0x4c5   : > { %v2548_v63 = vsub.f32 1.0, %v2547_v45  ;;  %v2578_v62 = vmul.f32 %v9002_v25, %v2544_v39  ;;  %v2616_v31 = vmul.f32 %v9008_v11, %v2544_v39 }
 0x4c6   : > { %v3371_v43 = vsel %vm3370_vm12, %v6213_v50, %v3367_v24  ;;  %v2955_v50 = vsel %vm759_vm1, %v9105_v35, 0.0 }
 0x4c7   : > { %v2549_v4 = vmul.f32 %v6215_v1, %v2548_v63  ;;  %v3715_v13 = vmul.f32 %v3371_v43, %v8543_v29  ;;  %v9119_v29 = vadd.f32 %v8961_v30, %v3753_v16  ;;  %v2597_v7 = vmul.f32 %v2578_v62, %v11715_v51 }
 0x4c8   : > { %v2635_v23 = vmul.f32 %v2616_v31, %v11716_v28  ;;  %v2824_v28 = vpop.f32.mrf.mxu3 }
 0x4c9   : > { %v2550_v26 = vadd.f32 %v6215_v1, %v2549_v4  ;;  %v3754_v54 = vmul.f32 %v8963_v59, %v3715_v13 }
 0x4cb   : > { %v2554_v57 = vsel %vm2553_vm15, %v6215_v1, %v2550_v26  ;;  %v9122_v25 = vadd.f32 %v8961_v30, %v3754_v54  ;;  %2956 = vadd.xlane.f32.xlu1 %v2955_v50 }
 0x4cc   : > { %v2559_v58 = vsel %vm2556_vm0, %v2558_v19, %v2554_v57 }
 0x4cd   : > { %v2579_v11 = vmul.f32 %v9047_v21, %v2559_v58  ;;  %v2617_v14 = vmul.f32 %v9052_v18, %v2559_v58  ;;  %v3829_v40 = vpack.c.bf16 %v9122_v25, %v9119_v29  ;;  %v2654_v18 = vadd.f32 %v2635_v23, %v2597_v7 }
 0x4ce   : > { %v2822_v58 = vadd.f32 %v2821_v37, %v7814_v17 }
 0x4cf   : > { %v2598_v53 = vmul.f32 %v2579_v11, %v11717_v52  ;;  %v2636_v60 = vmul.f32 %v2617_v14, %v11718_v22  ;;  %5836 = vmatmul.msk.bf16.gmra.mxu0 %vm759_vm1, %v3829_v40  ;;  %5855 = vmatmul.msk.bf16.gmra.mxu1 %vm759_vm1, %v3829_v40  ;;  %v11719_v22 = vld [vmem:[#allocation21_spill] sm:$0xff] }
 0x4d1   : > { %v2655_v36 = vadd.f32 %v2636_v60, %v2598_v53  ;;  %v9163_v60 = vadd.f32 %v2822_v58, %v11719_v22 }
 0x4d3   : > { %v2674_v24 = vpack.c.bf16 %v2655_v36, %v2654_v18 }
 0x4d4   : > { %v3156_v56 = vpop.xlane.xlu2 %3155 }
 0x4d5   : > { %v3260_v0 = vmul.f32 %v3156_v56, %v8189_v27  ;;  %5802 = vmatmul.msk.bf16.gmra.mxu3 %vm759_vm1, %v2674_v24  ;;  %v2964_v24 = vsel %vm759_vm1, %v9163_v60, 0.0 }
 0x4d7   : > { %v3298_v6 = vadd.f32 1e-05, %v3260_v0 }
 0x4d9   : > { %6216 = vrsqrt.f32 %v3298_v6  ;;  %vm3378_vm3 = vweird.f32 %v3298_v6 }
 0x4dc   : > { %v3159_v33 = vpop.xlane.xlu0 %3158  ;;  %v2942_v1 = vpop.xlane.xlu2 %2941 }
 0x4dd   : > { %v3261_v45 = vmul.f32 %v3159_v33, %v8189_v27  ;;  %v3039_v49 = vmul.f32 %v8189_v27, %v2942_v1 }
 0x4df   : > { %v6217_v21 = vpop.eup %6216  ;;  %v3299_v38 = vadd.f32 1e-05, %v3261_v45  ;;  %v9137_v41 = vsub.f32 %v8742_v20, %v3039_v49 }
 0x4e0   : > { %v3373_v63 = vmul.f32 %v6217_v21, %v3298_v6  ;;  %vm3379_vm2 = vweird.f32 %v6217_v21 }
 0x4e1   : > { %6218 = vrsqrt.f32 %v3299_v38  ;;  %v3115_v39 = vmul.f32 %v9137_v41, %v9137_v41  ;;  %vm3380_vm4 = vmor %vm3378_vm3, %vm3379_vm2  ;;  %vm3388_vm6 = vweird.f32 %v3299_v38 }
 0x4e2   : > { %v3374_v3 = vmul.f32 %v6217_v21, %v3373_v63 }
 0x4e3   : > { %v3175_v4 = vsel %vm759_vm1, %v3115_v39, 0.0 }
 0x4e4   : > { %v3375_v34 = vmul.f32 0.5, %v3374_v3  ;;  %v2945_v43 = vpop.xlane.xlu2 %2944  ;;  %3176 = vadd.xlane.f32.xlu0 %v3175_v4 }
 0x4e5   : > { %v3162_v56 = vpop.xlane.xlu0 %3161  ;;  %v3040_v20 = vmul.f32 %v8189_v27, %v2945_v43  ;;  %v11720_v43 = vld [vmem:[#allocation22_spill] sm:$0xff] }
 0x4e6   : > { %v3262_v0 = vmul.f32 %v3162_v56, %v8189_v27  ;;  %v3376_v13 = vsub.f32 1.5, %v3375_v34 }
 0x4e7   : > { %v6219_v16 = vpop.eup %6218  ;;  %v9148_v31 = vsub.f32 %v8795_v5, %v3040_v20  ;;  %v2826_v20 = vpop.f32.mrf.mxu3 }
 0x4e8   : > { %v9145_v62 = vadd.f32 1e-05, %v3262_v0  ;;  %v3377_v26 = vmul.f32 %v6217_v21, %v3376_v13  ;;  %v3383_v19 = vmul.f32 %v6219_v16, %v3299_v38  ;;  %vm3389_vm5 = vweird.f32 %v6219_v16 }
 0x4e9   : > { %v3116_v54 = vmul.f32 %v9148_v31, %v9148_v31  ;;  %vm3390_vm7 = vmor %vm3388_vm6, %vm3389_vm5 }
 0x4ea   : > { %6220 = vrsqrt.f32 %v9145_v62  ;;  %v3384_v57 = vmul.f32 %v6219_v16, %v3383_v19  ;;  %v3381_v11 = vsel %vm3380_vm4, %v6217_v21, %v3377_v26  ;;  %vm3398_vm9 = vweird.f32 %v9145_v62 }
 0x4eb   : > { %v3178_v50 = vsel %vm759_vm1, %v3116_v54, 0.0  ;;  %v3716_v6 = vmul.f32 %v3381_v11, %v8714_v42 }
 0x4ec   : > { %v3385_v14 = vmul.f32 0.5, %v3384_v57  ;;  %3179 = vadd.xlane.f32.xlu0 %v3178_v50  ;;  %v2827_v57 = vadd.f32 %v2826_v20, %v7814_v17 }
 0x4ed   : > { %v2948_v51 = vpop.xlane.xlu0 %2947  ;;  %v3165_v7 = vpop.xlane.xlu1 %3164  ;;  %v3755_v42 = vmul.f32 %v8963_v59, %v3716_v6 }
 0x4ee   : > { %v3041_v5 = vmul.f32 %v8189_v27, %v2948_v51  ;;  %v3386_v23 = vsub.f32 1.5, %v3385_v14  ;;  %v3263_v40 = vmul.f32 %v3165_v7, %v8189_v27 }
 0x4ef   : > { %v9179_v56 = vadd.f32 %v8961_v30, %v3755_v42  ;;  %v5966_v42 = vld [vmem:[%s11285_s8 + $0x78] sm:$0xff] }
 0x4f0   : > { %v6221_v33 = vpop.eup %6220  ;;  %v9159_v1 = vsub.f32 %v8823_v32, %v3041_v5  ;;  %v3387_v52 = vmul.f32 %v6219_v16, %v3386_v23  ;;  %v3301_v45 = vadd.f32 1e-05, %v3263_v40  ;;  %v2825_v32 = vadd.f32 %v2824_v28, %v7814_v17  ;;  %v11721_v5 = vld [vmem:[#allocation23_spill] sm:$0xff]  ;;  %v2829_v23 = vpop.f32.mrf.mxu3  ;;  %4513 = vmatpush.bf16.msrb.mxu3 %v5966_v42 }
 0x4f1   : > { %v3393_v53 = vmul.f32 %v6221_v33, %v9145_v62  ;;  %vm3399_vm8 = vweird.f32 %v6221_v33  ;;  %v9199_v7 = vadd.f32 %v2827_v57, %v11721_v5  ;;  %v5953_v5 = vld [vmem:[%s11285_s8 + $0x10] sm:$0xff] }
 0x4f2   : > { %v3391_v49 = vsel %vm3390_vm7, %v6219_v16, %v3387_v52  ;;  %v3117_v18 = vmul.f32 %v9159_v1, %v9159_v1  ;;  %6222 = vrsqrt.f32 %v3301_v45  ;;  %v9185_v0 = vadd.f32 %v2825_v32, %v11720_v43  ;;  %vm3400_vm10 = vmor %vm3398_vm9, %vm3399_vm8  ;;  %v5964_v43 = vld [vmem:[%s11285_s8 + $0x68] sm:$0xff] }
 0x4f3   : > { %v3394_v21 = vmul.f32 %v6221_v33, %v3393_v53  ;;  %v3717_v36 = vmul.f32 %v3391_v49, %v8739_v47  ;;  %vm3408_vm12 = vweird.f32 %v3301_v45  ;;  %v2970_v6 = vsel %vm759_vm1, %v9199_v7, 0.0  ;;  %v11722_v49 = vld [vmem:[#allocation24_spill] sm:$0xff] }
 0x4f4   : > { %v3181_v3 = vsel %vm759_vm1, %v3117_v18, 0.0  ;;  %2965 = vadd.xlane.f32.xlu0 %v2964_v24  ;;  %v2967_v58 = vsel %vm759_vm1, %v9185_v0, 0.0  ;;  %v2830_v52 = vadd.f32 %v2829_v23, %v7814_v17  ;;  %v5965_v24 = vld [vmem:[%s11285_s8 + $0x70] sm:$0xff] }
 0x4f5   : > { %v3395_v38 = vmul.f32 0.5, %v3394_v21  ;;  %v2951_v63 = vpop.xlane.xlu0 %2950  ;;  %3182 = vadd.xlane.f32.xlu1 %v3181_v3  ;;  %v3756_v37 = vmul.f32 %v8963_v59, %v3717_v36  ;;  %v5958_v36 = vld [vmem:[%s11285_s8 + $0x38] sm:$0xff]  ;;  %4514 = vmatpush.bf16.msrb.mxu3 %v5965_v24 }
 0x4f6   : > { %v3042_v39 = vmul.f32 %v8189_v27, %v2951_v63  ;;  %v9209_v21 = vadd.f32 %v2830_v52, %v11722_v49  ;;  %4409 = vmatpush.bf16.msrb.mxu2 %v5958_v36  ;;  %v5957_v63 = vld [vmem:[%s11285_s8 + $0x30] sm:$0xff]  ;;  %v5952_v52 = vld [vmem:[%s11285_s8 + $0x8] sm:$0xff]  ;;  %v6361_v36 = vld [vmem:[%s11280_s3] sm:$0xf] }
 0x4f7   : > { %v3396_v34 = vsub.f32 1.5, %v3395_v38  ;;  %v9182_v4 = vadd.f32 %v8961_v30, %v3756_v37  ;;  %v3855_v42 = vperm.slane %v6361_v36, 1 }
 0x4f8   : > { %v9176_v47 = vsub.f32 %v8872_v55, %v3042_v39  ;;  %v6223_v13 = vpop.eup %6222  ;;  %v9238_v39 = vpop.f32.mrf.mxu3 }
 0x4f9   : > { %v3830_v16 = vpack.c.bf16 %v9182_v4, %v9179_v56  ;;  %v3397_v19 = vmul.f32 %v6221_v33, %v3396_v34  ;;  %v3403_v55 = vmul.f32 %v6223_v13, %v3301_v45  ;;  %vm3409_vm11 = vweird.f32 %v6223_v13  ;;  %v5956_v34 = vld [vmem:[%s11285_s8 + $0x28] sm:$0xff]  ;;  %4515 = vmatpush.bf16.msrb.mxu3 %v5964_v43  ;;  %v5959_v43 = vld [vmem:[%s11285_s8 + $0x40] sm:$0xff] }
 0x4fa   : > { %v3118_v26 = vmul.f32 %v9176_v47, %v9176_v47  ;;  %vm3410_vm13 = vmor %vm3408_vm12, %vm3409_vm11  ;;  %4410 = vmatpush.bf16.msrb.mxu2 %v5957_v63 }
 0x4fb   : > { %5837 = vmatmul.msk.bf16.gmra.mxu0 %vm759_vm1, %v3830_v16  ;;  %5856 = vmatmul.msk.bf16.gmra.mxu1 %vm759_vm1, %v3830_v16  ;;  %v3404_v50 = vmul.f32 %v6223_v13, %v3403_v55  ;;  %v3401_v11 = vsel %vm3400_vm10, %v6221_v33, %v3397_v19  ;;  %v5963_v16 = vld [vmem:[%s11285_s8 + $0x60] sm:$0xff]  ;;  %v5954_v55 = vld [vmem:[%s11285_s8 + $0x18] sm:$0xff] }
 0x4fc   : > { %v3184_v54 = vsel %vm759_vm1, %v3118_v26, 0.0  ;;  %2968 = vadd.xlane.f32.xlu0 %v2967_v58  ;;  %v3718_v28 = vmul.f32 %v3401_v11, %v8792_v2 }
 0x4fd   : > { %3185 = vadd.xlane.f32.xlu1 %v3184_v54  ;;  %v3405_v14 = vmul.f32 0.5, %v3404_v50  ;;  %4516 = vmatpush.bf16.msrb.mxu3 %v5963_v16  ;;  %v5962_v54 = vld [vmem:[%s11285_s8 + $0x58] sm:$0xff] }
 0x4fe   : > { %v3757_v53 = vmul.f32 %v8963_v59, %v3718_v28  ;;  %4411 = vmatpush.bf16.msrb.mxu2 %v5956_v34  ;;  %v5961_v28 = vld [vmem:[%s11285_s8 + $0x50] sm:$0xff]  ;;  %v5951_v34 = vld [vmem:[%s11285_s8] sm:$0xff] }
 0x4ff   : > { %v3406_v51 = vsub.f32 1.5, %v3405_v14 }
 0x500   : > { %v9212_v2 = vadd.f32 %v8961_v30, %v3757_v53  ;;  %v9255_v26 = vpop.f32.mrf.mxu3 }
 0x501   : > { %v3407_v40 = vmul.f32 %v6223_v13, %v3406_v51  ;;  %4517 = vmatpush.bf16.msrb.mxu3 %v5962_v54 }
 0x503   : > { %v3411_v62 = vsel %vm3410_vm13, %v6223_v13, %v3407_v40  ;;  %v5955_v13 = vld [vmem:[%s11285_s8 + $0x20] sm:$0xff] }
 0x504   : > { %v3719_v33 = vmul.f32 %v3411_v62, %v8831_v15  ;;  %v2973_v15 = vsel %vm759_vm1, %v9209_v21, 0.0  ;;  %4412 = vmatpush.bf16.msrb.mxu2 %v5955_v13 }
 0x505   : > { %2971 = vadd.xlane.f32.xlu1 %v2970_v6  ;;  %4518 = vmatpush.bf16.msrb.mxu3 %v5961_v28 }
 0x506   : > { %v3758_v22 = vmul.f32 %v8963_v59, %v3719_v33  ;;  %v5960_v33 = vld [vmem:[%s11285_s8 + $0x48] sm:$0xff] }
 0x508   : > { %v9215_v45 = vadd.f32 %v8961_v30, %v3758_v22  ;;  %4413 = vmatpush.bf16.msrb.mxu2 %v5954_v55  ;;  %v2836_v53 = vpop.f32.mrf.mxu3 }
 0x509   : > { %4519 = vmatpush.bf16.msrb.mxu3 %v5960_v33  ;;  %v11725_v33 = vld [vmem:[#allocation27_spill] sm:$0xff] }
 0x50a   : > { %v3831_v18 = vpack.c.bf16 %v9215_v45, %v9212_v2 }
 0x50c   : > { %5838 = vmatmul.msk.bf16.gmra.mxu0 %vm759_vm1, %v3831_v18  ;;  %5857 = vmatmul.msk.bf16.gmra.mxu1 %vm759_vm1, %v3831_v18 }
 0x50d   : > { %2974 = vadd.xlane.f32.xlu1 %v2973_v15  ;;  %4414 = vmatpush.bf16.msrb.mxu2 %v5953_v5 }
 0x50e   : > { %4520 = vmatpush.bf16.msrb.mxu3 %v5959_v43 }
 0x511   : > { %4415 = vmatpush.bf16.msrb.mxu2 %v5952_v52 }
 0x515   : > { %4416 = vmatpush.bf16.msrb.mxu2 %v5951_v34 }
 0x51d   : > { %v3171_v32 = vpop.xlane.xlu2 %3170 }
 0x51e   : > { %v3265_v38 = vmul.f32 %v3171_v32, %v8189_v27 }
 0x520   : > { %v9236_v3 = vadd.f32 1e-05, %v3265_v38 }
 0x522   : > { %6224 = vrsqrt.f32 %v9236_v3  ;;  %vm3428_vm15 = vweird.f32 %v9236_v3 }
 0x525   : > { %v3174_v37 = vpop.xlane.xlu2 %3173 }
 0x528   : > { %v9247_v20 = vpop.eup %6224 }
 0x529   : > { %v3423_v19 = vmul.f32 %v9247_v20, %v9236_v3  ;;  %vm3429_vm14 = vweird.f32 %v9247_v20 }
 0x52a   : > { %vm9324_vm0 = vmor %vm3428_vm15, %vm3429_vm14 }
 0x52b   : > { %v3424_v58 = vmul.f32 %v9247_v20, %v3423_v19  ;;  %v2837_v19 = vadd.f32 %v2836_v53, %v7814_v17 }
 0x52d   : > { %v2960_v57 = vpop.xlane.xlu2 %2959  ;;  %v3425_v62 = vmul.f32 0.5, %v3424_v58  ;;  %v9335_v53 = vadd.f32 %v2837_v19, %v11725_v33 }
 0x52e   : > { %v3045_v50 = vmul.f32 %v8189_v27, %v2960_v57  ;;  %v3168_v11 = vpop.xlane.xlu1 %3167 }
 0x52f   : > { %v3264_v51 = vmul.f32 %v3168_v11, %v8189_v27  ;;  %v3426_v18 = vsub.f32 1.5, %v3425_v62 }
 0x530   : > { %v9268_v14 = vsub.f32 %v9036_v9, %v3045_v50  ;;  %v3266_v9 = vmul.f32 %v3174_v37, %v8189_v27  ;;  %v3856_v37 = vperm.slane %v6361_v36, 3  ;;  %v9315_v50 = vperm.slane %v3855_v42, 1 }
 0x531   : > { %v9279_v40 = vadd.f32 1e-05, %v3264_v51  ;;  %v3427_v54 = vmul.f32 %v9247_v20, %v3426_v18 }
 0x532   : > { %v3121_v23 = vmul.f32 %v9268_v14, %v9268_v14  ;;  %v9294_v32 = vadd.f32 1e-05, %v3266_v9  ;;  %v9319_v11 = vperm.slane %v3856_v37, 1 }
 0x533   : > { %6226 = vrsqrt.f32 %v9279_v40  ;;  %v3431_v62 = vsel %vm9324_vm0, %v9247_v20, %v3427_v54  ;;  %vm3418_vm3 = vweird.f32 %v9279_v40 }
 0x534   : > { %v3193_v6 = vsel %vm759_vm1, %v3121_v23, 0.0  ;;  %6228 = vrsqrt.f32 %v9294_v32  ;;  %v2839_v23 = vpop.f32.mrf.mxu3  ;;  %vm3438_vm6 = vweird.f32 %v9294_v32 }
 0x535   : > { %3194 = vadd.xlane.f32.xlu0 %v3193_v6  ;;  %v2963_v22 = vpop.xlane.xlu2 %2962  ;;  %v2840_v20 = vadd.f32 %v2839_v23, %v7814_v17  ;;  %v11726_v23 = vld [vmem:[#allocation28_spill] sm:$0xff] }
 0x536   : > { %v3046_v49 = vmul.f32 %v8189_v27, %v2963_v22  ;;  %v2954_v15 = vpop.xlane.xlu1 %2953 }
 0x537   : > { %v3043_v63 = vmul.f32 %v8189_v27, %v2954_v15  ;;  %v3967_v24 = vpop.f32.mrf.mxu0 }
 0x538   : > { %v9297_v38 = vsub.f32 %v9072_v12, %v3046_v49  ;;  %v4071_v13 = vpop.f32.mrf.mxu1  ;;  %v3968_v6 = vadd.f32 %v3967_v24, %v9315_v50 }
 0x539   : > { %v6227_v16 = vpop.eup %6226  ;;  %v9310_v55 = vsub.f32 %v9077_v61, %v3043_v63  ;;  %v4072_v3 = vadd.f32 %v4071_v13, %v9319_v11  ;;  %v3721_v63 = vmul.f32 %v3431_v62, %v8927_v46  ;;  %v2832_v46 = vadd.f32 %v9238_v39, %v7814_v17 }
 0x53a   : > { %v3122_v12 = vmul.f32 %v9297_v38, %v9297_v38  ;;  %v3413_v57 = vmul.f32 %v6227_v16, %v9279_v40  ;;  %vm3419_vm2 = vweird.f32 %v6227_v16  ;;  %v9339_v42 = vpop.eup %6228  ;;  %v4166_v43 = vmax.f32 %v3968_v6, 0.0  ;;  %v11727_v6 = vld [vmem:[#allocation25_spill] sm:$0xff] }
 0x53b   : > { %v3119_v51 = vmul.f32 %v9310_v55, %v9310_v55  ;;  %vm3420_vm4 = vmor %vm3418_vm3, %vm3419_vm2  ;;  %v4167_v19 = vmax.f32 %v4072_v3, 0.0  ;;  %v9360_v62 = vadd.f32 %v2840_v20, %v11726_v23  ;;  %vm3439_vm5 = vweird.f32 %v9339_v42 }
 0x53c   : > { %v3196_v58 = vsel %vm759_vm1, %v3122_v12, 0.0  ;;  %v3414_v61 = vmul.f32 %v6227_v16, %v3413_v57  ;;  %v2982_v12 = vsel %vm759_vm1, %v9335_v53, 0.0  ;;  %vm3440_vm7 = vmor %vm3438_vm6, %vm3439_vm5 }
 0x53d   : > { %3197 = vadd.xlane.f32.xlu0 %v3196_v58  ;;  %v3187_v28 = vsel %vm759_vm1, %v3119_v51, 0.0 }
 0x53e   : > { %v3415_v9 = vmul.f32 0.5, %v3414_v61  ;;  %3188 = vadd.xlane.f32.xlu2 %v3187_v28  ;;  %v2957_v52 = vpop.xlane.xlu1 %2956  ;;  %v3760_v28 = vmul.f32 %v8963_v59, %v3721_v63 }
 0x53f   : > { %v3044_v22 = vmul.f32 %v8189_v27, %v2957_v52  ;;  %v3969_v49 = vpop.f32.mrf.mxu0  ;;  %v9371_v52 = vadd.f32 %v2832_v46, %v11727_v6 }
 0x540   : > { %v3416_v18 = vsub.f32 1.5, %v3415_v9  ;;  %v3970_v15 = vadd.f32 %v3969_v49, %v9315_v50  ;;  %v4073_v36 = vpop.f32.mrf.mxu1 }
 0x541   : > { %v9344_v24 = vsub.f32 %v9105_v35, %v3044_v22  ;;  %v4074_v37 = vadd.f32 %v4073_v36, %v9319_v11  ;;  %v3433_v35 = vmul.f32 %v9339_v42, %v9294_v32  ;;  %v2985_v22 = vsel %vm759_vm1, %v9360_v62, 0.0 }
 0x542   : > { %v3417_v34 = vmul.f32 %v6227_v16, %v3416_v18  ;;  %v4168_v13 = vmax.f32 %v3970_v15, 0.0  ;;  %v2835_v18 = vadd.f32 %v9255_v26, %v7814_v17 }
 0x543   : > { %v4169_v54 = vmax.f32 %v4074_v37, 0.0  ;;  %v3120_v57 = vmul.f32 %v9344_v24, %v9344_v24  ;;  %v3434_v9 = vmul.f32 %v9339_v42, %v3433_v35  ;;  %v2976_v37 = vsel %vm759_vm1, %v9371_v52, 0.0 }
 0x544   : > { %v3421_v58 = vsel %vm3420_vm4, %v6227_v16, %v3417_v34  ;;  %v4242_v40 = vpack.c.bf16 %v4168_v13, %v4166_v43  ;;  %v11728_v34 = vld [vmem:[#allocation26_spill] sm:$0xff] }
 0x545   : > { %2983 = vadd.xlane.f32.xlu0 %v2982_v12  ;;  %v3720_v51 = vmul.f32 %v3421_v58, %v9045_v10  ;;  %v4243_v61 = vpack.c.bf16 %v4169_v54, %v4167_v19  ;;  %v3190_v5 = vsel %vm759_vm1, %v3120_v57, 0.0  ;;  %v9368_v10 = vadd.f32 %v8961_v30, %v3760_v28 }
 0x546   : > { %4417 = vmatmul.bf16.vlgmr.msrb.gmra.mxu2 %v4242_v40  ;;  %3191 = vadd.xlane.f32.xlu2 %v3190_v5  ;;  %v3435_v63 = vmul.f32 0.5, %v3434_v9  ;;  %v9385_v43 = vadd.f32 %v2835_v18, %v11728_v34 }
 0x547   : > { %4521 = vmatmul.bf16.vlgmr.msrb.gmra.mxu3 %v4243_v61  ;;  %v3759_v39 = vmul.f32 %v8963_v59, %v3720_v51 }
 0x548   : > { %v3436_v13 = vsub.f32 1.5, %v3435_v63  ;;  %v2979_v58 = vsel %vm759_vm1, %v9385_v43, 0.0 }
 0x549   : > { %v9365_v16 = vadd.f32 %v8961_v30, %v3759_v39 }
 0x54a   : > { %v3437_v51 = vmul.f32 %v9339_v42, %v3436_v13 }
 0x54b   : > { %v3832_v49 = vpack.c.bf16 %v9368_v10, %v9365_v16 }
 0x54c   : > { %v3972_v15 = vpop.f32.mrf.mxu0  ;;  %v4076_v36 = vpop.f32.mrf.mxu1 }
 0x54d   : > { %2986 = vadd.xlane.f32.xlu0 %v2985_v22  ;;  %5839 = vmatmul.msk.bf16.gmra.mxu0 %vm759_vm1, %v3832_v49  ;;  %v3973_v26 = vadd.f32 %v3972_v15, %v9315_v50  ;;  %v4077_v54 = vadd.f32 %v4076_v36, %v9319_v11 }
 0x54e   : > { %5858 = vmatmul.msk.bf16.gmra.mxu1 %vm759_vm1, %v3832_v49  ;;  %2977 = vadd.xlane.f32.xlu2 %v2976_v37 }
 0x54f   : > { %v4170_v23 = vmax.f32 %v3973_v26, 0.0  ;;  %v4171_v39 = vmax.f32 %v4077_v54, 0.0 }
 0x554   : > { %v3974_v46 = vpop.f32.mrf.mxu0  ;;  %v4078_v35 = vpop.f32.mrf.mxu1 }
 0x555   : > { %v3975_v61 = vadd.f32 %v3974_v46, %v9315_v50  ;;  %v4079_v5 = vadd.f32 %v4078_v35, %v9319_v11 }
 0x556   : > { %2980 = vadd.xlane.f32.xlu2 %v2979_v58  ;;  %v2841_v58 = vpop.f32.mrf.mxu3 }
 0x557   : > { %v3177_v3 = vpop.xlane.xlu0 %3176  ;;  %v4172_v9 = vmax.f32 %v3975_v61, 0.0  ;;  %v4173_v6 = vmax.f32 %v4079_v5, 0.0 }
 0x558   : > { %v3267_v33 = vmul.f32 %v3177_v3, %v8189_v27 }
 0x559   : > { %v4244_v22 = vpack.c.bf16 %v4172_v9, %v4170_v23  ;;  %v4245_v49 = vpack.c.bf16 %v4173_v6, %v4171_v39 }
 0x55a   : > { %v3305_v20 = vadd.f32 1e-05, %v3267_v33  ;;  %v3441_v33 = vsel %vm3440_vm7, %v9339_v42, %v3437_v51 }
 0x55b   : > { %4422 = vmatmul.bf16.gmra.mxu2 %v4244_v22  ;;  %4526 = vmatmul.bf16.gmra.mxu3 %v4245_v49  ;;  %v3722_v13 = vmul.f32 %v3441_v33, %v8970_v48 }
 0x55c   : > { %6230 = vrsqrt.f32 %v3305_v20  ;;  %vm3448_vm9 = vweird.f32 %v3305_v20 }
 0x55d   : > { %v3761_v48 = vmul.f32 %v8963_v59, %v3722_v13 }
 0x55e   : > { %v2844_v13 = vpop.f32.mrf.mxu3 }
 0x55f   : > { %v3180_v19 = vpop.xlane.xlu0 %3179 }
 0x560   : > { %v3268_v12 = vmul.f32 %v3180_v19, %v8189_v27 }
 0x562   : > { %v6231_v57 = vpop.eup %6230  ;;  %v3306_v40 = vadd.f32 1e-05, %v3268_v12 }
 0x563   : > { %v3443_v28 = vmul.f32 %v6231_v57, %v3305_v20  ;;  %vm3449_vm8 = vweird.f32 %v6231_v57 }
 0x564   : > { %6232 = vrsqrt.f32 %v3306_v40  ;;  %vm3450_vm10 = vmor %vm3448_vm9, %vm3449_vm8  ;;  %vm3458_vm12 = vweird.f32 %v3306_v40 }
 0x565   : > { %v3444_v3 = vmul.f32 %v6231_v57, %v3443_v28 }
 0x567   : > { %v3445_v18 = vmul.f32 0.5, %v3444_v3  ;;  %v2966_v15 = vpop.xlane.xlu0 %2965 }
 0x568   : > { %v3183_v36 = vpop.xlane.xlu1 %3182  ;;  %v3047_v63 = vmul.f32 %v8189_v27, %v2966_v15 }
 0x569   : > { %v3269_v32 = vmul.f32 %v3183_v36, %v8189_v27  ;;  %v3446_v37 = vsub.f32 1.5, %v3445_v18  ;;  %v2842_v18 = vadd.f32 %v2841_v58, %v7814_v17 }
 0x56a   : > { %v6233_v34 = vpop.eup %6232  ;;  %v9404_v19 = vsub.f32 %v9163_v60, %v3047_v63 }
 0x56b   : > { %v3307_v42 = vadd.f32 1e-05, %v3269_v32  ;;  %v3447_v26 = vmul.f32 %v6231_v57, %v3446_v37  ;;  %v3453_v12 = vmul.f32 %v6233_v34, %v3306_v40  ;;  %vm3459_vm11 = vweird.f32 %v6233_v34  ;;  %v11731_v40 = vld [vmem:[#allocation29_spill] sm:$0xff] }
 0x56c   : > { %v3123_v54 = vmul.f32 %v9404_v19, %v9404_v19  ;;  %vm3460_vm13 = vmor %vm3458_vm12, %vm3459_vm11 }
 0x56d   : > { %6234 = vrsqrt.f32 %v3307_v42  ;;  %v3451_v46 = vsel %vm3450_vm10, %v6231_v57, %v3447_v26  ;;  %v3454_v35 = vmul.f32 %v6233_v34, %v3453_v12  ;;  %vm3468_vm15 = vweird.f32 %v3307_v42 }
 0x56e   : > { %v3723_v51 = vmul.f32 %v3451_v46, %v9137_v41  ;;  %v3199_v61 = vsel %vm759_vm1, %v3123_v54, 0.0  ;;  %v9419_v41 = vadd.f32 %v8961_v30, %v3761_v48  ;;  %v9434_v46 = vadd.f32 %v2842_v18, %v11731_v40 }
 0x56f   : > { %v3455_v60 = vmul.f32 0.5, %v3454_v35  ;;  %v2969_v5 = vpop.xlane.xlu0 %2968  ;;  %3200 = vadd.xlane.f32.xlu1 %v3199_v61  ;;  %v2845_v61 = vadd.f32 %v2844_v13, %v7814_v17 }
 0x570   : > { %v9411_v28 = vpop.xlane.xlu1 %3185  ;;  %v3048_v20 = vmul.f32 %v8189_v27, %v2969_v5  ;;  %v3762_v23 = vmul.f32 %v8963_v59, %v3723_v51  ;;  %11729 = vst [vmem:[#allocation42_spill] sm:$0xff] %v9419_v41 }
 0x571   : > { %v3456_v39 = vsub.f32 1.5, %v3455_v60  ;;  %v2988_v60 = vsel %vm759_vm1, %v9434_v46, 0.0 }
 0x572   : > { %v9416_v57 = vsub.f32 %v9185_v0, %v3048_v20  ;;  %v9422_v6 = vadd.f32 %v8961_v30, %v3762_v23 }
 0x573   : > { %v6235_v9 = vpop.eup %6234  ;;  %v3457_v3 = vmul.f32 %v6233_v34, %v3456_v39 }
 0x574   : > { %11730 = vst [vmem:[#allocation60_spill] sm:$0xff] %v9422_v6  ;;  %v3463_v33 = vmul.f32 %v6235_v9, %v3307_v42  ;;  %v3833_v22 = vpack.c.bf16 %v9422_v6, %v9419_v41  ;;  %v3124_v49 = vmul.f32 %v9416_v57, %v9416_v57  ;;  %vm3469_vm14 = vweird.f32 %v6235_v9  ;;  %v11737_v41 = vld [vmem:[#allocation38_spill] sm:$0xff] }
 0x575   : > { %v3461_v36 = vsel %vm3460_vm13, %v6233_v34, %v3457_v3  ;;  %vm3470_vm0 = vmor %vm3468_vm15, %vm3469_vm14 }
 0x576   : > { %v3464_v0 = vmul.f32 %v6235_v9, %v3463_v33  ;;  %5840 = vmatmul.msk.bf16.gmra.mxu0 %vm759_vm1, %v3833_v22  ;;  %5859 = vmatmul.msk.bf16.gmra.mxu1 %vm759_vm1, %v3833_v22  ;;  %v3202_v15 = vsel %vm759_vm1, %v3124_v49, 0.0  ;;  %v3724_v35 = vmul.f32 %v3461_v36, %v9148_v31  ;;  %v11732_v22 = vld [vmem:[#allocation30_spill] sm:$0xff] }
 0x577   : > { %3203 = vadd.xlane.f32.xlu1 %v3202_v15  ;;  %v9453_v49 = vadd.f32 %v2845_v61, %v11732_v22  ;;  %v11736_v22 = vld [vmem:[#allocation32_spill] sm:$0xff] }
 0x578   : > { %v3465_v63 = vmul.f32 0.5, %v3464_v0  ;;  %v2972_v32 = vpop.xlane.xlu1 %2971  ;;  %v3977_v37 = vpop.f32.mrf.mxu0 }
 0x579   : > { %v3049_v26 = vmul.f32 %v8189_v27, %v2972_v32  ;;  %v4081_v12 = vpop.f32.mrf.mxu1  ;;  %v3978_v20 = vadd.f32 %v3977_v37, %v9315_v50  ;;  %v2846_v0 = vpop.f32.mrf.mxu3 }
 0x57a   : > { %v3466_v54 = vsub.f32 1.5, %v3465_v63  ;;  %v4082_v42 = vadd.f32 %v4081_v12, %v9319_v11 }
 0x57b   : > { %v9438_v58 = vsub.f32 %v9199_v7, %v3049_v26  ;;  %v3763_v7 = vmul.f32 %v8963_v59, %v3724_v35  ;;  %v4174_v15 = vmax.f32 %v3978_v20, 0.0 }
 0x57c   : > { %v3467_v51 = vmul.f32 %v6235_v9, %v3466_v54  ;;  %v4175_v37 = vmax.f32 %v4082_v42, 0.0 }
 0x57d   : > { %v3125_v34 = vmul.f32 %v9438_v58, %v9438_v58  ;;  %v9458_v63 = vadd.f32 %v8961_v30, %v3763_v7 }
 0x57e   : > { %v3471_v48 = vsel %vm3470_vm0, %v6235_v9, %v3467_v51  ;;  %v2991_v51 = vsel %vm759_vm1, %v9453_v49, 0.0 }
 0x57f   : > { %v3725_v5 = vmul.f32 %v3471_v48, %v9159_v1  ;;  %v3205_v31 = vsel %vm759_vm1, %v3125_v34, 0.0  ;;  %2989 = vadd.xlane.f32.xlu1 %v2988_v60  ;;  %11733 = vst [vmem:[#allocation66_spill] sm:$0xff] %v9458_v63  ;;  %v2847_v34 = vadd.f32 %v2846_v0, %v7814_v17  ;;  %v11735_v60 = vld [vmem:[#allocation31_spill] sm:$0xff] }
 0x580   : > { %3206 = vadd.xlane.f32.xlu2 %v3205_v31  ;;  %v3979_v23 = vpop.f32.mrf.mxu0  ;;  %v2975_v39 = vpop.xlane.xlu1 %2974 }
 0x581   : > { %v3980_v3 = vadd.f32 %v3979_v23, %v9315_v50  ;;  %v4083_v9 = vpop.f32.mrf.mxu1  ;;  %v3764_v33 = vmul.f32 %v8963_v59, %v3725_v5  ;;  %v3050_v1 = vmul.f32 %v8189_v27, %v2975_v39  ;;  %v9477_v5 = vadd.f32 %v2847_v34, %v11735_v60  ;;  %v2849_v20 = vpop.f32.mrf.mxu3 }
 0x582   : > { %v4084_v18 = vadd.f32 %v4083_v9, %v9319_v11  ;;  %v2850_v31 = vadd.f32 %v2849_v20, %v7814_v17 }
 0x583   : > { %v4176_v36 = vmax.f32 %v3980_v3, 0.0  ;;  %v9461_v32 = vadd.f32 %v8961_v30, %v3764_v33  ;;  %v9464_v13 = vsub.f32 %v9209_v21, %v3050_v1  ;;  %v2994_v7 = vsel %vm759_vm1, %v9477_v5, 0.0 }
 0x584   : > { %v4177_v26 = vmax.f32 %v4084_v18, 0.0  ;;  %v9487_v1 = vadd.f32 %v2850_v31, %v11736_v22 }
 0x585   : > { %11734 = vst [vmem:[#allocation50_spill] sm:$0xff] %v9461_v32  ;;  %v3834_v12 = vpack.c.bf16 %v9461_v32, %v9458_v63  ;;  %v4246_v54 = vpack.c.bf16 %v4176_v36, %v4174_v15  ;;  %v3126_v35 = vmul.f32 %v9464_v13, %v9464_v13 }
 0x586   : > { %v4247_v40 = vpack.c.bf16 %v4177_v26, %v4175_v37 }
 0x587   : > { %5841 = vmatmul.msk.bf16.gmra.mxu0 %vm759_vm1, %v3834_v12  ;;  %5860 = vmatmul.msk.bf16.gmra.mxu1 %vm759_vm1, %v3834_v12  ;;  %v3208_v21 = vsel %vm759_vm1, %v3126_v35, 0.0  ;;  %v3270_v35 = vmul.f32 %v9411_v28, %v8189_v27 }
 0x588   : > { %2992 = vadd.xlane.f32.xlu1 %v2991_v51  ;;  %4427 = vmatmul.bf16.gmra.mxu2 %v4246_v54  ;;  %v2997_v54 = vsel %vm759_vm1, %v9487_v1, 0.0 }
 0x589   : > { %4531 = vmatmul.bf16.gmra.mxu3 %v4247_v40  ;;  %3209 = vadd.xlane.f32.xlu2 %v3208_v21  ;;  %v3982_v61 = vpop.f32.mrf.mxu0  ;;  %v4086_v48 = vpop.f32.mrf.mxu1  ;;  %v3308_v34 = vadd.f32 1e-05, %v3270_v35 }
 0x58a   : > { %v3983_v42 = vadd.f32 %v3982_v61, %v9315_v50  ;;  %v4087_v23 = vadd.f32 %v4086_v48, %v9319_v11  ;;  %v9489_v12 = vpop.f32.mrf.mxu3 }
 0x58b   : > { %6236 = vrsqrt.f32 %v3308_v34  ;;  %vm3478_vm3 = vweird.f32 %v3308_v34 }
 0x58c   : > { %v4178_v18 = vmax.f32 %v3983_v42, 0.0  ;;  %v4179_v0 = vmax.f32 %v4087_v23, 0.0 }
 0x591   : > { %2995 = vadd.xlane.f32.xlu2 %v2994_v7  ;;  %v3984_v39 = vpop.f32.mrf.mxu0  ;;  %v4088_v3 = vpop.f32.mrf.mxu1 }
 0x592   : > { %v3985_v9 = vadd.f32 %v3984_v39, %v9315_v50  ;;  %v4089_v33 = vadd.f32 %v4088_v3, %v9319_v11  ;;  %v9493_v40 = vpop.f32.mrf.mxu3  ;;  %v6237_v48 = vpop.eup %6236 }
 0x593   : > { %v3473_v20 = vmul.f32 %v6237_v48, %v3308_v34  ;;  %vm3479_vm2 = vweird.f32 %v6237_v48 }
 0x594   : > { %v4180_v15 = vmax.f32 %v3985_v9, 0.0  ;;  %v4181_v36 = vmax.f32 %v4089_v33, 0.0  ;;  %vm3480_vm4 = vmor %vm3478_vm3, %vm3479_vm2 }
 0x595   : > { %v3474_v23 = vmul.f32 %v6237_v48, %v3473_v20 }
 0x596   : > { %v4248_v37 = vpack.c.bf16 %v4180_v15, %v4178_v18  ;;  %v4249_v26 = vpack.c.bf16 %v4181_v36, %v4179_v0 }
 0x597   : > { %v3475_v9 = vmul.f32 0.5, %v3474_v23 }
 0x598   : > { %4432 = vmatmul.bf16.gmra.mxu2 %v4248_v37 }
 0x599   : > { %4536 = vmatmul.bf16.gmra.mxu3 %v4249_v26  ;;  %2998 = vadd.xlane.f32.xlu2 %v2997_v54  ;;  %v3476_v0 = vsub.f32 1.5, %v3475_v9 }
 0x59a   : > { %v2856_v51 = vpop.f32.mrf.mxu3 }
 0x5a2   : > { %v9497_v21 = vpop.f32.mrf.mxu3 }
 0x5a8   : > { %v3195_v61 = vpop.xlane.xlu0 %3194 }
 0x5a9   : > { %v3273_v60 = vmul.f32 %v3195_v61, %v8189_v27 }
 0x5aa   : > { %v9502_v42 = vpop.f32.mrf.mxu3 }
 0x5ab   : > { %v9500_v7 = vadd.f32 1e-05, %v3273_v60  ;;  %v3477_v60 = vmul.f32 %v6237_v48, %v3476_v0 }
 0x5ad   : > { %6238 = vrsqrt.f32 %v9500_v7  ;;  %vm3508_vm12 = vweird.f32 %v9500_v7 }
 0x5b0   : > { %v3198_v31 = vpop.xlane.xlu0 %3197 }
 0x5b1   : > { %v3189_v39 = vpop.xlane.xlu2 %3188 }
 0x5b2   : > { %v3271_v3 = vmul.f32 %v3189_v39, %v8189_v27  ;;  %v9507_v18 = vpop.f32.mrf.mxu3  ;;  %v3274_v39 = vmul.f32 %v3198_v31, %v8189_v27 }
 0x5b3   : > { %v9509_v36 = vpop.eup %6238 }
 0x5b4   : > { %v3309_v28 = vadd.f32 1e-05, %v3271_v3  ;;  %v3503_v20 = vmul.f32 %v9509_v36, %v9500_v7  ;;  %v9526_v32 = vadd.f32 1e-05, %v3274_v39  ;;  %vm3509_vm9 = vweird.f32 %v9509_v36 }
 0x5b5   : > { %vm3510_vm13 = vmor %vm3508_vm12, %vm3509_vm9 }
 0x5b6   : > { %6240 = vrsqrt.f32 %v3309_v28  ;;  %v3504_v0 = vmul.f32 %v9509_v36, %v3503_v20  ;;  %vm3488_vm6 = vweird.f32 %v3309_v28  ;;  %vm3518_vm15 = vweird.f32 %v9526_v32 }
 0x5b8   : > { %v2984_v33 = vpop.xlane.xlu0 %2983 }
 0x5b9   : > { %v3053_v22 = vmul.f32 %v8189_v27, %v2984_v33  ;;  %v3192_v15 = vpop.xlane.xlu2 %3191 }
 0x5ba   : > { %v3272_v26 = vmul.f32 %v3192_v15, %v8189_v27  ;;  %v9532_v6 = vpop.f32.mrf.mxu3 }
 0x5bb   : > { %v9512_v37 = vsub.f32 %v9335_v53, %v3053_v22  ;;  %v3481_v22 = vsel %vm3480_vm4, %v6237_v48, %v3477_v60 }
 0x5bc   : > { %v6241_v54 = vpop.eup %6240  ;;  %v9517_v61 = vadd.f32 1e-05, %v3272_v26  ;;  %v3726_v48 = vmul.f32 %v3481_v22, %v9176_v47  ;;  %v6362_v47 = vld [vmem:[%s11279_s2] sm:$0xff] }
 0x5bd   : > { %v3129_v35 = vmul.f32 %v9512_v37, %v9512_v37  ;;  %v3483_v23 = vmul.f32 %v6241_v54, %v3309_v28  ;;  %vm3489_vm5 = vweird.f32 %v6241_v54 }
 0x5be   : > { %6242 = vrsqrt.f32 %v9517_v61  ;;  %vm3490_vm7 = vmor %vm3488_vm6, %vm3489_vm5  ;;  %vm3498_vm10 = vweird.f32 %v9517_v61 }
 0x5bf   : > { %v3217_v3 = vsel %vm759_vm1, %v3129_v35, 0.0  ;;  %v3484_v53 = vmul.f32 %v6241_v54, %v3483_v23  ;;  %6244 = vrsqrt.f32 %v9526_v32 }
 0x5c0   : > { %3218 = vadd.xlane.f32.xlu1 %v3217_v3  ;;  %v2987_v9 = vpop.xlane.xlu0 %2986  ;;  %v2857_v3 = vadd.f32 %v2856_v51, %v7814_v17  ;;  %v9550_v51 = vperm.slane %v6362_v47, 3 }
 0x5c1   : > { %v3054_v33 = vmul.f32 %v8189_v27, %v2987_v9  ;;  %v3485_v15 = vmul.f32 0.5, %v3484_v53  ;;  %v2978_v26 = vpop.xlane.xlu2 %2977 }
 0x5c2   : > { %v3051_v35 = vmul.f32 %v8189_v27, %v2978_v26  ;;  %v9560_v63 = vadd.f32 %v2857_v3, %v11737_v41 }
 0x5c3   : > { %v9529_v31 = vsub.f32 %v9360_v62, %v3054_v33  ;;  %v3486_v34 = vsub.f32 1.5, %v3485_v15  ;;  %v3505_v62 = vmul.f32 0.5, %v3504_v0  ;;  %v3765_v15 = vmul.f32 %v8963_v59, %v3726_v48 }
 0x5c4   : > { %v9534_v23 = vpop.eup %6242  ;;  %v9541_v20 = vsub.f32 %v9371_v52, %v3051_v35 }
 0x5c5   : > { %v3130_v60 = vmul.f32 %v9529_v31, %v9529_v31  ;;  %v3487_v39 = vmul.f32 %v6241_v54, %v3486_v34  ;;  %v3493_v53 = vmul.f32 %v9534_v23, %v9517_v61  ;;  %v3506_v26 = vsub.f32 1.5, %v3505_v62  ;;  %v9565_v62 = vpop.eup %6244 }
 0x5c6   : > { %v3127_v52 = vmul.f32 %v9541_v20, %v9541_v20  ;;  %vm3499_vm8 = vweird.f32 %v9534_v23  ;;  %v9573_v41 = vadd.f32 %v8961_v30, %v3765_v15  ;;  %v3006_v15 = vsel %vm759_vm1, %v9560_v63, 0.0 }
 0x5c7   : > { %v3220_v9 = vsel %vm759_vm1, %v3130_v60, 0.0  ;;  %v3491_v33 = vsel %vm3490_vm7, %v6241_v54, %v3487_v39  ;;  %v3494_v28 = vmul.f32 %v9534_v23, %v3493_v53  ;;  %vm9584_vm11 = vmor %vm3498_vm10, %vm3499_vm8  ;;  %v3513_v61 = vmul.f32 %v9565_v62, %v9526_v32 }
 0x5c8   : > { %3221 = vadd.xlane.f32.xlu1 %v3220_v9  ;;  %v3727_v22 = vmul.f32 %v3491_v33, %v9310_v55  ;;  %v3211_v0 = vsel %vm759_vm1, %v3127_v52, 0.0  ;;  %11738 = vst [vmem:[#allocation48_spill] sm:$0xff] %v9573_v41  ;;  %vm3519_vm14 = vweird.f32 %v9565_v62 }
 0x5c9   : > { %v3495_v35 = vmul.f32 0.5, %v3494_v28  ;;  %v4418_v34 = vpop.f32.mrf.mxu2  ;;  %3212 = vadd.xlane.f32.xlu0 %v3211_v0  ;;  %v2981_v60 = vpop.xlane.xlu2 %2980  ;;  %v3507_v28 = vmul.f32 %v9509_v36, %v3506_v26  ;;  %v2860_v0 = vadd.f32 %v9497_v21, %v7814_v17  ;;  %vm3520_vm0 = vmor %vm3518_vm15, %vm3519_vm14 }
 0x5ca   : > { %v4419_v47 = vadd.f32 %v4418_v34, %v9550_v51  ;;  %v3052_v54 = vmul.f32 %v8189_v27, %v2981_v60  ;;  %v3987_v39 = vpop.f32.mrf.mxu0  ;;  %v3766_v53 = vmul.f32 %v8963_v59, %v3727_v22  ;;  %v4522_v9 = vpop.f32.mrf.mxu3  ;;  %v2852_v34 = vadd.f32 %v9489_v12, %v7814_v17 }
 0x5cb   : > { %v3496_v55 = vsub.f32 1.5, %v3495_v35  ;;  %v4091_v48 = vpop.f32.mrf.mxu1  ;;  %v3511_v7 = vsel %vm3510_vm13, %v9509_v36, %v3507_v28 }
 0x5cc   : > { %v9567_v52 = vadd.f32 %v4522_v9, %v4419_v47  ;;  %v9570_v33 = vsub.f32 %v9385_v43, %v3052_v54  ;;  %v9576_v3 = vadd.f32 %v8961_v30, %v3766_v53  ;;  %v3988_v47 = vadd.f32 %v3987_v39, %v9315_v50  ;;  %v11742_v54 = vld [vmem:[#allocation39_spill] sm:$0xff]  ;;  %v11743_v39 = vld [vmem:[#allocation34_spill] sm:$0xff] }
 0x5cd   : > { %v3497_v22 = vmul.f32 %v9534_v23, %v3496_v55  ;;  %v9608_v53 = vadd.f32 %v2860_v0, %v11742_v54  ;;  %v4092_v55 = vadd.f32 %v4091_v48, %v9319_v11  ;;  %v3514_v9 = vmul.f32 %v9565_v62, %v3513_v61 }
 0x5ce   : > { %11739 = vst [vmem:[#allocation85_spill] sm:$0xff] %v9576_v3  ;;  %v3835_v35 = vpack.c.bf16 %v9576_v3, %v9573_v41  ;;  %v3128_v26 = vmul.f32 %v9570_v33, %v9570_v33  ;;  %v9619_v28 = vadd.f32 %v2852_v34, %v11743_v39  ;;  %v2855_v34 = vadd.f32 %v9493_v40, %v7814_v17 }
 0x5cf   : > { %v3501_v21 = vsel %vm9584_vm11, %v9534_v23, %v3497_v22  ;;  %v3009_v61 = vsel %vm759_vm1, %v9608_v53, 0.0 }
 0x5d0   : > { %3007 = vadd.xlane.f32.xlu1 %v3006_v15  ;;  %5842 = vmatmul.msk.bf16.gmra.mxu0 %vm759_vm1, %v3835_v35  ;;  %v3214_v60 = vsel %vm759_vm1, %v3128_v26, 0.0  ;;  %v3728_v23 = vmul.f32 %v3501_v21, %v9344_v24  ;;  %v3729_v15 = vmul.f32 %v3511_v7, %v9268_v14  ;;  %v4182_v26 = vmax.f32 %v3988_v47, 0.0 }
 0x5d1   : > { %5861 = vmatmul.msk.bf16.gmra.mxu1 %vm759_vm1, %v3835_v35  ;;  %3215 = vadd.xlane.f32.xlu0 %v3214_v60  ;;  %v9615_v35 = vpop.f32.mrf.mxu2  ;;  %v4183_v21 = vmax.f32 %v4092_v55, 0.0  ;;  %v3515_v7 = vmul.f32 0.5, %v3514_v9  ;;  %v11745_v9 = vld [vmem:[#allocation36_spill] sm:$0xff] }
 0x5d2   : > { %v3989_v12 = vpop.f32.mrf.mxu0  ;;  %v9622_v60 = vpop.f32.mrf.mxu3  ;;  %v3767_v14 = vmul.f32 %v8963_v59, %v3728_v23  ;;  %v3768_v55 = vmul.f32 %v8963_v59, %v3729_v15  ;;  %v9636_v39 = vadd.f32 %v2855_v34, %v11745_v9 }
 0x5d3   : > { %v3990_v22 = vadd.f32 %v3989_v12, %v9315_v50  ;;  %v4093_v43 = vpop.f32.mrf.mxu1  ;;  %v3516_v23 = vsub.f32 1.5, %v3515_v7 }
 0x5d4   : > { %v4094_v36 = vadd.f32 %v4093_v43, %v9319_v11  ;;  %v3003_v7 = vsel %vm759_vm1, %v9636_v39, 0.0 }
 0x5d5   : > { %v4184_v24 = vmax.f32 %v3990_v22, 0.0  ;;  %v3000_v22 = vsel %vm759_vm1, %v9619_v28, 0.0 }
 0x5d6   : > { %v4185_v54 = vmax.f32 %v4094_v36, 0.0  ;;  %v9633_v36 = vadd.f32 %v8961_v30, %v3767_v14 }
 0x5d7   : > { %v4250_v12 = vpack.c.bf16 %v4184_v24, %v4182_v26 }
 0x5d8   : > { %3010 = vadd.xlane.f32.xlu1 %v3009_v61  ;;  %v4251_v47 = vpack.c.bf16 %v4185_v54, %v4183_v21  ;;  %11744 = vst [vmem:[#allocation45_spill] sm:$0xff] %v9633_v36  ;;  %v3517_v21 = vmul.f32 %v9565_v62, %v3516_v23 }
 0x5d9   : > { %4437 = vmatmul.bf16.gmra.mxu2 %v4250_v12  ;;  %3001 = vadd.xlane.f32.xlu0 %v3000_v22 }
 0x5da   : > { %4541 = vmatmul.bf16.gmra.mxu3 %v4251_v47  ;;  %v3521_v22 = vsel %vm3520_vm0, %v9565_v62, %v3517_v21 }
 0x5db   : > { %v3730_v32 = vmul.f32 %v3521_v22, %v9297_v38 }
 0x5dd   : > { %v3769_v22 = vmul.f32 %v8963_v59, %v3730_v32 }
 0x5de   : > { %v4423_v24 = vpop.f32.mrf.mxu2  ;;  %v4527_v14 = vpop.f32.mrf.mxu3 }
 0x5df   : > { %v4424_v61 = vadd.f32 %v4423_v24, %v9550_v51 }
 0x5e1   : > { %v9654_v34 = vadd.f32 %v4527_v14, %v4424_v61  ;;  %3004 = vadd.xlane.f32.xlu0 %v3003_v7 }
 0x5e2   : > { %v3201_v0 = vpop.xlane.xlu1 %3200 }
 0x5e3   : > { %v3275_v48 = vmul.f32 %v3201_v0, %v8189_v27  ;;  %v9639_v0 = vadd.f32 %v8961_v30, %v3768_v55 }
 0x5e5   : > { %v3313_v43 = vadd.f32 1e-05, %v3275_v48  ;;  %11746 = vst [vmem:[#allocation58_spill] sm:$0xff] %v9639_v0  ;;  %v3836_v15 = vpack.c.bf16 %v9639_v0, %v9633_v36 }
 0x5e7   : > { %6246 = vrsqrt.f32 %v3313_v43  ;;  %5843 = vmatmul.msk.bf16.gmra.mxu0 %vm759_vm1, %v3836_v15  ;;  %5862 = vmatmul.msk.bf16.gmra.mxu1 %vm759_vm1, %v3836_v15  ;;  %vm3528_vm3 = vweird.f32 %v3313_v43 }
 0x5ea   : > { %v3204_v40 = vpop.xlane.xlu1 %3203 }
 0x5eb   : > { %v3276_v26 = vmul.f32 %v3204_v40, %v8189_v27 }
 0x5ed   : > { %v6247_v48 = vpop.eup %6246  ;;  %v9647_v54 = vadd.f32 1e-05, %v3276_v26 }
 0x5ee   : > { %v3523_v12 = vmul.f32 %v6247_v48, %v3313_v43  ;;  %vm3529_vm2 = vweird.f32 %v6247_v48 }
 0x5ef   : > { %6248 = vrsqrt.f32 %v9647_v54  ;;  %vm3530_vm4 = vmor %vm3528_vm3, %vm3529_vm2  ;;  %vm3538_vm6 = vweird.f32 %v9647_v54 }
 0x5f0   : > { %v3524_v47 = vmul.f32 %v6247_v48, %v3523_v12 }
 0x5f2   : > { %v3525_v55 = vmul.f32 0.5, %v3524_v47  ;;  %v2990_v9 = vpop.xlane.xlu1 %2989 }
 0x5f3   : > { %v3207_v23 = vpop.xlane.xlu2 %3206  ;;  %v3055_v26 = vmul.f32 %v8189_v27, %v2990_v9  ;;  %v3992_v24 = vpop.f32.mrf.mxu0 }
 0x5f4   : > { %v3277_v40 = vmul.f32 %v3207_v23, %v8189_v27  ;;  %v4096_v15 = vpop.f32.mrf.mxu1  ;;  %v3526_v61 = vsub.f32 1.5, %v3525_v55 }
 0x5f5   : > { %v6249_v14 = vpop.eup %6248  ;;  %v9664_v12 = vsub.f32 %v9434_v46, %v3055_v26  ;;  %v3993_v46 = vadd.f32 %v3992_v24, %v9315_v50 }
 0x5f6   : > { %v9661_v7 = vadd.f32 1e-05, %v3277_v40  ;;  %v3527_v62 = vmul.f32 %v6247_v48, %v3526_v61  ;;  %v3533_v21 = vmul.f32 %v6249_v14, %v9647_v54  ;;  %v4097_v40 = vadd.f32 %v4096_v15, %v9319_v11 }
 0x5f7   : > { %v3131_v38 = vmul.f32 %v9664_v12, %v9664_v12  ;;  %vm3539_vm5 = vweird.f32 %v6249_v14 }
 0x5f8   : > { %6250 = vrsqrt.f32 %v9661_v7  ;;  %v3531_v47 = vsel %vm3530_vm4, %v6247_v48, %v3527_v62  ;;  %v3534_v23 = vmul.f32 %v6249_v14, %v3533_v21  ;;  %vm3540_vm7 = vmor %vm3538_vm6, %vm3539_vm5  ;;  %vm3548_vm9 = vweird.f32 %v9661_v7 }
 0x5f9   : > { %v3731_v55 = vmul.f32 %v3531_v47, %v9404_v19  ;;  %v3223_v43 = vsel %vm759_vm1, %v3131_v38, 0.0  ;;  %v9681_v47 = vadd.f32 %v8961_v30, %v3769_v22 }
 0x5fa   : > { %v3535_v9 = vmul.f32 0.5, %v3534_v23  ;;  %3224 = vadd.xlane.f32.xlu2 %v3223_v43 }
 0x5fb   : > { %v2993_v26 = vpop.xlane.xlu1 %2992  ;;  %v3994_v62 = vpop.f32.mrf.mxu0  ;;  %v3770_v21 = vmul.f32 %v8963_v59, %v3731_v55  ;;  %11747 = vst [vmem:[#allocation79_spill] sm:$0xff] %v9681_v47 }
 0x5fc   : > { %v9675_v61 = vpop.xlane.xlu2 %3209  ;;  %v3056_v48 = vmul.f32 %v8189_v27, %v2993_v26  ;;  %v3536_v36 = vsub.f32 1.5, %v3535_v9  ;;  %v3995_v32 = vadd.f32 %v3994_v62, %v9315_v50  ;;  %v4098_v19 = vpop.f32.mrf.mxu1  ;;  %v4186_v9 = vmax.f32 %v3993_v46, 0.0 }
 0x5fd   : > { %v4099_v23 = vadd.f32 %v4098_v19, %v9319_v11  ;;  %v9688_v38 = vadd.f32 %v8961_v30, %v3770_v21  ;;  %v4187_v26 = vmax.f32 %v4097_v40, 0.0  ;;  %v2862_v21 = vadd.f32 %v9502_v42, %v7814_v17  ;;  %v11749_v42 = vld [vmem:[#allocation41_spill] sm:$0xff] }
 0x5fe   : > { %v6251_v24 = vpop.eup %6250  ;;  %v9684_v15 = vsub.f32 %v9453_v49, %v3056_v48  ;;  %v3537_v43 = vmul.f32 %v6249_v14, %v3536_v36  ;;  %v4188_v62 = vmax.f32 %v3995_v32, 0.0 }
 0x5ff   : > { %11748 = vst [vmem:[#allocation61_spill] sm:$0xff] %v9688_v38  ;;  %v3543_v55 = vmul.f32 %v6251_v24, %v9661_v7  ;;  %v4189_v0 = vmax.f32 %v4099_v23, 0.0  ;;  %v3837_v22 = vpack.c.bf16 %v9688_v38, %v9681_v47  ;;  %vm3549_vm8 = vweird.f32 %v6251_v24 }
 0x600   : > { %v3132_v3 = vmul.f32 %v9684_v15, %v9684_v15  ;;  %v4252_v36 = vpack.c.bf16 %v4188_v62, %v4186_v9  ;;  %v3541_v32 = vsel %vm3540_vm7, %v6249_v14, %v3537_v43  ;;  %vm3550_vm10 = vmor %vm3548_vm9, %vm3549_vm8  ;;  %v9709_v14 = vadd.f32 %v2862_v21, %v11749_v42 }
 0x601   : > { %v3544_v49 = vmul.f32 %v6251_v24, %v3543_v55  ;;  %5844 = vmatmul.msk.bf16.gmra.mxu0 %vm759_vm1, %v3837_v22  ;;  %5863 = vmatmul.msk.bf16.gmra.mxu1 %vm759_vm1, %v3837_v22  ;;  %v4253_v48 = vpack.c.bf16 %v4189_v0, %v4187_v26  ;;  %v3732_v0 = vmul.f32 %v3541_v32, %v9416_v57 }
 0x602   : > { %v3226_v46 = vsel %vm759_vm1, %v3132_v3, 0.0  ;;  %4442 = vmatmul.bf16.gmra.mxu2 %v4252_v36 }
 0x603   : > { %v3545_v40 = vmul.f32 0.5, %v3544_v49  ;;  %4546 = vmatmul.bf16.gmra.mxu3 %v4253_v48  ;;  %3227 = vadd.xlane.f32.xlu2 %v3226_v46  ;;  %v3771_v36 = vmul.f32 %v8963_v59, %v3732_v0 }
 0x604   : > { %v2996_v19 = vpop.xlane.xlu2 %2995  ;;  %v3997_v23 = vpop.f32.mrf.mxu0 }
 0x605   : > { %v3546_v54 = vsub.f32 1.5, %v3545_v40  ;;  %v3057_v55 = vmul.f32 %v8189_v27, %v2996_v19  ;;  %v4101_v9 = vpop.f32.mrf.mxu1  ;;  %v3998_v49 = vadd.f32 %v3997_v23, %v9315_v50 }
 0x606   : > { %v4102_v7 = vadd.f32 %v4101_v9, %v9319_v11  ;;  %v11752_v9 = vld [vmem:[#allocation44_spill] sm:$0xff] }
 0x607   : > { %v3547_v3 = vmul.f32 %v6251_v24, %v3546_v54  ;;  %v9706_v26 = vsub.f32 %v9477_v5, %v3057_v55  ;;  %v2865_v5 = vadd.f32 %v9507_v18, %v7814_v17  ;;  %v4190_v23 = vmax.f32 %v3998_v49, 0.0 }
 0x608   : > { %v9727_v54 = vadd.f32 %v8961_v30, %v3771_v36  ;;  %v2867_v36 = vadd.f32 %v9532_v6, %v7814_v17 }
 0x609   : > { %v3551_v43 = vsel %vm3550_vm10, %v6251_v24, %v3547_v3  ;;  %v3133_v62 = vmul.f32 %v9706_v26, %v9706_v26  ;;  %v3012_v24 = vsel %vm759_vm1, %v9709_v14, 0.0  ;;  %v9733_v0 = vadd.f32 %v2865_v5, %v11752_v9 }
 0x60a   : > { %v3733_v22 = vmul.f32 %v3551_v43, %v9438_v58  ;;  %11750 = vst [vmem:[#allocation81_spill] sm:$0xff] %v9727_v54  ;;  %v4191_v3 = vmax.f32 %v4102_v7, 0.0  ;;  %v11753_v7 = vld [vmem:[#allocation56_spill] sm:$0xff] }
 0x60b   : > { %v3229_v57 = vsel %vm759_vm1, %v3133_v62, 0.0  ;;  %3013 = vadd.xlane.f32.xlu2 %v3012_v24  ;;  %v3015_v5 = vsel %vm759_vm1, %v9733_v0, 0.0  ;;  %v9750_v24 = vadd.f32 %v2867_v36, %v11753_v7  ;;  %v9766_v36 = vpop.f32.mrf.mxu3 }
 0x60c   : > { %3230 = vadd.xlane.f32.xlu0 %v3229_v57  ;;  %v3999_v48 = vpop.f32.mrf.mxu0  ;;  %v3772_v46 = vmul.f32 %v8963_v59, %v3733_v22  ;;  %v2999_v40 = vpop.xlane.xlu2 %2998 }
 0x60d   : > { %v4000_v58 = vadd.f32 %v3999_v48, %v9315_v50  ;;  %v4103_v21 = vpop.f32.mrf.mxu1  ;;  %v3058_v32 = vmul.f32 %v8189_v27, %v2999_v40  ;;  %v3018_v48 = vsel %vm759_vm1, %v9750_v24, 0.0 }
 0x60e   : > { %v4104_v19 = vadd.f32 %v4103_v21, %v9319_v11  ;;  %v9730_v55 = vadd.f32 %v8961_v30, %v3772_v46  ;;  %v3278_v46 = vmul.f32 %v9675_v61, %v8189_v27 }
 0x60f   : > { %v4192_v18 = vmax.f32 %v4000_v58, 0.0  ;;  %v9736_v42 = vsub.f32 %v9487_v1, %v3058_v32 }
 0x610   : > { %11751 = vst [vmem:[#allocation67_spill] sm:$0xff] %v9730_v55  ;;  %v4193_v43 = vmax.f32 %v4104_v19, 0.0  ;;  %v3838_v62 = vpack.c.bf16 %v9730_v55, %v9727_v54  ;;  %v3316_v17 = vadd.f32 1e-05, %v3278_v46 }
 0x611   : > { %v4254_v22 = vpack.c.bf16 %v4192_v18, %v4190_v23  ;;  %v3134_v57 = vmul.f32 %v9736_v42, %v9736_v42 }
 0x612   : > { %v4255_v49 = vpack.c.bf16 %v4193_v43, %v4191_v3  ;;  %5845 = vmatmul.msk.bf16.gmra.mxu0 %vm759_vm1, %v3838_v62  ;;  %5864 = vmatmul.msk.bf16.gmra.mxu1 %vm759_vm1, %v3838_v62  ;;  %6252 = vrsqrt.f32 %v3316_v17  ;;  %v9761_v43 = vpop.f32.mrf.mxu2  ;;  %vm3558_vm12 = vweird.f32 %v3316_v17 }
 0x613   : > { %4447 = vmatmul.bf16.gmra.mxu2 %v4254_v22  ;;  %v3232_v1 = vsel %vm759_vm1, %v3134_v57, 0.0  ;;  %3016 = vadd.xlane.f32.xlu2 %v3015_v5 }
 0x614   : > { %4551 = vmatmul.bf16.gmra.mxu3 %v4255_v49  ;;  %3233 = vadd.xlane.f32.xlu0 %v3232_v1 }
 0x618   : > { %v6253_v6 = vpop.eup %6252 }
 0x619   : > { %v3553_v58 = vmul.f32 %v6253_v6, %v3316_v17  ;;  %vm3559_vm11 = vweird.f32 %v6253_v6 }
 0x61a   : > { %vm3560_vm13 = vmor %vm3558_vm12, %vm3559_vm11 }
 0x61b   : > { %v3554_v32 = vmul.f32 %v6253_v6, %v3553_v58 }
 0x61c   : > { %3019 = vadd.xlane.f32.xlu0 %v3018_v48 }
 0x61d   : > { %v3555_v18 = vmul.f32 0.5, %v3554_v32 }
 0x61f   : > { %v3556_v62 = vsub.f32 1.5, %v3555_v18 }
 0x621   : > { %v3557_v1 = vmul.f32 %v6253_v6, %v3556_v62 }
 0x623   : > { %v3561_v18 = vsel %vm3560_vm13, %v6253_v6, %v3557_v1 }
 0x633   : > { %v3219_v40 = vpop.xlane.xlu1 %3218 }
 0x634   : > { %v3281_v21 = vmul.f32 %v3219_v40, %v8189_v27  ;;  %v9774_v40 = vpop.f32.mrf.mxu2 }
 0x636   : > { %v9757_v19 = vadd.f32 1e-05, %v3281_v21 }
 0x638   : > { %6254 = vrsqrt.f32 %v9757_v19  ;;  %vm3588_vm6 = vweird.f32 %v9757_v19 }
 0x63b   : > { %v3222_v23 = vpop.xlane.xlu1 %3221 }
 0x63c   : > { %v3213_v9 = vpop.xlane.xlu0 %3212  ;;  %v3282_v6 = vmul.f32 %v3222_v23, %v8189_v27 }
 0x63d   : > { %v3279_v3 = vmul.f32 %v3213_v9, %v8189_v27 }
 0x63e   : > { %v9763_v22 = vpop.eup %6254 }
 0x63f   : > { %v3317_v61 = vadd.f32 1e-05, %v3279_v3  ;;  %v3583_v7 = vmul.f32 %v9763_v22, %v9757_v19  ;;  %vm3589_vm2 = vweird.f32 %v9763_v22 }
 0x640   : > { %vm3590_vm7 = vmor %vm3588_vm6, %vm3589_vm2 }
 0x641   : > { %6256 = vrsqrt.f32 %v3317_v61  ;;  %v3584_v3 = vmul.f32 %v9763_v22, %v3583_v7  ;;  %vm3568_vm15 = vweird.f32 %v3317_v61 }
 0x643   : > { %v3008_v49 = vpop.xlane.xlu1 %3007  ;;  %v3585_v54 = vmul.f32 0.5, %v3584_v3 }
 0x644   : > { %v3061_v57 = vmul.f32 %v8189_v27, %v3008_v49  ;;  %v3216_v5 = vpop.xlane.xlu0 %3215  ;;  %v3734_v49 = vmul.f32 %v3561_v18, %v9464_v13 }
 0x645   : > { %v3280_v46 = vmul.f32 %v3216_v5, %v8189_v27  ;;  %v9785_v5 = vpop.f32.mrf.mxu3 }
 0x646   : > { %v9771_v48 = vsub.f32 %v9560_v63, %v3061_v57  ;;  %v3773_v3 = vmul.f32 %v8963_v59, %v3734_v49 }
 0x647   : > { %v6257_v58 = vpop.eup %6256  ;;  %v9776_v21 = vadd.f32 1e-05, %v3280_v46 }
 0x648   : > { %11754 = vst [vmem:[#allocation83_spill] sm:$0xff] %v9771_v48  ;;  %v3137_v32 = vmul.f32 %v9771_v48, %v9771_v48  ;;  %v3563_v9 = vmul.f32 %v6257_v58, %v3317_v61  ;;  %vm3569_vm14 = vweird.f32 %v6257_v58  ;;  %v9809_v61 = vadd.f32 %v8961_v30, %v3773_v3 }
 0x649   : > { %6258 = vrsqrt.f32 %v9776_v21  ;;  %vm3570_vm0 = vmor %vm3568_vm15, %vm3569_vm14  ;;  %vm3578_vm4 = vweird.f32 %v9776_v21 }
 0x64a   : > { %v3241_v63 = vsel %vm759_vm1, %v3137_v32, 0.0  ;;  %v3564_v62 = vmul.f32 %v6257_v58, %v3563_v9  ;;  %11756 = vst [vmem:[#allocation3_spill] sm:$0xff] %v9809_v61 }
 0x64b   : > { %3242 = vadd.xlane.f32.xlu2 %v3241_v63  ;;  %v3011_v17 = vpop.xlane.xlu1 %3010 }
 0x64c   : > { %v3062_v57 = vmul.f32 %v8189_v27, %v3011_v17  ;;  %v3565_v46 = vmul.f32 0.5, %v3564_v62  ;;  %v3002_v55 = vpop.xlane.xlu0 %3001  ;;  %v9798_v62 = vpop.f32.mrf.mxu2  ;;  %v9801_v17 = vadd.f32 1e-05, %v3282_v6 }
 0x64d   : > { %v3059_v7 = vmul.f32 %v8189_v27, %v3002_v55  ;;  %v4002_v32 = vpop.f32.mrf.mxu0  ;;  %v3586_v55 = vsub.f32 1.5, %v3585_v54 }
 0x64e   : > { %v9789_v1 = vsub.f32 %v9608_v53, %v3062_v57  ;;  %v4106_v9 = vpop.f32.mrf.mxu1  ;;  %v3566_v63 = vsub.f32 1.5, %v3565_v46  ;;  %v4003_v47 = vadd.f32 %v4002_v32, %v9315_v50  ;;  %6260 = vrsqrt.f32 %v9801_v17 }
 0x64f   : > { %v6259_v38 = vpop.eup %6258  ;;  %v9793_v13 = vsub.f32 %v9619_v28, %v3059_v7  ;;  %v4107_v6 = vadd.f32 %v4106_v9, %v9319_v11  ;;  %vm3598_vm9 = vweird.f32 %v9801_v17 }
 0x650   : > { %11755 = vst [vmem:[#allocation4_spill] sm:$0xff] %v9789_v1  ;;  %v3138_v18 = vmul.f32 %v9789_v1, %v9789_v1  ;;  %v3567_v23 = vmul.f32 %v6257_v58, %v3566_v63  ;;  %v3573_v53 = vmul.f32 %v6259_v38, %v9776_v21  ;;  %vm3579_vm3 = vweird.f32 %v6259_v38 }
 0x651   : > { %v3135_v7 = vmul.f32 %v9793_v13, %v9793_v13  ;;  %vm9829_vm5 = vmor %vm3578_vm4, %vm3579_vm3 }
 0x652   : > { %v3244_v57 = vsel %vm759_vm1, %v3138_v18, 0.0  ;;  %v3571_v46 = vsel %vm3570_vm0, %v6257_v58, %v3567_v23  ;;  %v3574_v28 = vmul.f32 %v6259_v38, %v3573_v53  ;;  %v3587_v18 = vmul.f32 %v9763_v22, %v3586_v55  ;;  %v9818_v53 = vpop.f32.mrf.mxu3 }
 0x653   : > { %3245 = vadd.xlane.f32.xlu0 %v3244_v57  ;;  %v3735_v49 = vmul.f32 %v3571_v46, %v9541_v20  ;;  %v3235_v63 = vsel %vm759_vm1, %v3135_v7, 0.0  ;;  %v4194_v55 = vmax.f32 %v4003_v47, 0.0 }
 0x654   : > { %v3575_v54 = vmul.f32 0.5, %v3574_v28  ;;  %v3005_v58 = vpop.xlane.xlu0 %3004  ;;  %3236 = vadd.xlane.f32.xlu1 %v3235_v63  ;;  %v9837_v21 = vpop.f32.mrf.mxu2 }
 0x655   : > { %v3060_v20 = vmul.f32 %v8189_v27, %v3005_v58  ;;  %v4004_v23 = vpop.f32.mrf.mxu0  ;;  %v3774_v3 = vmul.f32 %v8963_v59, %v3735_v49  ;;  %v4195_v58 = vmax.f32 %v4107_v6, 0.0 }
 0x656   : > { %v4108_v32 = vpop.f32.mrf.mxu1  ;;  %v3576_v57 = vsub.f32 1.5, %v3575_v54  ;;  %v4005_v9 = vadd.f32 %v4004_v23, %v9315_v50 }
 0x657   : > { %v4109_v46 = vadd.f32 %v4108_v32, %v9319_v11  ;;  %v9824_v28 = vsub.f32 %v9636_v39, %v3060_v20  ;;  %v9827_v7 = vadd.f32 %v8961_v30, %v3774_v3  ;;  %v9842_v32 = vpop.eup %6260 }
 0x658   : > { %v3577_v63 = vmul.f32 %v6259_v38, %v3576_v57  ;;  %v4196_v49 = vmax.f32 %v4005_v9, 0.0  ;;  %v3591_v57 = vsel %vm3590_vm7, %v9763_v22, %v3587_v18  ;;  %vm3599_vm8 = vweird.f32 %v9842_v32 }
 0x659   : > { %11757 = vst [vmem:[#allocation71_spill] sm:$0xff] %v9824_v28  ;;  %v4197_v1 = vmax.f32 %v4109_v46, 0.0  ;;  %v3839_v23 = vpack.c.bf16 %v9827_v7, %v9809_v61  ;;  %v3136_v47 = vmul.f32 %v9824_v28, %v9824_v28  ;;  %v3737_v9 = vmul.f32 %v3591_v57, %v9512_v37  ;;  %vm3600_vm10 = vmor %vm3598_vm9, %vm3599_vm8 }
 0x65a   : > { %11758 = vst [vmem:[#allocation74_spill] sm:$0xff] %v9827_v7  ;;  %v3581_v39 = vsel %vm9829_vm5, %v6259_v38, %v3577_v63  ;;  %v4256_v6 = vpack.c.bf16 %v4196_v49, %v4194_v55  ;;  %v3593_v46 = vmul.f32 %v9842_v32, %v9801_v17  ;;  %v9854_v55 = vpop.f32.mrf.mxu3 }
 0x65b   : > { %v4257_v20 = vpack.c.bf16 %v4197_v1, %v4195_v58  ;;  %5846 = vmatmul.msk.bf16.gmra.mxu0 %vm759_vm1, %v3839_v23  ;;  %5865 = vmatmul.msk.bf16.gmra.mxu1 %vm759_vm1, %v3839_v23  ;;  %v3238_v3 = vsel %vm759_vm1, %v3136_v47, 0.0  ;;  %v3736_v19 = vmul.f32 %v3581_v39, %v9570_v33  ;;  %v3776_v18 = vmul.f32 %v8963_v59, %v3737_v9 }
 0x65c   : > { %4452 = vmatmul.bf16.gmra.mxu2 %v4256_v6  ;;  %3239 = vadd.xlane.f32.xlu1 %v3238_v3  ;;  %v3594_v22 = vmul.f32 %v9842_v32, %v3593_v46  ;;  %v9860_v54 = vpop.f32.mrf.mxu2 }
 0x65d   : > { %4556 = vmatmul.bf16.gmra.mxu3 %v4257_v20  ;;  %v3775_v58 = vmul.f32 %v8963_v59, %v3736_v19  ;;  %v9870_v19 = vadd.f32 %v8961_v30, %v3776_v18 }
 0x65e   : > { %v3595_v3 = vmul.f32 0.5, %v3594_v22 }
 0x65f   : > { %v9865_v39 = vadd.f32 %v8961_v30, %v3775_v58  ;;  %11762 = vst [vmem:[#allocation77_spill] sm:$0xff] %v9870_v19 }
 0x660   : > { %v3596_v22 = vsub.f32 1.5, %v3595_v3 }
 0x661   : > { %11761 = vst [vmem:[#allocation5_spill] sm:$0xff] %v9865_v39 }
 0x662   : > { %v9874_v58 = vpop.f32.mrf.mxu3 }
 0x664   : > { %v4007_v38 = vpop.f32.mrf.mxu0  ;;  %v4111_v1 = vpop.f32.mrf.mxu1 }
 0x665   : > { %v4008_v23 = vadd.f32 %v4007_v38, %v9315_v50  ;;  %v4112_v37 = vadd.f32 %v4111_v1, %v9319_v11  ;;  %v3840_v1 = vpack.c.bf16 %v9870_v19, %v9865_v39  ;;  %v9879_v18 = vpop.f32.mrf.mxu2 }
 0x667   : > { %v4198_v9 = vmax.f32 %v4008_v23, 0.0 }
 0x66b   : > { %5847 = vmatmul.msk.bf16.gmra.mxu0 %vm759_vm1, %v3840_v1  ;;  %5866 = vmatmul.msk.bf16.gmra.mxu1 %vm759_vm1, %v3840_v1 }
 0x66c   : > { %v4009_v47 = vpop.f32.mrf.mxu0  ;;  %v4113_v20 = vpop.f32.mrf.mxu1 }
 0x66d   : > { %v3225_v63 = vpop.xlane.xlu2 %3224  ;;  %v4010_v6 = vadd.f32 %v4009_v47, %v9315_v50  ;;  %v4114_v57 = vadd.f32 %v4113_v20, %v9319_v11  ;;  %v3597_v20 = vmul.f32 %v9842_v32, %v3596_v22 }
 0x66e   : > { %v3283_v49 = vmul.f32 %v3225_v63, %v8189_v27  ;;  %v4199_v63 = vmax.f32 %v4112_v37, 0.0 }
 0x66f   : > { %v4200_v46 = vmax.f32 %v4010_v6, 0.0  ;;  %v4201_v38 = vmax.f32 %v4114_v57, 0.0 }
 0x670   : > { %v3321_v33 = vadd.f32 1e-05, %v3283_v49 }
 0x671   : > { %v4258_v7 = vpack.c.bf16 %v4200_v46, %v4198_v9  ;;  %v4259_v48 = vpack.c.bf16 %v4201_v38, %v4199_v63  ;;  %v9888_v38 = vpop.f32.mrf.mxu3 }
 0x672   : > { %6262 = vrsqrt.f32 %v3321_v33  ;;  %vm3608_vm12 = vweird.f32 %v3321_v33 }
 0x673   : > { %4457 = vmatmul.bf16.gmra.mxu2 %v4258_v7  ;;  %4561 = vmatmul.bf16.gmra.mxu3 %v4259_v48 }
 0x676   : > { %v3228_v49 = vpop.xlane.xlu2 %3227 }
 0x677   : > { %v3284_v47 = vmul.f32 %v3228_v49, %v8189_v27  ;;  %v3601_v49 = vsel %vm3600_vm10, %v9842_v32, %v3597_v20 }
 0x678   : > { %v6263_v61 = vpop.eup %6262 }
 0x679   : > { %v3603_v23 = vmul.f32 %v6263_v61, %v3321_v33  ;;  %v9881_v37 = vadd.f32 1e-05, %v3284_v47  ;;  %vm3609_vm11 = vweird.f32 %v6263_v61  ;;  %v9923_v39 = vpop.f32.mrf.mxu3 }
 0x67a   : > { %vm3610_vm13 = vmor %vm3608_vm12, %vm3609_vm11 }
 0x67b   : > { %v3604_v6 = vmul.f32 %v6263_v61, %v3603_v23  ;;  %6264 = vrsqrt.f32 %v9881_v37  ;;  %vm3618_vm15 = vweird.f32 %v9881_v37 }
 0x67d   : > { %v3605_v3 = vmul.f32 0.5, %v3604_v6 }
 0x67e   : > { %v4012_v9 = vpop.f32.mrf.mxu0  ;;  %v3014_v63 = vpop.xlane.xlu2 %3013 }
 0x67f   : > { %v3231_v57 = vpop.xlane.xlu0 %3230  ;;  %v4116_v7 = vpop.f32.mrf.mxu1  ;;  %v3606_v48 = vsub.f32 1.5, %v3605_v3  ;;  %v3063_v1 = vmul.f32 %v8189_v27, %v3014_v63  ;;  %v3738_v3 = vmul.f32 %v3601_v49, %v9529_v31 }
 0x680   : > { %v3285_v46 = vmul.f32 %v3231_v57, %v8189_v27  ;;  %v9903_v57 = vpop.f32.mrf.mxu2  ;;  %v4117_v63 = vadd.f32 %v4116_v7, %v9319_v11  ;;  %v4426_v7 = vadd.f32 %v9761_v43, %v9550_v51 }
 0x681   : > { %v9894_v22 = vpop.eup %6264  ;;  %v3607_v23 = vmul.f32 %v6263_v61, %v3606_v48  ;;  %v9897_v17 = vsub.f32 %v9709_v14, %v3063_v1  ;;  %v4013_v14 = vadd.f32 %v4012_v9, %v9315_v50 }
 0x682   : > { %v9892_v47 = vadd.f32 1e-05, %v3285_v46  ;;  %v3613_v6 = vmul.f32 %v9894_v22, %v9881_v37  ;;  %vm3619_vm14 = vweird.f32 %v9894_v22 }
 0x683   : > { %11763 = vst [vmem:[#allocation80_spill] sm:$0xff] %v9897_v17  ;;  %v3611_v32 = vsel %vm3610_vm13, %v6263_v61, %v3607_v23  ;;  %v3139_v20 = vmul.f32 %v9897_v17, %v9897_v17  ;;  %v4421_v61 = vadd.f32 %v9615_v35, %v9550_v51  ;;  %v4203_v17 = vmax.f32 %v4117_v63, 0.0  ;;  %vm9946_vm0 = vmor %vm3618_vm15, %vm3619_vm14 }
 0x684   : > { %6266 = vrsqrt.f32 %v9892_v47  ;;  %v3739_v46 = vmul.f32 %v3611_v32, %v9664_v12  ;;  %v3614_v33 = vmul.f32 %v9894_v22, %v3613_v6  ;;  %v3777_v6 = vmul.f32 %v8963_v59, %v3738_v3 }
 0x685   : > { %v3247_v48 = vsel %vm759_vm1, %v3139_v20, 0.0  ;;  %vm3628_vm3 = vweird.f32 %v9892_v47 }
 0x686   : > { %v3615_v1 = vmul.f32 0.5, %v3614_v33  ;;  %3248 = vadd.xlane.f32.xlu1 %v3247_v48  ;;  %v3017_v31 = vpop.xlane.xlu2 %3016  ;;  %v4014_v23 = vpop.f32.mrf.mxu0  ;;  %v3778_v9 = vmul.f32 %v8963_v59, %v3739_v46  ;;  %v9938_v41 = vadd.f32 %v8961_v30, %v3777_v6  ;;  %v4525_v6 = vadd.f32 %v9622_v60, %v4421_v61 }
 0x687   : > { %v9912_v19 = vpop.xlane.xlu0 %3233  ;;  %v3064_v49 = vmul.f32 %v8189_v27, %v3017_v31  ;;  %v4118_v12 = vpop.f32.mrf.mxu1  ;;  %v4015_v33 = vadd.f32 %v4014_v23, %v9315_v50  ;;  %v4202_v31 = vmax.f32 %v4013_v14, 0.0 }
 0x688   : > { %v3616_v20 = vsub.f32 1.5, %v3615_v1  ;;  %v4119_v48 = vadd.f32 %v4118_v12, %v9319_v11  ;;  %v9933_v1 = vadd.f32 %v9567_v52, %v9039_v8  ;;  %v9935_v12 = vpop.f32.mrf.mxu2  ;;  %v9941_v14 = vadd.f32 %v8961_v30, %v3778_v9 }
 0x689   : > { %v9927_v28 = vsub.f32 %v9733_v0, %v3064_v49  ;;  %v4204_v46 = vmax.f32 %v4015_v33, 0.0  ;;  %v4530_v9 = vadd.f32 %v9766_v36, %v4426_v7 }
 0x68a   : > { %v6267_v32 = vpop.eup %6266  ;;  %v3617_v3 = vmul.f32 %v9894_v22, %v3616_v20  ;;  %v4205_v43 = vmax.f32 %v4119_v48, 0.0  ;;  %v3841_v52 = vpack.c.bf16 %v9941_v14, %v9938_v41  ;;  %v4655_v60 = vsel %vm759_vm1, %v9933_v1, 0.0 }
 0x68b   : > { %v3623_v35 = vmul.f32 %v6267_v32, %v9892_v47  ;;  %v4260_v0 = vpack.c.bf16 %v4204_v46, %v4202_v31  ;;  %v3140_v49 = vmul.f32 %v9927_v28, %v9927_v28  ;;  %vm3629_vm2 = vweird.f32 %v6267_v32  ;;  %v9965_v31 = vpop.f32.mrf.mxu3 }
 0x68c   : > { %v4261_v63 = vpack.c.bf16 %v4205_v43, %v4203_v17  ;;  %v3621_v37 = vsel %vm9946_vm0, %v9894_v22, %v3617_v3  ;;  %5848 = vmatmul.msk.bf16.gmra.mxu0 %vm759_vm1, %v3841_v52  ;;  %5867 = vmatmul.msk.bf16.gmra.mxu1 %vm759_vm1, %v3841_v52  ;;  %vm3630_vm4 = vmor %vm3628_vm3, %vm3629_vm2  ;;  %v9971_v46 = vadd.f32 %v4525_v6, %v9042_v44 }
 0x68d   : > { %v3624_v23 = vmul.f32 %v6267_v32, %v3623_v35  ;;  %4462 = vmatmul.bf16.gmra.mxu2 %v4260_v0  ;;  %v3250_v33 = vsel %vm759_vm1, %v3140_v49, 0.0  ;;  %v3740_v22 = vmul.f32 %v3621_v37, %v9684_v15  ;;  %v4434_v43 = vadd.f32 %v9837_v21, %v9550_v51 }
 0x68e   : > { %4566 = vmatmul.bf16.gmra.mxu3 %v4261_v63  ;;  %4656 = vadd.xlane.f32.xlu1 %v4655_v60  ;;  %v9976_v0 = vadd.f32 %v4530_v9, %v9122_v25  ;;  %v4429_v47 = vadd.f32 %v9774_v40, %v9550_v51 }
 0x68f   : > { %v3625_v8 = vmul.f32 0.5, %v3624_v23  ;;  %v3020_v17 = vpop.xlane.xlu0 %3019  ;;  %v4017_v36 = vpop.f32.mrf.mxu0  ;;  %3251 = vadd.xlane.f32.xlu2 %v3250_v33  ;;  %v3779_v49 = vmul.f32 %v8963_v59, %v3740_v22  ;;  %v4538_v20 = vadd.f32 %v9854_v55, %v4434_v43  ;;  %v4436_v43 = vadd.f32 %v9860_v54, %v9550_v51 }
 0x690   : > { %v3065_v35 = vmul.f32 %v8189_v27, %v3020_v17  ;;  %v4121_v61 = vpop.f32.mrf.mxu1  ;;  %v9983_v63 = vpop.f32.mrf.mxu2  ;;  %v4018_v21 = vadd.f32 %v4017_v36, %v9315_v50  ;;  %v4664_v40 = vsel %vm759_vm1, %v9976_v0, 0.0  ;;  %v4533_v6 = vadd.f32 %v9785_v5, %v4429_v47 }
 0x691   : > { %v3626_v48 = vsub.f32 1.5, %v3625_v8  ;;  %v10000_v17 = vadd.f32 %v9654_v34, %v9119_v29  ;;  %v10003_v55 = vadd.f32 %v8961_v30, %v3779_v49  ;;  %v4431_v36 = vadd.f32 %v9798_v62, %v9550_v51 }
 0x692   : > { %v9968_v3 = vsub.f32 %v9750_v24, %v3065_v35  ;;  %v4441_v29 = vadd.f32 %v9903_v57, %v9550_v51  ;;  %v4540_v54 = vadd.f32 %v9874_v58, %v4436_v43  ;;  %v4444_v58 = vadd.f32 %v9935_v12, %v9550_v51 }
 0x693   : > { %v3627_v7 = vmul.f32 %v6267_v32, %v3626_v48  ;;  %v4206_v48 = vmax.f32 %v4018_v21, 0.0  ;;  %v4549_v34 = vpop.f32.mrf.mxu3  ;;  %v4661_v57 = vsel %vm759_vm1, %v10000_v17, 0.0  ;;  %v3286_v43 = vmul.f32 %v9912_v19, %v8189_v27 }
 0x694   : > { %v3141_v15 = vmul.f32 %v9968_v3, %v9968_v3  ;;  %v4545_v62 = vadd.f32 %v9923_v39, %v4441_v29  ;;  %v4439_v39 = vadd.f32 %v9879_v18, %v9550_v51  ;;  %v10045_v21 = vadd.f32 %v4540_v54, %v9215_v45 }
 0x695   : > { %v3631_v23 = vsel %vm3630_vm4, %v6267_v32, %v3627_v7  ;;  %v4122_v32 = vadd.f32 %v4121_v61, %v9319_v11  ;;  %v10011_v61 = vadd.f32 %v4538_v20, %v9212_v2  ;;  %v10018_v7 = vadd.f32 %v4533_v6, %v9179_v56 }
 0x696   : > { %v3741_v24 = vmul.f32 %v3631_v23, %v9706_v26  ;;  %v3253_v44 = vsel %vm759_vm1, %v3141_v15, 0.0  ;;  %v4658_v26 = vsel %vm759_vm1, %v9971_v46, 0.0  ;;  %4665 = vadd.xlane.f32.xlu1 %v4664_v40  ;;  %v4535_v2 = vadd.f32 %v9818_v53, %v4431_v36  ;;  %v11769_v36 = vld [vmem:[#allocation50_spill] sm:$0xff] }
 0x697   : > { %3254 = vadd.xlane.f32.xlu0 %v3253_v44  ;;  %v4019_v8 = vpop.f32.mrf.mxu0  ;;  %4659 = vadd.xlane.f32.xlu2 %v4658_v26  ;;  %v4207_v35 = vmax.f32 %v4122_v32, 0.0  ;;  %v4673_v56 = vsel %vm759_vm1, %v10011_v61, 0.0  ;;  %v4667_v53 = vsel %vm759_vm1, %v10018_v7, 0.0  ;;  %v10037_v44 = vadd.f32 %v4545_v62, %v9368_v10  ;;  %v11766_v26 = vld [vmem:[#allocation66_spill] sm:$0xff] }
 0x698   : > { %v3780_v25 = vmul.f32 %v8963_v59, %v3741_v24  ;;  %v4123_v52 = vpop.f32.mrf.mxu1  ;;  %v4020_v9 = vadd.f32 %v4019_v8, %v9315_v50  ;;  %v4448_v47 = vpop.f32.mrf.mxu2  ;;  %v10040_v49 = vadd.f32 %v4535_v2, %v9182_v4  ;;  %v4548_v40 = vadd.f32 %v9965_v31, %v4444_v58 }
 0x699   : > { %v4124_v37 = vadd.f32 %v4123_v52, %v9319_v11  ;;  %v4449_v24 = vadd.f32 %v4448_v47, %v9550_v51  ;;  %v4682_v18 = vsel %vm759_vm1, %v10037_v44, 0.0  ;;  %v4676_v4 = vsel %vm759_vm1, %v10045_v21, 0.0  ;;  %v11767_v52 = vld [vmem:[#allocation42_spill] sm:$0xff] }
 0x69a   : > { %v10006_v33 = vadd.f32 %v8961_v30, %v3780_v25  ;;  %v4208_v60 = vmax.f32 %v4020_v9, 0.0  ;;  %v4543_v25 = vadd.f32 %v9888_v38, %v4439_v39  ;;  %v4670_v10 = vsel %vm759_vm1, %v10040_v49, 0.0 }
 0x69b   : > { %v4209_v5 = vmax.f32 %v4124_v37, 0.0  ;;  %v4552_v32 = vpop.f32.mrf.mxu3  ;;  %v4446_v38 = vadd.f32 %v9983_v63, %v9550_v51  ;;  %v10064_v6 = vadd.f32 %v4548_v40, %v11767_v52 }
 0x69c   : > { %v3842_v22 = vpack.c.bf16 %v10006_v33, %v10003_v55  ;;  %v4262_v23 = vpack.c.bf16 %v4208_v60, %v4206_v48  ;;  %v4553_v20 = vadd.f32 %v4552_v32, %v4449_v24  ;;  %v10056_v45 = vadd.f32 %v4543_v25, %v9365_v16  ;;  %v11768_v60 = vld [vmem:[#allocation60_spill] sm:$0xff] }
 0x69d   : > { %v4263_v15 = vpack.c.bf16 %v4209_v5, %v4207_v35  ;;  %v4550_v9 = vadd.f32 %v4549_v34, %v4446_v38  ;;  %v4685_v63 = vsel %vm759_vm1, %v10064_v6, 0.0 }
 0x69e   : > { %4467 = vmatmul.bf16.gmra.mxu2 %v4262_v23  ;;  %5849 = vmatmul.msk.bf16.gmra.mxu0 %vm759_vm1, %v3842_v22  ;;  %v10061_v8 = vadd.f32 %v4553_v20, %v11766_v26  ;;  %v4679_v16 = vsel %vm759_vm1, %v10056_v45, 0.0  ;;  %v3324_v23 = vadd.f32 1e-05, %v3286_v43 }
 0x69f   : > { %4571 = vmatmul.bf16.gmra.mxu3 %v4263_v15  ;;  %5868 = vmatmul.msk.bf16.gmra.mxu1 %vm759_vm1, %v3842_v22  ;;  %v10074_v5 = vadd.f32 %v4550_v9, %v11768_v60 }
 0x6a0   : > { %4674 = vadd.xlane.f32.xlu1 %v4673_v56  ;;  %4662 = vadd.xlane.f32.xlu2 %v4661_v57  ;;  %v4450_v12 = vpop.f32.mrf.mxu2  ;;  %v4691_v48 = vsel %vm759_vm1, %v10061_v8, 0.0  ;;  %6268 = vrsqrt.f32 %v3324_v23  ;;  %vm3638_vm6 = vweird.f32 %v3324_v23 }
 0x6a1   : > { %4668 = vadd.xlane.f32.xlu0 %v4667_v53  ;;  %v4451_v31 = vadd.f32 %v4450_v12, %v9550_v51  ;;  %v4688_v34 = vsel %vm759_vm1, %v10074_v5, 0.0 }
 0x6a3   : > { %v4554_v37 = vpop.f32.mrf.mxu3 }
 0x6a4   : > { %v4555_v35 = vadd.f32 %v4554_v37, %v4451_v31 }
 0x6a6   : > { %v10077_v29 = vadd.f32 %v4555_v35, %v11769_v36  ;;  %v6269_v15 = vpop.eup %6268 }
 0x6a7   : > { %v3633_v62 = vmul.f32 %v6269_v15, %v3324_v23  ;;  %vm3639_vm5 = vweird.f32 %v6269_v15 }
 0x6a8   : > { %4683 = vadd.xlane.f32.xlu1 %v4682_v18  ;;  %4671 = vadd.xlane.f32.xlu2 %v4670_v10  ;;  %v4694_v22 = vsel %vm759_vm1, %v10077_v29, 0.0  ;;  %vm3640_vm7 = vmor %vm3638_vm6, %vm3639_vm5 }
 0x6a9   : > { %4677 = vadd.xlane.f32.xlu0 %v4676_v4  ;;  %v3634_v56 = vmul.f32 %v6269_v15, %v3633_v62 }
 0x6ab   : > { %v3635_v39 = vmul.f32 0.5, %v3634_v56 }
 0x6ad   : > { %v3636_v58 = vsub.f32 1.5, %v3635_v39 }
 0x6af   : > { %v3637_v20 = vmul.f32 %v6269_v15, %v3636_v58 }
 0x6b0   : > { %4692 = vadd.xlane.f32.xlu1 %v4691_v48  ;;  %4680 = vadd.xlane.f32.xlu2 %v4679_v16 }
 0x6b1   : > { %4686 = vadd.xlane.f32.xlu0 %v4685_v63  ;;  %v3641_v38 = vsel %vm3640_vm7, %v6269_v15, %v3637_v20 }
 0x6b2   : > { %v3742_v16 = vmul.f32 %v3641_v38, %v9736_v42 }
 0x6b4   : > { %v3781_v43 = vmul.f32 %v8963_v59, %v3742_v16 }
 0x6b8   : > { %4689 = vadd.xlane.f32.xlu2 %v4688_v34 }
 0x6b9   : > { %4695 = vadd.xlane.f32.xlu0 %v4694_v22 }
 0x6be   : > { %v3243_v2 = vpop.xlane.xlu2 %3242 }
 0x6bf   : > { %v3289_v47 = vmul.f32 %v3243_v2, %v8189_v27 }
 0x6c1   : > { %v10086_v57 = vadd.f32 1e-05, %v3289_v47 }
 0x6c3   : > { %6270 = vrsqrt.f32 %v10086_v57  ;;  %vm3668_vm15 = vweird.f32 %v10086_v57 }
 0x6c6   : > { %v3246_v10 = vpop.xlane.xlu0 %3245 }
 0x6c7   : > { %v3237_v54 = vpop.xlane.xlu1 %3236  ;;  %v3290_v26 = vmul.f32 %v3246_v10, %v8189_v27 }
 0x6c8   : > { %v3287_v53 = vmul.f32 %v3237_v54, %v8189_v27 }
 0x6c9   : > { %v10090_v32 = vpop.eup %6270  ;;  %v10098_v35 = vadd.f32 1e-05, %v3290_v26 }
 0x6ca   : > { %v3325_v24 = vadd.f32 1e-05, %v3287_v53  ;;  %v3663_v4 = vmul.f32 %v10090_v32, %v10086_v57  ;;  %vm3669_vm11 = vweird.f32 %v10090_v32 }
 0x6cb   : > { %vm3670_vm0 = vmor %vm3668_vm15, %vm3669_vm11  ;;  %vm3678_vm3 = vweird.f32 %v10098_v35 }
 0x6cc   : > { %6272 = vrsqrt.f32 %v3325_v24  ;;  %v3664_v31 = vmul.f32 %v10090_v32, %v3663_v4  ;;  %vm3648_vm9 = vweird.f32 %v3325_v24 }
 0x6ce   : > { %v3665_v36 = vmul.f32 0.5, %v3664_v31 }
 0x6cf   : > { %v3240_v19 = vpop.xlane.xlu1 %3239 }
 0x6d0   : > { %v3288_v25 = vmul.f32 %v3240_v19, %v8189_v27  ;;  %v3666_v54 = vsub.f32 1.5, %v3665_v36 }
 0x6d2   : > { %v6273_v18 = vpop.eup %6272  ;;  %v3326_v40 = vadd.f32 1e-05, %v3288_v25 }
 0x6d3   : > { %v3643_v12 = vmul.f32 %v6273_v18, %v3325_v24  ;;  %vm3649_vm8 = vweird.f32 %v6273_v18 }
 0x6d4   : > { %6274 = vrsqrt.f32 %v3326_v40  ;;  %vm3650_vm10 = vmor %vm3648_vm9, %vm3649_vm8  ;;  %vm3658_vm13 = vweird.f32 %v3326_v40 }
 0x6d5   : > { %v3644_v52 = vmul.f32 %v6273_v18, %v3643_v12  ;;  %6276 = vrsqrt.f32 %v10098_v35 }
 0x6d7   : > { %v3645_v9 = vmul.f32 0.5, %v3644_v52 }
 0x6d8   : > { %v4022_v37 = vpop.f32.mrf.mxu0  ;;  %v4126_v48 = vpop.f32.mrf.mxu1 }
 0x6d9   : > { %v3646_v63 = vsub.f32 1.5, %v3645_v9  ;;  %v4023_v2 = vadd.f32 %v4022_v37, %v9315_v50  ;;  %v4127_v62 = vadd.f32 %v4126_v48, %v9319_v11  ;;  %v3667_v9 = vmul.f32 %v10090_v32, %v3666_v54  ;;  %v11770_v48 = vld [vmem:[#allocation48_spill] sm:$0xff] }
 0x6da   : > { %v6275_v60 = vpop.eup %6274 }
 0x6db   : > { %v3647_v34 = vmul.f32 %v6273_v18, %v3646_v63  ;;  %v3653_v22 = vmul.f32 %v6275_v60, %v3326_v40  ;;  %vm3659_vm12 = vweird.f32 %v6275_v60  ;;  %v4210_v10 = vmax.f32 %v4023_v2, 0.0  ;;  %v10116_v31 = vpop.eup %6276 }
 0x6dc   : > { %v4211_v12 = vmax.f32 %v4127_v62, 0.0  ;;  %vm10122_vm14 = vmor %vm3658_vm13, %vm3659_vm12  ;;  %v3671_v57 = vsel %vm3670_vm0, %v10090_v32, %v3667_v9  ;;  %vm3679_vm2 = vweird.f32 %v10116_v31 }
 0x6dd   : > { %v3651_v23 = vsel %vm3650_vm10, %v6273_v18, %v3647_v34  ;;  %v3654_v15 = vmul.f32 %v6275_v60, %v3653_v22  ;;  %vm3680_vm4 = vmor %vm3678_vm3, %vm3679_vm2 }
 0x6de   : > { %v3743_v42 = vmul.f32 %v3651_v23, %v9793_v13  ;;  %v10111_v13 = vadd.f32 %v8961_v30, %v3781_v43  ;;  %v3673_v23 = vmul.f32 %v10116_v31, %v10098_v35  ;;  %v11776_v35 = vld [vmem:[#allocation58_spill] sm:$0xff] }
 0x6df   : > { %v4453_v47 = vpop.f32.mrf.mxu2  ;;  %v3655_v53 = vmul.f32 0.5, %v3654_v15 }
 0x6e0   : > { %v4557_v56 = vpop.f32.mrf.mxu3  ;;  %v4454_v39 = vadd.f32 %v4453_v47, %v9550_v51  ;;  %v4024_v24 = vpop.f32.mrf.mxu0  ;;  %v3782_v20 = vmul.f32 %v8963_v59, %v3743_v42  ;;  %v11773_v47 = vld [vmem:[#allocation71_spill] sm:$0xff] }
 0x6e1   : > { %v4128_v58 = vpop.f32.mrf.mxu1  ;;  %v4025_v19 = vadd.f32 %v4024_v24, %v9315_v50  ;;  %v3656_v18 = vsub.f32 1.5, %v3655_v53  ;;  %v11774_v53 = vld [vmem:[#allocation83_spill] sm:$0xff]  ;;  %v3674_v24 = vmul.f32 %v10116_v31, %v3673_v23 }
 0x6e2   : > { %v4129_v25 = vadd.f32 %v4128_v58, %v9319_v11  ;;  %v4558_v4 = vadd.f32 %v4557_v56, %v4454_v39  ;;  %v10114_v52 = vadd.f32 %v8961_v30, %v3782_v20  ;;  %v3745_v39 = vmul.f32 %v3671_v57, %v11774_v53  ;;  %v11775_v58 = vld [vmem:[#allocation85_spill] sm:$0xff] }
 0x6e3   : > { %v4212_v38 = vmax.f32 %v4025_v19, 0.0  ;;  %v3657_v37 = vmul.f32 %v6275_v60, %v3656_v18 }
 0x6e4   : > { %v4213_v26 = vmax.f32 %v4129_v25, 0.0  ;;  %v10120_v16 = vadd.f32 %v4558_v4, %v11770_v48  ;;  %v3843_v22 = vpack.c.bf16 %v10114_v52, %v10111_v13 }
 0x6e5   : > { %v4264_v36 = vpack.c.bf16 %v4212_v38, %v4210_v10  ;;  %v3661_v43 = vsel %vm10122_vm14, %v6275_v60, %v3657_v37  ;;  %v3675_v10 = vmul.f32 0.5, %v3674_v24  ;;  %v3784_v38 = vmul.f32 %v8963_v59, %v3745_v39 }
 0x6e6   : > { %v4265_v34 = vpack.c.bf16 %v4213_v26, %v4211_v12  ;;  %v4697_v40 = vsel %vm759_vm1, %v10120_v16, 0.0  ;;  %5850 = vmatmul.msk.bf16.gmra.mxu0 %vm759_vm1, %v3843_v22  ;;  %5869 = vmatmul.msk.bf16.gmra.mxu1 %vm759_vm1, %v3843_v22  ;;  %v3744_v56 = vmul.f32 %v3661_v43, %v11773_v47 }
 0x6e7   : > { %v4455_v15 = vpop.f32.mrf.mxu2  ;;  %4472 = vmatmul.bf16.gmra.mxu2 %v4264_v36  ;;  %4698 = vadd.xlane.f32.xlu2 %v4697_v40  ;;  %v3676_v43 = vsub.f32 1.5, %v3675_v10 }
 0x6e8   : > { %v4559_v2 = vpop.f32.mrf.mxu3  ;;  %v4456_v42 = vadd.f32 %v4455_v15, %v9550_v51  ;;  %4576 = vmatmul.bf16.gmra.mxu3 %v4265_v34  ;;  %v4027_v60 = vpop.f32.mrf.mxu0  ;;  %v3783_v32 = vmul.f32 %v8963_v59, %v3744_v56  ;;  %v10163_v15 = vadd.f32 %v8961_v30, %v3784_v38 }
 0x6e9   : > { %v4131_v62 = vpop.f32.mrf.mxu1  ;;  %v4028_v4 = vadd.f32 %v4027_v60, %v9315_v50  ;;  %v3677_v53 = vmul.f32 %v10116_v31, %v3676_v43 }
 0x6ea   : > { %v4560_v54 = vadd.f32 %v4559_v2, %v4456_v42  ;;  %v4132_v9 = vadd.f32 %v4131_v62, %v9319_v11  ;;  %v10158_v34 = vadd.f32 %v8961_v30, %v3783_v32 }
 0x6eb   : > { %v4214_v40 = vmax.f32 %v4028_v4, 0.0 }
 0x6ec   : > { %v10145_v19 = vadd.f32 %v4560_v54, %v11775_v58  ;;  %v4215_v2 = vmax.f32 %v4132_v9, 0.0  ;;  %v3844_v60 = vpack.c.bf16 %v10163_v15, %v10158_v34 }
 0x6ee   : > { %v4700_v18 = vsel %vm759_vm1, %v10145_v19, 0.0 }
 0x6ef   : > { %4701 = vadd.xlane.f32.xlu1 %v4700_v18 }
 0x6f0   : > { %v4029_v48 = vpop.f32.mrf.mxu0 }
 0x6f1   : > { %v4030_v63 = vadd.f32 %v4029_v48, %v9315_v50  ;;  %v4133_v36 = vpop.f32.mrf.mxu1 }
 0x6f2   : > { %v4134_v22 = vadd.f32 %v4133_v36, %v9319_v11 }
 0x6f3   : > { %v4216_v23 = vmax.f32 %v4030_v63, 0.0 }
 0x6f4   : > { %v4217_v57 = vmax.f32 %v4134_v22, 0.0 }
 0x6f5   : > { %v4266_v42 = vpack.c.bf16 %v4216_v23, %v4214_v40  ;;  %v11777_v23 = vld [vmem:[#allocation4_spill] sm:$0xff] }
 0x6f6   : > { %v4458_v12 = vpop.f32.mrf.mxu2  ;;  %v4562_v37 = vpop.f32.mrf.mxu3  ;;  %v4267_v62 = vpack.c.bf16 %v4217_v57, %v4215_v2  ;;  %5851 = vmatmul.msk.bf16.gmra.mxu0 %vm759_vm1, %v3844_v60  ;;  %5870 = vmatmul.msk.bf16.gmra.mxu1 %vm759_vm1, %v3844_v60 }
 0x6f7   : > { %4477 = vmatmul.bf16.gmra.mxu2 %v4266_v42 }
 0x6f8   : > { %4581 = vmatmul.bf16.gmra.mxu3 %v4267_v62 }
 0x6f9   : > { %v3249_v25 = vpop.xlane.xlu1 %3248 }
 0x6fa   : > { %v3291_v20 = vmul.f32 %v3249_v25, %v8189_v27  ;;  %v4459_v25 = vadd.f32 %v4458_v12, %v9550_v51  ;;  %v3681_v12 = vsel %vm3680_vm4, %v10116_v31, %v3677_v53 }
 0x6fb   : > { %v3746_v2 = vmul.f32 %v3681_v12, %v11777_v23 }
 0x6fc   : > { %v10153_v26 = vadd.f32 1e-05, %v3291_v20  ;;  %v4563_v63 = vadd.f32 %v4562_v37, %v4459_v25 }
 0x6fe   : > { %6278 = vrsqrt.f32 %v10153_v26  ;;  %v4460_v39 = vpop.f32.mrf.mxu2  ;;  %v4564_v18 = vpop.f32.mrf.mxu3  ;;  %vm3688_vm6 = vweird.f32 %v10153_v26 }
 0x6ff   : > { %v4461_v32 = vadd.f32 %v4460_v39, %v9550_v51  ;;  %v11778_v39 = vld [vmem:[#allocation45_spill] sm:$0xff] }
 0x701   : > { %v4657_v56 = vpop.xlane.xlu1 %4656  ;;  %v4565_v38 = vadd.f32 %v4564_v18, %v4461_v32 }
 0x702   : > { %v3252_v47 = vpop.xlane.xlu2 %3251  ;;  %v4769_v58 = vmul.f32 %v4657_v56, %v8189_v27 }
 0x703   : > { %v3292_v24 = vmul.f32 %v3252_v47, %v8189_v27  ;;  %v10189_v36 = vadd.f32 %v4565_v38, %v11776_v35  ;;  %v3785_v38 = vmul.f32 %v8963_v59, %v3746_v2 }
 0x704   : > { %v6279_v54 = vpop.eup %6278  ;;  %v10180_v4 = vsub.f32 %v9933_v1, %v4769_v58 }
 0x705   : > { %v3683_v20 = vmul.f32 %v6279_v54, %v10153_v26  ;;  %v10177_v10 = vadd.f32 1e-05, %v3292_v24  ;;  %vm3689_vm5 = vweird.f32 %v6279_v54  ;;  %v4706_v31 = vsel %vm759_vm1, %v10189_v36, 0.0 }
 0x706   : > { %v4845_v48 = vmul.f32 %v10180_v4, %v10180_v4  ;;  %4707 = vadd.xlane.f32.xlu2 %v4706_v31  ;;  %v10201_v24 = vadd.f32 %v4563_v63, %v11778_v39  ;;  %vm3690_vm7 = vmor %vm3688_vm6, %vm3689_vm5  ;;  %v10229_v2 = vadd.f32 %v8961_v30, %v3785_v38 }
 0x707   : > { %v3684_v9 = vmul.f32 %v6279_v54, %v3683_v20  ;;  %6280 = vrsqrt.f32 %v10177_v10  ;;  %vm3698_vm8 = vweird.f32 %v10177_v10 }
 0x708   : > { %v4883_v40 = vsel %vm759_vm1, %v4845_v48, 0.0  ;;  %11779 = vst [vmem:[#allocation6_spill] sm:$0xff] %v10201_v24 }
 0x709   : > { %v3685_v22 = vmul.f32 0.5, %v3684_v9  ;;  %4884 = vadd.xlane.f32.xlu0 %v4883_v40  ;;  %v4666_v60 = vpop.xlane.xlu1 %4665  ;;  %v4032_v56 = vpop.f32.mrf.mxu0  ;;  %v11780_v9 = vld [vmem:[#allocation80_spill] sm:$0xff] }
 0x70a   : > { %v3255_v43 = vpop.xlane.xlu0 %3254  ;;  %v4660_v42 = vpop.xlane.xlu2 %4659  ;;  %v4772_v47 = vmul.f32 %v4666_v60, %v8189_v27 }
 0x70b   : > { %v3293_v1 = vmul.f32 %v3255_v43, %v8189_v27  ;;  %v3686_v57 = vsub.f32 1.5, %v3685_v22  ;;  %v4770_v37 = vmul.f32 %v4660_v42, %v8189_v27  ;;  %v4136_v53 = vpop.f32.mrf.mxu1  ;;  %v4033_v22 = vadd.f32 %v4032_v56, %v9315_v50 }
 0x70c   : > { %v10216_v48 = vsub.f32 %v9976_v0, %v4772_v47  ;;  %v4137_v43 = vadd.f32 %v4136_v53, %v9319_v11 }
 0x70d   : > { %v10197_v62 = vadd.f32 1e-05, %v3293_v1  ;;  %v3687_v58 = vmul.f32 %v6279_v54, %v3686_v57  ;;  %v10204_v25 = vpop.eup %6280  ;;  %v10208_v32 = vsub.f32 %v9971_v46, %v4770_v37 }
 0x70e   : > { %v3693_v18 = vmul.f32 %v10204_v25, %v10177_v10  ;;  %vm3699_vm9 = vweird.f32 %v10204_v25  ;;  %v4848_v47 = vmul.f32 %v10216_v48, %v10216_v48  ;;  %v4219_v38 = vmax.f32 %v4137_v43, 0.0 }
 0x70f   : > { %6282 = vrsqrt.f32 %v10197_v62  ;;  %v3691_v20 = vsel %vm3690_vm7, %v6279_v54, %v3687_v58  ;;  %v4846_v26 = vmul.f32 %v10208_v32, %v10208_v32  ;;  %v4703_v54 = vsel %vm759_vm1, %v10201_v24, 0.0  ;;  %vm10259_vm10 = vmor %vm3698_vm8, %vm3699_vm9 }
 0x710   : > { %v3747_v12 = vmul.f32 %v3691_v20, %v11780_v9  ;;  %v3694_v63 = vmul.f32 %v10204_v25, %v3693_v18  ;;  %v4463_v46 = vpop.f32.mrf.mxu2  ;;  %v4218_v18 = vmax.f32 %v4033_v22, 0.0  ;;  %vm3708_vm12 = vweird.f32 %v10197_v62 }
 0x711   : > { %v4567_v35 = vpop.f32.mrf.mxu3  ;;  %v4886_v1 = vsel %vm759_vm1, %v4846_v26, 0.0  ;;  %4704 = vadd.xlane.f32.xlu0 %v4703_v54  ;;  %v4034_v60 = vpop.f32.mrf.mxu0  ;;  %v4464_v39 = vadd.f32 %v4463_v46, %v9550_v51 }
 0x712   : > { %v3786_v40 = vmul.f32 %v8963_v59, %v3747_v12  ;;  %v3695_v0 = vmul.f32 0.5, %v3694_v63  ;;  %4887 = vadd.xlane.f32.xlu1 %v4886_v1  ;;  %v4035_v12 = vadd.f32 %v4034_v60, %v9315_v50 }
 0x713   : > { %v4663_v23 = vpop.xlane.xlu2 %4662  ;;  %v4138_v20 = vpop.f32.mrf.mxu1 }
 0x714   : > { %v4771_v31 = vmul.f32 %v4663_v23, %v8189_v27  ;;  %v4669_v42 = vpop.xlane.xlu0 %4668  ;;  %v10234_v37 = vadd.f32 %v8961_v30, %v3786_v40  ;;  %v3696_v56 = vsub.f32 1.5, %v3695_v0  ;;  %v4139_v1 = vadd.f32 %v4138_v20, %v9319_v11 }
 0x715   : > { %v6283_v57 = vpop.eup %6282  ;;  %v4773_v58 = vmul.f32 %v4669_v42, %v8189_v27  ;;  %v4220_v40 = vmax.f32 %v4035_v12, 0.0  ;;  %v4568_v0 = vadd.f32 %v4567_v35, %v4464_v39 }
 0x716   : > { %v3703_v53 = vmul.f32 %v6283_v57, %v10197_v62  ;;  %v10242_v9 = vsub.f32 %v10000_v17, %v4771_v31  ;;  %v3697_v26 = vmul.f32 %v10204_v25, %v3696_v56  ;;  %v3845_v46 = vpack.c.bf16 %v10234_v37, %v10229_v2 }
 0x717   : > { %v10247_v54 = vsub.f32 %v10018_v7, %v4773_v58  ;;  %v4892_v17 = vsel %vm759_vm1, %v4848_v47, 0.0  ;;  %v4221_v23 = vmax.f32 %v4139_v1, 0.0  ;;  %v4268_v56 = vpack.c.bf16 %v4220_v40, %v4218_v18 }
 0x718   : > { %v3704_v63 = vmul.f32 %v6283_v57, %v3703_v53  ;;  %v4847_v22 = vmul.f32 %v10242_v9, %v10242_v9  ;;  %v4465_v31 = vpop.f32.mrf.mxu2  ;;  %v3701_v47 = vsel %vm10259_vm10, %v10204_v25, %v3697_v26  ;;  %5852 = vmatmul.msk.bf16.gmra.mxu0 %vm759_vm1, %v3845_v46  ;;  %5871 = vmatmul.msk.bf16.gmra.mxu1 %vm759_vm1, %v3845_v46  ;;  %vm3709_vm11 = vweird.f32 %v6283_v57 }
 0x719   : > { %v4569_v42 = vpop.f32.mrf.mxu3  ;;  %v4849_v60 = vmul.f32 %v10247_v54, %v10247_v54  ;;  %v4466_v10 = vadd.f32 %v4465_v31, %v9550_v51  ;;  %v4269_v39 = vpack.c.bf16 %v4221_v23, %v4219_v38  ;;  %4893 = vadd.xlane.f32.xlu0 %v4892_v17  ;;  %4482 = vmatmul.bf16.gmra.mxu2 %v4268_v56  ;;  %vm3710_vm13 = vmor %vm3708_vm12, %vm3709_vm11  ;;  %v11785_v38 = vld [vmem:[#allocation61_spill] sm:$0xff] }
 0x71a   : > { %v3705_v7 = vmul.f32 0.5, %v3704_v63  ;;  %v4889_v53 = vsel %vm759_vm1, %v4847_v22, 0.0  ;;  %v3748_v18 = vmul.f32 %v3701_v47, %v9927_v28  ;;  %v11783_v63 = vld [vmem:[#allocation79_spill] sm:$0xff] }
 0x71b   : > { %4890 = vadd.xlane.f32.xlu1 %v4889_v53  ;;  %v4895_v58 = vsel %vm759_vm1, %v4849_v60, 0.0  ;;  %v4570_v20 = vadd.f32 %v4569_v42, %v4466_v10  ;;  %v4037_v25 = vpop.f32.mrf.mxu0  ;;  %4586 = vmatmul.bf16.gmra.mxu3 %v4269_v39  ;;  %v10276_v1 = vadd.f32 %v4568_v0, %v11783_v63  ;;  %v4672_v31 = vpop.xlane.xlu2 %4671 }
 0x71c   : > { %v3706_v35 = vsub.f32 1.5, %v3705_v7  ;;  %4896 = vadd.xlane.f32.xlu2 %v4895_v58  ;;  %v4141_v26 = vpop.f32.mrf.mxu1  ;;  %v3787_v7 = vmul.f32 %v8963_v59, %v3748_v18  ;;  %v4038_v42 = vadd.f32 %v4037_v25, %v9315_v50 }
 0x71d   : > { %11784 = vst [vmem:[#allocation7_spill] sm:$0xff] %v10276_v1  ;;  %v10279_v40 = vadd.f32 %v4570_v20, %v11785_v38  ;;  %v4709_v23 = vsel %vm759_vm1, %v10276_v1, 0.0  ;;  %v4675_v38 = vpop.xlane.xlu1 %4674 }
 0x71e   : > { %v3707_v12 = vmul.f32 %v6283_v57, %v3706_v35  ;;  %v10296_v53 = vadd.f32 %v8961_v30, %v3787_v7  ;;  %v11787_v35 = vld [vmem:[#allocation81_spill] sm:$0xff]  ;;  %v4222_v20 = vmax.f32 %v4038_v42, 0.0  ;;  %v4775_v7 = vmul.f32 %v4675_v38, %v8189_v27 }
 0x71f   : > { %v4712_v17 = vsel %vm759_vm1, %v10279_v40, 0.0 }
 0x720   : > { %v3711_v46 = vsel %vm3710_vm13, %v6283_v57, %v3707_v12 }
 0x721   : > { %v3749_v22 = vmul.f32 %v3711_v46, %v9968_v3  ;;  %v4468_v43 = vpop.f32.mrf.mxu2  ;;  %4713 = vadd.xlane.f32.xlu0 %v4712_v17  ;;  %v4142_v3 = vadd.f32 %v4141_v26, %v9319_v11 }
 0x722   : > { %v4572_v28 = vpop.f32.mrf.mxu3  ;;  %v4469_v62 = vadd.f32 %v4468_v43, %v9550_v51 }
 0x723   : > { %v3788_v0 = vmul.f32 %v8963_v59, %v3749_v22  ;;  %4710 = vadd.xlane.f32.xlu1 %v4709_v23  ;;  %v4039_v60 = vpop.f32.mrf.mxu0  ;;  %v4774_v59 = vmul.f32 %v4672_v31, %v8189_v27  ;;  %v4223_v12 = vmax.f32 %v4142_v3, 0.0  ;;  %v11788_v23 = vld [vmem:[#allocation67_spill] sm:$0xff]  ;;  %v10320_v31 = vsub.f32 %v10011_v61, %v4775_v7 }
 0x724   : > { %v4573_v57 = vadd.f32 %v4572_v28, %v4469_v62  ;;  %v4040_v56 = vadd.f32 %v4039_v60, %v9315_v50  ;;  %v4143_v10 = vpop.f32.mrf.mxu1 }
 0x725   : > { %v10292_v47 = vadd.f32 %v8961_v30, %v3788_v0  ;;  %v4144_v58 = vadd.f32 %v4143_v10, %v9319_v11  ;;  %v10308_v22 = vsub.f32 %v10040_v49, %v4774_v59  ;;  %v4684_v10 = vpop.xlane.xlu1 %4683 }
 0x726   : > { %v10300_v39 = vadd.f32 %v4573_v57, %v11787_v35  ;;  %v4224_v25 = vmax.f32 %v4040_v56, 0.0  ;;  %v4851_v57 = vmul.f32 %v10320_v31, %v10320_v31  ;;  %v4678_v56 = vpop.xlane.xlu0 %4677 }
 0x727   : > { %11786 = vst [vmem:[#allocation8_spill] sm:$0xff] %v10292_v47  ;;  %v3846_v18 = vpack.c.bf16 %v10292_v47, %v10296_v53  ;;  %v4225_v26 = vmax.f32 %v4144_v58, 0.0  ;;  %v4850_v49 = vmul.f32 %v10308_v22, %v10308_v22 }
 0x728   : > { %v4715_v63 = vsel %vm759_vm1, %v10300_v39, 0.0  ;;  %v4270_v30 = vpack.c.bf16 %v4224_v25, %v4222_v20  ;;  %v4901_v60 = vsel %vm759_vm1, %v4851_v57, 0.0 }
 0x729   : > { %v4470_v46 = vpop.f32.mrf.mxu2  ;;  %v4271_v17 = vpack.c.bf16 %v4225_v26, %v4223_v12  ;;  %5853 = vmatmul.msk.bf16.gmra.mxu0 %vm759_vm1, %v3846_v18  ;;  %5872 = vmatmul.msk.bf16.gmra.mxu1 %vm759_vm1, %v3846_v18  ;;  %v4898_v3 = vsel %vm759_vm1, %v4850_v49, 0.0 }
 0x72a   : > { %v4471_v43 = vadd.f32 %v4470_v46, %v9550_v51  ;;  %v4574_v28 = vpop.f32.mrf.mxu3  ;;  %4487 = vmatmul.bf16.gmra.mxu2 %v4270_v30 }
 0x72b   : > { %4716 = vadd.xlane.f32.xlu1 %v4715_v63  ;;  %4591 = vmatmul.bf16.gmra.mxu3 %v4271_v17 }
 0x72c   : > { %v4575_v62 = vadd.f32 %v4574_v28, %v4471_v43  ;;  %v4776_v43 = vmul.f32 %v4678_v56, %v8189_v27 }
 0x72d   : > { %v10330_v58 = vpop.xlane.xlu1 %4692 }
 0x72e   : > { %v10315_v0 = vadd.f32 %v4575_v62, %v11788_v23  ;;  %v10328_v59 = vpop.xlane.xlu0 %4686 }
 0x730   : > { %v4718_v42 = vsel %vm759_vm1, %v10315_v0, 0.0 }
 0x731   : > { %4719 = vadd.xlane.f32.xlu0 %v4718_v42  ;;  %v11789_v42 = vld [vmem:[#allocation3_spill] sm:$0xff] }
 0x733   : > { %4899 = vadd.xlane.f32.xlu1 %v4898_v3 }
 0x736   : > { %v10332_v20 = vpop.xlane.xlu0 %4695 }
 0x739   : > { %4902 = vadd.xlane.f32.xlu0 %v4901_v60 }
 0x762   : > { %v10343_v57 = vpop.xlane.xlu1 %4701 }
 0x763   : > { %v4042_v35 = vpop.f32.mrf.mxu0  ;;  %v4146_v61 = vpop.f32.mrf.mxu1 }
 0x764   : > { %v4043_v25 = vadd.f32 %v4042_v35, %v9315_v50  ;;  %v4147_v18 = vadd.f32 %v4146_v61, %v9319_v11 }
 0x766   : > { %v4226_v7 = vmax.f32 %v4043_v25, 0.0  ;;  %v4227_v62 = vmax.f32 %v4147_v18, 0.0 }
 0x76a   : > { %v4473_v12 = vpop.f32.mrf.mxu2 }
 0x76b   : > { %v4577_v26 = vpop.f32.mrf.mxu3  ;;  %v4474_v63 = vadd.f32 %v4473_v12, %v9550_v51  ;;  %v4044_v38 = vpop.f32.mrf.mxu0  ;;  %v10346_v12 = vsub.f32 %v10045_v21, %v4776_v43 }
 0x76c   : > { %v4148_v30 = vpop.f32.mrf.mxu1  ;;  %v4045_v46 = vadd.f32 %v4044_v38, %v9315_v50  ;;  %v4681_v38 = vpop.xlane.xlu2 %4680 }
 0x76d   : > { %v4149_v17 = vadd.f32 %v4148_v30, %v9319_v11  ;;  %v4578_v28 = vadd.f32 %v4577_v26, %v4474_v63  ;;  %v4777_v21 = vmul.f32 %v4681_v38, %v8189_v27 }
 0x76e   : > { %v4228_v23 = vmax.f32 %v4045_v46, 0.0 }
 0x76f   : > { %v4229_v49 = vmax.f32 %v4149_v17, 0.0  ;;  %v10341_v3 = vadd.f32 %v4578_v28, %v11789_v42  ;;  %v4852_v28 = vmul.f32 %v10346_v12, %v10346_v12 }
 0x770   : > { %v4272_v60 = vpack.c.bf16 %v4228_v23, %v4226_v7  ;;  %v11791_v7 = vld [vmem:[#allocation74_spill] sm:$0xff]  ;;  %v10362_v23 = vsub.f32 %v10056_v45, %v4777_v21 }
 0x771   : > { %11790 = vst [vmem:[#allocation84_spill] sm:$0xff] %v10341_v3  ;;  %v4273_v35 = vpack.c.bf16 %v4229_v49, %v4227_v62  ;;  %v4721_v56 = vsel %vm759_vm1, %v10341_v3, 0.0 }
 0x772   : > { %v4475_v18 = vpop.f32.mrf.mxu2  ;;  %4722 = vadd.xlane.f32.xlu2 %v4721_v56  ;;  %4492 = vmatmul.bf16.gmra.mxu2 %v4272_v60 }
 0x773   : > { %v4579_v26 = vpop.f32.mrf.mxu3  ;;  %v4476_v63 = vadd.f32 %v4475_v18, %v9550_v51  ;;  %4596 = vmatmul.bf16.gmra.mxu3 %v4273_v35  ;;  %v4047_v30 = vpop.f32.mrf.mxu0 }
 0x774   : > { %v4151_v46 = vpop.f32.mrf.mxu1  ;;  %v4048_v60 = vadd.f32 %v4047_v30, %v9315_v50 }
 0x775   : > { %v4580_v43 = vadd.f32 %v4579_v26, %v4476_v63  ;;  %v4152_v56 = vadd.f32 %v4151_v46, %v9319_v11 }
 0x777   : > { %v10359_v62 = vadd.f32 %v4580_v43, %v11791_v7  ;;  %v4778_v43 = vmul.f32 %v4684_v10, %v8189_v27  ;;  %v11794_v10 = vld [vmem:[#allocation5_spill] sm:$0xff] }
 0x779   : > { %11792 = vst [vmem:[#allocation96_spill] sm:$0xff] %v10359_v62  ;;  %v4724_v35 = vsel %vm759_vm1, %v10359_v62, 0.0 }
 0x77a   : > { %4725 = vadd.xlane.f32.xlu1 %v4724_v35 }
 0x77b   : > { %v4582_v18 = vpop.f32.mrf.mxu3  ;;  %v4049_v63 = vpop.f32.mrf.mxu0 }
 0x77c   : > { %v4885_v61 = vpop.xlane.xlu0 %4884  ;;  %v4153_v21 = vpop.f32.mrf.mxu1 }
 0x77d   : > { %v4997_v25 = vmul.f32 %v4885_v61, %v8189_v27  ;;  %v4904_v61 = vsel %vm759_vm1, %v4852_v28, 0.0  ;;  %v4050_v28 = vadd.f32 %v4049_v63, %v9315_v50  ;;  %v4154_v7 = vadd.f32 %v4153_v21, %v9319_v11 }
 0x77e   : > { %4905 = vadd.xlane.f32.xlu2 %v4904_v61  ;;  %v4853_v61 = vmul.f32 %v10362_v23, %v10362_v23 }
 0x77f   : > { %v10352_v17 = vadd.f32 1e-05, %v4997_v25  ;;  %v4478_v25 = vpop.f32.mrf.mxu2  ;;  %v4232_v1 = vmax.f32 %v4050_v28, 0.0  ;;  %v10395_v28 = vsub.f32 %v10037_v44, %v4778_v43 }
 0x780   : > { %v4479_v26 = vadd.f32 %v4478_v25, %v9550_v51  ;;  %v4231_v25 = vmax.f32 %v4152_v56, 0.0 }
 0x781   : > { %6284 = vrsqrt.f32 %v10352_v17  ;;  %vm5079_vm15 = vweird.f32 %v10352_v17 }
 0x782   : > { %v4583_v35 = vadd.f32 %v4582_v18, %v4479_v26 }
 0x784   : > { %v10364_v49 = vpop.xlane.xlu0 %4704  ;;  %v10387_v24 = vadd.f32 %v4583_v35, %v11794_v10 }
 0x785   : > { %11793 = vst [vmem:[#allocation9_spill] sm:$0xff] %v10364_v49  ;;  %v4888_v42 = vpop.xlane.xlu1 %4887 }
 0x786   : > { %v4998_v38 = vmul.f32 %v4888_v42, %v8189_v27  ;;  %v4230_v42 = vmax.f32 %v4048_v60, 0.0  ;;  %v4907_v60 = vsel %vm759_vm1, %v4853_v61, 0.0  ;;  %v4727_v18 = vsel %vm759_vm1, %v10387_v24, 0.0 }
 0x787   : > { %v10372_v45 = vpop.eup %6284  ;;  %4908 = vadd.xlane.f32.xlu1 %v4907_v60  ;;  %4728 = vadd.xlane.f32.xlu0 %v4727_v18 }
 0x788   : > { %v10375_v30 = vadd.f32 1e-05, %v4998_v38  ;;  %v5074_v46 = vmul.f32 %v10372_v45, %v10352_v17  ;;  %v4233_v38 = vmax.f32 %v4154_v7, 0.0  ;;  %v4274_v63 = vpack.c.bf16 %v4232_v1, %v4230_v42 }
 0x789   : > { %vm5080_vm14 = vweird.f32 %v10372_v45 }
 0x78a   : > { %6286 = vrsqrt.f32 %v10375_v30  ;;  %v5075_v62 = vmul.f32 %v10372_v45, %v5074_v46  ;;  %v4275_v21 = vpack.c.bf16 %v4233_v38, %v4231_v25  ;;  %v4480_v46 = vpop.f32.mrf.mxu2  ;;  %4497 = vmatmul.bf16.gmra.mxu2 %v4274_v63  ;;  %v11795_v38 = vld [vmem:[#allocation77_spill] sm:$0xff]  ;;  %vm5081_vm0 = vmor %vm5079_vm15, %vm5080_vm14  ;;  %vm5089_vm3 = vweird.f32 %v10375_v30 }
 0x78b   : > { %v4481_v42 = vadd.f32 %v4480_v46, %v9550_v51 }
 0x78c   : > { %v5076_v47 = vmul.f32 0.5, %v5075_v62  ;;  %v4894_v49 = vpop.xlane.xlu0 %4893  ;;  %v4779_v62 = vmul.f32 %v10328_v59, %v8189_v27  ;;  %4601 = vmatmul.bf16.gmra.mxu3 %v4275_v21  ;;  %v4854_v59 = vmul.f32 %v10395_v28, %v10395_v28 }
 0x78d   : > { %v5000_v26 = vmul.f32 %v4894_v49, %v8189_v27 }
 0x78e   : > { %v4891_v3 = vpop.xlane.xlu1 %4890  ;;  %v5077_v7 = vsub.f32 1.5, %v5076_v47  ;;  %v10411_v25 = vsub.f32 %v10064_v6, %v4779_v62  ;;  %v4910_v6 = vsel %vm759_vm1, %v4854_v59, 0.0 }
 0x78f   : > { %v4999_v56 = vmul.f32 %v4891_v3, %v8189_v27  ;;  %v10400_v35 = vadd.f32 1e-05, %v5000_v26  ;;  %v4584_v3 = vpop.f32.mrf.mxu3  ;;  %4911 = vadd.xlane.f32.xlu0 %v4910_v6 }
 0x790   : > { %v6287_v1 = vpop.eup %6286  ;;  %v5078_v47 = vmul.f32 %v10372_v45, %v5077_v7  ;;  %v4585_v43 = vadd.f32 %v4584_v3, %v4481_v42  ;;  %v4855_v7 = vmul.f32 %v10411_v25, %v10411_v25 }
 0x791   : > { %v10402_v49 = vadd.f32 1e-05, %v4999_v56  ;;  %v5084_v44 = vmul.f32 %v6287_v1, %v10375_v30  ;;  %6288 = vrsqrt.f32 %v10400_v35  ;;  %vm5090_vm2 = vweird.f32 %v6287_v1 }
 0x792   : > { %v10415_v10 = vadd.f32 %v4585_v43, %v11795_v38  ;;  %v5082_v21 = vsel %vm5081_vm0, %v10372_v45, %v5078_v47  ;;  %vm5091_vm4 = vmor %vm5089_vm3, %vm5090_vm2  ;;  %vm5109_vm6 = vweird.f32 %v10400_v35 }
 0x793   : > { %v5085_v61 = vmul.f32 %v6287_v1, %v5084_v44  ;;  %6290 = vrsqrt.f32 %v10402_v49  ;;  %v5453_v46 = vmul.f32 %v5082_v21, %v10180_v4  ;;  %v4913_v4 = vsel %vm759_vm1, %v4855_v7, 0.0 }
 0x794   : > { %v4730_v60 = vsel %vm759_vm1, %v10415_v10, 0.0  ;;  %vm5099_vm9 = vweird.f32 %v10402_v49 }
 0x795   : > { %v5086_v63 = vmul.f32 0.5, %v5085_v61  ;;  %v4052_v18 = vpop.f32.mrf.mxu0  ;;  %v4156_v26 = vpop.f32.mrf.mxu1  ;;  %4731 = vadd.xlane.f32.xlu2 %v4730_v60  ;;  %v5491_v59 = vsel %vm759_vm1, %v5453_v46, 0.0 }
 0x796   : > { %v4690_v61 = vpop.xlane.xlu2 %4689  ;;  %v4053_v30 = vadd.f32 %v4052_v18, %v9315_v50  ;;  %v4157_v60 = vadd.f32 %v4156_v26, %v9319_v11 }
 0x797   : > { %v5087_v56 = vsub.f32 1.5, %v5086_v63  ;;  %v6289_v17 = vpop.eup %6288 }
 0x798   : > { %v5104_v45 = vmul.f32 %v6289_v17, %v10400_v35  ;;  %vm5110_vm5 = vweird.f32 %v6289_v17 }
 0x799   : > { %v5088_v62 = vmul.f32 %v6287_v1, %v5087_v56  ;;  %v6291_v42 = vpop.eup %6290  ;;  %vm5111_vm8 = vmor %vm5109_vm6, %vm5110_vm5 }
 0x79a   : > { %v5105_v44 = vmul.f32 %v6289_v17, %v5104_v45  ;;  %v5094_v47 = vmul.f32 %v6291_v42, %v10402_v49  ;;  %vm5100_vm7 = vweird.f32 %v6291_v42 }
 0x79b   : > { %v5092_v3 = vsel %vm5091_vm4, %v6287_v1, %v5088_v62  ;;  %vm5101_vm10 = vmor %vm5099_vm9, %vm5100_vm7 }
 0x79c   : > { %v5454_v43 = vmul.f32 %v5092_v3, %v10208_v32  ;;  %v5106_v38 = vmul.f32 0.5, %v5105_v44  ;;  %v5095_v63 = vmul.f32 %v6291_v42, %v5094_v47  ;;  %v4483_v1 = vpop.f32.mrf.mxu2  ;;  %v4780_v44 = vmul.f32 %v4690_v61, %v8189_v27 }
 0x79d   : > { %v4054_v56 = vpop.f32.mrf.mxu0  ;;  %4914 = vadd.xlane.f32.xlu2 %v4913_v4  ;;  %v4484_v32 = vadd.f32 %v4483_v1, %v9550_v51  ;;  %v4158_v3 = vpop.f32.mrf.mxu1 }
 0x79e   : > { %v5492_v21 = vsel %vm759_vm1, %v5454_v43, 0.0  ;;  %v5107_v62 = vsub.f32 1.5, %v5106_v38  ;;  %v5096_v45 = vmul.f32 0.5, %v5095_v63  ;;  %v4587_v46 = vpop.f32.mrf.mxu3  ;;  %v4055_v7 = vadd.f32 %v4054_v56, %v9315_v50 }
 0x79f   : > { %v5493_v6 = vadd.f32 %v5492_v21, %v5491_v59  ;;  %v4159_v18 = vadd.f32 %v4158_v3, %v9319_v11  ;;  %v4588_v43 = vadd.f32 %v4587_v46, %v4484_v32  ;;  %v4234_v59 = vmax.f32 %v4053_v30, 0.0 }
 0x7a0   : > { %v5108_v47 = vmul.f32 %v6289_v17, %v5107_v62  ;;  %v5097_v26 = vsub.f32 1.5, %v5096_v45  ;;  %v4235_v38 = vmax.f32 %v4157_v60, 0.0  ;;  %v4236_v63 = vmax.f32 %v4055_v7, 0.0 }
 0x7a1   : > { %v4237_v4 = vmax.f32 %v4159_v18, 0.0  ;;  %v10442_v35 = vadd.f32 %v4588_v43, %v9938_v41  ;;  %v10445_v62 = vsub.f32 %v10074_v5, %v4780_v44 }
 0x7a2   : > { %v5112_v21 = vsel %vm5111_vm8, %v6289_v17, %v5108_v47  ;;  %v5098_v1 = vmul.f32 %v6291_v42, %v5097_v26  ;;  %v4276_v61 = vpack.c.bf16 %v4236_v63, %v4234_v59 }
 0x7a3   : > { %v4277_v56 = vpack.c.bf16 %v4237_v4, %v4235_v38  ;;  %v4733_v30 = vsel %vm759_vm1, %v10442_v35, 0.0  ;;  %v5456_v60 = vmul.f32 %v5112_v21, %v10216_v48  ;;  %v4856_v7 = vmul.f32 %v10445_v62, %v10445_v62 }
 0x7a4   : > { %v5102_v45 = vsel %vm5101_vm10, %v6291_v42, %v5098_v1  ;;  %v4485_v32 = vpop.f32.mrf.mxu2  ;;  %4734 = vadd.xlane.f32.xlu1 %v4733_v30  ;;  %4502 = vmatmul.bf16.gmra.mxu2 %v4276_v61  ;;  %v4781_v48 = vmul.f32 %v10330_v58, %v8189_v27 }
 0x7a5   : > { %v5455_v17 = vmul.f32 %v5102_v45, %v10242_v9  ;;  %v4486_v41 = vadd.f32 %v4485_v32, %v9550_v51  ;;  %4606 = vmatmul.bf16.gmra.mxu3 %v4277_v56  ;;  %v5496_v9 = vsel %vm759_vm1, %v5456_v60, 0.0  ;;  %v4916_v43 = vsel %vm759_vm1, %v4856_v7, 0.0 }
 0x7a6   : > { %v4057_v49 = vpop.f32.mrf.mxu0  ;;  %v4589_v46 = vpop.f32.mrf.mxu3  ;;  %v10468_v59 = vsub.f32 %v10061_v8, %v4781_v48  ;;  %v4782_v56 = vmul.f32 %v10332_v20, %v8189_v27 }
 0x7a7   : > { %v4161_v3 = vpop.f32.mrf.mxu1  ;;  %v5494_v5 = vsel %vm759_vm1, %v5455_v17, 0.0  ;;  %v4590_v42 = vadd.f32 %v4589_v46, %v4486_v41  ;;  %v4058_v26 = vadd.f32 %v4057_v49, %v9315_v50  ;;  %v4699_v20 = vpop.xlane.xlu2 %4698 }
 0x7a8   : > { %v5495_v44 = vadd.f32 %v5494_v5, %v5493_v6  ;;  %v4162_v38 = vadd.f32 %v4161_v3, %v9319_v11  ;;  %v4857_v32 = vmul.f32 %v10468_v59, %v10468_v59 }
 0x7a9   : > { %v10461_v47 = vadd.f32 %v4590_v42, %v9941_v14  ;;  %v4238_v45 = vmax.f32 %v4058_v26, 0.0  ;;  %v4783_v42 = vmul.f32 %v4699_v20, %v8189_v27 }
 0x7aa   : > { %v10458_v18 = vadd.f32 %v5496_v9, %v5495_v44  ;;  %v4239_v60 = vmax.f32 %v4162_v38, 0.0  ;;  %v4919_v5 = vsel %vm759_vm1, %v4857_v32, 0.0 }
 0x7ab   : > { %v4736_v6 = vsel %vm759_vm1, %v10461_v47, 0.0  ;;  %v10495_v9 = vsub.f32 %v10120_v16, %v4783_v42 }
 0x7ac   : > { %4917 = vadd.xlane.f32.xlu1 %v4916_v43  ;;  %4737 = vadd.xlane.f32.xlu0 %v4736_v6 }
 0x7ad   : > { %v4488_v58 = vpop.f32.mrf.mxu2  ;;  %v4859_v6 = vmul.f32 %v10495_v9, %v10495_v9 }
 0x7ae   : > { %v4059_v63 = vpop.f32.mrf.mxu0  ;;  %v4489_v4 = vadd.f32 %v4488_v58, %v9550_v51  ;;  %v4592_v14 = vpop.f32.mrf.mxu3 }
 0x7af   : > { %v4060_v21 = vadd.f32 %v4059_v63, %v9315_v50  ;;  %v4163_v1 = vpop.f32.mrf.mxu1  ;;  %v10482_v50 = vsub.f32 %v10077_v29, %v4782_v56  ;;  %v4925_v38 = vsel %vm759_vm1, %v4859_v6, 0.0  ;;  %v10503_v58 = vpop.xlane.xlu1 %4710 }
 0x7b0   : > { %v4164_v61 = vadd.f32 %v4163_v1, %v9319_v11  ;;  %v4593_v8 = vadd.f32 %v4592_v14, %v4489_v4  ;;  %v10509_v16 = vpop.xlane.xlu2 %4707 }
 0x7b1   : > { %v4240_v30 = vmax.f32 %v4060_v21, 0.0  ;;  %v4858_v29 = vmul.f32 %v10482_v50, %v10482_v50 }
 0x7b2   : > { %v4241_v17 = vmax.f32 %v4164_v61, 0.0  ;;  %v10479_v49 = vadd.f32 %v4593_v8, %v10003_v55 }
 0x7b3   : > { %v4278_v41 = vpack.c.bf16 %v4240_v30, %v4238_v45  ;;  %v4922_v43 = vsel %vm759_vm1, %v4858_v29, 0.0 }
 0x7b4   : > { %v4279_v46 = vpack.c.bf16 %v4241_v17, %v4239_v60  ;;  %v4739_v11 = vsel %vm759_vm1, %v10479_v49, 0.0  ;;  %4920 = vadd.xlane.f32.xlu0 %v4919_v5 }
 0x7b5   : > { %v4490_v3 = vpop.f32.mrf.mxu2  ;;  %4740 = vadd.xlane.f32.xlu2 %v4739_v11  ;;  %4507 = vmatmul.bf16.gmra.mxu2 %v4278_v41 }
 0x7b6   : > { %v4491_v44 = vadd.f32 %v4490_v3, %v9550_v51  ;;  %4611 = vmatmul.bf16.gmra.mxu3 %v4279_v46  ;;  %v4594_v55 = vpop.f32.mrf.mxu3 }
 0x7b7   : > { %v10507_v63 = vpop.xlane.xlu1 %4716 }
 0x7b8   : > { %v4595_v7 = vadd.f32 %v4594_v55, %v4491_v44  ;;  %v4897_v14 = vpop.xlane.xlu2 %4896 }
 0x7b9   : > { %v5001_v1 = vmul.f32 %v4897_v14, %v8189_v27 }
 0x7ba   : > { %v10492_v48 = vadd.f32 %v4595_v7, %v10006_v33  ;;  %v10505_v33 = vpop.xlane.xlu0 %4713 }
 0x7bb   : > { %v5039_v8 = vadd.f32 1e-05, %v5001_v1 }
 0x7bc   : > { %v4742_v26 = vsel %vm759_vm1, %v10492_v48, 0.0 }
 0x7bd   : > { %4743 = vadd.xlane.f32.xlu1 %v4742_v26  ;;  %4923 = vadd.xlane.f32.xlu2 %v4922_v43  ;;  %6292 = vrsqrt.f32 %v5039_v8  ;;  %vm5119_vm13 = vweird.f32 %v5039_v8 }
 0x7bf   : > { %v4900_v21 = vpop.xlane.xlu1 %4899 }
 0x7c0   : > { %v5002_v56 = vmul.f32 %v4900_v21, %v8189_v27 }
 0x7c2   : > { %v10511_v4 = vpop.xlane.xlu0 %4719  ;;  %v5040_v30 = vadd.f32 1e-05, %v5002_v56 }
 0x7c3   : > { %v6293_v17 = vpop.eup %6292 }
 0x7c4   : > { %6294 = vrsqrt.f32 %v5040_v30  ;;  %v5114_v46 = vmul.f32 %v6293_v17, %v5039_v8  ;;  %vm5120_vm11 = vweird.f32 %v6293_v17  ;;  %vm5129_vm15 = vweird.f32 %v5040_v30 }
 0x7c5   : > { %4926 = vadd.xlane.f32.xlu1 %v4925_v38  ;;  %vm5121_vm14 = vmor %vm5119_vm13, %vm5120_vm11 }
 0x7c6   : > { %v5115_v5 = vmul.f32 %v6293_v17, %v5114_v46 }
 0x7c8   : > { %v5116_v42 = vmul.f32 0.5, %v5115_v5 }
 0x7ca   : > { %v4903_v61 = vpop.xlane.xlu0 %4902  ;;  %v6295_v32 = vpop.eup %6294  ;;  %v5117_v38 = vsub.f32 1.5, %v5116_v42 }
 0x7cb   : > { %v5003_v45 = vmul.f32 %v4903_v61, %v8189_v27  ;;  %v5124_v11 = vmul.f32 %v6295_v32, %v5040_v30  ;;  %vm5130_vm12 = vweird.f32 %v6295_v32 }
 0x7cc   : > { %v5118_v61 = vmul.f32 %v6293_v17, %v5117_v38  ;;  %vm5131_vm2 = vmor %vm5129_vm15, %vm5130_vm12 }
 0x7cd   : > { %v5041_v60 = vadd.f32 1e-05, %v5003_v45  ;;  %v5125_v44 = vmul.f32 %v6295_v32, %v5124_v11 }
 0x7cf   : > { %6296 = vrsqrt.f32 %v5041_v60  ;;  %v5126_v7 = vmul.f32 0.5, %v5125_v44  ;;  %vm5139_vm3 = vweird.f32 %v5041_v60 }
 0x7d1   : > { %v5127_v21 = vsub.f32 1.5, %v5126_v7  ;;  %v5122_v7 = vsel %vm5121_vm14, %v6293_v17, %v5118_v61 }
 0x7d3   : > { %v5128_v56 = vmul.f32 %v6295_v32, %v5127_v21  ;;  %v5457_v21 = vmul.f32 %v5122_v7, %v10247_v54 }
 0x7d5   : > { %v6297_v41 = vpop.eup %6296  ;;  %v5498_v54 = vsel %vm759_vm1, %v5457_v21, 0.0 }
 0x7d6   : > { %v5134_v3 = vmul.f32 %v6297_v41, %v5041_v60  ;;  %vm5140_vm0 = vweird.f32 %v6297_v41 }
 0x7d7   : > { %vm5141_vm4 = vmor %vm5139_vm3, %vm5140_vm0 }
 0x7d8   : > { %v5135_v55 = vmul.f32 %v6297_v41, %v5134_v3 }
 0x7da   : > { %v5136_v6 = vmul.f32 0.5, %v5135_v55 }
 0x7dc   : > { %v5137_v1 = vsub.f32 1.5, %v5136_v6  ;;  %v5132_v6 = vsel %vm5131_vm2, %v6295_v32, %v5128_v56 }
 0x7dd   : > { %v5458_v30 = vmul.f32 %v5132_v6, %v10308_v22 }
 0x7de   : > { %v5138_v55 = vmul.f32 %v6297_v41, %v5137_v1 }
 0x7e5   : > { %v10516_v20 = vpop.xlane.xlu2 %4722 }
 0x7ed   : > { %v10518_v26 = vpop.xlane.xlu1 %4725 }
 0x7f1   : > { %v4906_v29 = vpop.xlane.xlu2 %4905 }
 0x7f2   : > { %v5004_v43 = vmul.f32 %v4906_v29, %v8189_v27 }
 0x7f4   : > { %v5042_v14 = vadd.f32 1e-05, %v5004_v43 }
 0x7f5   : > { %v4493_v45 = vpop.f32.mrf.mxu2 }
 0x7f6   : > { %6298 = vrsqrt.f32 %v5042_v14  ;;  %v4494_v11 = vadd.f32 %v4493_v45, %v9550_v51  ;;  %v4597_v3 = vpop.f32.mrf.mxu3  ;;  %v5142_v45 = vsel %vm5141_vm4, %v6297_v41, %v5138_v55  ;;  %v5500_v55 = vsel %vm759_vm1, %v5458_v30, 0.0 }
 0x7f7   : > { %v5459_v60 = vmul.f32 %v5142_v45, %v10320_v31  ;;  %vm5149_vm6 = vweird.f32 %v5042_v14 }
 0x7f8   : > { %v4598_v29 = vadd.f32 %v4597_v3, %v4494_v11 }
 0x7fa   : > { %v4909_v46 = vpop.xlane.xlu1 %4908  ;;  %v10522_v5 = vpop.xlane.xlu0 %4728  ;;  %v10526_v8 = vadd.f32 %v4598_v29, %v10111_v13 }
 0x7fb   : > { %v5005_v44 = vmul.f32 %v4909_v46, %v8189_v27 }
 0x7fc   : > { %v6299_v42 = vpop.eup %6298  ;;  %v4745_v17 = vsel %vm759_vm1, %v10526_v8, 0.0 }
 0x7fd   : > { %v5043_v43 = vadd.f32 1e-05, %v5005_v44  ;;  %v5144_v38 = vmul.f32 %v6299_v42, %v5042_v14  ;;  %v4495_v32 = vpop.f32.mrf.mxu2  ;;  %4746 = vadd.xlane.f32.xlu0 %v4745_v17  ;;  %vm5150_vm5 = vweird.f32 %v6299_v42  ;;  %v5499_v44 = vadd.f32 %v5498_v54, %v10458_v18 }
 0x7fe   : > { %v4496_v13 = vadd.f32 %v4495_v32, %v9550_v51  ;;  %v4599_v56 = vpop.f32.mrf.mxu3  ;;  %vm5151_vm7 = vmor %vm5149_vm6, %vm5150_vm5 }
 0x7ff   : > { %6300 = vrsqrt.f32 %v5043_v43  ;;  %v5145_v46 = vmul.f32 %v6299_v42, %v5144_v38  ;;  %v5502_v38 = vsel %vm759_vm1, %v5459_v60, 0.0  ;;  %v5501_v21 = vadd.f32 %v5500_v55, %v5499_v44 }
 0x800   : > { %v4600_v7 = vadd.f32 %v4599_v56, %v4496_v13  ;;  %vm5159_vm9 = vweird.f32 %v5043_v43 }
 0x801   : > { %v5146_v1 = vmul.f32 0.5, %v5145_v46  ;;  %v5503_v30 = vadd.f32 %v5502_v38, %v5501_v21 }
 0x802   : > { %v4912_v11 = vpop.xlane.xlu0 %4911  ;;  %v10542_v45 = vadd.f32 %v4600_v7, %v10114_v52 }
 0x803   : > { %v5147_v41 = vsub.f32 1.5, %v5146_v1  ;;  %v5006_v22 = vmul.f32 %v4912_v11, %v8189_v27 }
 0x804   : > { %v4748_v18 = vsel %vm759_vm1, %v10542_v45, 0.0 }
 0x805   : > { %v6301_v3 = vpop.eup %6300  ;;  %v5148_v29 = vmul.f32 %v6299_v42, %v5147_v41  ;;  %v5044_v31 = vadd.f32 1e-05, %v5006_v22  ;;  %4749 = vadd.xlane.f32.xlu2 %v4748_v18 }
 0x806   : > { %v5154_v6 = vmul.f32 %v6301_v3, %v5043_v43  ;;  %vm5160_vm8 = vweird.f32 %v6301_v3 }
 0x807   : > { %v5152_v46 = vsel %vm5151_vm7, %v6299_v42, %v5148_v29  ;;  %6302 = vrsqrt.f32 %v5044_v31  ;;  %vm5161_vm10 = vmor %vm5159_vm9, %vm5160_vm8  ;;  %vm5169_vm12 = vweird.f32 %v5044_v31 }
 0x808   : > { %v10532_v61 = vpop.xlane.xlu2 %4731  ;;  %v5155_v17 = vmul.f32 %v6301_v3, %v5154_v6  ;;  %v5460_v1 = vmul.f32 %v5152_v46, %v10346_v12 }
 0x80a   : > { %v5156_v32 = vmul.f32 0.5, %v5155_v17  ;;  %v5504_v60 = vsel %vm759_vm1, %v5460_v1, 0.0 }
 0x80b   : > { %v5505_v42 = vadd.f32 %v5504_v60, %v5503_v30 }
 0x80c   : > { %v5157_v54 = vsub.f32 1.5, %v5156_v32 }
 0x80d   : > { %v4498_v13 = vpop.f32.mrf.mxu2  ;;  %v6303_v22 = vpop.eup %6302 }
 0x80e   : > { %v4499_v52 = vadd.f32 %v4498_v13, %v9550_v51  ;;  %v5158_v44 = vmul.f32 %v6301_v3, %v5157_v54  ;;  %v5164_v55 = vmul.f32 %v6303_v22, %v5044_v31  ;;  %vm5170_vm11 = vweird.f32 %v6303_v22 }
 0x80f   : > { %v4602_v11 = vpop.f32.mrf.mxu3  ;;  %vm5171_vm13 = vmor %vm5169_vm12, %vm5170_vm11 }
 0x810   : > { %v4915_v14 = vpop.xlane.xlu2 %4914  ;;  %v4603_v12 = vadd.f32 %v4602_v11, %v4499_v52  ;;  %v5162_v7 = vsel %vm5161_vm10, %v6301_v3, %v5158_v44  ;;  %v5165_v38 = vmul.f32 %v6303_v22, %v5164_v55 }
 0x811   : > { %v5007_v56 = vmul.f32 %v4915_v14, %v8189_v27  ;;  %v5461_v6 = vmul.f32 %v5162_v7, %v10362_v23 }
 0x812   : > { %v10551_v29 = vadd.f32 %v4603_v12, %v10158_v34  ;;  %v5166_v18 = vmul.f32 0.5, %v5165_v38  ;;  %v4789_v34 = vmul.f32 %v10507_v63, %v8189_v27 }
 0x813   : > { %v5045_v41 = vadd.f32 1e-05, %v5007_v56  ;;  %v5506_v1 = vsel %vm759_vm1, %v5461_v6, 0.0 }
 0x814   : > { %v4751_v17 = vsel %vm759_vm1, %v10551_v29, 0.0  ;;  %v5507_v30 = vadd.f32 %v5506_v1, %v5505_v42  ;;  %v5167_v23 = vsub.f32 1.5, %v5166_v18  ;;  %v10566_v11 = vsub.f32 %v10300_v39, %v4789_v34 }
 0x815   : > { %6304 = vrsqrt.f32 %v5045_v41  ;;  %v4500_v46 = vpop.f32.mrf.mxu2  ;;  %4752 = vadd.xlane.f32.xlu1 %v4751_v17  ;;  %vm5179_vm15 = vweird.f32 %v5045_v41 }
 0x816   : > { %v4501_v43 = vadd.f32 %v4500_v46, %v9550_v51  ;;  %v5168_v60 = vmul.f32 %v6303_v22, %v5167_v23  ;;  %v4865_v39 = vmul.f32 %v10566_v11, %v10566_v11 }
 0x817   : > { %v10554_v21 = vpop.xlane.xlu1 %4734  ;;  %v4604_v3 = vpop.f32.mrf.mxu3 }
 0x818   : > { %v4605_v14 = vadd.f32 %v4604_v3, %v4501_v43  ;;  %v5172_v42 = vsel %vm5171_vm13, %v6303_v22, %v5168_v60  ;;  %v4943_v46 = vsel %vm759_vm1, %v4865_v39, 0.0  ;;  %v4788_v3 = vmul.f32 %v10505_v33, %v8189_v27 }
 0x819   : > { %v5462_v63 = vmul.f32 %v5172_v42, %v10395_v28 }
 0x81a   : > { %v10563_v56 = vadd.f32 %v4605_v14, %v10163_v15  ;;  %v10585_v14 = vsub.f32 %v10279_v40, %v4788_v3  ;;  %v4786_v40 = vmul.f32 %v10509_v16, %v8189_v27 }
 0x81b   : > { %v6305_v32 = vpop.eup %6304  ;;  %v5508_v31 = vsel %vm759_vm1, %v5462_v63, 0.0 }
 0x81c   : > { %v5174_v13 = vmul.f32 %v6305_v32, %v5045_v41  ;;  %v4754_v54 = vsel %vm759_vm1, %v10563_v56, 0.0  ;;  %vm5180_vm14 = vweird.f32 %v6305_v32  ;;  %v5509_v6 = vadd.f32 %v5508_v31, %v5507_v30 }
 0x81d   : > { %4755 = vadd.xlane.f32.xlu0 %v4754_v54  ;;  %vm5181_vm0 = vmor %vm5179_vm15, %vm5180_vm14  ;;  %v4864_v63 = vmul.f32 %v10585_v14, %v10585_v14  ;;  %v10605_v39 = vsub.f32 %v10189_v36, %v4786_v40 }
 0x81e   : > { %v5175_v52 = vmul.f32 %v6305_v32, %v5174_v13 }
 0x81f   : > { %v4918_v12 = vpop.xlane.xlu1 %4917 }
 0x820   : > { %v5176_v44 = vmul.f32 0.5, %v5175_v52  ;;  %v5008_v55 = vmul.f32 %v4918_v12, %v8189_v27  ;;  %v4790_v12 = vmul.f32 %v10511_v4, %v8189_v27  ;;  %v4940_v4 = vsel %vm759_vm1, %v4864_v63, 0.0 }
 0x822   : > { %v5177_v15 = vsub.f32 1.5, %v5176_v44  ;;  %v5046_v7 = vadd.f32 1e-05, %v5008_v55 }
 0x824   : > { %v5178_v22 = vmul.f32 %v6305_v32, %v5177_v15  ;;  %6306 = vrsqrt.f32 %v5046_v7  ;;  %vm5189_vm3 = vweird.f32 %v5046_v7  ;;  %v10600_v15 = vsub.f32 %v10315_v0, %v4790_v12 }
 0x825   : > { %4944 = vadd.xlane.f32.xlu0 %v4943_v46  ;;  %v4791_v46 = vmul.f32 %v10516_v20, %v8189_v27 }
 0x826   : > { %v5182_v38 = vsel %vm5181_vm0, %v6305_v32, %v5178_v22  ;;  %v4866_v36 = vmul.f32 %v10600_v15, %v10600_v15 }
 0x827   : > { %v5463_v28 = vmul.f32 %v5182_v38, %v10411_v25  ;;  %v4503_v17 = vpop.f32.mrf.mxu2 }
 0x828   : > { %v4504_v1 = vadd.f32 %v4503_v17, %v9550_v51  ;;  %v4607_v18 = vpop.f32.mrf.mxu3  ;;  %v4862_v17 = vmul.f32 %v10605_v39, %v10605_v39 }
 0x829   : > { %v5510_v43 = vsel %vm759_vm1, %v5463_v28, 0.0 }
 0x82a   : > { %v6307_v30 = vpop.eup %6306  ;;  %v5511_v34 = vadd.f32 %v5510_v43, %v5509_v6  ;;  %v4608_v41 = vadd.f32 %v4607_v18, %v4504_v1  ;;  %v4946_v43 = vsel %vm759_vm1, %v4866_v36, 0.0  ;;  %v4934_v20 = vsel %vm759_vm1, %v4862_v17, 0.0 }
 0x82b   : > { %v5184_v23 = vmul.f32 %v6307_v30, %v5046_v7  ;;  %vm5190_vm2 = vweird.f32 %v6307_v30 }
 0x82c   : > { %v10582_v32 = vadd.f32 %v4608_v41, %v10229_v2  ;;  %vm5191_vm4 = vmor %vm5189_vm3, %vm5190_vm2 }
 0x82d   : > { %v5185_v25 = vmul.f32 %v6307_v30, %v5184_v23 }
 0x82e   : > { %v4757_v13 = vsel %vm759_vm1, %v10582_v32, 0.0 }
 0x82f   : > { %v5186_v60 = vmul.f32 0.5, %v5185_v25  ;;  %v4505_v52 = vpop.f32.mrf.mxu2  ;;  %4758 = vadd.xlane.f32.xlu2 %v4757_v13  ;;  %v4792_v25 = vmul.f32 %v10518_v26, %v8189_v27 }
 0x830   : > { %v4506_v42 = vadd.f32 %v4505_v52, %v9550_v51  ;;  %v4609_v54 = vpop.f32.mrf.mxu3  ;;  %v4794_v52 = vmul.f32 %v10532_v61, %v8189_v27  ;;  %v4744_v36 = vpop.xlane.xlu1 %4743 }
 0x831   : > { %v5187_v33 = vsub.f32 1.5, %v5186_v60  ;;  %v4798_v17 = vmul.f32 %v4744_v36, %v8189_v27 }
 0x832   : > { %v4610_v2 = vadd.f32 %v4609_v54, %v4506_v42  ;;  %v11798_v54 = vld [vmem:[#allocation8_spill] sm:$0xff] }
 0x833   : > { %v5188_v44 = vmul.f32 %v6307_v30, %v5187_v33  ;;  %v11799_v33 = vld [vmem:[#allocation6_spill] sm:$0xff] }
 0x834   : > { %v10597_v31 = vadd.f32 %v4610_v2, %v10234_v37  ;;  %v11800_v2 = vld [vmem:[#allocation96_spill] sm:$0xff] }
 0x835   : > { %v5192_v55 = vsel %vm5191_vm4, %v6307_v30, %v5188_v44  ;;  %v11796_v30 = vld [vmem:[#allocation84_spill] sm:$0xff]  ;;  %v10652_v63 = vsub.f32 %v11800_v2, %v4792_v25  ;;  %v10658_v44 = vsub.f32 %v10415_v10, %v4794_v52 }
 0x836   : > { %v5464_v6 = vmul.f32 %v5192_v55, %v10445_v62  ;;  %v4760_v16 = vsel %vm759_vm1, %v10597_v31, 0.0  ;;  %v4784_v62 = vmul.f32 %v10343_v57, %v8189_v27  ;;  %v10631_v3 = vsub.f32 %v11796_v30, %v4791_v46  ;;  %v4741_v55 = vpop.xlane.xlu2 %4740 }
 0x837   : > { %4941 = vadd.xlane.f32.xlu2 %v4940_v4  ;;  %4761 = vadd.xlane.f32.xlu1 %v4760_v16  ;;  %v4795_v4 = vmul.f32 %v10554_v21, %v8189_v27  ;;  %v4868_v16 = vmul.f32 %v10652_v63, %v10652_v63  ;;  %v4797_v10 = vmul.f32 %v4741_v55, %v8189_v27 }
 0x838   : > { %v4508_v22 = vpop.f32.mrf.mxu2  ;;  %v5512_v7 = vsel %vm759_vm1, %v5464_v6, 0.0  ;;  %v10625_v18 = vsub.f32 %v10145_v19, %v4784_v62  ;;  %v11797_v19 = vld [vmem:[#allocation9_spill] sm:$0xff]  ;;  %v4867_v42 = vmul.f32 %v10631_v3, %v10631_v3  ;;  %v4793_v6 = vmul.f32 %v10522_v5, %v8189_v27  ;;  %v4738_v62 = vpop.xlane.xlu0 %4737 }
 0x839   : > { %v4509_v37 = vadd.f32 %v4508_v22, %v9550_v51  ;;  %v4612_v38 = vpop.f32.mrf.mxu3  ;;  %v10611_v0 = vadd.f32 %v5512_v7, %v5511_v34  ;;  %v4785_v23 = vmul.f32 %v11797_v19, %v8189_v27  ;;  %v4870_v7 = vmul.f32 %v10658_v44, %v10658_v44  ;;  %v10718_v2 = vpop.xlane.xlu1 %4926 }
 0x83a   : > { %v4860_v60 = vmul.f32 %v10625_v18, %v10625_v18  ;;  %v4949_v61 = vsel %vm759_vm1, %v4867_v42, 0.0  ;;  %v4952_v21 = vsel %vm759_vm1, %v4868_v16, 0.0  ;;  %v10696_v30 = vsub.f32 %v10492_v48, %v4798_v17 }
 0x83b   : > { %v4613_v28 = vadd.f32 %v4612_v38, %v4509_v37  ;;  %v10649_v12 = vsub.f32 %v11799_v33, %v4785_v23  ;;  %v10673_v37 = vsub.f32 %v10387_v24, %v4793_v6  ;;  %v10676_v38 = vsub.f32 %v10442_v35, %v4795_v4 }
 0x83c   : > { %v4928_v40 = vsel %vm759_vm1, %v4860_v60, 0.0  ;;  %v4958_v46 = vsel %vm759_vm1, %v4870_v7, 0.0  ;;  %v4796_v24 = vmul.f32 %v4738_v62, %v8189_v27  ;;  %v4874_v19 = vmul.f32 %v10696_v30, %v10696_v30 }
 0x83d   : > { %v10622_v1 = vadd.f32 %v4613_v28, %v10296_v53  ;;  %v4861_v22 = vmul.f32 %v10649_v12, %v10649_v12  ;;  %v10681_v28 = vsub.f32 %v10479_v49, %v4797_v10  ;;  %v4869_v35 = vmul.f32 %v10673_v37, %v10673_v37 }
 0x83e   : > { %v4970_v48 = vsel %vm759_vm1, %v4874_v19, 0.0  ;;  %v10709_v25 = vpop.xlane.xlu2 %4923 }
 0x83f   : > { %v4763_v57 = vsel %vm759_vm1, %v10622_v1, 0.0  ;;  %4947 = vadd.xlane.f32.xlu2 %v4946_v43  ;;  %4935 = vadd.xlane.f32.xlu1 %v4934_v20  ;;  %v4931_v5 = vsel %vm759_vm1, %v4861_v22, 0.0  ;;  %v4871_v43 = vmul.f32 %v10676_v38, %v10676_v38  ;;  %v4873_v49 = vmul.f32 %v10681_v28, %v10681_v28 }
 0x840   : > { %v4510_v34 = vpop.f32.mrf.mxu2  ;;  %4764 = vadd.xlane.f32.xlu0 %v4763_v57  ;;  %v10693_v57 = vsub.f32 %v10461_v47, %v4796_v24  ;;  %v10707_v23 = vpop.xlane.xlu0 %4920 }
 0x841   : > { %v4511_v41 = vadd.f32 %v4510_v34, %v9550_v51  ;;  %v4614_v53 = vpop.f32.mrf.mxu3  ;;  %v4955_v34 = vsel %vm759_vm1, %v4869_v35, 0.0  ;;  %v4961_v20 = vsel %vm759_vm1, %v4871_v43, 0.0 }
 0x843   : > { %v4615_v13 = vadd.f32 %v4614_v53, %v4511_v41  ;;  %v4967_v41 = vsel %vm759_vm1, %v4873_v49, 0.0  ;;  %v4872_v53 = vmul.f32 %v10693_v57, %v10693_v57 }
 0x845   : > { %v10646_v51 = vadd.f32 %v4615_v13, %v11798_v54  ;;  %v4964_v47 = vsel %vm759_vm1, %v4872_v53, 0.0 }
 0x847   : > { %v4766_v26 = vsel %vm759_vm1, %v10646_v51, 0.0  ;;  %4950 = vadd.xlane.f32.xlu1 %v4949_v61 }
 0x848   : > { %4767 = vadd.xlane.f32.xlu2 %v4766_v26  ;;  %4929 = vadd.xlane.f32.xlu0 %v4928_v40 }
 0x84f   : > { %4959 = vadd.xlane.f32.xlu1 %v4958_v46 }
 0x850   : > { %4932 = vadd.xlane.f32.xlu2 %v4931_v5  ;;  %4953 = vadd.xlane.f32.xlu0 %v4952_v21 }
 0x857   : > { %4968 = vadd.xlane.f32.xlu1 %v4967_v41 }
 0x858   : > { %4956 = vadd.xlane.f32.xlu2 %v4955_v34  ;;  %4962 = vadd.xlane.f32.xlu0 %v4961_v20 }
 0x860   : > { %4965 = vadd.xlane.f32.xlu2 %v4964_v47  ;;  %4971 = vadd.xlane.f32.xlu0 %v4970_v48 }
 0x870   : > { %v4747_v13 = vpop.xlane.xlu0 %4746 }
 0x871   : > { %v4799_v60 = vmul.f32 %v4747_v13, %v8189_v27 }
 0x873   : > { %v10713_v52 = vsub.f32 %v10526_v8, %v4799_v60 }
 0x875   : > { %v4875_v42 = vmul.f32 %v10713_v52, %v10713_v52 }
 0x877   : > { %v4973_v54 = vsel %vm759_vm1, %v4875_v42, 0.0  ;;  %v11801_v42 = vld [vmem:[#allocation7_spill] sm:$0xff] }
 0x878   : > { %v4750_v33 = vpop.xlane.xlu2 %4749  ;;  %4974 = vadd.xlane.f32.xlu2 %v4973_v54 }
 0x879   : > { %v4800_v26 = vmul.f32 %v4750_v33, %v8189_v27 }
 0x87b   : > { %v10722_v40 = vsub.f32 %v10542_v45, %v4800_v26 }
 0x87d   : > { %v4876_v61 = vmul.f32 %v10722_v40, %v10722_v40 }
 0x87f   : > { %v4976_v8 = vsel %vm759_vm1, %v4876_v61, 0.0 }
 0x880   : > { %4977 = vadd.xlane.f32.xlu1 %v4976_v8 }
 0x888   : > { %v4753_v55 = vpop.xlane.xlu1 %4752 }
 0x889   : > { %v4801_v6 = vmul.f32 %v4753_v55, %v8189_v27 }
 0x88b   : > { %v10729_v4 = vsub.f32 %v10551_v29, %v4801_v6 }
 0x88d   : > { %v4877_v22 = vmul.f32 %v10729_v4, %v10729_v4 }
 0x88f   : > { %v4979_v10 = vsel %vm759_vm1, %v4877_v22, 0.0 }
 0x890   : > { %v4756_v16 = vpop.xlane.xlu0 %4755  ;;  %4980 = vadd.xlane.f32.xlu0 %v4979_v10 }
 0x891   : > { %v4802_v45 = vmul.f32 %v4756_v16, %v8189_v27 }
 0x893   : > { %v10736_v7 = vsub.f32 %v10563_v56, %v4802_v45 }
 0x895   : > { %v4878_v5 = vmul.f32 %v10736_v7, %v10736_v7 }
 0x897   : > { %v4982_v21 = vsel %vm759_vm1, %v4878_v5, 0.0 }
 0x898   : > { %4983 = vadd.xlane.f32.xlu2 %v4982_v21  ;;  %v4945_v29 = vpop.xlane.xlu0 %4944 }
 0x899   : > { %v5017_v62 = vmul.f32 %v4945_v29, %v8189_v27 }
 0x89b   : > { %v5055_v36 = vadd.f32 1e-05, %v5017_v62 }
 0x89d   : > { %6308 = vrsqrt.f32 %v5055_v36  ;;  %vm5279_vm6 = vweird.f32 %v5055_v36 }
 0x8a2   : > { %v4759_v46 = vpop.xlane.xlu2 %4758 }
 0x8a3   : > { %v4803_v24 = vmul.f32 %v4759_v46, %v8189_v27  ;;  %v6309_v35 = vpop.eup %6308 }
 0x8a4   : > { %v5274_v43 = vmul.f32 %v6309_v35, %v5055_v36  ;;  %vm5280_vm5 = vweird.f32 %v6309_v35 }
 0x8a5   : > { %v10744_v17 = vsub.f32 %v10582_v32, %v4803_v24  ;;  %v4787_v32 = vmul.f32 %v10503_v58, %v8189_v27  ;;  %vm5281_vm7 = vmor %vm5279_vm6, %vm5280_vm5 }
 0x8a6   : > { %v5275_v53 = vmul.f32 %v6309_v35, %v5274_v43 }
 0x8a7   : > { %v4879_v56 = vmul.f32 %v10744_v17, %v10744_v17  ;;  %v10759_v54 = vsub.f32 %v11801_v42, %v4787_v32 }
 0x8a8   : > { %v5276_v13 = vmul.f32 0.5, %v5275_v53 }
 0x8a9   : > { %v4985_v49 = vsel %vm759_vm1, %v4879_v56, 0.0  ;;  %v4863_v10 = vmul.f32 %v10759_v54, %v10759_v54 }
 0x8aa   : > { %4986 = vadd.xlane.f32.xlu1 %v4985_v49  ;;  %v4942_v34 = vpop.xlane.xlu2 %4941  ;;  %v4762_v41 = vpop.xlane.xlu1 %4761  ;;  %v5277_v58 = vsub.f32 1.5, %v5276_v13 }
 0x8ab   : > { %v5016_v20 = vmul.f32 %v4942_v34, %v8189_v27  ;;  %v4804_v19 = vmul.f32 %v4762_v41, %v8189_v27 }
 0x8ac   : > { %v5278_v5 = vmul.f32 %v6309_v35, %v5277_v58  ;;  %v5010_v58 = vmul.f32 %v10709_v25, %v8189_v27 }
 0x8ad   : > { %v5054_v47 = vadd.f32 1e-05, %v5016_v20  ;;  %v10754_v48 = vsub.f32 %v10597_v31, %v4804_v19 }
 0x8ae   : > { %v5282_v56 = vsel %vm5281_vm7, %v6309_v35, %v5278_v5 }
 0x8af   : > { %6310 = vrsqrt.f32 %v5054_v47  ;;  %v4880_v60 = vmul.f32 %v10754_v48, %v10754_v48  ;;  %vm5269_vm9 = vweird.f32 %v5054_v47  ;;  %v5473_v36 = vmul.f32 %v5282_v56, %v10566_v11 }
 0x8b1   : > { %v4988_v61 = vsel %vm759_vm1, %v4880_v60, 0.0  ;;  %v5535_v60 = vsel %vm759_vm1, %v5473_v36, 0.0 }
 0x8b2   : > { %v4948_v33 = vpop.xlane.xlu2 %4947  ;;  %4989 = vadd.xlane.f32.xlu0 %v4988_v61 }
 0x8b3   : > { %v4765_v26 = vpop.xlane.xlu0 %4764  ;;  %v5018_v8 = vmul.f32 %v4948_v33, %v8189_v27 }
 0x8b4   : > { %v4805_v55 = vmul.f32 %v4765_v26, %v8189_v27 }
 0x8b5   : > { %v6311_v31 = vpop.eup %6310  ;;  %v5056_v6 = vadd.f32 1e-05, %v5018_v8 }
 0x8b6   : > { %v10765_v22 = vsub.f32 %v10622_v1, %v4805_v55  ;;  %v5264_v16 = vmul.f32 %v6311_v31, %v5054_v47  ;;  %v4937_v1 = vsel %vm759_vm1, %v4863_v10, 0.0  ;;  %vm5270_vm8 = vweird.f32 %v6311_v31 }
 0x8b7   : > { %6312 = vrsqrt.f32 %v5056_v6  ;;  %vm5271_vm10 = vmor %vm5269_vm9, %vm5270_vm8  ;;  %vm5289_vm12 = vweird.f32 %v5056_v6  ;;  %v5009_v55 = vmul.f32 %v10707_v23, %v8189_v27  ;;  %v5048_v10 = vadd.f32 1e-05, %v5010_v58 }
 0x8b8   : > { %v4881_v45 = vmul.f32 %v10765_v22, %v10765_v22  ;;  %v5265_v21 = vmul.f32 %v6311_v31, %v5264_v16  ;;  %v5011_v16 = vmul.f32 %v10718_v2, %v8189_v27 }
 0x8b9   : > { %vm5209_vm3 = vweird.f32 %v5048_v10 }
 0x8ba   : > { %v4991_v29 = vsel %vm759_vm1, %v4881_v45, 0.0  ;;  %v5266_v62 = vmul.f32 0.5, %v5265_v21  ;;  %4938 = vadd.xlane.f32.xlu0 %v4937_v1  ;;  %v4936_v45 = vpop.xlane.xlu1 %4935 }
 0x8bb   : > { %v4768_v46 = vpop.xlane.xlu2 %4767  ;;  %4992 = vadd.xlane.f32.xlu2 %v4991_v29 }
 0x8bc   : > { %v4806_v24 = vmul.f32 %v4768_v46, %v8189_v27  ;;  %v5267_v43 = vsub.f32 1.5, %v5266_v62 }
 0x8bd   : > { %v6313_v49 = vpop.eup %6312 }
 0x8be   : > { %v10775_v34 = vsub.f32 %v10646_v51, %v4806_v24  ;;  %v5268_v20 = vmul.f32 %v6311_v31, %v5267_v43  ;;  %v5284_v41 = vmul.f32 %v6313_v49, %v5056_v6  ;;  %vm5290_vm11 = vweird.f32 %v6313_v49 }
 0x8bf   : > { %vm5291_vm13 = vmor %vm5289_vm12, %vm5290_vm11  ;;  %v10794_v6 = vadd.f32 1e-05, %v5011_v16 }
 0x8c0   : > { %11802 = vst [vmem:[#allocation86_spill] sm:$0xff] %v10775_v34  ;;  %v5272_v53 = vsel %vm5271_vm10, %v6311_v31, %v5268_v20  ;;  %v5285_v19 = vmul.f32 %v6313_v49, %v5284_v41  ;;  %v4882_v13 = vmul.f32 %v10775_v34, %v10775_v34  ;;  %v5047_v31 = vadd.f32 1e-05, %v5009_v55 }
 0x8c1   : > { %v5472_v32 = vmul.f32 %v5272_v53, %v10585_v14  ;;  %vm5219_vm6 = vweird.f32 %v10794_v6 }
 0x8c2   : > { %v5286_v35 = vmul.f32 0.5, %v5285_v19  ;;  %v4994_v51 = vsel %vm759_vm1, %v4882_v13, 0.0  ;;  %6314 = vrsqrt.f32 %v5047_v31  ;;  %v4951_v25 = vpop.xlane.xlu1 %4950  ;;  %vm5199_vm15 = vweird.f32 %v5047_v31 }
 0x8c3   : > { %v5534_v42 = vsel %vm759_vm1, %v5472_v32, 0.0  ;;  %4995 = vadd.xlane.f32.xlu1 %v4994_v51  ;;  %6316 = vrsqrt.f32 %v5048_v10  ;;  %v4933_v5 = vpop.xlane.xlu2 %4932  ;;  %v5019_v24 = vmul.f32 %v4951_v25, %v8189_v27 }
 0x8c4   : > { %v5536_v33 = vadd.f32 %v5535_v60, %v5534_v42  ;;  %v5287_v47 = vsub.f32 1.5, %v5286_v35  ;;  %6318 = vrsqrt.f32 %v10794_v6 }
 0x8c5   : > { %v10810_v32 = vadd.f32 1e-05, %v5019_v24 }
 0x8c6   : > { %v5288_v11 = vmul.f32 %v6313_v49, %v5287_v47 }
 0x8c7   : > { %6320 = vrsqrt.f32 %v10810_v32  ;;  %vm5299_vm11 = vweird.f32 %v10810_v32 }
 0x8c8   : > { %v5292_v26 = vsel %vm5291_vm13, %v6313_v49, %v5288_v11  ;;  %v6315_v21 = vpop.eup %6314  ;;  %v5014_v49 = vmul.f32 %v4936_v45, %v8189_v27 }
 0x8c9   : > { %v5474_v14 = vmul.f32 %v5292_v26, %v10600_v15  ;;  %v4930_v15 = vpop.xlane.xlu0 %4929  ;;  %v10797_v29 = vpop.eup %6316  ;;  %v5194_v23 = vmul.f32 %v6315_v21, %v5047_v31  ;;  %vm5200_vm14 = vweird.f32 %v6315_v21 }
 0x8ca   : > { %v10799_v62 = vpop.eup %6318  ;;  %v5204_v46 = vmul.f32 %v10797_v29, %v5048_v10  ;;  %v5012_v19 = vmul.f32 %v4930_v15, %v8189_v27  ;;  %v10813_v60 = vadd.f32 1e-05, %v5014_v49  ;;  %v4960_v51 = vpop.xlane.xlu1 %4959  ;;  %vm5210_vm0 = vweird.f32 %v10797_v29  ;;  %vm10833_vm2 = vmor %vm5199_vm15, %vm5200_vm14 }
 0x8cb   : > { %v5537_v61 = vsel %vm759_vm1, %v5474_v14, 0.0  ;;  %v5195_v2 = vmul.f32 %v6315_v21, %v5194_v23  ;;  %v5214_v1 = vmul.f32 %v10799_v62, %v10794_v6  ;;  %v4957_v20 = vpop.xlane.xlu2 %4956  ;;  %vm5220_vm4 = vweird.f32 %v10799_v62  ;;  %vm10847_vm5 = vmor %vm5209_vm3, %vm5210_vm0 }
 0x8cc   : > { %v10786_v8 = vadd.f32 %v5537_v61, %v5536_v33  ;;  %v5205_v43 = vmul.f32 %v10797_v29, %v5204_v46  ;;  %v5021_v13 = vmul.f32 %v4957_v20, %v8189_v27  ;;  %v10817_v11 = vadd.f32 1e-05, %v5012_v19  ;;  %vm5221_vm7 = vmor %vm5219_vm6, %vm5220_vm4 }
 0x8cd   : > { %v5196_v36 = vmul.f32 0.5, %v5195_v2  ;;  %v5215_v53 = vmul.f32 %v10799_v62, %v5214_v1  ;;  %6322 = vrsqrt.f32 %v10813_v60  ;;  %v5022_v61 = vmul.f32 %v4960_v51, %v8189_v27  ;;  %v10827_v15 = vpop.eup %6320 }
 0x8ce   : > { %v5206_v35 = vmul.f32 0.5, %v5205_v43  ;;  %v10820_v26 = vadd.f32 1e-05, %v5021_v13  ;;  %v5294_v10 = vmul.f32 %v10827_v15, %v10810_v32  ;;  %v5013_v20 = vmul.f32 %v4933_v5, %v8189_v27 }
 0x8cf   : > { %v5197_v33 = vsub.f32 1.5, %v5196_v36  ;;  %v5216_v47 = vmul.f32 0.5, %v5215_v53  ;;  %v10831_v25 = vadd.f32 1e-05, %v5022_v61  ;;  %vm5229_vm8 = vweird.f32 %v10817_v11 }
 0x8d0   : > { %v5207_v14 = vsub.f32 1.5, %v5206_v35  ;;  %vm5300_vm9 = vweird.f32 %v10827_v15  ;;  %vm5319_vm4 = vweird.f32 %v10820_v26  ;;  %vm5249_vm6 = vweird.f32 %v10813_v60 }
 0x8d1   : > { %v4954_v56 = vpop.xlane.xlu0 %4953  ;;  %v5198_v58 = vmul.f32 %v6315_v21, %v5197_v33  ;;  %v5217_v16 = vsub.f32 1.5, %v5216_v47  ;;  %v10877_v47 = vadd.f32 1e-05, %v5013_v20  ;;  %vm10937_vm13 = vmor %vm5299_vm11, %vm5300_vm9  ;;  %vm5329_vm15 = vweird.f32 %v10831_v25 }
 0x8d2   : > { %v5020_v41 = vmul.f32 %v4954_v56, %v8189_v27  ;;  %v5208_v23 = vmul.f32 %v10797_v29, %v5207_v14  ;;  %v4969_v5 = vpop.xlane.xlu1 %4968 }
 0x8d3   : > { %v4966_v45 = vpop.xlane.xlu2 %4965  ;;  %v10838_v1 = vpop.eup %6322  ;;  %v5202_v24 = vsel %vm10833_vm2, %v6315_v21, %v5198_v58  ;;  %v5218_v31 = vmul.f32 %v10799_v62, %v5217_v16  ;;  %vm5239_vm9 = vweird.f32 %v10877_v47 }
 0x8d4   : > { %v10815_v42 = vadd.f32 1e-05, %v5020_v41  ;;  %v5024_v56 = vmul.f32 %v4966_v45, %v8189_v27  ;;  %v5212_v21 = vsel %vm10847_vm5, %v10797_v29, %v5208_v23  ;;  %v5465_v53 = vmul.f32 %v5202_v24, %v10468_v59 }
 0x8d5   : > { %v5244_v19 = vmul.f32 %v10838_v1, %v10813_v60  ;;  %v5222_v35 = vsel %vm5221_vm7, %v10799_v62, %v5218_v31  ;;  %v5466_v6 = vmul.f32 %v5212_v21, %v10482_v50  ;;  %v5295_v59 = vmul.f32 %v10827_v15, %v5294_v10 }
 0x8d6   : > { %6324 = vrsqrt.f32 %v10815_v42  ;;  %v10871_v51 = vadd.f32 1e-05, %v5024_v56  ;;  %v5025_v62 = vmul.f32 %v4969_v5, %v8189_v27  ;;  %v5467_v58 = vmul.f32 %v5222_v35, %v10495_v9 }
 0x8d7   : > { %6326 = vrsqrt.f32 %v10817_v11  ;;  %v5245_v16 = vmul.f32 %v10838_v1, %v5244_v19  ;;  %v5516_v46 = vsel %vm759_vm1, %v5466_v6, 0.0  ;;  %v5296_v24 = vmul.f32 0.5, %v5295_v59 }
 0x8d8   : > { %6328 = vrsqrt.f32 %v10820_v26  ;;  %v10896_v56 = vadd.f32 1e-05, %v5025_v62  ;;  %v5518_v49 = vsel %vm759_vm1, %v5467_v58, 0.0  ;;  %vm5309_vm12 = vweird.f32 %v10815_v42 }
 0x8d9   : > { %v4963_v55 = vpop.xlane.xlu0 %4962  ;;  %6330 = vrsqrt.f32 %v10831_v25  ;;  %v5246_v10 = vmul.f32 0.5, %v5245_v16  ;;  %v5297_v6 = vsub.f32 1.5, %v5296_v24  ;;  %vm5250_vm2 = vweird.f32 %v10838_v1 }
 0x8da   : > { %v5023_v2 = vmul.f32 %v4963_v55, %v8189_v27  ;;  %v5514_v55 = vsel %vm759_vm1, %v5465_v53, 0.0 }
 0x8db   : > { %v5515_v9 = vadd.f32 %v5514_v55, %v10611_v0  ;;  %v5247_v62 = vsub.f32 1.5, %v5246_v10 }
 0x8dc   : > { %v10845_v43 = vpop.eup %6324  ;;  %v10866_v13 = vadd.f32 1e-05, %v5023_v2 }
 0x8dd   : > { %v10854_v41 = vpop.eup %6326  ;;  %v5304_v29 = vmul.f32 %v10845_v43, %v10815_v42  ;;  %v5517_v53 = vadd.f32 %v5516_v46, %v5515_v9  ;;  %v5298_v46 = vmul.f32 %v10827_v15, %v5297_v6  ;;  %v10928_v10 = vmul.f32 %v10838_v1, %v5247_v62 }
 0x8de   : > { %v10861_v36 = vpop.eup %6328  ;;  %v5224_v33 = vmul.f32 %v10854_v41, %v10817_v11  ;;  %6332 = vrsqrt.f32 %v10866_v13  ;;  %vm5230_vm10 = vweird.f32 %v10854_v41  ;;  %vm5310_vm14 = vweird.f32 %v10845_v43 }
 0x8df   : > { %v5314_v61 = vmul.f32 %v10861_v36, %v10820_v26  ;;  %v10886_v50 = vpop.eup %6330  ;;  %v5305_v45 = vmul.f32 %v10845_v43, %v5304_v29  ;;  %6334 = vrsqrt.f32 %v10871_v51  ;;  %v5302_v62 = vsel %vm10937_vm13, %v10827_v15, %v5298_v46  ;;  %vm10962_vm3 = vmor %vm5309_vm12, %vm5310_vm14 }
 0x8e0   : > { %v5225_v2 = vmul.f32 %v10854_v41, %v5224_v33  ;;  %6336 = vrsqrt.f32 %v10877_v47  ;;  %v5324_v20 = vmul.f32 %v10886_v50, %v10831_v25  ;;  %v10907_v33 = vadd.f32 %v5518_v49, %v5517_v53  ;;  %vm10974_vm5 = vmor %vm5229_vm8, %vm5230_vm10 }
 0x8e1   : > { %v4972_v14 = vpop.xlane.xlu0 %4971  ;;  %v5315_v31 = vmul.f32 %v10861_v36, %v5314_v61  ;;  %v5306_v19 = vmul.f32 0.5, %v5305_v45  ;;  %6338 = vrsqrt.f32 %v10896_v56  ;;  %vm5320_vm0 = vweird.f32 %v10861_v36 }
 0x8e2   : > { %v5026_v23 = vmul.f32 %v4972_v14, %v8189_v27  ;;  %v5226_v29 = vmul.f32 0.5, %v5225_v2  ;;  %v5325_v55 = vmul.f32 %v10886_v50, %v5324_v20  ;;  %v5475_v42 = vmul.f32 %v5302_v62, %v10631_v3  ;;  %vm10990_vm7 = vmor %vm5319_vm4, %vm5320_vm0 }
 0x8e3   : > { %v5316_v59 = vmul.f32 0.5, %v5315_v31  ;;  %v5307_v16 = vsub.f32 1.5, %v5306_v19  ;;  %vm5330_vm8 = vweird.f32 %v10886_v50  ;;  %vm5339_vm12 = vweird.f32 %v10866_v13 }
 0x8e4   : > { %v10901_v5 = vadd.f32 1e-05, %v5026_v23  ;;  %v10903_v35 = vpop.eup %6332  ;;  %v5227_v23 = vsub.f32 1.5, %v5226_v29  ;;  %v5326_v20 = vmul.f32 0.5, %v5325_v55  ;;  %v5539_v62 = vsel %vm759_vm1, %v5475_v42, 0.0  ;;  %vm11020_vm11 = vmor %vm5329_vm15, %vm5330_vm8 }
 0x8e5   : > { %v10905_v0 = vpop.eup %6334  ;;  %v5334_v45 = vmul.f32 %v10903_v35, %v10866_v13  ;;  %v5317_v49 = vsub.f32 1.5, %v5316_v59  ;;  %v5308_v32 = vmul.f32 %v10845_v43, %v5307_v16  ;;  %vm5340_vm13 = vweird.f32 %v10903_v35  ;;  %vm11047_vm15 = vmor %vm5249_vm6, %vm5250_vm2 }
 0x8e6   : > { %v10910_v61 = vpop.eup %6336  ;;  %6340 = vrsqrt.f32 %v10901_v5  ;;  %v5344_v2 = vmul.f32 %v10905_v0, %v10871_v51  ;;  %v5327_v46 = vsub.f32 1.5, %v5326_v20  ;;  %vm5350_vm14 = vweird.f32 %v10905_v0  ;;  %vm11063_vm0 = vmor %vm5339_vm12, %vm5340_vm13 }
 0x8e7   : > { %v5234_v31 = vmul.f32 %v10910_v61, %v10877_v47  ;;  %v10933_v19 = vpop.eup %6338  ;;  %v5335_v6 = vmul.f32 %v10903_v35, %v5334_v45  ;;  %v5318_v45 = vmul.f32 %v10861_v36, %v5317_v49  ;;  %vm5240_vm10 = vweird.f32 %v10910_v61 }
 0x8e8   : > { %v5345_v55 = vmul.f32 %v10905_v0, %v5344_v2  ;;  %v5354_v2 = vmul.f32 %v10933_v19, %v10896_v56  ;;  %vm5349_vm2 = vweird.f32 %v10871_v51  ;;  %vm11086_vm4 = vmor %vm5239_vm9, %vm5240_vm10  ;;  %vm5359_vm6 = vweird.f32 %v10896_v56 }
 0x8e9   : > { %v5235_v16 = vmul.f32 %v10910_v61, %v5234_v31  ;;  %v5336_v26 = vmul.f32 0.5, %v5335_v6  ;;  %v5322_v29 = vsel %vm10990_vm7, %v10861_v36, %v5318_v45  ;;  %vm5369_vm9 = vweird.f32 %v10901_v5 }
 0x8ea   : > { %v5346_v3 = vmul.f32 0.5, %v5345_v55 }
 0x8eb   : > { %v4975_v21 = vpop.xlane.xlu2 %4974  ;;  %v5337_v55 = vsub.f32 1.5, %v5336_v26 }
 0x8ec   : > { %v5027_v58 = vmul.f32 %v4975_v21, %v8189_v27  ;;  %v10953_v34 = vpop.eup %6340  ;;  %v5347_v45 = vsub.f32 1.5, %v5346_v3 }
 0x8ed   : > { %v5364_v20 = vmul.f32 %v10953_v34, %v10901_v5  ;;  %v5338_v25 = vmul.f32 %v10903_v35, %v5337_v55  ;;  %vm5370_vm7 = vweird.f32 %v10953_v34 }
 0x8ee   : > { %v10931_v21 = vadd.f32 1e-05, %v5027_v58  ;;  %vm11135_vm10 = vmor %vm5369_vm9, %vm5370_vm7 }
 0x8f0   : > { %6342 = vrsqrt.f32 %v10931_v21  ;;  %vm5379_vm12 = vweird.f32 %v10931_v21 }
 0x8f3   : > { %v4978_v14 = vpop.xlane.xlu1 %4977 }
 0x8f4   : > { %v5028_v24 = vmul.f32 %v4978_v14, %v8189_v27  ;;  %v5228_v14 = vmul.f32 %v10854_v41, %v5227_v23 }
 0x8f6   : > { %v10951_v58 = vadd.f32 1e-05, %v5028_v24  ;;  %v5232_v49 = vsel %vm10974_vm5, %v10854_v41, %v5228_v14  ;;  %v5355_v14 = vmul.f32 %v10933_v19, %v5354_v2  ;;  %vm5360_vm5 = vweird.f32 %v10933_v19 }
 0x8f7   : > { %v5468_v15 = vmul.f32 %v5232_v49, %v10625_v18  ;;  %vm11120_vm8 = vmor %vm5359_vm6, %vm5360_vm5 }
 0x8f8   : > { %6344 = vrsqrt.f32 %v10951_v58 }
 0x903   : > { %v4981_v9 = vpop.xlane.xlu0 %4980 }
 0x904   : > { %v5029_v59 = vmul.f32 %v4981_v9, %v8189_v27  ;;  %v5312_v9 = vsel %vm10962_vm3, %v10845_v43, %v5308_v32  ;;  %vm11077_vm3 = vmor %vm5349_vm2, %vm5350_vm14 }
 0x905   : > { %v5476_v6 = vmul.f32 %v5312_v9, %v10652_v63  ;;  %v5477_v63 = vmul.f32 %v5322_v29, %v10673_v37  ;;  %v5540_v37 = vadd.f32 %v5539_v62, %v10786_v8  ;;  %v5356_v9 = vmul.f32 0.5, %v5355_v14 }
 0x906   : > { %v10982_v31 = vadd.f32 1e-05, %v5029_v59  ;;  %v5328_v59 = vmul.f32 %v10886_v50, %v5327_v46  ;;  %v5348_v8 = vmul.f32 %v10905_v0, %v5347_v45  ;;  %v5520_v62 = vsel %vm759_vm1, %v5468_v15, 0.0 }
 0x907   : > { %v5541_v42 = vsel %vm759_vm1, %v5476_v6, 0.0  ;;  %v5543_v49 = vsel %vm759_vm1, %v5477_v63, 0.0  ;;  %v5252_v6 = vsel %vm11047_vm15, %v10838_v1, %v10928_v10  ;;  %v5342_v63 = vsel %vm11063_vm0, %v10903_v35, %v5338_v25 }
 0x908   : > { %6346 = vrsqrt.f32 %v10982_v31  ;;  %v5332_v18 = vsel %vm11020_vm11, %v10886_v50, %v5328_v59  ;;  %v5357_v59 = vsub.f32 1.5, %v5356_v9  ;;  %v5352_v35 = vsel %vm11077_vm3, %v10905_v0, %v5348_v8 }
 0x909   : > { %v5479_v0 = vmul.f32 %v5342_v63, %v10676_v38  ;;  %vm5389_vm15 = vweird.f32 %v10951_v58  ;;  %vm5399_vm3 = vweird.f32 %v10982_v31 }
 0x90b   : > { %v4984_v53 = vpop.xlane.xlu2 %4983 }
 0x90c   : > { %v5030_v23 = vmul.f32 %v4984_v53, %v8189_v27  ;;  %v5236_v53 = vmul.f32 0.5, %v5235_v16  ;;  %v11012_v16 = vpop.eup %6342 }
 0x90d   : > { %v11026_v24 = vpop.eup %6344  ;;  %v5374_v26 = vmul.f32 %v11012_v16, %v10931_v21  ;;  %vm5380_vm11 = vweird.f32 %v11012_v16 }
 0x90e   : > { %v11000_v32 = vadd.f32 1e-05, %v5030_v23  ;;  %v5365_v23 = vmul.f32 %v10953_v34, %v5364_v20  ;;  %v5237_v46 = vsub.f32 1.5, %v5236_v53  ;;  %v11041_v3 = vpop.eup %6346  ;;  %v5478_v53 = vmul.f32 %v5332_v18, %v10658_v44  ;;  %vm11174_vm14 = vmor %vm5379_vm12, %vm5380_vm11 }
 0x90f   : > { %v5384_v29 = vmul.f32 %v11026_v24, %v10951_v58  ;;  %v5375_v45 = vmul.f32 %v11012_v16, %v5374_v26  ;;  %v5394_v15 = vmul.f32 %v11041_v3, %v10982_v31  ;;  %v5358_v18 = vmul.f32 %v10933_v19, %v5357_v59 }
 0x910   : > { %6348 = vrsqrt.f32 %v11000_v32  ;;  %v5366_v11 = vmul.f32 0.5, %v5365_v23  ;;  %v5238_v20 = vmul.f32 %v10910_v61, %v5237_v46  ;;  %vm5390_vm13 = vweird.f32 %v11026_v24 }
 0x911   : > { %v5376_v26 = vmul.f32 0.5, %v5375_v45  ;;  %v5395_v8 = vmul.f32 %v11041_v3, %v5394_v15  ;;  %vm11186_vm0 = vmor %vm5389_vm15, %vm5390_vm13  ;;  %vm5400_vm2 = vweird.f32 %v11041_v3  ;;  %vm5409_vm6 = vweird.f32 %v11000_v32 }
 0x912   : > { %v5367_v23 = vsub.f32 1.5, %v5366_v11  ;;  %v5242_v47 = vsel %vm11086_vm4, %v10910_v61, %v5238_v20  ;;  %v5480_v61 = vmul.f32 %v5352_v35, %v10693_v57  ;;  %vm11205_vm5 = vmor %vm5399_vm3, %vm5400_vm2 }
 0x913   : > { %v5469_v20 = vmul.f32 %v5242_v47, %v10649_v12  ;;  %v5396_v45 = vmul.f32 0.5, %v5395_v8 }
 0x916   : > { %v11069_v14 = vpop.eup %6348 }
 0x917   : > { %v5404_v9 = vmul.f32 %v11069_v14, %v11000_v32  ;;  %vm5410_vm4 = vweird.f32 %v11069_v14 }
 0x919   : > { %v5405_v12 = vmul.f32 %v11069_v14, %v5404_v9  ;;  %v11165_v9 = vmul.f32 %v5252_v6, %v10605_v39 }
 0x91d   : > { %v4987_v43 = vpop.xlane.xlu1 %4986 }
 0x91e   : > { %v5031_v41 = vmul.f32 %v4987_v43, %v8189_v27  ;;  %v5542_v43 = vadd.f32 %v5541_v42, %v5540_v37  ;;  %v5545_v37 = vsel %vm759_vm1, %v5478_v53, 0.0  ;;  %v5385_v42 = vmul.f32 %v11026_v24, %v5384_v29 }
 0x91f   : > { %v5547_v29 = vsel %vm759_vm1, %v5479_v0, 0.0  ;;  %v5406_v0 = vmul.f32 0.5, %v5405_v12 }
 0x920   : > { %v11010_v36 = vadd.f32 1e-05, %v5031_v41  ;;  %v5544_v55 = vadd.f32 %v5543_v49, %v5542_v43  ;;  %v5368_v49 = vmul.f32 %v10953_v34, %v5367_v23  ;;  %v5386_v57 = vmul.f32 0.5, %v5385_v42 }
 0x921   : > { %v5407_v39 = vsub.f32 1.5, %v5406_v0 }
 0x922   : > { %6350 = vrsqrt.f32 %v11010_v36  ;;  %v5546_v25 = vadd.f32 %v5545_v37, %v5544_v55  ;;  %v5377_v55 = vsub.f32 1.5, %v5376_v26  ;;  %v5387_v15 = vsub.f32 1.5, %v5386_v57 }
 0x923   : > { %v5522_v37 = vsel %vm759_vm1, %v5469_v20, 0.0  ;;  %vm5419_vm9 = vweird.f32 %v11010_v36 }
 0x924   : > { %v5548_v59 = vadd.f32 %v5547_v29, %v5546_v25  ;;  %v5521_v25 = vadd.f32 %v5520_v62, %v10907_v33 }
 0x925   : > { %v4990_v41 = vpop.xlane.xlu0 %4989 }
 0x926   : > { %v5032_v44 = vmul.f32 %v4990_v41, %v8189_v27  ;;  %v5362_v41 = vsel %vm11120_vm8, %v10933_v19, %v5358_v18  ;;  %v5372_v19 = vsel %vm11135_vm10, %v10953_v34, %v5368_v49  ;;  %v5378_v18 = vmul.f32 %v11012_v16, %v5377_v55  ;;  %vm11217_vm8 = vmor %vm5409_vm6, %vm5410_vm4 }
 0x927   : > { %v5481_v23 = vmul.f32 %v5362_v41, %v10681_v28  ;;  %v5482_v34 = vmul.f32 %v5372_v19, %v10696_v30  ;;  %v5388_v49 = vmul.f32 %v11026_v24, %v5387_v15  ;;  %v11172_v8 = vadd.f32 %v5522_v37, %v5521_v25 }
 0x928   : > { %v11095_v46 = vadd.f32 1e-05, %v5032_v44  ;;  %v11097_v2 = vpop.eup %6350  ;;  %v5549_v44 = vsel %vm759_vm1, %v5480_v61, 0.0  ;;  %v5397_v61 = vsub.f32 1.5, %v5396_v45  ;;  %v5382_v21 = vsel %vm11174_vm14, %v11012_v16, %v5378_v18 }
 0x929   : > { %v5414_v38 = vmul.f32 %v11097_v2, %v11010_v36  ;;  %v5550_v42 = vadd.f32 %v5549_v44, %v5548_v59  ;;  %v5551_v30 = vsel %vm759_vm1, %v5481_v23, 0.0  ;;  %v5553_v6 = vsel %vm759_vm1, %v5482_v34, 0.0 }
 0x92a   : > { %6352 = vrsqrt.f32 %v11095_v46  ;;  %v5398_v43 = vmul.f32 %v11041_v3, %v5397_v61  ;;  %v5392_v16 = vsel %vm11186_vm0, %v11026_v24, %v5388_v49  ;;  %v5483_v12 = vmul.f32 %v5382_v21, %v10713_v52 }
 0x92b   : > { %v5415_v51 = vmul.f32 %v11097_v2, %v5414_v38  ;;  %v5552_v50 = vadd.f32 %v5551_v30, %v5550_v42  ;;  %vm5420_vm7 = vweird.f32 %v11097_v2  ;;  %v5484_v52 = vmul.f32 %v5392_v16, %v10722_v40 }
 0x92c   : > { %v5402_v24 = vsel %vm11205_vm5, %v11041_v3, %v5398_v43  ;;  %vm11229_vm11 = vmor %vm5419_vm9, %vm5420_vm7  ;;  %vm5429_vm13 = vweird.f32 %v11095_v46  ;;  %v11841_v43 = vld [vmem:[#allocation86_spill] sm:$0xff]  ;;  %vm5579_vm9 = vcmask 517120  }
 0x92d   : > { %v4939_v53 = vpop.xlane.xlu0 %4938  ;;  %v5416_v26 = vmul.f32 0.5, %v5415_v51  ;;  %v5554_v5 = vadd.f32 %v5553_v6, %v5552_v50  ;;  %v5555_v51 = vsel %vm759_vm1, %v5483_v12, 0.0  ;;  %v5485_v40 = vmul.f32 %v5402_v24, %v10729_v4 }
 0x92e   : > { %v4993_v11 = vpop.xlane.xlu2 %4992  ;;  %v5015_v60 = vmul.f32 %v4939_v53, %v8189_v27  ;;  %v5408_v53 = vmul.f32 %v11069_v14, %v5407_v39  ;;  %v5557_v37 = vsel %vm759_vm1, %v5484_v52, 0.0 }
 0x92f   : > { %v5033_v56 = vmul.f32 %v4993_v11, %v8189_v27  ;;  %v5417_v57 = vsub.f32 1.5, %v5416_v26  ;;  %v5556_v34 = vadd.f32 %v5555_v51, %v5554_v5  ;;  %v5559_v18 = vsel %vm759_vm1, %v5485_v40, 0.0 }
 0x930   : > { %v11141_v13 = vpop.eup %6352  ;;  %v11147_v35 = vadd.f32 1e-05, %v5015_v60  ;;  %v5412_v19 = vsel %vm11217_vm8, %v11069_v14, %v5408_v53  ;;  %vm5577_vm8 = vcmask 1040384  }
 0x931   : > { %v11139_v63 = vadd.f32 1e-05, %v5033_v56  ;;  %v5424_v47 = vmul.f32 %v11141_v13, %v11095_v46  ;;  %v5418_v59 = vmul.f32 %v11097_v2, %v5417_v57  ;;  %vm5430_vm10 = vweird.f32 %v11141_v13 }
 0x932   : > { %v5486_v4 = vmul.f32 %v5412_v19, %v10736_v7  ;;  %vm11241_vm15 = vmor %vm5429_vm13, %vm5430_vm10  ;;  %vm5259_vm0 = vweird.f32 %v11147_v35  ;;  %v5524_v7 = vsel %vm759_vm1, %v11165_v9, 0.0  ;;  %v5558_v25 = vadd.f32 %v5557_v37, %v5556_v34 }
 0x933   : > { %6354 = vrsqrt.f32 %v11139_v63  ;;  %v5425_v28 = vmul.f32 %v11141_v13, %v5424_v47  ;;  %v5422_v36 = vsel %vm11229_vm11, %v11097_v2, %v5418_v59  ;;  %vm5439_vm2 = vweird.f32 %v11139_v63 }
 0x934   : > { %6356 = vrsqrt.f32 %v11147_v35  ;;  %v5561_v26 = vsel %vm759_vm1, %v5486_v4, 0.0  ;;  %v5525_v9 = vadd.f32 %v5524_v7, %v11172_v8  ;;  %v5560_v49 = vadd.f32 %v5559_v18, %v5558_v25 }
 0x935   : > { %v5426_v1 = vmul.f32 0.5, %v5425_v28  ;;  %v5487_v28 = vmul.f32 %v5422_v36, %v10744_v17 }
 0x936   : > { %v4996_v33 = vpop.xlane.xlu1 %4995 }
 0x937   : > { %v5034_v62 = vmul.f32 %v4996_v33, %v8189_v27  ;;  %v5427_v29 = vsub.f32 1.5, %v5426_v1  ;;  %v5563_v38 = vsel %vm759_vm1, %v5487_v28, 0.0  ;;  %v5562_v33 = vadd.f32 %v5561_v26, %v5560_v49 }
 0x939   : > { %v11178_v10 = vpop.eup %6354  ;;  %v11199_v58 = vadd.f32 1e-05, %v5034_v62  ;;  %v5428_v3 = vmul.f32 %v11141_v13, %v5427_v29  ;;  %v5564_v21 = vadd.f32 %v5563_v38, %v5562_v33 }
 0x93a   : > { %v6357_v11 = vpop.eup %6356  ;;  %v5434_v56 = vmul.f32 %v11178_v10, %v11139_v63  ;;  %vm5440_vm14 = vweird.f32 %v11178_v10 }
 0x93b   : > { %v5254_v27 = vmul.f32 %v6357_v11, %v11147_v35  ;;  %6358 = vrsqrt.f32 %v11199_v58  ;;  %vm5260_vm12 = vweird.f32 %v6357_v11  ;;  %v5432_v46 = vsel %vm11241_vm15, %v11141_v13, %v5428_v3  ;;  %vm5441_vm4 = vmor %vm5439_vm2, %vm5440_vm14 }
 0x93c   : > { %v5435_v41 = vmul.f32 %v11178_v10, %v5434_v56  ;;  %vm5261_vm3 = vmor %vm5259_vm0, %vm5260_vm12  ;;  %v5488_v30 = vmul.f32 %v5432_v46, %v10754_v48  ;;  %vm5449_vm6 = vweird.f32 %v11199_v58 }
 0x93d   : > { %v5255_v31 = vmul.f32 %v6357_v11, %v5254_v27 }
 0x93e   : > { %v5436_v44 = vmul.f32 0.5, %v5435_v41 }
 0x93f   : > { %v5256_v32 = vmul.f32 0.5, %v5255_v31 }
 0x940   : > { %v5437_v45 = vsub.f32 1.5, %v5436_v44 }
 0x941   : > { %v5257_v15 = vsub.f32 1.5, %v5256_v32  ;;  %v6359_v47 = vpop.eup %6358 }
 0x942   : > { %v5438_v14 = vmul.f32 %v11178_v10, %v5437_v45  ;;  %v5444_v2 = vmul.f32 %v6359_v47, %v11199_v58  ;;  %vm5450_vm5 = vweird.f32 %v6359_v47 }
 0x943   : > { %v5258_v0 = vmul.f32 %v6357_v11, %v5257_v15  ;;  %vm5451_vm7 = vmor %vm5449_vm6, %vm5450_vm5 }
 0x944   : > { %v5442_v61 = vsel %vm5441_vm4, %v11178_v10, %v5438_v14  ;;  %v5445_v63 = vmul.f32 %v6359_v47, %v5444_v2 }
 0x945   : > { %v5262_v35 = vsel %vm5261_vm3, %v6357_v11, %v5258_v0  ;;  %v5489_v39 = vmul.f32 %v5442_v61, %v10765_v22 }
 0x946   : > { %v5471_v13 = vmul.f32 %v5262_v35, %v10759_v54  ;;  %v5446_v17 = vmul.f32 0.5, %v5445_v63  ;;  %v5565_v54 = vsel %vm759_vm1, %v5488_v30, 0.0 }
 0x947   : > { %v5567_v48 = vsel %vm759_vm1, %v5489_v39, 0.0  ;;  %v5566_v8 = vadd.f32 %v5565_v54, %v5564_v21 }
 0x948   : > { %v5526_v50 = vsel %vm759_vm1, %v5471_v13, 0.0  ;;  %v5447_v10 = vsub.f32 1.5, %v5446_v17 }
 0x949   : > { %v5527_v1 = vadd.f32 %v5526_v50, %v5525_v9  ;;  %v5568_v57 = vadd.f32 %v5567_v48, %v5566_v8 }
 0x94a   : > { %v5448_v62 = vmul.f32 %v6359_v47, %v5447_v10 }
 0x94b   : > { %v5528_v6 = vrot.slane %v5527_v1, 4 }
 0x94c   : > { %v5452_v20 = vsel %vm5451_vm7, %v6359_v47, %v5448_v62 }
 0x94d   : > { %v5529_v11 = vadd.f32 %v5528_v6, %v5527_v1  ;;  %v5490_v22 = vmul.f32 %v5452_v20, %v11841_v43 }
 0x94f   : > { %v5569_v56 = vsel %vm759_vm1, %v5490_v22, 0.0  ;;  %v5530_v16 = vrot.slane %v5529_v11, 2 }
 0x950   : > { %v5570_v27 = vadd.f32 %v5569_v56, %v5568_v57 }
 0x951   : > { %v5531_v29 = vadd.f32 %v5530_v16, %v5529_v11 }
 0x952   : > { %v5571_v53 = vrot.slane %v5570_v27, 4 }
 0x953   : > { %v5532_v60 = vrot.slane %v5531_v29, 1 }
 0x954   : > { %v5572_v41 = vadd.f32 %v5571_v53, %v5570_v27 }
 0x955   : > { %v5533_v24 = vadd.f32 %v5532_v60, %v5531_v29 }
 0x956   : > { %v5573_v12 = vrot.slane %v5572_v41, 2 }
 0x958   : > { %v5574_v58 = vadd.f32 %v5573_v12, %v5572_v41 }
 0x95a   : > { %v5575_v31 = vrot.slane %v5574_v58, 1 }
 0x95c   : > { %v5576_v59 = vadd.f32 %v5575_v31, %v5574_v58 }
 0x95e   : > { %v5578_v44 = vsel %vm5577_vm8, %v5533_v24, %v5576_v59 }
 0x95f   : > { %5580 = vst.msk [vmem:[%s352_s29] sm:$0x3] %vm5579_vm9, %v5578_v44 }
 0x960 PF: > { %s19_s30 = sadd.s32 1, %s6369_s30  }
 0x961   : > { %p16_p5 = scmp.ge.s32.totalorder %s19_s30, 4  }
 0x963   :  { %18 = sbr.rel (!%p16_p5) target bundleno = 1 (0x1), region = 89 }

</bundles_post_ra>
